<compile_context>
chip_gen: v7x
topology: tpu7x:2x2x1
jax: 0.10.0
libtpu: 0.0.40
codegen_flags: <defaults>
</compile_context>

<pallas_src>
import functools

import jax
import jax.numpy as jnp
from jax.experimental import pallas as pl
from jax.experimental.pallas import tpu as pltpu


# -----------------------------------------------------------------------------
# Kernel 1: fused conv stack (conv1+bn+relu+pool5, conv2+bn+relu+pool2,
#           conv3+bn+relu+pool2), one batch element per grid step.
# -----------------------------------------------------------------------------
def _conv_stack_kernel(xcol_ref, w1_ref, w2_ref, w3_ref, sc_ref, sh_ref, o_ref,
                       *, H, W, C):
    W1, W2, W3 = W // 5, W // 10, W // 20
    sc = sc_ref[...]                       # (3, C) folded BN scale
    sh = sh_ref[...]                       # (3, C) folded BN shift (+conv bias)

    def halo_pad(y, h, w):
        # zero-pad (h, w, C) -> (h+2, w+2, C) entirely in VMEM (no HBM pass).
        zc = jnp.zeros((h, 1, C), y.dtype)
        y = jnp.concatenate([zc, y, zc], axis=1)
        zr = jnp.zeros((1, w + 2, C), y.dtype)
        return jnp.concatenate([zr, y, zr], axis=0)

    def conv3x3(yp, w_ref, h, w):
        # 9 shifted-slice matmuls; bf16 MXU operands, f32 accumulation.
        acc = jnp.zeros((h * w, C), jnp.float32)
        for kh in range(3):
            for kw in range(3):
                patch = yp[kh:kh + h, kw:kw + w, :].reshape(h * w, C)
                acc = acc + jnp.dot(patch, w_ref[kh * 3 + kw],
                                    preferred_element_type=jnp.float32)
        return acc

    # ---- conv1 (Cin=1): single im2col matmul + BN + ReLU + MaxPool2d((1,5))
    y = jnp.dot(xcol_ref[0], w1_ref[...], preferred_element_type=jnp.float32)
    y = jnp.maximum(y * sc[0:1] + sh[0:1], 0.0)            # (H*W, C)
    y = jnp.max(y.reshape(H, W1, 5, C), axis=2)            # (H, W1, C)
    y = y.astype(jnp.bfloat16)                             # cast once (not per tap)

    # ---- conv2 + BN + ReLU + MaxPool2d((1,2))
    y = conv3x3(halo_pad(y, H, W1), w2_ref, H, W1)
    y = jnp.maximum(y * sc[1:2] + sh[1:2], 0.0)            # (H*W1, C) f32
    y = jnp.max(y.reshape(H, W2, 2, C), axis=2)            # (H, W2, C)
    y = y.astype(jnp.bfloat16)

    # ---- conv3 + BN + ReLU + MaxPool2d((1,2))
    y = conv3x3(halo_pad(y, H, W2), w3_ref, H, W2)
    y = jnp.maximum(y * sc[2:3] + sh[2:3], 0.0)            # (H*W2, C) f32
    y = jnp.max(y.reshape(H, W3, 2, C), axis=2)            # (H, W3, C)

    # Emit GRU-ready features (lane-dense, width W3*C=256) in (w, c) order;
    # torch's permute(0,2,1,3)+reshape order (c, w) is absorbed into a row
    # permutation of the GRU layer-0 input weight (see prepare_params).
    o_ref[0] = jnp.concatenate([y[:, w, :] for w in range(W3)], axis=-1)


def conv_stack(xcol, w1c, w2, w3, bn_scale, bn_shift, *, H, W):
    B = xcol.shape[0]
    C = w1c.shape[1]
    W3 = W // 20
    kernel = functools.partial(_conv_stack_kernel, H=H, W=W, C=C)
    return pl.pallas_call(
        kernel,
        out_shape=jax.ShapeDtypeStruct((B, H, W3 * C), jnp.float32),
        grid_spec=pltpu.PrefetchScalarGridSpec(
            num_scalar_prefetch=0,
            grid=(B,),
            in_specs=[
                pl.BlockSpec((1, H * W, 16), lambda b: (b, 0, 0)),
                pl.BlockSpec((16, C), lambda b: (0, 0)),
                pl.BlockSpec((9, C, C), lambda b: (0, 0, 0)),
                pl.BlockSpec((9, C, C), lambda b: (0, 0, 0)),
                pl.BlockSpec((3, C), lambda b: (0, 0)),
                pl.BlockSpec((3, C), lambda b: (0, 0)),
            ],
            out_specs=pl.BlockSpec((1, H, W3 * C), lambda b: (b, 0, 0)),
        ),
        compiler_params=pltpu.CompilerParams(dimension_semantics=("parallel",)),
    )(xcol, w1c, w2, w3, bn_scale, bn_shift)


# -----------------------------------------------------------------------------
# Kernel 2: 2-layer bidirectional GRU (both directions fused, packed gates)
#           + Linear(64->16) -> Linear(16->6) -> sigmoid head.
# Packed layouts (built in prepare_params):
#   wih: (Din, 6*HID)  columns [r_f z_f n_f | r_b z_b n_b]
#   whh: (2*HID, 6*HID) block diagonal (fwd rows -> fwd cols, bwd -> bwd)
#   bih/bhh: (1, 6*HID)
# -----------------------------------------------------------------------------
def _bigru_head_kernel(x_ref,
                       wih1_ref, whh1_ref, bih1_ref, bhh1_ref,
                       wih2_ref, whh2_ref, bih2_ref, bhh2_ref,
                       lw1_ref, lb1_ref, lw2_ref, lb2_ref,
                       out_ref, *, T, B, HID):
    DH = 2 * HID      # packed hidden width [fwd | bwd] = 64
    G = 3 * HID       # per-direction gate width = 96

    def gru_cell(gi, gh, h_prev):
        r = jax.nn.sigmoid(gi[:, 0:HID] + gh[:, 0:HID])
        z = jax.nn.sigmoid(gi[:, HID:2 * HID] + gh[:, HID:2 * HID])
        n = jnp.tanh(gi[:, 2 * HID:3 * HID] + r * gh[:, 2 * HID:3 * HID])
        return (1.0 - z) * n + z * h_prev

    def run_layer(x_flat, wih_ref, whh_ref, bih_ref, bhh_ref):
        # x_flat: (B*T, Din), rows ordered b*T + t.
        whh = whh_ref[...]
        bhh = bhh_ref[...]
        # Input projection for the whole sequence, all batches and both
        # directions at once, hoisted out of the recurrence: (B*T, 6*HID).
        gi = jnp.dot(x_flat, wih_ref[...],
                     preferred_element_type=jnp.float32) + bih_ref[...]
        # Recurrence: one (B, 64) @ (64, 192) block-diagonal dot per step.
        # The backward direction reads its inputs time-reversed in place.
        h = jnp.zeros((B, DH), jnp.float32)
        hs = []
        for s in range(T):
            gh = jnp.dot(h, whh, preferred_element_type=jnp.float32) + bhh
            gi_f = jnp.concatenate(
                [gi[b * T + s:b * T + s + 1, 0:G] for b in range(B)], axis=0)
            gi_b = jnp.concatenate(
                [gi[b * T + (T - 1 - s):b * T + (T - s), G:2 * G]
                 for b in range(B)], axis=0)
            hf = gru_cell(gi_f, gh[:, 0:G], h[:, 0:HID])
            hb = gru_cell(gi_b, gh[:, G:2 * G], h[:, HID:DH])
            h = jnp.concatenate([hf, hb], axis=-1)          # (B, 64)
            hs.append(h)
        # Re-align the backward direction: output row (b, t) = [h_f(t)|h_b(t)]
        # where the backward state for original time t was produced at step
        # T-1-t.  Rows are emitted in order b*T + t.
        rows = []
        for b in range(B):
            for t in range(T):
                rows.append(jnp.concatenate(
                    [hs[t][b:b + 1, 0:HID],
                     hs[T - 1 - t][b:b + 1, HID:DH]], axis=-1))
        return jnp.concatenate(rows, axis=0)                # (B*T, 64)

    # Flatten (B, T, D) -> (B*T, D) with row order b*T + t.
    x_flat = jnp.concatenate([x_ref[b] for b in range(B)], axis=0)
    f1 = run_layer(x_flat, wih1_ref, whh1_ref, bih1_ref, bhh1_ref)
    # TODO(synk): inter-layer GRU dropout (p=0.5) and the Dropout modules are
    # identity in eval mode.
    f2 = run_layer(f1, wih2_ref, whh2_ref, bih2_ref, bhh2_ref)

    # Fused head, batched over all B*T rows:
    # Linear(64->16) -> Linear(16->6) -> sigmoid.
    hmid = jnp.dot(f2, lw1_ref[...],
                   preferred_element_type=jnp.float32) + lb1_ref[...]
    logit = jnp.dot(hmid, lw2_ref[...],
                    preferred_element_type=jnp.float32) + lb2_ref[...]
    sig = jax.nn.sigmoid(logit)                             # (B*T, 6)
    for b in range(B):
        out_ref[b] = sig[b * T:(b + 1) * T]                 # (T, 6)


def bigru_head(x_btd, q):
    B, T, D = x_btd.shape
    HID = 32

    def full(shape):
        return pl.BlockSpec(shape, lambda i, s=shape: (0,) * len(s))

    kernel = functools.partial(_bigru_head_kernel, T=T, B=B, HID=HID)
    return pl.pallas_call(
        kernel,
        out_shape=jax.ShapeDtypeStruct((B, T, 6), jnp.float32),
        grid_spec=pltpu.PrefetchScalarGridSpec(
            num_scalar_prefetch=0,
            grid=(1,),
            in_specs=[
                full((B, T, D)),
                full((D, 6 * HID)), full((2 * HID, 6 * HID)),
                full((1, 6 * HID)), full((1, 6 * HID)),
                full((2 * HID, 6 * HID)), full((2 * HID, 6 * HID)),
                full((1, 6 * HID)), full((1, 6 * HID)),
                full((2 * HID, 16)), full((1, 16)),
                full((16, 6)), full((1, 6)),
            ],
            out_specs=full((B, T, 6)),
        ),
        compiler_params=pltpu.CompilerParams(dimension_semantics=("arbitrary",)),
    )(x_btd, q['wih1'], q['whh1'], q['bih1'], q['bhh1'],
      q['wih2'], q['whh2'], q['bih2'], q['bhh2'],
      q['lw1'], q['lb1'], q['lw2'], q['lb2'])


# -----------------------------------------------------------------------------
# Full forward pass (matches Net.forward in eval mode).
# -----------------------------------------------------------------------------
def net_forward(x_nchw, q):
    B, _, H, W = x_nchw.shape
    # Tiny wrapper-side im2col for conv1 (Cin=1): (B, H*W, 9) -> pad K to 16.
    # This keeps the first conv as a single dense MXU matmul instead of 9
    # skinny K=1 taps.
    x = x_nchw[:, 0].astype(jnp.float32)                    # (B, H, W)
    xp = jnp.pad(x, ((0, 0), (1, 1), (1, 1)))
    cols = [xp[:, kh:kh + H, kw:kw + W] for kh in range(3) for kw in range(3)]
    xcol = jnp.stack(cols, axis=-1).reshape(B, H * W, 9)    # row = h*W + w
    xcol = jnp.pad(xcol, ((0, 0), (0, 0), (0, 7)))          # (B, H*W, 16)

    feat = conv_stack(xcol, q['w1c'], q['w2'], q['w3'],
                      q['bn_scale'], q['bn_shift'], H=H, W=W)   # (B, T, 256)
    return bigru_head(feat, q)                              # (B, T, 6)


# -----------------------------------------------------------------------------
# Parameter construction: torch-like parameters + packing for the kernels.
# -----------------------------------------------------------------------------
def init_params(key):
    ks = jax.random.split(key, 16)

    def u(k, shape, fan_in):
        bound = 1.0 / (fan_in ** 0.5)
        return jax.random.uniform(k, shape, jnp.float32, -bound, bound)

    p = {}
    p['w1'] = u(ks[0], (3, 3, 1, 128), 9)          # HWIO
    p['b1'] = u(ks[1], (128,), 9)
    p['w2'] = u(ks[2], (3, 3, 128, 128), 9 * 128)
    p['b2'] = u(ks[3], (128,), 9 * 128)
    p['w3'] = u(ks[4], (3, 3, 128, 128), 9 * 128)
    p['b3'] = u(ks[5], (128,), 9 * 128)
    for i in (1, 2, 3):                            # BatchNorm defaults
        p[f'g{i}'] = jnp.ones((128,), jnp.float32)
        p[f'be{i}'] = jnp.zeros((128,), jnp.float32)
        p[f'm{i}'] = jnp.zeros((128,), jnp.float32)
        p[f'v{i}'] = jnp.ones((128,), jnp.float32)

    def gru_dir_params(k, din, hid):
        k1, k2, k3, k4 = jax.random.split(k, 4)
        return (u(k1, (3, din, hid), hid),         # w_ih (gates r,z,n)
                u(k2, (3, hid, hid), hid),         # w_hh
                u(k3, (3, hid), hid),              # b_ih
                u(k4, (3, hid), hid))              # b_hh

    p['gru_l0_f'] = gru_dir_params(ks[6], 256, 32)
    p['gru_l0_b'] = gru_dir_params(ks[7], 256, 32)
    p['gru_l1_f'] = gru_dir_params(ks[8], 64, 32)
    p['gru_l1_b'] = gru_dir_params(ks[9], 64, 32)

    p['lw1'] = u(ks[10], (64, 16), 64)
    p['lb1'] = u(ks[11], (1, 16), 64)
    p['lw2'] = u(ks[12], (16, 6), 16)
    p['lb2'] = u(ks[13], (1, 6), 16)
    return p


def pack_bigru(p_f, p_b, feat_perm=None):
    wih_f, whh_f, bih_f, bhh_f = p_f
    wih_b, whh_b, bih_b, bhh_b = p_b
    hid = wih_f.shape[2]

    def gates(w3):                                  # (3, A, hid) -> (A, 3*hid)
        return jnp.concatenate([w3[0], w3[1], w3[2]], axis=-1)

    wih = jnp.concatenate([gates(wih_f), gates(wih_b)], axis=-1)   # (D, 6*hid)
    if feat_perm is not None:
        wih = wih[feat_perm]
    whh = jnp.zeros((2 * hid, 6 * hid), jnp.float32)
    whh = whh.at[0:hid, 0:3 * hid].set(gates(whh_f))
    whh = whh.at[hid:2 * hid, 3 * hid:6 * hid].set(gates(whh_b))
    bih = jnp.concatenate([bih_f.reshape(-1), bih_b.reshape(-1)])[None, :]
    bhh = jnp.concatenate([bhh_f.reshape(-1), bhh_b.reshape(-1)])[None, :]
    return wih, whh, bih, bhh


def prepare_params(p, eps=1e-5):
    q = {}
    # conv1 im2col weight: (kh*3+kw, Cout), K padded 9 -> 16.
    q['w1c'] = jnp.pad(p['w1'].reshape(9, 128), ((0, 7), (0, 0)))
    # conv2/conv3 weights as (9, Cin, Cout) bf16 for the MXU taps.
    q['w2'] = p['w2'].reshape(9, 128, 128).astype(jnp.bfloat16)
    q['w3'] = p['w3'].reshape(9, 128, 128).astype(jnp.bfloat16)
    # Fold conv bias + BatchNorm (running stats) into per-channel scale/shift.
    scs, shs = [], []
    for i, b in ((1, p['b1']), (2, p['b2']), (3, p['b3'])):
        scale = p[f'g{i}'] / jnp.sqrt(p[f'v{i}'] + eps)
        shift = p[f'be{i}'] + (b - p[f'm{i}']) * scale
        scs.append(scale)
        shs.append(shift)
    q['bn_scale'] = jnp.stack(scs)                  # (3, 128)
    q['bn_shift'] = jnp.stack(shs)                  # (3, 128)
    # The conv kernel emits feature j = (w, c) with j = w*128 + c; torch's
    # permute(0,2,1,3)+reshape order is k = c*2 + w.  Permute the GRU layer-0
    # input-weight rows so the math matches torch exactly.
    j = jnp.arange(256)
    perm = (j % 128) * 2 + (j // 128)
    q['wih1'], q['whh1'], q['bih1'], q['bhh1'] = pack_bigru(
        p['gru_l0_f'], p['gru_l0_b'], perm)
    q['wih2'], q['whh2'], q['bih2'], q['bhh2'] = pack_bigru(
        p['gru_l1_f'], p['gru_l1_b'], None)
    q['lw1'], q['lb1'], q['lw2'], q['lb2'] = (
        p['lw1'], p['lb1'], p['lw2'], p['lb2'])
    return q


if __name__ == "__main__":
    key = jax.random.PRNGKey(0)
    k_x, k_p = jax.random.split(key)

    # NCHW input like the PyTorch module.  W=40 so the (1,5),(1,2),(1,2)
    # max-pools leave W'=2 and the flattened GRU feature size is 128*2 = 256.
    B, H, W = 2, 8, 40
    x = jax.random.normal(k_x, (B, 1, H, W), jnp.float32)

    params = init_params(k_p)
    q = prepare_params(params)

    y = jax.jit(net_forward)(x, q)
    y = jax.block_until_ready(y)

    assert y.shape == (B, H, 6), y.shape
    assert bool(jnp.all(jnp.isfinite(y)))
    assert bool(jnp.all((y >= 0.0) & (y <= 1.0)))   # sigmoid output range
    print("KERNEL_OK")
</pallas_src>

<mosaic_0001>
module attributes {stable_mosaic.version = 11 : i64} {
  func.func @_conv_stack_kernel(%arg0: i32, %arg1: memref<1x320x16xf32, #tpu.memory_space<vmem>>, %arg2: memref<16x128xf32, #tpu.memory_space<vmem>>, %arg3: memref<9x128x128xbf16, #tpu.memory_space<vmem>>, %arg4: memref<9x128x128xbf16, #tpu.memory_space<vmem>>, %arg5: memref<3x128xf32, #tpu.memory_space<vmem>>, %arg6: memref<3x128xf32, #tpu.memory_space<vmem>>, %arg7: memref<1x8x256xf32, #tpu.memory_space<vmem>>) attributes {dimension_semantics = [#tpu.dimension_semantics<parallel>], iteration_bounds = array<i64: 2>, scalar_prefetch = 0 : i64, scratch_operands = 0 : i64, tpu.core_type = #tpu.core_type<tc>, window_params = [{transform_indices = @transform_0, window_bounds = array<i64: 1, 320, 16>}, {pipeline_mode = #tpu.pipeline_mode<synchronous>, transform_indices = @transform_1, window_bounds = array<i64: 16, 128>}, {pipeline_mode = #tpu.pipeline_mode<synchronous>, transform_indices = @transform_2, window_bounds = array<i64: 9, 128, 128>}, {pipeline_mode = #tpu.pipeline_mode<synchronous>, transform_indices = @transform_3, window_bounds = array<i64: 9, 128, 128>}, {pipeline_mode = #tpu.pipeline_mode<synchronous>, transform_indices = @transform_4, window_bounds = array<i64: 3, 128>}, {pipeline_mode = #tpu.pipeline_mode<synchronous>, transform_indices = @transform_5, window_bounds = array<i64: 3, 128>}, {transform_indices = @transform_6, window_bounds = array<i64: 1, 8, 256>}]} {
    %c0 = arith.constant 0 : index
    %c0_0 = arith.constant 0 : index
    %0 = vector.load %arg5[%c0, %c0_0] : memref<3x128xf32, #tpu.memory_space<vmem>>, vector<3x128xf32>
    %c0_1 = arith.constant 0 : index
    %c0_2 = arith.constant 0 : index
    %1 = vector.load %arg6[%c0_1, %c0_2] : memref<3x128xf32, #tpu.memory_space<vmem>>, vector<3x128xf32>
    %c0_3 = arith.constant 0 : index
    %c0_4 = arith.constant 0 : index
    %c0_5 = arith.constant 0 : index
    %2 = vector.load %arg1[%c0_3, %c0_4, %c0_5] : memref<1x320x16xf32, #tpu.memory_space<vmem>>, vector<1x320x16xf32>
    %3 = vector.shape_cast %2 : vector<1x320x16xf32> to vector<320x16xf32>
    %c0_6 = arith.constant 0 : index
    %c0_7 = arith.constant 0 : index
    %4 = vector.load %arg2[%c0_6, %c0_7] : memref<16x128xf32, #tpu.memory_space<vmem>>, vector<16x128xf32>
    %cst = arith.constant dense<0.000000e+00> : vector<320x128xf32>
    %5 = tpu.matmul %3, %4, %cst {dimension_numbers = #tpu.dot_dimension_numbers<[1], [0], [0], [1], [0, 0, 1, 1], [], []>} : vector<320x16xf32>, vector<16x128xf32>, vector<320x128xf32> -> vector<320x128xf32>
    %6 = vector.extract_strided_slice %0 {offsets = [0, 0], sizes = [1, 128], strides = [1, 1]} : vector<3x128xf32> to vector<1x128xf32>
    %7 = vector.broadcast %6 : vector<1x128xf32> to vector<320x128xf32>
    %8 = arith.mulf %5, %7 : vector<320x128xf32>
    %9 = vector.extract_strided_slice %1 {offsets = [0, 0], sizes = [1, 128], strides = [1, 1]} : vector<3x128xf32> to vector<1x128xf32>
    %10 = vector.broadcast %9 : vector<1x128xf32> to vector<320x128xf32>
    %11 = arith.addf %8, %10 : vector<320x128xf32>
    %cst_8 = arith.constant 0.000000e+00 : f32
    %12 = vector.broadcast %cst_8 : f32 to vector<320x128xf32>
    %13 = arith.maximumf %11, %12 : vector<320x128xf32>
    %14 = vector.shape_cast %13 : vector<320x128xf32> to vector<8x8x5x128xf32>
    %cst_9 = arith.constant dense<0xFF800000> : vector<8x8x128xf32>
    %15 = vector.multi_reduction <maximumf>, %14, %cst_9 [2] : vector<8x8x5x128xf32> to vector<8x8x128xf32>
    %16 = arith.truncf %15 : vector<8x8x128xf32> to vector<8x8x128xbf16>
    %cst_10 = arith.constant 0.000000e+00 : bf16
    %17 = vector.broadcast %cst_10 : bf16 to vector<8x1x128xbf16>
    %18 = tpu.concatenate %17, %16, %17 in 1 : vector<8x1x128xbf16>, vector<8x8x128xbf16>, vector<8x1x128xbf16> -> vector<8x10x128xbf16>
    %cst_11 = arith.constant 0.000000e+00 : bf16
    %19 = vector.broadcast %cst_11 : bf16 to vector<1x10x128xbf16>
    %20 = tpu.concatenate %19, %18, %19 in 0 : vector<1x10x128xbf16>, vector<8x10x128xbf16>, vector<1x10x128xbf16> -> vector<10x10x128xbf16>
    %cst_12 = arith.constant 0.000000e+00 : f32
    %21 = vector.broadcast %cst_12 : f32 to vector<64x128xf32>
    %22 = vector.extract_strided_slice %20 {offsets = [0, 0, 0], sizes = [8, 8, 128], strides = [1, 1, 1]} : vector<10x10x128xbf16> to vector<8x8x128xbf16>
    %23 = vector.shape_cast %22 : vector<8x8x128xbf16> to vector<64x128xbf16>
    %c0_13 = arith.constant 0 : index
    %c0_14 = arith.constant 0 : index
    %c0_15 = arith.constant 0 : index
    %24 = vector.load %arg3[%c0_13, %c0_14, %c0_15] : memref<9x128x128xbf16, #tpu.memory_space<vmem>>, vector<1x128x128xbf16>
    %25 = vector.shape_cast %24 : vector<1x128x128xbf16> to vector<128x128xbf16>
    %cst_16 = arith.constant dense<0.000000e+00> : vector<64x128xf32>
    %26 = tpu.matmul %23, %25, %cst_16 {dimension_numbers = #tpu.dot_dimension_numbers<[1], [0], [0], [1], [0, 0, 1, 1], [], []>} : vector<64x128xbf16>, vector<128x128xbf16>, vector<64x128xf32> -> vector<64x128xf32>
    %27 = arith.addf %21, %26 : vector<64x128xf32>
    %28 = vector.extract_strided_slice %20 {offsets = [0, 1, 0], sizes = [8, 8, 128], strides = [1, 1, 1]} : vector<10x10x128xbf16> to vector<8x8x128xbf16>
    %29 = vector.shape_cast %28 : vector<8x8x128xbf16> to vector<64x128xbf16>
    %c1 = arith.constant 1 : index
    %c0_17 = arith.constant 0 : index
    %c0_18 = arith.constant 0 : index
    %30 = vector.load %arg3[%c1, %c0_17, %c0_18] : memref<9x128x128xbf16, #tpu.memory_space<vmem>>, vector<1x128x128xbf16>
    %31 = vector.shape_cast %30 : vector<1x128x128xbf16> to vector<128x128xbf16>
    %cst_19 = arith.constant dense<0.000000e+00> : vector<64x128xf32>
    %32 = tpu.matmul %29, %31, %cst_19 {dimension_numbers = #tpu.dot_dimension_numbers<[1], [0], [0], [1], [0, 0, 1, 1], [], []>} : vector<64x128xbf16>, vector<128x128xbf16>, vector<64x128xf32> -> vector<64x128xf32>
    %33 = arith.addf %27, %32 : vector<64x128xf32>
    %34 = vector.extract_strided_slice %20 {offsets = [0, 2, 0], sizes = [8, 8, 128], strides = [1, 1, 1]} : vector<10x10x128xbf16> to vector<8x8x128xbf16>
    %35 = vector.shape_cast %34 : vector<8x8x128xbf16> to vector<64x128xbf16>
    %c2 = arith.constant 2 : index
    %c0_20 = arith.constant 0 : index
    %c0_21 = arith.constant 0 : index
    %36 = vector.load %arg3[%c2, %c0_20, %c0_21] : memref<9x128x128xbf16, #tpu.memory_space<vmem>>, vector<1x128x128xbf16>
    %37 = vector.shape_cast %36 : vector<1x128x128xbf16> to vector<128x128xbf16>
    %cst_22 = arith.constant dense<0.000000e+00> : vector<64x128xf32>
    %38 = tpu.matmul %35, %37, %cst_22 {dimension_numbers = #tpu.dot_dimension_numbers<[1], [0], [0], [1], [0, 0, 1, 1], [], []>} : vector<64x128xbf16>, vector<128x128xbf16>, vector<64x128xf32> -> vector<64x128xf32>
    %39 = arith.addf %33, %38 : vector<64x128xf32>
    %40 = vector.extract_strided_slice %20 {offsets = [1, 0, 0], sizes = [8, 8, 128], strides = [1, 1, 1]} : vector<10x10x128xbf16> to vector<8x8x128xbf16>
    %41 = vector.shape_cast %40 : vector<8x8x128xbf16> to vector<64x128xbf16>
    %c3 = arith.constant 3 : index
    %c0_23 = arith.constant 0 : index
    %c0_24 = arith.constant 0 : index
    %42 = vector.load %arg3[%c3, %c0_23, %c0_24] : memref<9x128x128xbf16, #tpu.memory_space<vmem>>, vector<1x128x128xbf16>
    %43 = vector.shape_cast %42 : vector<1x128x128xbf16> to vector<128x128xbf16>
    %cst_25 = arith.constant dense<0.000000e+00> : vector<64x128xf32>
    %44 = tpu.matmul %41, %43, %cst_25 {dimension_numbers = #tpu.dot_dimension_numbers<[1], [0], [0], [1], [0, 0, 1, 1], [], []>} : vector<64x128xbf16>, vector<128x128xbf16>, vector<64x128xf32> -> vector<64x128xf32>
    %45 = arith.addf %39, %44 : vector<64x128xf32>
    %46 = vector.extract_strided_slice %20 {offsets = [1, 1, 0], sizes = [8, 8, 128], strides = [1, 1, 1]} : vector<10x10x128xbf16> to vector<8x8x128xbf16>
    %47 = vector.shape_cast %46 : vector<8x8x128xbf16> to vector<64x128xbf16>
    %c4 = arith.constant 4 : index
    %c0_26 = arith.constant 0 : index
    %c0_27 = arith.constant 0 : index
    %48 = vector.load %arg3[%c4, %c0_26, %c0_27] : memref<9x128x128xbf16, #tpu.memory_space<vmem>>, vector<1x128x128xbf16>
    %49 = vector.shape_cast %48 : vector<1x128x128xbf16> to vector<128x128xbf16>
    %cst_28 = arith.constant dense<0.000000e+00> : vector<64x128xf32>
    %50 = tpu.matmul %47, %49, %cst_28 {dimension_numbers = #tpu.dot_dimension_numbers<[1], [0], [0], [1], [0, 0, 1, 1], [], []>} : vector<64x128xbf16>, vector<128x128xbf16>, vector<64x128xf32> -> vector<64x128xf32>
    %51 = arith.addf %45, %50 : vector<64x128xf32>
    %52 = vector.extract_strided_slice %20 {offsets = [1, 2, 0], sizes = [8, 8, 128], strides = [1, 1, 1]} : vector<10x10x128xbf16> to vector<8x8x128xbf16>
    %53 = vector.shape_cast %52 : vector<8x8x128xbf16> to vector<64x128xbf16>
    %c5 = arith.constant 5 : index
    %c0_29 = arith.constant 0 : index
    %c0_30 = arith.constant 0 : index
    %54 = vector.load %arg3[%c5, %c0_29, %c0_30] : memref<9x128x128xbf16, #tpu.memory_space<vmem>>, vector<1x128x128xbf16>
    %55 = vector.shape_cast %54 : vector<1x128x128xbf16> to vector<128x128xbf16>
    %cst_31 = arith.constant dense<0.000000e+00> : vector<64x128xf32>
    %56 = tpu.matmul %53, %55, %cst_31 {dimension_numbers = #tpu.dot_dimension_numbers<[1], [0], [0], [1], [0, 0, 1, 1], [], []>} : vector<64x128xbf16>, vector<128x128xbf16>, vector<64x128xf32> -> vector<64x128xf32>
    %57 = arith.addf %51, %56 : vector<64x128xf32>
    %58 = vector.extract_strided_slice %20 {offsets = [2, 0, 0], sizes = [8, 8, 128], strides = [1, 1, 1]} : vector<10x10x128xbf16> to vector<8x8x128xbf16>
    %59 = vector.shape_cast %58 : vector<8x8x128xbf16> to vector<64x128xbf16>
    %c6 = arith.constant 6 : index
    %c0_32 = arith.constant 0 : index
    %c0_33 = arith.constant 0 : index
    %60 = vector.load %arg3[%c6, %c0_32, %c0_33] : memref<9x128x128xbf16, #tpu.memory_space<vmem>>, vector<1x128x128xbf16>
    %61 = vector.shape_cast %60 : vector<1x128x128xbf16> to vector<128x128xbf16>
    %cst_34 = arith.constant dense<0.000000e+00> : vector<64x128xf32>
    %62 = tpu.matmul %59, %61, %cst_34 {dimension_numbers = #tpu.dot_dimension_numbers<[1], [0], [0], [1], [0, 0, 1, 1], [], []>} : vector<64x128xbf16>, vector<128x128xbf16>, vector<64x128xf32> -> vector<64x128xf32>
    %63 = arith.addf %57, %62 : vector<64x128xf32>
    %64 = vector.extract_strided_slice %20 {offsets = [2, 1, 0], sizes = [8, 8, 128], strides = [1, 1, 1]} : vector<10x10x128xbf16> to vector<8x8x128xbf16>
    %65 = vector.shape_cast %64 : vector<8x8x128xbf16> to vector<64x128xbf16>
    %c7 = arith.constant 7 : index
    %c0_35 = arith.constant 0 : index
    %c0_36 = arith.constant 0 : index
    %66 = vector.load %arg3[%c7, %c0_35, %c0_36] : memref<9x128x128xbf16, #tpu.memory_space<vmem>>, vector<1x128x128xbf16>
    %67 = vector.shape_cast %66 : vector<1x128x128xbf16> to vector<128x128xbf16>
    %cst_37 = arith.constant dense<0.000000e+00> : vector<64x128xf32>
    %68 = tpu.matmul %65, %67, %cst_37 {dimension_numbers = #tpu.dot_dimension_numbers<[1], [0], [0], [1], [0, 0, 1, 1], [], []>} : vector<64x128xbf16>, vector<128x128xbf16>, vector<64x128xf32> -> vector<64x128xf32>
    %69 = arith.addf %63, %68 : vector<64x128xf32>
    %70 = vector.extract_strided_slice %20 {offsets = [2, 2, 0], sizes = [8, 8, 128], strides = [1, 1, 1]} : vector<10x10x128xbf16> to vector<8x8x128xbf16>
    %71 = vector.shape_cast %70 : vector<8x8x128xbf16> to vector<64x128xbf16>
    %c8 = arith.constant 8 : index
    %c0_38 = arith.constant 0 : index
    %c0_39 = arith.constant 0 : index
    %72 = vector.load %arg3[%c8, %c0_38, %c0_39] : memref<9x128x128xbf16, #tpu.memory_space<vmem>>, vector<1x128x128xbf16>
    %73 = vector.shape_cast %72 : vector<1x128x128xbf16> to vector<128x128xbf16>
    %cst_40 = arith.constant dense<0.000000e+00> : vector<64x128xf32>
    %74 = tpu.matmul %71, %73, %cst_40 {dimension_numbers = #tpu.dot_dimension_numbers<[1], [0], [0], [1], [0, 0, 1, 1], [], []>} : vector<64x128xbf16>, vector<128x128xbf16>, vector<64x128xf32> -> vector<64x128xf32>
    %75 = arith.addf %69, %74 : vector<64x128xf32>
    %76 = vector.extract_strided_slice %0 {offsets = [1, 0], sizes = [1, 128], strides = [1, 1]} : vector<3x128xf32> to vector<1x128xf32>
    %77 = vector.broadcast %76 : vector<1x128xf32> to vector<64x128xf32>
    %78 = arith.mulf %75, %77 : vector<64x128xf32>
    %79 = vector.extract_strided_slice %1 {offsets = [1, 0], sizes = [1, 128], strides = [1, 1]} : vector<3x128xf32> to vector<1x128xf32>
    %80 = vector.broadcast %79 : vector<1x128xf32> to vector<64x128xf32>
    %81 = arith.addf %78, %80 : vector<64x128xf32>
    %cst_41 = arith.constant 0.000000e+00 : f32
    %82 = vector.broadcast %cst_41 : f32 to vector<64x128xf32>
    %83 = arith.maximumf %81, %82 : vector<64x128xf32>
    %84 = vector.shape_cast %83 : vector<64x128xf32> to vector<8x4x2x128xf32>
    %cst_42 = arith.constant dense<0xFF800000> : vector<8x4x128xf32>
    %85 = vector.multi_reduction <maximumf>, %84, %cst_42 [2] : vector<8x4x2x128xf32> to vector<8x4x128xf32>
    %86 = arith.truncf %85 : vector<8x4x128xf32> to vector<8x4x128xbf16>
    %cst_43 = arith.constant 0.000000e+00 : bf16
    %87 = vector.broadcast %cst_43 : bf16 to vector<8x1x128xbf16>
    %88 = tpu.concatenate %87, %86, %87 in 1 : vector<8x1x128xbf16>, vector<8x4x128xbf16>, vector<8x1x128xbf16> -> vector<8x6x128xbf16>
    %cst_44 = arith.constant 0.000000e+00 : bf16
    %89 = vector.broadcast %cst_44 : bf16 to vector<1x6x128xbf16>
    %90 = tpu.concatenate %89, %88, %89 in 0 : vector<1x6x128xbf16>, vector<8x6x128xbf16>, vector<1x6x128xbf16> -> vector<10x6x128xbf16>
    %cst_45 = arith.constant 0.000000e+00 : f32
    %91 = vector.broadcast %cst_45 : f32 to vector<32x128xf32>
    %92 = vector.extract_strided_slice %90 {offsets = [0, 0, 0], sizes = [8, 4, 128], strides = [1, 1, 1]} : vector<10x6x128xbf16> to vector<8x4x128xbf16>
    %93 = vector.shape_cast %92 : vector<8x4x128xbf16> to vector<32x128xbf16>
    %c0_46 = arith.constant 0 : index
    %c0_47 = arith.constant 0 : index
    %c0_48 = arith.constant 0 : index
    %94 = vector.load %arg4[%c0_46, %c0_47, %c0_48] : memref<9x128x128xbf16, #tpu.memory_space<vmem>>, vector<1x128x128xbf16>
    %95 = vector.shape_cast %94 : vector<1x128x128xbf16> to vector<128x128xbf16>
    %cst_49 = arith.constant dense<0.000000e+00> : vector<32x128xf32>
    %96 = tpu.matmul %93, %95, %cst_49 {dimension_numbers = #tpu.dot_dimension_numbers<[1], [0], [0], [1], [0, 0, 1, 1], [], []>} : vector<32x128xbf16>, vector<128x128xbf16>, vector<32x128xf32> -> vector<32x128xf32>
    %97 = arith.addf %91, %96 : vector<32x128xf32>
    %98 = vector.extract_strided_slice %90 {offsets = [0, 1, 0], sizes = [8, 4, 128], strides = [1, 1, 1]} : vector<10x6x128xbf16> to vector<8x4x128xbf16>
    %99 = vector.shape_cast %98 : vector<8x4x128xbf16> to vector<32x128xbf16>
    %c1_50 = arith.constant 1 : index
    %c0_51 = arith.constant 0 : index
    %c0_52 = arith.constant 0 : index
    %100 = vector.load %arg4[%c1_50, %c0_51, %c0_52] : memref<9x128x128xbf16, #tpu.memory_space<vmem>>, vector<1x128x128xbf16>
    %101 = vector.shape_cast %100 : vector<1x128x128xbf16> to vector<128x128xbf16>
    %cst_53 = arith.constant dense<0.000000e+00> : vector<32x128xf32>
    %102 = tpu.matmul %99, %101, %cst_53 {dimension_numbers = #tpu.dot_dimension_numbers<[1], [0], [0], [1], [0, 0, 1, 1], [], []>} : vector<32x128xbf16>, vector<128x128xbf16>, vector<32x128xf32> -> vector<32x128xf32>
    %103 = arith.addf %97, %102 : vector<32x128xf32>
    %104 = vector.extract_strided_slice %90 {offsets = [0, 2, 0], sizes = [8, 4, 128], strides = [1, 1, 1]} : vector<10x6x128xbf16> to vector<8x4x128xbf16>
    %105 = vector.shape_cast %104 : vector<8x4x128xbf16> to vector<32x128xbf16>
    %c2_54 = arith.constant 2 : index
    %c0_55 = arith.constant 0 : index
    %c0_56 = arith.constant 0 : index
    %106 = vector.load %arg4[%c2_54, %c0_55, %c0_56] : memref<9x128x128xbf16, #tpu.memory_space<vmem>>, vector<1x128x128xbf16>
    %107 = vector.shape_cast %106 : vector<1x128x128xbf16> to vector<128x128xbf16>
    %cst_57 = arith.constant dense<0.000000e+00> : vector<32x128xf32>
    %108 = tpu.matmul %105, %107, %cst_57 {dimension_numbers = #tpu.dot_dimension_numbers<[1], [0], [0], [1], [0, 0, 1, 1], [], []>} : vector<32x128xbf16>, vector<128x128xbf16>, vector<32x128xf32> -> vector<32x128xf32>
    %109 = arith.addf %103, %108 : vector<32x128xf32>
    %110 = vector.extract_strided_slice %90 {offsets = [1, 0, 0], sizes = [8, 4, 128], strides = [1, 1, 1]} : vector<10x6x128xbf16> to vector<8x4x128xbf16>
    %111 = vector.shape_cast %110 : vector<8x4x128xbf16> to vector<32x128xbf16>
    %c3_58 = arith.constant 3 : index
    %c0_59 = arith.constant 0 : index
    %c0_60 = arith.constant 0 : index
    %112 = vector.load %arg4[%c3_58, %c0_59, %c0_60] : memref<9x128x128xbf16, #tpu.memory_space<vmem>>, vector<1x128x128xbf16>
    %113 = vector.shape_cast %112 : vector<1x128x128xbf16> to vector<128x128xbf16>
    %cst_61 = arith.constant dense<0.000000e+00> : vector<32x128xf32>
    %114 = tpu.matmul %111, %113, %cst_61 {dimension_numbers = #tpu.dot_dimension_numbers<[1], [0], [0], [1], [0, 0, 1, 1], [], []>} : vector<32x128xbf16>, vector<128x128xbf16>, vector<32x128xf32> -> vector<32x128xf32>
    %115 = arith.addf %109, %114 : vector<32x128xf32>
    %116 = vector.extract_strided_slice %90 {offsets = [1, 1, 0], sizes = [8, 4, 128], strides = [1, 1, 1]} : vector<10x6x128xbf16> to vector<8x4x128xbf16>
    %117 = vector.shape_cast %116 : vector<8x4x128xbf16> to vector<32x128xbf16>
    %c4_62 = arith.constant 4 : index
    %c0_63 = arith.constant 0 : index
    %c0_64 = arith.constant 0 : index
    %118 = vector.load %arg4[%c4_62, %c0_63, %c0_64] : memref<9x128x128xbf16, #tpu.memory_space<vmem>>, vector<1x128x128xbf16>
    %119 = vector.shape_cast %118 : vector<1x128x128xbf16> to vector<128x128xbf16>
    %cst_65 = arith.constant dense<0.000000e+00> : vector<32x128xf32>
    %120 = tpu.matmul %117, %119, %cst_65 {dimension_numbers = #tpu.dot_dimension_numbers<[1], [0], [0], [1], [0, 0, 1, 1], [], []>} : vector<32x128xbf16>, vector<128x128xbf16>, vector<32x128xf32> -> vector<32x128xf32>
    %121 = arith.addf %115, %120 : vector<32x128xf32>
    %122 = vector.extract_strided_slice %90 {offsets = [1, 2, 0], sizes = [8, 4, 128], strides = [1, 1, 1]} : vector<10x6x128xbf16> to vector<8x4x128xbf16>
    %123 = vector.shape_cast %122 : vector<8x4x128xbf16> to vector<32x128xbf16>
    %c5_66 = arith.constant 5 : index
    %c0_67 = arith.constant 0 : index
    %c0_68 = arith.constant 0 : index
    %124 = vector.load %arg4[%c5_66, %c0_67, %c0_68] : memref<9x128x128xbf16, #tpu.memory_space<vmem>>, vector<1x128x128xbf16>
    %125 = vector.shape_cast %124 : vector<1x128x128xbf16> to vector<128x128xbf16>
    %cst_69 = arith.constant dense<0.000000e+00> : vector<32x128xf32>
    %126 = tpu.matmul %123, %125, %cst_69 {dimension_numbers = #tpu.dot_dimension_numbers<[1], [0], [0], [1], [0, 0, 1, 1], [], []>} : vector<32x128xbf16>, vector<128x128xbf16>, vector<32x128xf32> -> vector<32x128xf32>
    %127 = arith.addf %121, %126 : vector<32x128xf32>
    %128 = vector.extract_strided_slice %90 {offsets = [2, 0, 0], sizes = [8, 4, 128], strides = [1, 1, 1]} : vector<10x6x128xbf16> to vector<8x4x128xbf16>
    %129 = vector.shape_cast %128 : vector<8x4x128xbf16> to vector<32x128xbf16>
    %c6_70 = arith.constant 6 : index
    %c0_71 = arith.constant 0 : index
    %c0_72 = arith.constant 0 : index
    %130 = vector.load %arg4[%c6_70, %c0_71, %c0_72] : memref<9x128x128xbf16, #tpu.memory_space<vmem>>, vector<1x128x128xbf16>
    %131 = vector.shape_cast %130 : vector<1x128x128xbf16> to vector<128x128xbf16>
    %cst_73 = arith.constant dense<0.000000e+00> : vector<32x128xf32>
    %132 = tpu.matmul %129, %131, %cst_73 {dimension_numbers = #tpu.dot_dimension_numbers<[1], [0], [0], [1], [0, 0, 1, 1], [], []>} : vector<32x128xbf16>, vector<128x128xbf16>, vector<32x128xf32> -> vector<32x128xf32>
    %133 = arith.addf %127, %132 : vector<32x128xf32>
    %134 = vector.extract_strided_slice %90 {offsets = [2, 1, 0], sizes = [8, 4, 128], strides = [1, 1, 1]} : vector<10x6x128xbf16> to vector<8x4x128xbf16>
    %135 = vector.shape_cast %134 : vector<8x4x128xbf16> to vector<32x128xbf16>
    %c7_74 = arith.constant 7 : index
    %c0_75 = arith.constant 0 : index
    %c0_76 = arith.constant 0 : index
    %136 = vector.load %arg4[%c7_74, %c0_75, %c0_76] : memref<9x128x128xbf16, #tpu.memory_space<vmem>>, vector<1x128x128xbf16>
    %137 = vector.shape_cast %136 : vector<1x128x128xbf16> to vector<128x128xbf16>
    %cst_77 = arith.constant dense<0.000000e+00> : vector<32x128xf32>
    %138 = tpu.matmul %135, %137, %cst_77 {dimension_numbers = #tpu.dot_dimension_numbers<[1], [0], [0], [1], [0, 0, 1, 1], [], []>} : vector<32x128xbf16>, vector<128x128xbf16>, vector<32x128xf32> -> vector<32x128xf32>
    %139 = arith.addf %133, %138 : vector<32x128xf32>
    %140 = vector.extract_strided_slice %90 {offsets = [2, 2, 0], sizes = [8, 4, 128], strides = [1, 1, 1]} : vector<10x6x128xbf16> to vector<8x4x128xbf16>
    %141 = vector.shape_cast %140 : vector<8x4x128xbf16> to vector<32x128xbf16>
    %c8_78 = arith.constant 8 : index
    %c0_79 = arith.constant 0 : index
    %c0_80 = arith.constant 0 : index
    %142 = vector.load %arg4[%c8_78, %c0_79, %c0_80] : memref<9x128x128xbf16, #tpu.memory_space<vmem>>, vector<1x128x128xbf16>
    %143 = vector.shape_cast %142 : vector<1x128x128xbf16> to vector<128x128xbf16>
    %cst_81 = arith.constant dense<0.000000e+00> : vector<32x128xf32>
    %144 = tpu.matmul %141, %143, %cst_81 {dimension_numbers = #tpu.dot_dimension_numbers<[1], [0], [0], [1], [0, 0, 1, 1], [], []>} : vector<32x128xbf16>, vector<128x128xbf16>, vector<32x128xf32> -> vector<32x128xf32>
    %145 = arith.addf %139, %144 : vector<32x128xf32>
    %146 = vector.extract_strided_slice %0 {offsets = [2, 0], sizes = [1, 128], strides = [1, 1]} : vector<3x128xf32> to vector<1x128xf32>
    %147 = vector.broadcast %146 : vector<1x128xf32> to vector<32x128xf32>
    %148 = arith.mulf %145, %147 : vector<32x128xf32>
    %149 = vector.extract_strided_slice %1 {offsets = [2, 0], sizes = [1, 128], strides = [1, 1]} : vector<3x128xf32> to vector<1x128xf32>
    %150 = vector.broadcast %149 : vector<1x128xf32> to vector<32x128xf32>
    %151 = arith.addf %148, %150 : vector<32x128xf32>
    %cst_82 = arith.constant 0.000000e+00 : f32
    %152 = vector.broadcast %cst_82 : f32 to vector<32x128xf32>
    %153 = arith.maximumf %151, %152 : vector<32x128xf32>
    %154 = vector.shape_cast %153 : vector<32x128xf32> to vector<8x2x2x128xf32>
    %cst_83 = arith.constant dense<0xFF800000> : vector<8x2x128xf32>
    %155 = vector.multi_reduction <maximumf>, %154, %cst_83 [2] : vector<8x2x2x128xf32> to vector<8x2x128xf32>
    %156 = vector.extract_strided_slice %155 {offsets = [0, 0, 0], sizes = [8, 1, 128], strides = [1, 1, 1]} : vector<8x2x128xf32> to vector<8x1x128xf32>
    %157 = vector.shape_cast %156 : vector<8x1x128xf32> to vector<8x128xf32>
    %158 = vector.extract_strided_slice %155 {offsets = [0, 1, 0], sizes = [8, 1, 128], strides = [1, 1, 1]} : vector<8x2x128xf32> to vector<8x1x128xf32>
    %159 = vector.shape_cast %158 : vector<8x1x128xf32> to vector<8x128xf32>
    %160 = tpu.concatenate %157, %159 in 1 : vector<8x128xf32>, vector<8x128xf32> -> vector<8x256xf32>
    %c0_84 = arith.constant 0 : index
    %c0_85 = arith.constant 0 : index
    %c0_86 = arith.constant 0 : index
    %161 = vector.load %arg7[%c0_84, %c0_85, %c0_86] : memref<1x8x256xf32, #tpu.memory_space<vmem>>, vector<1x8x256xf32>
    %162 = vector.shape_cast %161 : vector<1x8x256xf32> to vector<8x256xf32>
    %163 = vector.shape_cast %160 : vector<8x256xf32> to vector<1x8x256xf32>
    tpu.vector_store %arg7[%c0_84, %c0_85, %c0_86], %163 {strides = array<i32>} : memref<1x8x256xf32, #tpu.memory_space<vmem>>, vector<1x8x256xf32>,
    return
  }
  func.func @transform_0(%arg0: i32) -> (i32, i32, i32) {
    %c0_i32 = arith.constant 0 : i32
    %c0_i32_0 = arith.constant 0 : i32
    %c0_i32_1 = arith.constant 0 : i32
    return %arg0, %c0_i32, %c0_i32_0 : i32, i32, i32
  }
  func.func @transform_1(%arg0: i32) -> (i32, i32) {
    %c0_i32 = arith.constant 0 : i32
    %c0_i32_0 = arith.constant 0 : i32
    %c0_i32_1 = arith.constant 0 : i32
    return %c0_i32, %c0_i32_0 : i32, i32
  }
  func.func @transform_2(%arg0: i32) -> (i32, i32, i32) {
    %c0_i32 = arith.constant 0 : i32
    %c0_i32_0 = arith.constant 0 : i32
    %c0_i32_1 = arith.constant 0 : i32
    %c0_i32_2 = arith.constant 0 : i32
    return %c0_i32, %c0_i32_0, %c0_i32_1 : i32, i32, i32
  }
  func.func @transform_3(%arg0: i32) -> (i32, i32, i32) {
    %c0_i32 = arith.constant 0 : i32
    %c0_i32_0 = arith.constant 0 : i32
    %c0_i32_1 = arith.constant 0 : i32
    %c0_i32_2 = arith.constant 0 : i32
    return %c0_i32, %c0_i32_0, %c0_i32_1 : i32, i32, i32
  }
  func.func @transform_4(%arg0: i32) -> (i32, i32) {
    %c0_i32 = arith.constant 0 : i32
    %c0_i32_0 = arith.constant 0 : i32
    %c0_i32_1 = arith.constant 0 : i32
    return %c0_i32, %c0_i32_0 : i32, i32
  }
  func.func @transform_5(%arg0: i32) -> (i32, i32) {
    %c0_i32 = arith.constant 0 : i32
    %c0_i32_0 = arith.constant 0 : i32
    %c0_i32_1 = arith.constant 0 : i32
    return %c0_i32, %c0_i32_0 : i32, i32
  }
  func.func @transform_6(%arg0: i32) -> (i32, i32, i32) {
    %c0_i32 = arith.constant 0 : i32
    %c0_i32_0 = arith.constant 0 : i32
    %c0_i32_1 = arith.constant 0 : i32
    return %arg0, %c0_i32, %c0_i32_0 : i32, i32, i32
  }
}

module attributes {stable_mosaic.version = 11 : i64} {
  func.func @_bigru_head_kernel(%arg0: i32, %arg1: memref<2x8x256xf32, #tpu.memory_space<vmem>>, %arg2: memref<256x192xf32, #tpu.memory_space<vmem>>, %arg3: memref<64x192xf32, #tpu.memory_space<vmem>>, %arg4: memref<1x192xf32, #tpu.memory_space<vmem>>, %arg5: memref<1x192xf32, #tpu.memory_space<vmem>>, %arg6: memref<64x192xf32, #tpu.memory_space<vmem>>, %arg7: memref<64x192xf32, #tpu.memory_space<vmem>>, %arg8: memref<1x192xf32, #tpu.memory_space<vmem>>, %arg9: memref<1x192xf32, #tpu.memory_space<vmem>>, %arg10: memref<64x16xf32, #tpu.memory_space<vmem>>, %arg11: memref<1x16xf32, #tpu.memory_space<vmem>>, %arg12: memref<16x6xf32, #tpu.memory_space<vmem>>, %arg13: memref<1x6xf32, #tpu.memory_space<vmem>>, %arg14: memref<2x8x6xf32, #tpu.memory_space<vmem>>) attributes {dimension_semantics = [#tpu.dimension_semantics<arbitrary>], iteration_bounds = array<i64: 1>, scalar_prefetch = 0 : i64, scratch_operands = 0 : i64, tpu.core_type = #tpu.core_type<tc>, window_params = [{pipeline_mode = #tpu.pipeline_mode<synchronous>, transform_indices = @transform_0, window_bounds = array<i64: 2, 8, 256>}, {pipeline_mode = #tpu.pipeline_mode<synchronous>, transform_indices = @transform_1, window_bounds = array<i64: 256, 192>}, {pipeline_mode = #tpu.pipeline_mode<synchronous>, transform_indices = @transform_2, window_bounds = array<i64: 64, 192>}, {pipeline_mode = #tpu.pipeline_mode<synchronous>, transform_indices = @transform_3, window_bounds = array<i64: 1, 192>}, {pipeline_mode = #tpu.pipeline_mode<synchronous>, transform_indices = @transform_4, window_bounds = array<i64: 1, 192>}, {pipeline_mode = #tpu.pipeline_mode<synchronous>, transform_indices = @transform_5, window_bounds = array<i64: 64, 192>}, {pipeline_mode = #tpu.pipeline_mode<synchronous>, transform_indices = @transform_6, window_bounds = array<i64: 64, 192>}, {pipeline_mode = #tpu.pipeline_mode<synchronous>, transform_indices = @transform_7, window_bounds = array<i64: 1, 192>}, {pipeline_mode = #tpu.pipeline_mode<synchronous>, transform_indices = @transform_8, window_bounds = array<i64: 1, 192>}, {pipeline_mode = #tpu.pipeline_mode<synchronous>, transform_indices = @transform_9, window_bounds = array<i64: 64, 16>}, {pipeline_mode = #tpu.pipeline_mode<synchronous>, transform_indices = @transform_10, window_bounds = array<i64: 1, 16>}, {pipeline_mode = #tpu.pipeline_mode<synchronous>, transform_indices = @transform_11, window_bounds = array<i64: 16, 6>}, {pipeline_mode = #tpu.pipeline_mode<synchronous>, transform_indices = @transform_12, window_bounds = array<i64: 1, 6>}, {pipeline_mode = #tpu.pipeline_mode<synchronous>, transform_indices = @transform_13, window_bounds = array<i64: 2, 8, 6>}]} {
    %c0 = arith.constant 0 : index
    %c0_0 = arith.constant 0 : index
    %c0_1 = arith.constant 0 : index
    %0 = vector.load %arg1[%c0, %c0_0, %c0_1] : memref<2x8x256xf32, #tpu.memory_space<vmem>>, vector<1x8x256xf32>
    %1 = vector.shape_cast %0 : vector<1x8x256xf32> to vector<8x256xf32>
    %c1 = arith.constant 1 : index
    %c0_2 = arith.constant 0 : index
    %c0_3 = arith.constant 0 : index
    %2 = vector.load %arg1[%c1, %c0_2, %c0_3] : memref<2x8x256xf32, #tpu.memory_space<vmem>>, vector<1x8x256xf32>
    %3 = vector.shape_cast %2 : vector<1x8x256xf32> to vector<8x256xf32>
    %4 = tpu.concatenate %1, %3 in 0 : vector<8x256xf32>, vector<8x256xf32> -> vector<16x256xf32>
    %c0_4 = arith.constant 0 : index
    %c0_5 = arith.constant 0 : index
    %5 = vector.load %arg3[%c0_4, %c0_5] : memref<64x192xf32, #tpu.memory_space<vmem>>, vector<64x192xf32>
    %c0_6 = arith.constant 0 : index
    %c0_7 = arith.constant 0 : index
    %6 = vector.load %arg5[%c0_6, %c0_7] : memref<1x192xf32, #tpu.memory_space<vmem>>, vector<1x192xf32>
    %c0_8 = arith.constant 0 : index
    %c0_9 = arith.constant 0 : index
    %7 = vector.load %arg2[%c0_8, %c0_9] : memref<256x192xf32, #tpu.memory_space<vmem>>, vector<256x192xf32>
    %cst = arith.constant dense<0.000000e+00> : vector<16x192xf32>
    %8 = tpu.matmul %4, %7, %cst {dimension_numbers = #tpu.dot_dimension_numbers<[1], [0], [0], [1], [0, 0, 1, 1], [], []>} : vector<16x256xf32>, vector<256x192xf32>, vector<16x192xf32> -> vector<16x192xf32>
    %c0_10 = arith.constant 0 : index
    %c0_11 = arith.constant 0 : index
    %9 = vector.load %arg4[%c0_10, %c0_11] : memref<1x192xf32, #tpu.memory_space<vmem>>, vector<1x192xf32>
    %10 = vector.broadcast %9 : vector<1x192xf32> to vector<16x192xf32>
    %11 = arith.addf %8, %10 : vector<16x192xf32>
    %cst_12 = arith.constant 0.000000e+00 : f32
    %12 = vector.broadcast %cst_12 : f32 to vector<2x64xf32>
    %cst_13 = arith.constant dense<0.000000e+00> : vector<2x192xf32>
    %13 = tpu.matmul %12, %5, %cst_13 {dimension_numbers = #tpu.dot_dimension_numbers<[1], [0], [0], [1], [0, 0, 1, 1], [], []>} : vector<2x64xf32>, vector<64x192xf32>, vector<2x192xf32> -> vector<2x192xf32>
    %14 = vector.broadcast %6 : vector<1x192xf32> to vector<2x192xf32>
    %15 = arith.addf %13, %14 : vector<2x192xf32>
    %16 = vector.extract_strided_slice %11 {offsets = [0, 0], sizes = [1, 96], strides = [1, 1]} : vector<16x192xf32> to vector<1x96xf32>
    %17 = vector.extract_strided_slice %11 {offsets = [8, 0], sizes = [1, 96], strides = [1, 1]} : vector<16x192xf32> to vector<1x96xf32>
    %18 = tpu.concatenate %16, %17 in 0 : vector<1x96xf32>, vector<1x96xf32> -> vector<2x96xf32>
    %19 = vector.extract_strided_slice %11 {offsets = [7, 96], sizes = [1, 96], strides = [1, 1]} : vector<16x192xf32> to vector<1x96xf32>
    %20 = vector.extract_strided_slice %11 {offsets = [15, 96], sizes = [1, 96], strides = [1, 1]} : vector<16x192xf32> to vector<1x96xf32>
    %21 = tpu.concatenate %19, %20 in 0 : vector<1x96xf32>, vector<1x96xf32> -> vector<2x96xf32>
    %22 = vector.extract_strided_slice %15 {offsets = [0, 0], sizes = [2, 96], strides = [1, 1]} : vector<2x192xf32> to vector<2x96xf32>
    %23 = vector.extract_strided_slice %12 {offsets = [0, 0], sizes = [2, 32], strides = [1, 1]} : vector<2x64xf32> to vector<2x32xf32>
    %24 = vector.extract_strided_slice %18 {offsets = [0, 0], sizes = [2, 32], strides = [1, 1]} : vector<2x96xf32> to vector<2x32xf32>
    %25 = vector.extract_strided_slice %22 {offsets = [0, 0], sizes = [2, 32], strides = [1, 1]} : vector<2x96xf32> to vector<2x32xf32>
    %26 = arith.addf %24, %25 : vector<2x32xf32>
    %27 = arith.negf %26 : vector<2x32xf32>
    %28 = math.exp %27 : vector<2x32xf32>
    %cst_14 = arith.constant 1.000000e+00 : f32
    %29 = vector.broadcast %cst_14 : f32 to vector<2x32xf32>
    %30 = arith.addf %29, %28 : vector<2x32xf32>
    %31 = arith.divf %29, %30 : vector<2x32xf32>
    %32 = vector.extract_strided_slice %18 {offsets = [0, 32], sizes = [2, 32], strides = [1, 1]} : vector<2x96xf32> to vector<2x32xf32>
    %33 = vector.extract_strided_slice %22 {offsets = [0, 32], sizes = [2, 32], strides = [1, 1]} : vector<2x96xf32> to vector<2x32xf32>
    %34 = arith.addf %32, %33 : vector<2x32xf32>
    %35 = arith.negf %34 : vector<2x32xf32>
    %36 = math.exp %35 : vector<2x32xf32>
    %cst_15 = arith.constant 1.000000e+00 : f32
    %37 = vector.broadcast %cst_15 : f32 to vector<2x32xf32>
    %38 = arith.addf %37, %36 : vector<2x32xf32>
    %39 = arith.divf %37, %38 : vector<2x32xf32>
    %40 = vector.extract_strided_slice %18 {offsets = [0, 64], sizes = [2, 32], strides = [1, 1]} : vector<2x96xf32> to vector<2x32xf32>
    %41 = vector.extract_strided_slice %22 {offsets = [0, 64], sizes = [2, 32], strides = [1, 1]} : vector<2x96xf32> to vector<2x32xf32>
    %42 = arith.mulf %31, %41 : vector<2x32xf32>
    %43 = arith.addf %40, %42 : vector<2x32xf32>
    %44 = math.tanh %43 : vector<2x32xf32>
    %cst_16 = arith.constant 1.000000e+00 : f32
    %45 = vector.broadcast %cst_16 : f32 to vector<2x32xf32>
    %46 = arith.subf %45, %39 : vector<2x32xf32>
    %47 = arith.mulf %46, %44 : vector<2x32xf32>
    %48 = arith.mulf %39, %23 : vector<2x32xf32>
    %49 = arith.addf %47, %48 : vector<2x32xf32>
    %50 = vector.extract_strided_slice %15 {offsets = [0, 96], sizes = [2, 96], strides = [1, 1]} : vector<2x192xf32> to vector<2x96xf32>
    %51 = vector.extract_strided_slice %12 {offsets = [0, 32], sizes = [2, 32], strides = [1, 1]} : vector<2x64xf32> to vector<2x32xf32>
    %52 = vector.extract_strided_slice %21 {offsets = [0, 0], sizes = [2, 32], strides = [1, 1]} : vector<2x96xf32> to vector<2x32xf32>
    %53 = vector.extract_strided_slice %50 {offsets = [0, 0], sizes = [2, 32], strides = [1, 1]} : vector<2x96xf32> to vector<2x32xf32>
    %54 = arith.addf %52, %53 : vector<2x32xf32>
    %55 = arith.negf %54 : vector<2x32xf32>
    %56 = math.exp %55 : vector<2x32xf32>
    %cst_17 = arith.constant 1.000000e+00 : f32
    %57 = vector.broadcast %cst_17 : f32 to vector<2x32xf32>
    %58 = arith.addf %57, %56 : vector<2x32xf32>
    %59 = arith.divf %57, %58 : vector<2x32xf32>
    %60 = vector.extract_strided_slice %21 {offsets = [0, 32], sizes = [2, 32], strides = [1, 1]} : vector<2x96xf32> to vector<2x32xf32>
    %61 = vector.extract_strided_slice %50 {offsets = [0, 32], sizes = [2, 32], strides = [1, 1]} : vector<2x96xf32> to vector<2x32xf32>
    %62 = arith.addf %60, %61 : vector<2x32xf32>
    %63 = arith.negf %62 : vector<2x32xf32>
    %64 = math.exp %63 : vector<2x32xf32>
    %cst_18 = arith.constant 1.000000e+00 : f32
    %65 = vector.broadcast %cst_18 : f32 to vector<2x32xf32>
    %66 = arith.addf %65, %64 : vector<2x32xf32>
    %67 = arith.divf %65, %66 : vector<2x32xf32>
    %68 = vector.extract_strided_slice %21 {offsets = [0, 64], sizes = [2, 32], strides = [1, 1]} : vector<2x96xf32> to vector<2x32xf32>
    %69 = vector.extract_strided_slice %50 {offsets = [0, 64], sizes = [2, 32], strides = [1, 1]} : vector<2x96xf32> to vector<2x32xf32>
    %70 = arith.mulf %59, %69 : vector<2x32xf32>
    %71 = arith.addf %68, %70 : vector<2x32xf32>
    %72 = math.tanh %71 : vector<2x32xf32>
    %cst_19 = arith.constant 1.000000e+00 : f32
    %73 = vector.broadcast %cst_19 : f32 to vector<2x32xf32>
    %74 = arith.subf %73, %67 : vector<2x32xf32>
    %75 = arith.mulf %74, %72 : vector<2x32xf32>
    %76 = arith.mulf %67, %51 : vector<2x32xf32>
    %77 = arith.addf %75, %76 : vector<2x32xf32>
    %78 = tpu.concatenate %49, %77 in 1 : vector<2x32xf32>, vector<2x32xf32> -> vector<2x64xf32>
    %cst_20 = arith.constant dense<0.000000e+00> : vector<2x192xf32>
    %79 = tpu.matmul %78, %5, %cst_20 {dimension_numbers = #tpu.dot_dimension_numbers<[1], [0], [0], [1], [0, 0, 1, 1], [], []>} : vector<2x64xf32>, vector<64x192xf32>, vector<2x192xf32> -> vector<2x192xf32>
    %80 = vector.broadcast %6 : vector<1x192xf32> to vector<2x192xf32>
    %81 = arith.addf %79, %80 : vector<2x192xf32>
    %82 = vector.extract_strided_slice %11 {offsets = [1, 0], sizes = [1, 96], strides = [1, 1]} : vector<16x192xf32> to vector<1x96xf32>
    %83 = vector.extract_strided_slice %11 {offsets = [9, 0], sizes = [1, 96], strides = [1, 1]} : vector<16x192xf32> to vector<1x96xf32>
    %84 = tpu.concatenate %82, %83 in 0 : vector<1x96xf32>, vector<1x96xf32> -> vector<2x96xf32>
    %85 = vector.extract_strided_slice %11 {offsets = [6, 96], sizes = [1, 96], strides = [1, 1]} : vector<16x192xf32> to vector<1x96xf32>
    %86 = vector.extract_strided_slice %11 {offsets = [14, 96], sizes = [1, 96], strides = [1, 1]} : vector<16x192xf32> to vector<1x96xf32>
    %87 = tpu.concatenate %85, %86 in 0 : vector<1x96xf32>, vector<1x96xf32> -> vector<2x96xf32>
    %88 = vector.extract_strided_slice %81 {offsets = [0, 0], sizes = [2, 96], strides = [1, 1]} : vector<2x192xf32> to vector<2x96xf32>
    %89 = vector.extract_strided_slice %78 {offsets = [0, 0], sizes = [2, 32], strides = [1, 1]} : vector<2x64xf32> to vector<2x32xf32>
    %90 = vector.extract_strided_slice %84 {offsets = [0, 0], sizes = [2, 32], strides = [1, 1]} : vector<2x96xf32> to vector<2x32xf32>
    %91 = vector.extract_strided_slice %88 {offsets = [0, 0], sizes = [2, 32], strides = [1, 1]} : vector<2x96xf32> to vector<2x32xf32>
    %92 = arith.addf %90, %91 : vector<2x32xf32>
    %93 = arith.negf %92 : vector<2x32xf32>
    %94 = math.exp %93 : vector<2x32xf32>
    %cst_21 = arith.constant 1.000000e+00 : f32
    %95 = vector.broadcast %cst_21 : f32 to vector<2x32xf32>
    %96 = arith.addf %95, %94 : vector<2x32xf32>
    %97 = arith.divf %95, %96 : vector<2x32xf32>
    %98 = vector.extract_strided_slice %84 {offsets = [0, 32], sizes = [2, 32], strides = [1, 1]} : vector<2x96xf32> to vector<2x32xf32>
    %99 = vector.extract_strided_slice %88 {offsets = [0, 32], sizes = [2, 32], strides = [1, 1]} : vector<2x96xf32> to vector<2x32xf32>
    %100 = arith.addf %98, %99 : vector<2x32xf32>
    %101 = arith.negf %100 : vector<2x32xf32>
    %102 = math.exp %101 : vector<2x32xf32>
    %cst_22 = arith.constant 1.000000e+00 : f32
    %103 = vector.broadcast %cst_22 : f32 to vector<2x32xf32>
    %104 = arith.addf %103, %102 : vector<2x32xf32>
    %105 = arith.divf %103, %104 : vector<2x32xf32>
    %106 = vector.extract_strided_slice %84 {offsets = [0, 64], sizes = [2, 32], strides = [1, 1]} : vector<2x96xf32> to vector<2x32xf32>
    %107 = vector.extract_strided_slice %88 {offsets = [0, 64], sizes = [2, 32], strides = [1, 1]} : vector<2x96xf32> to vector<2x32xf32>
    %108 = arith.mulf %97, %107 : vector<2x32xf32>
    %109 = arith.addf %106, %108 : vector<2x32xf32>
    %110 = math.tanh %109 : vector<2x32xf32>
    %cst_23 = arith.constant 1.000000e+00 : f32
    %111 = vector.broadcast %cst_23 : f32 to vector<2x32xf32>
    %112 = arith.subf %111, %105 : vector<2x32xf32>
    %113 = arith.mulf %112, %110 : vector<2x32xf32>
    %114 = arith.mulf %105, %89 : vector<2x32xf32>
    %115 = arith.addf %113, %114 : vector<2x32xf32>
    %116 = vector.extract_strided_slice %81 {offsets = [0, 96], sizes = [2, 96], strides = [1, 1]} : vector<2x192xf32> to vector<2x96xf32>
    %117 = vector.extract_strided_slice %78 {offsets = [0, 32], sizes = [2, 32], strides = [1, 1]} : vector<2x64xf32> to vector<2x32xf32>
    %118 = vector.extract_strided_slice %87 {offsets = [0, 0], sizes = [2, 32], strides = [1, 1]} : vector<2x96xf32> to vector<2x32xf32>
    %119 = vector.extract_strided_slice %116 {offsets = [0, 0], sizes = [2, 32], strides = [1, 1]} : vector<2x96xf32> to vector<2x32xf32>
    %120 = arith.addf %118, %119 : vector<2x32xf32>
    %121 = arith.negf %120 : vector<2x32xf32>
    %122 = math.exp %121 : vector<2x32xf32>
    %cst_24 = arith.constant 1.000000e+00 : f32
    %123 = vector.broadcast %cst_24 : f32 to vector<2x32xf32>
    %124 = arith.addf %123, %122 : vector<2x32xf32>
    %125 = arith.divf %123, %124 : vector<2x32xf32>
    %126 = vector.extract_strided_slice %87 {offsets = [0, 32], sizes = [2, 32], strides = [1, 1]} : vector<2x96xf32> to vector<2x32xf32>
    %127 = vector.extract_strided_slice %116 {offsets = [0, 32], sizes = [2, 32], strides = [1, 1]} : vector<2x96xf32> to vector<2x32xf32>
    %128 = arith.addf %126, %127 : vector<2x32xf32>
    %129 = arith.negf %128 : vector<2x32xf32>
    %130 = math.exp %129 : vector<2x32xf32>
    %cst_25 = arith.constant 1.000000e+00 : f32
    %131 = vector.broadcast %cst_25 : f32 to vector<2x32xf32>
    %132 = arith.addf %131, %130 : vector<2x32xf32>
    %133 = arith.divf %131, %132 : vector<2x32xf32>
    %134 = vector.extract_strided_slice %87 {offsets = [0, 64], sizes = [2, 32], strides = [1, 1]} : vector<2x96xf32> to vector<2x32xf32>
    %135 = vector.extract_strided_slice %116 {offsets = [0, 64], sizes = [2, 32], strides = [1, 1]} : vector<2x96xf32> to vector<2x32xf32>
    %136 = arith.mulf %125, %135 : vector<2x32xf32>
    %137 = arith.addf %134, %136 : vector<2x32xf32>
    %138 = math.tanh %137 : vector<2x32xf32>
    %cst_26 = arith.constant 1.000000e+00 : f32
    %139 = vector.broadcast %cst_26 : f32 to vector<2x32xf32>
    %140 = arith.subf %139, %133 : vector<2x32xf32>
    %141 = arith.mulf %140, %138 : vector<2x32xf32>
    %142 = arith.mulf %133, %117 : vector<2x32xf32>
    %143 = arith.addf %141, %142 : vector<2x32xf32>
    %144 = tpu.concatenate %115, %143 in 1 : vector<2x32xf32>, vector<2x32xf32> -> vector<2x64xf32>
    %cst_27 = arith.constant dense<0.000000e+00> : vector<2x192xf32>
    %145 = tpu.matmul %144, %5, %cst_27 {dimension_numbers = #tpu.dot_dimension_numbers<[1], [0], [0], [1], [0, 0, 1, 1], [], []>} : vector<2x64xf32>, vector<64x192xf32>, vector<2x192xf32> -> vector<2x192xf32>
    %146 = vector.broadcast %6 : vector<1x192xf32> to vector<2x192xf32>
    %147 = arith.addf %145, %146 : vector<2x192xf32>
    %148 = vector.extract_strided_slice %11 {offsets = [2, 0], sizes = [1, 96], strides = [1, 1]} : vector<16x192xf32> to vector<1x96xf32>
    %149 = vector.extract_strided_slice %11 {offsets = [10, 0], sizes = [1, 96], strides = [1, 1]} : vector<16x192xf32> to vector<1x96xf32>
    %150 = tpu.concatenate %148, %149 in 0 : vector<1x96xf32>, vector<1x96xf32> -> vector<2x96xf32>
    %151 = vector.extract_strided_slice %11 {offsets = [5, 96], sizes = [1, 96], strides = [1, 1]} : vector<16x192xf32> to vector<1x96xf32>
    %152 = vector.extract_strided_slice %11 {offsets = [13, 96], sizes = [1, 96], strides = [1, 1]} : vector<16x192xf32> to vector<1x96xf32>
    %153 = tpu.concatenate %151, %152 in 0 : vector<1x96xf32>, vector<1x96xf32> -> vector<2x96xf32>
    %154 = vector.extract_strided_slice %147 {offsets = [0, 0], sizes = [2, 96], strides = [1, 1]} : vector<2x192xf32> to vector<2x96xf32>
    %155 = vector.extract_strided_slice %144 {offsets = [0, 0], sizes = [2, 32], strides = [1, 1]} : vector<2x64xf32> to vector<2x32xf32>
    %156 = vector.extract_strided_slice %150 {offsets = [0, 0], sizes = [2, 32], strides = [1, 1]} : vector<2x96xf32> to vector<2x32xf32>
    %157 = vector.extract_strided_slice %154 {offsets = [0, 0], sizes = [2, 32], strides = [1, 1]} : vector<2x96xf32> to vector<2x32xf32>
    %158 = arith.addf %156, %157 : vector<2x32xf32>
    %159 = arith.negf %158 : vector<2x32xf32>
    %160 = math.exp %159 : vector<2x32xf32>
    %cst_28 = arith.constant 1.000000e+00 : f32
    %161 = vector.broadcast %cst_28 : f32 to vector<2x32xf32>
    %162 = arith.addf %161, %160 : vector<2x32xf32>
    %163 = arith.divf %161, %162 : vector<2x32xf32>
    %164 = vector.extract_strided_slice %150 {offsets = [0, 32], sizes = [2, 32], strides = [1, 1]} : vector<2x96xf32> to vector<2x32xf32>
    %165 = vector.extract_strided_slice %154 {offsets = [0, 32], sizes = [2, 32], strides = [1, 1]} : vector<2x96xf32> to vector<2x32xf32>
    %166 = arith.addf %164, %165 : vector<2x32xf32>
    %167 = arith.negf %166 : vector<2x32xf32>
    %168 = math.exp %167 : vector<2x32xf32>
    %cst_29 = arith.constant 1.000000e+00 : f32
    %169 = vector.broadcast %cst_29 : f32 to vector<2x32xf32>
    %170 = arith.addf %169, %168 : vector<2x32xf32>
    %171 = arith.divf %169, %170 : vector<2x32xf32>
    %172 = vector.extract_strided_slice %150 {offsets = [0, 64], sizes = [2, 32], strides = [1, 1]} : vector<2x96xf32> to vector<2x32xf32>
    %173 = vector.extract_strided_slice %154 {offsets = [0, 64], sizes = [2, 32], strides = [1, 1]} : vector<2x96xf32> to vector<2x32xf32>
    %174 = arith.mulf %163, %173 : vector<2x32xf32>
    %175 = arith.addf %172, %174 : vector<2x32xf32>
    %176 = math.tanh %175 : vector<2x32xf32>
    %cst_30 = arith.constant 1.000000e+00 : f32
    %177 = vector.broadcast %cst_30 : f32 to vector<2x32xf32>
    %178 = arith.subf %177, %171 : vector<2x32xf32>
    %179 = arith.mulf %178, %176 : vector<2x32xf32>
    %180 = arith.mulf %171, %155 : vector<2x32xf32>
    %181 = arith.addf %179, %180 : vector<2x32xf32>
    %182 = vector.extract_strided_slice %147 {offsets = [0, 96], sizes = [2, 96], strides = [1, 1]} : vector<2x192xf32> to vector<2x96xf32>
    %183 = vector.extract_strided_slice %144 {offsets = [0, 32], sizes = [2, 32], strides = [1, 1]} : vector<2x64xf32> to vector<2x32xf32>
    %184 = vector.extract_strided_slice %153 {offsets = [0, 0], sizes = [2, 32], strides = [1, 1]} : vector<2x96xf32> to vector<2x32xf32>
    %185 = vector.extract_strided_slice %182 {offsets = [0, 0], sizes = [2, 32], strides = [1, 1]} : vector<2x96xf32> to vector<2x32xf32>
    %186 = arith.addf %184, %185 : vector<2x32xf32>
    %187 = arith.negf %186 : vector<2x32xf32>
    %188 = math.exp %187 : vector<2x32xf32>
    %cst_31 = arith.constant 1.000000e+00 : f32
    %189 = vector.broadcast %cst_31 : f32 to vector<2x32xf32>
    %190 = arith.addf %189, %188 : vector<2x32xf32>
    %191 = arith.divf %189, %190 : vector<2x32xf32>
    %192 = vector.extract_strided_slice %153 {offsets = [0, 32], sizes = [2, 32], strides = [1, 1]} : vector<2x96xf32> to vector<2x32xf32>
    %193 = vector.extract_strided_slice %182 {offsets = [0, 32], sizes = [2, 32], strides = [1, 1]} : vector<2x96xf32> to vector<2x32xf32>
    %194 = arith.addf %192, %193 : vector<2x32xf32>
    %195 = arith.negf %194 : vector<2x32xf32>
    %196 = math.exp %195 : vector<2x32xf32>
    %cst_32 = arith.constant 1.000000e+00 : f32
    %197 = vector.broadcast %cst_32 : f32 to vector<2x32xf32>
    %198 = arith.addf %197, %196 : vector<2x32xf32>
    %199 = arith.divf %197, %198 : vector<2x32xf32>
    %200 = vector.extract_strided_slice %153 {offsets = [0, 64], sizes = [2, 32], strides = [1, 1]} : vector<2x96xf32> to vector<2x32xf32>
    %201 = vector.extract_strided_slice %182 {offsets = [0, 64], sizes = [2, 32], strides = [1, 1]} : vector<2x96xf32> to vector<2x32xf32>
    %202 = arith.mulf %191, %201 : vector<2x32xf32>
    %203 = arith.addf %200, %202 : vector<2x32xf32>
    %204 = math.tanh %203 : vector<2x32xf32>
    %cst_33 = arith.constant 1.000000e+00 : f32
    %205 = vector.broadcast %cst_33 : f32 to vector<2x32xf32>
    %206 = arith.subf %205, %199 : vector<2x32xf32>
    %207 = arith.mulf %206, %204 : vector<2x32xf32>
    %208 = arith.mulf %199, %183 : vector<2x32xf32>
    %209 = arith.addf %207, %208 : vector<2x32xf32>
    %210 = tpu.concatenate %181, %209 in 1 : vector<2x32xf32>, vector<2x32xf32> -> vector<2x64xf32>
    %cst_34 = arith.constant dense<0.000000e+00> : vector<2x192xf32>
    %211 = tpu.matmul %210, %5, %cst_34 {dimension_numbers = #tpu.dot_dimension_numbers<[1], [0], [0], [1], [0, 0, 1, 1], [], []>} : vector<2x64xf32>, vector<64x192xf32>, vector<2x192xf32> -> vector<2x192xf32>
    %212 = vector.broadcast %6 : vector<1x192xf32> to vector<2x192xf32>
    %213 = arith.addf %211, %212 : vector<2x192xf32>
    %214 = vector.extract_strided_slice %11 {offsets = [3, 0], sizes = [1, 96], strides = [1, 1]} : vector<16x192xf32> to vector<1x96xf32>
    %215 = vector.extract_strided_slice %11 {offsets = [11, 0], sizes = [1, 96], strides = [1, 1]} : vector<16x192xf32> to vector<1x96xf32>
    %216 = tpu.concatenate %214, %215 in 0 : vector<1x96xf32>, vector<1x96xf32> -> vector<2x96xf32>
    %217 = vector.extract_strided_slice %11 {offsets = [4, 96], sizes = [1, 96], strides = [1, 1]} : vector<16x192xf32> to vector<1x96xf32>
    %218 = vector.extract_strided_slice %11 {offsets = [12, 96], sizes = [1, 96], strides = [1, 1]} : vector<16x192xf32> to vector<1x96xf32>
    %219 = tpu.concatenate %217, %218 in 0 : vector<1x96xf32>, vector<1x96xf32> -> vector<2x96xf32>
    %220 = vector.extract_strided_slice %213 {offsets = [0, 0], sizes = [2, 96], strides = [1, 1]} : vector<2x192xf32> to vector<2x96xf32>
    %221 = vector.extract_strided_slice %210 {offsets = [0, 0], sizes = [2, 32], strides = [1, 1]} : vector<2x64xf32> to vector<2x32xf32>
    %222 = vector.extract_strided_slice %216 {offsets = [0, 0], sizes = [2, 32], strides = [1, 1]} : vector<2x96xf32> to vector<2x32xf32>
    %223 = vector.extract_strided_slice %220 {offsets = [0, 0], sizes = [2, 32], strides = [1, 1]} : vector<2x96xf32> to vector<2x32xf32>
    %224 = arith.addf %222, %223 : vector<2x32xf32>
    %225 = arith.negf %224 : vector<2x32xf32>
    %226 = math.exp %225 : vector<2x32xf32>
    %cst_35 = arith.constant 1.000000e+00 : f32
    %227 = vector.broadcast %cst_35 : f32 to vector<2x32xf32>
    %228 = arith.addf %227, %226 : vector<2x32xf32>
    %229 = arith.divf %227, %228 : vector<2x32xf32>
    %230 = vector.extract_strided_slice %216 {offsets = [0, 32], sizes = [2, 32], strides = [1, 1]} : vector<2x96xf32> to vector<2x32xf32>
    %231 = vector.extract_strided_slice %220 {offsets = [0, 32], sizes = [2, 32], strides = [1, 1]} : vector<2x96xf32> to vector<2x32xf32>
    %232 = arith.addf %230, %231 : vector<2x32xf32>
    %233 = arith.negf %232 : vector<2x32xf32>
    %234 = math.exp %233 : vector<2x32xf32>
    %cst_36 = arith.constant 1.000000e+00 : f32
    %235 = vector.broadcast %cst_36 : f32 to vector<2x32xf32>
    %236 = arith.addf %235, %234 : vector<2x32xf32>
    %237 = arith.divf %235, %236 : vector<2x32xf32>
    %238 = vector.extract_strided_slice %216 {offsets = [0, 64], sizes = [2, 32], strides = [1, 1]} : vector<2x96xf32> to vector<2x32xf32>
    %239 = vector.extract_strided_slice %220 {offsets = [0, 64], sizes = [2, 32], strides = [1, 1]} : vector<2x96xf32> to vector<2x32xf32>
    %240 = arith.mulf %229, %239 : vector<2x32xf32>
    %241 = arith.addf %238, %240 : vector<2x32xf32>
    %242 = math.tanh %241 : vector<2x32xf32>
    %cst_37 = arith.constant 1.000000e+00 : f32
    %243 = vector.broadcast %cst_37 : f32 to vector<2x32xf32>
    %244 = arith.subf %243, %237 : vector<2x32xf32>
    %245 = arith.mulf %244, %242 : vector<2x32xf32>
    %246 = arith.mulf %237, %221 : vector<2x32xf32>
    %247 = arith.addf %245, %246 : vector<2x32xf32>
    %248 = vector.extract_strided_slice %213 {offsets = [0, 96], sizes = [2, 96], strides = [1, 1]} : vector<2x192xf32> to vector<2x96xf32>
    %249 = vector.extract_strided_slice %210 {offsets = [0, 32], sizes = [2, 32], strides = [1, 1]} : vector<2x64xf32> to vector<2x32xf32>
    %250 = vector.extract_strided_slice %219 {offsets = [0, 0], sizes = [2, 32], strides = [1, 1]} : vector<2x96xf32> to vector<2x32xf32>
    %251 = vector.extract_strided_slice %248 {offsets = [0, 0], sizes = [2, 32], strides = [1, 1]} : vector<2x96xf32> to vector<2x32xf32>
    %252 = arith.addf %250, %251 : vector<2x32xf32>
    %253 = arith.negf %252 : vector<2x32xf32>
    %254 = math.exp %253 : vector<2x32xf32>
    %cst_38 = arith.constant 1.000000e+00 : f32
    %255 = vector.broadcast %cst_38 : f32 to vector<2x32xf32>
    %256 = arith.addf %255, %254 : vector<2x32xf32>
    %257 = arith.divf %255, %256 : vector<2x32xf32>
    %258 = vector.extract_strided_slice %219 {offsets = [0, 32], sizes = [2, 32], strides = [1, 1]} : vector<2x96xf32> to vector<2x32xf32>
    %259 = vector.extract_strided_slice %248 {offsets = [0, 32], sizes = [2, 32], strides = [1, 1]} : vector<2x96xf32> to vector<2x32xf32>
    %260 = arith.addf %258, %259 : vector<2x32xf32>
    %261 = arith.negf %260 : vector<2x32xf32>
    %262 = math.exp %261 : vector<2x32xf32>
    %cst_39 = arith.constant 1.000000e+00 : f32
    %263 = vector.broadcast %cst_39 : f32 to vector<2x32xf32>
    %264 = arith.addf %263, %262 : vector<2x32xf32>
    %265 = arith.divf %263, %264 : vector<2x32xf32>
    %266 = vector.extract_strided_slice %219 {offsets = [0, 64], sizes = [2, 32], strides = [1, 1]} : vector<2x96xf32> to vector<2x32xf32>
    %267 = vector.extract_strided_slice %248 {offsets = [0, 64], sizes = [2, 32], strides = [1, 1]} : vector<2x96xf32> to vector<2x32xf32>
    %268 = arith.mulf %257, %267 : vector<2x32xf32>
    %269 = arith.addf %266, %268 : vector<2x32xf32>
    %270 = math.tanh %269 : vector<2x32xf32>
    %cst_40 = arith.constant 1.000000e+00 : f32
    %271 = vector.broadcast %cst_40 : f32 to vector<2x32xf32>
    %272 = arith.subf %271, %265 : vector<2x32xf32>
    %273 = arith.mulf %272, %270 : vector<2x32xf32>
    %274 = arith.mulf %265, %249 : vector<2x32xf32>
    %275 = arith.addf %273, %274 : vector<2x32xf32>
    %276 = tpu.concatenate %247, %275 in 1 : vector<2x32xf32>, vector<2x32xf32> -> vector<2x64xf32>
    %cst_41 = arith.constant dense<0.000000e+00> : vector<2x192xf32>
    %277 = tpu.matmul %276, %5, %cst_41 {dimension_numbers = #tpu.dot_dimension_numbers<[1], [0], [0], [1], [0, 0, 1, 1], [], []>} : vector<2x64xf32>, vector<64x192xf32>, vector<2x192xf32> -> vector<2x192xf32>
    %278 = vector.broadcast %6 : vector<1x192xf32> to vector<2x192xf32>
    %279 = arith.addf %277, %278 : vector<2x192xf32>
    %280 = vector.extract_strided_slice %11 {offsets = [4, 0], sizes = [1, 96], strides = [1, 1]} : vector<16x192xf32> to vector<1x96xf32>
    %281 = vector.extract_strided_slice %11 {offsets = [12, 0], sizes = [1, 96], strides = [1, 1]} : vector<16x192xf32> to vector<1x96xf32>
    %282 = tpu.concatenate %280, %281 in 0 : vector<1x96xf32>, vector<1x96xf32> -> vector<2x96xf32>
    %283 = vector.extract_strided_slice %11 {offsets = [3, 96], sizes = [1, 96], strides = [1, 1]} : vector<16x192xf32> to vector<1x96xf32>
    %284 = vector.extract_strided_slice %11 {offsets = [11, 96], sizes = [1, 96], strides = [1, 1]} : vector<16x192xf32> to vector<1x96xf32>
    %285 = tpu.concatenate %283, %284 in 0 : vector<1x96xf32>, vector<1x96xf32> -> vector<2x96xf32>
    %286 = vector.extract_strided_slice %279 {offsets = [0, 0], sizes = [2, 96], strides = [1, 1]} : vector<2x192xf32> to vector<2x96xf32>
    %287 = vector.extract_strided_slice %276 {offsets = [0, 0], sizes = [2, 32], strides = [1, 1]} : vector<2x64xf32> to vector<2x32xf32>
    %288 = vector.extract_strided_slice %282 {offsets = [0, 0], sizes = [2, 32], strides = [1, 1]} : vector<2x96xf32> to vector<2x32xf32>
    %289 = vector.extract_strided_slice %286 {offsets = [0, 0], sizes = [2, 32], strides = [1, 1]} : vector<2x96xf32> to vector<2x32xf32>
    %290 = arith.addf %288, %289 : vector<2x32xf32>
    %291 = arith.negf %290 : vector<2x32xf32>
    %292 = math.exp %291 : vector<2x32xf32>
    %cst_42 = arith.constant 1.000000e+00 : f32
    %293 = vector.broadcast %cst_42 : f32 to vector<2x32xf32>
    %294 = arith.addf %293, %292 : vector<2x32xf32>
    %295 = arith.divf %293, %294 : vector<2x32xf32>
    %296 = vector.extract_strided_slice %282 {offsets = [0, 32], sizes = [2, 32], strides = [1, 1]} : vector<2x96xf32> to vector<2x32xf32>
    %297 = vector.extract_strided_slice %286 {offsets = [0, 32], sizes = [2, 32], strides = [1, 1]} : vector<2x96xf32> to vector<2x32xf32>
    %298 = arith.addf %296, %297 : vector<2x32xf32>
    %299 = arith.negf %298 : vector<2x32xf32>
    %300 = math.exp %299 : vector<2x32xf32>
    %cst_43 = arith.constant 1.000000e+00 : f32
    %301 = vector.broadcast %cst_43 : f32 to vector<2x32xf32>
    %302 = arith.addf %301, %300 : vector<2x32xf32>
    %303 = arith.divf %301, %302 : vector<2x32xf32>
    %304 = vector.extract_strided_slice %282 {offsets = [0, 64], sizes = [2, 32], strides = [1, 1]} : vector<2x96xf32> to vector<2x32xf32>
    %305 = vector.extract_strided_slice %286 {offsets = [0, 64], sizes = [2, 32], strides = [1, 1]} : vector<2x96xf32> to vector<2x32xf32>
    %306 = arith.mulf %295, %305 : vector<2x32xf32>
    %307 = arith.addf %304, %306 : vector<2x32xf32>
    %308 = math.tanh %307 : vector<2x32xf32>
    %cst_44 = arith.constant 1.000000e+00 : f32
    %309 = vector.broadcast %cst_44 : f32 to vector<2x32xf32>
    %310 = arith.subf %309, %303 : vector<2x32xf32>
    %311 = arith.mulf %310, %308 : vector<2x32xf32>
    %312 = arith.mulf %303, %287 : vector<2x32xf32>
    %313 = arith.addf %311, %312 : vector<2x32xf32>
    %314 = vector.extract_strided_slice %279 {offsets = [0, 96], sizes = [2, 96], strides = [1, 1]} : vector<2x192xf32> to vector<2x96xf32>
    %315 = vector.extract_strided_slice %276 {offsets = [0, 32], sizes = [2, 32], strides = [1, 1]} : vector<2x64xf32> to vector<2x32xf32>
    %316 = vector.extract_strided_slice %285 {offsets = [0, 0], sizes = [2, 32], strides = [1, 1]} : vector<2x96xf32> to vector<2x32xf32>
    %317 = vector.extract_strided_slice %314 {offsets = [0, 0], sizes = [2, 32], strides = [1, 1]} : vector<2x96xf32> to vector<2x32xf32>
    %318 = arith.addf %316, %317 : vector<2x32xf32>
    %319 = arith.negf %318 : vector<2x32xf32>
    %320 = math.exp %319 : vector<2x32xf32>
    %cst_45 = arith.constant 1.000000e+00 : f32
    %321 = vector.broadcast %cst_45 : f32 to vector<2x32xf32>
    %322 = arith.addf %321, %320 : vector<2x32xf32>
    %323 = arith.divf %321, %322 : vector<2x32xf32>
    %324 = vector.extract_strided_slice %285 {offsets = [0, 32], sizes = [2, 32], strides = [1, 1]} : vector<2x96xf32> to vector<2x32xf32>
    %325 = vector.extract_strided_slice %314 {offsets = [0, 32], sizes = [2, 32], strides = [1, 1]} : vector<2x96xf32> to vector<2x32xf32>
    %326 = arith.addf %324, %325 : vector<2x32xf32>
    %327 = arith.negf %326 : vector<2x32xf32>
    %328 = math.exp %327 : vector<2x32xf32>
    %cst_46 = arith.constant 1.000000e+00 : f32
    %329 = vector.broadcast %cst_46 : f32 to vector<2x32xf32>
    %330 = arith.addf %329, %328 : vector<2x32xf32>
    %331 = arith.divf %329, %330 : vector<2x32xf32>
    %332 = vector.extract_strided_slice %285 {offsets = [0, 64], sizes = [2, 32], strides = [1, 1]} : vector<2x96xf32> to vector<2x32xf32>
    %333 = vector.extract_strided_slice %314 {offsets = [0, 64], sizes = [2, 32], strides = [1, 1]} : vector<2x96xf32> to vector<2x32xf32>
    %334 = arith.mulf %323, %333 : vector<2x32xf32>
    %335 = arith.addf %332, %334 : vector<2x32xf32>
    %336 = math.tanh %335 : vector<2x32xf32>
    %cst_47 = arith.constant 1.000000e+00 : f32
    %337 = vector.broadcast %cst_47 : f32 to vector<2x32xf32>
    %338 = arith.subf %337, %331 : vector<2x32xf32>
    %339 = arith.mulf %338, %336 : vector<2x32xf32>
    %340 = arith.mulf %331, %315 : vector<2x32xf32>
    %341 = arith.addf %339, %340 : vector<2x32xf32>
    %342 = tpu.concatenate %313, %341 in 1 : vector<2x32xf32>, vector<2x32xf32> -> vector<2x64xf32>
    %cst_48 = arith.constant dense<0.000000e+00> : vector<2x192xf32>
    %343 = tpu.matmul %342, %5, %cst_48 {dimension_numbers = #tpu.dot_dimension_numbers<[1], [0], [0], [1], [0, 0, 1, 1], [], []>} : vector<2x64xf32>, vector<64x192xf32>, vector<2x192xf32> -> vector<2x192xf32>
    %344 = vector.broadcast %6 : vector<1x192xf32> to vector<2x192xf32>
    %345 = arith.addf %343, %344 : vector<2x192xf32>
    %346 = vector.extract_strided_slice %11 {offsets = [5, 0], sizes = [1, 96], strides = [1, 1]} : vector<16x192xf32> to vector<1x96xf32>
    %347 = vector.extract_strided_slice %11 {offsets = [13, 0], sizes = [1, 96], strides = [1, 1]} : vector<16x192xf32> to vector<1x96xf32>
    %348 = tpu.concatenate %346, %347 in 0 : vector<1x96xf32>, vector<1x96xf32> -> vector<2x96xf32>
    %349 = vector.extract_strided_slice %11 {offsets = [2, 96], sizes = [1, 96], strides = [1, 1]} : vector<16x192xf32> to vector<1x96xf32>
    %350 = vector.extract_strided_slice %11 {offsets = [10, 96], sizes = [1, 96], strides = [1, 1]} : vector<16x192xf32> to vector<1x96xf32>
    %351 = tpu.concatenate %349, %350 in 0 : vector<1x96xf32>, vector<1x96xf32> -> vector<2x96xf32>
    %352 = vector.extract_strided_slice %345 {offsets = [0, 0], sizes = [2, 96], strides = [1, 1]} : vector<2x192xf32> to vector<2x96xf32>
    %353 = vector.extract_strided_slice %342 {offsets = [0, 0], sizes = [2, 32], strides = [1, 1]} : vector<2x64xf32> to vector<2x32xf32>
    %354 = vector.extract_strided_slice %348 {offsets = [0, 0], sizes = [2, 32], strides = [1, 1]} : vector<2x96xf32> to vector<2x32xf32>
    %355 = vector.extract_strided_slice %352 {offsets = [0, 0], sizes = [2, 32], strides = [1, 1]} : vector<2x96xf32> to vector<2x32xf32>
    %356 = arith.addf %354, %355 : vector<2x32xf32>
    %357 = arith.negf %356 : vector<2x32xf32>
    %358 = math.exp %357 : vector<2x32xf32>
    %cst_49 = arith.constant 1.000000e+00 : f32
    %359 = vector.broadcast %cst_49 : f32 to vector<2x32xf32>
    %360 = arith.addf %359, %358 : vector<2x32xf32>
    %361 = arith.divf %359, %360 : vector<2x32xf32>
    %362 = vector.extract_strided_slice %348 {offsets = [0, 32], sizes = [2, 32], strides = [1, 1]} : vector<2x96xf32> to vector<2x32xf32>
    %363 = vector.extract_strided_slice %352 {offsets = [0, 32], sizes = [2, 32], strides = [1, 1]} : vector<2x96xf32> to vector<2x32xf32>
    %364 = arith.addf %362, %363 : vector<2x32xf32>
    %365 = arith.negf %364 : vector<2x32xf32>
    %366 = math.exp %365 : vector<2x32xf32>
    %cst_50 = arith.constant 1.000000e+00 : f32
    %367 = vector.broadcast %cst_50 : f32 to vector<2x32xf32>
    %368 = arith.addf %367, %366 : vector<2x32xf32>
    %369 = arith.divf %367, %368 : vector<2x32xf32>
    %370 = vector.extract_strided_slice %348 {offsets = [0, 64], sizes = [2, 32], strides = [1, 1]} : vector<2x96xf32> to vector<2x32xf32>
    %371 = vector.extract_strided_slice %352 {offsets = [0, 64], sizes = [2, 32], strides = [1, 1]} : vector<2x96xf32> to vector<2x32xf32>
    %372 = arith.mulf %361, %371 : vector<2x32xf32>
    %373 = arith.addf %370, %372 : vector<2x32xf32>
    %374 = math.tanh %373 : vector<2x32xf32>
    %cst_51 = arith.constant 1.000000e+00 : f32
    %375 = vector.broadcast %cst_51 : f32 to vector<2x32xf32>
    %376 = arith.subf %375, %369 : vector<2x32xf32>
    %377 = arith.mulf %376, %374 : vector<2x32xf32>
    %378 = arith.mulf %369, %353 : vector<2x32xf32>
    %379 = arith.addf %377, %378 : vector<2x32xf32>
    %380 = vector.extract_strided_slice %345 {offsets = [0, 96], sizes = [2, 96], strides = [1, 1]} : vector<2x192xf32> to vector<2x96xf32>
    %381 = vector.extract_strided_slice %342 {offsets = [0, 32], sizes = [2, 32], strides = [1, 1]} : vector<2x64xf32> to vector<2x32xf32>
    %382 = vector.extract_strided_slice %351 {offsets = [0, 0], sizes = [2, 32], strides = [1, 1]} : vector<2x96xf32> to vector<2x32xf32>
    %383 = vector.extract_strided_slice %380 {offsets = [0, 0], sizes = [2, 32], strides = [1, 1]} : vector<2x96xf32> to vector<2x32xf32>
    %384 = arith.addf %382, %383 : vector<2x32xf32>
    %385 = arith.negf %384 : vector<2x32xf32>
    %386 = math.exp %385 : vector<2x32xf32>
    %cst_52 = arith.constant 1.000000e+00 : f32
    %387 = vector.broadcast %cst_52 : f32 to vector<2x32xf32>
    %388 = arith.addf %387, %386 : vector<2x32xf32>
    %389 = arith.divf %387, %388 : vector<2x32xf32>
    %390 = vector.extract_strided_slice %351 {offsets = [0, 32], sizes = [2, 32], strides = [1, 1]} : vector<2x96xf32> to vector<2x32xf32>
    %391 = vector.extract_strided_slice %380 {offsets = [0, 32], sizes = [2, 32], strides = [1, 1]} : vector<2x96xf32> to vector<2x32xf32>
    %392 = arith.addf %390, %391 : vector<2x32xf32>
    %393 = arith.negf %392 : vector<2x32xf32>
    %394 = math.exp %393 : vector<2x32xf32>
    %cst_53 = arith.constant 1.000000e+00 : f32
    %395 = vector.broadcast %cst_53 : f32 to vector<2x32xf32>
    %396 = arith.addf %395, %394 : vector<2x32xf32>
    %397 = arith.divf %395, %396 : vector<2x32xf32>
    %398 = vector.extract_strided_slice %351 {offsets = [0, 64], sizes = [2, 32], strides = [1, 1]} : vector<2x96xf32> to vector<2x32xf32>
    %399 = vector.extract_strided_slice %380 {offsets = [0, 64], sizes = [2, 32], strides = [1, 1]} : vector<2x96xf32> to vector<2x32xf32>
    %400 = arith.mulf %389, %399 : vector<2x32xf32>
    %401 = arith.addf %398, %400 : vector<2x32xf32>
    %402 = math.tanh %401 : vector<2x32xf32>
    %cst_54 = arith.constant 1.000000e+00 : f32
    %403 = vector.broadcast %cst_54 : f32 to vector<2x32xf32>
    %404 = arith.subf %403, %397 : vector<2x32xf32>
    %405 = arith.mulf %404, %402 : vector<2x32xf32>
    %406 = arith.mulf %397, %381 : vector<2x32xf32>
    %407 = arith.addf %405, %406 : vector<2x32xf32>
    %408 = tpu.concatenate %379, %407 in 1 : vector<2x32xf32>, vector<2x32xf32> -> vector<2x64xf32>
    %cst_55 = arith.constant dense<0.000000e+00> : vector<2x192xf32>
    %409 = tpu.matmul %408, %5, %cst_55 {dimension_numbers = #tpu.dot_dimension_numbers<[1], [0], [0], [1], [0, 0, 1, 1], [], []>} : vector<2x64xf32>, vector<64x192xf32>, vector<2x192xf32> -> vector<2x192xf32>
    %410 = vector.broadcast %6 : vector<1x192xf32> to vector<2x192xf32>
    %411 = arith.addf %409, %410 : vector<2x192xf32>
    %412 = vector.extract_strided_slice %11 {offsets = [6, 0], sizes = [1, 96], strides = [1, 1]} : vector<16x192xf32> to vector<1x96xf32>
    %413 = vector.extract_strided_slice %11 {offsets = [14, 0], sizes = [1, 96], strides = [1, 1]} : vector<16x192xf32> to vector<1x96xf32>
    %414 = tpu.concatenate %412, %413 in 0 : vector<1x96xf32>, vector<1x96xf32> -> vector<2x96xf32>
    %415 = vector.extract_strided_slice %11 {offsets = [1, 96], sizes = [1, 96], strides = [1, 1]} : vector<16x192xf32> to vector<1x96xf32>
    %416 = vector.extract_strided_slice %11 {offsets = [9, 96], sizes = [1, 96], strides = [1, 1]} : vector<16x192xf32> to vector<1x96xf32>
    %417 = tpu.concatenate %415, %416 in 0 : vector<1x96xf32>, vector<1x96xf32> -> vector<2x96xf32>
    %418 = vector.extract_strided_slice %411 {offsets = [0, 0], sizes = [2, 96], strides = [1, 1]} : vector<2x192xf32> to vector<2x96xf32>
    %419 = vector.extract_strided_slice %408 {offsets = [0, 0], sizes = [2, 32], strides = [1, 1]} : vector<2x64xf32> to vector<2x32xf32>
    %420 = vector.extract_strided_slice %414 {offsets = [0, 0], sizes = [2, 32], strides = [1, 1]} : vector<2x96xf32> to vector<2x32xf32>
    %421 = vector.extract_strided_slice %418 {offsets = [0, 0], sizes = [2, 32], strides = [1, 1]} : vector<2x96xf32> to vector<2x32xf32>
    %422 = arith.addf %420, %421 : vector<2x32xf32>
    %423 = arith.negf %422 : vector<2x32xf32>
    %424 = math.exp %423 : vector<2x32xf32>
    %cst_56 = arith.constant 1.000000e+00 : f32
    %425 = vector.broadcast %cst_56 : f32 to vector<2x32xf32>
    %426 = arith.addf %425, %424 : vector<2x32xf32>
    %427 = arith.divf %425, %426 : vector<2x32xf32>
    %428 = vector.extract_strided_slice %414 {offsets = [0, 32], sizes = [2, 32], strides = [1, 1]} : vector<2x96xf32> to vector<2x32xf32>
    %429 = vector.extract_strided_slice %418 {offsets = [0, 32], sizes = [2, 32], strides = [1, 1]} : vector<2x96xf32> to vector<2x32xf32>
    %430 = arith.addf %428, %429 : vector<2x32xf32>
    %431 = arith.negf %430 : vector<2x32xf32>
    %432 = math.exp %431 : vector<2x32xf32>
    %cst_57 = arith.constant 1.000000e+00 : f32
    %433 = vector.broadcast %cst_57 : f32 to vector<2x32xf32>
    %434 = arith.addf %433, %432 : vector<2x32xf32>
    %435 = arith.divf %433, %434 : vector<2x32xf32>
    %436 = vector.extract_strided_slice %414 {offsets = [0, 64], sizes = [2, 32], strides = [1, 1]} : vector<2x96xf32> to vector<2x32xf32>
    %437 = vector.extract_strided_slice %418 {offsets = [0, 64], sizes = [2, 32], strides = [1, 1]} : vector<2x96xf32> to vector<2x32xf32>
    %438 = arith.mulf %427, %437 : vector<2x32xf32>
    %439 = arith.addf %436, %438 : vector<2x32xf32>
    %440 = math.tanh %439 : vector<2x32xf32>
    %cst_58 = arith.constant 1.000000e+00 : f32
    %441 = vector.broadcast %cst_58 : f32 to vector<2x32xf32>
    %442 = arith.subf %441, %435 : vector<2x32xf32>
    %443 = arith.mulf %442, %440 : vector<2x32xf32>
    %444 = arith.mulf %435, %419 : vector<2x32xf32>
    %445 = arith.addf %443, %444 : vector<2x32xf32>
    %446 = vector.extract_strided_slice %411 {offsets = [0, 96], sizes = [2, 96], strides = [1, 1]} : vector<2x192xf32> to vector<2x96xf32>
    %447 = vector.extract_strided_slice %408 {offsets = [0, 32], sizes = [2, 32], strides = [1, 1]} : vector<2x64xf32> to vector<2x32xf32>
    %448 = vector.extract_strided_slice %417 {offsets = [0, 0], sizes = [2, 32], strides = [1, 1]} : vector<2x96xf32> to vector<2x32xf32>
    %449 = vector.extract_strided_slice %446 {offsets = [0, 0], sizes = [2, 32], strides = [1, 1]} : vector<2x96xf32> to vector<2x32xf32>
    %450 = arith.addf %448, %449 : vector<2x32xf32>
    %451 = arith.negf %450 : vector<2x32xf32>
    %452 = math.exp %451 : vector<2x32xf32>
    %cst_59 = arith.constant 1.000000e+00 : f32
    %453 = vector.broadcast %cst_59 : f32 to vector<2x32xf32>
    %454 = arith.addf %453, %452 : vector<2x32xf32>
    %455 = arith.divf %453, %454 : vector<2x32xf32>
    %456 = vector.extract_strided_slice %417 {offsets = [0, 32], sizes = [2, 32], strides = [1, 1]} : vector<2x96xf32> to vector<2x32xf32>
    %457 = vector.extract_strided_slice %446 {offsets = [0, 32], sizes = [2, 32], strides = [1, 1]} : vector<2x96xf32> to vector<2x32xf32>
    %458 = arith.addf %456, %457 : vector<2x32xf32>
    %459 = arith.negf %458 : vector<2x32xf32>
    %460 = math.exp %459 : vector<2x32xf32>
    %cst_60 = arith.constant 1.000000e+00 : f32
    %461 = vector.broadcast %cst_60 : f32 to vector<2x32xf32>
    %462 = arith.addf %461, %460 : vector<2x32xf32>
    %463 = arith.divf %461, %462 : vector<2x32xf32>
    %464 = vector.extract_strided_slice %417 {offsets = [0, 64], sizes = [2, 32], strides = [1, 1]} : vector<2x96xf32> to vector<2x32xf32>
    %465 = vector.extract_strided_slice %446 {offsets = [0, 64], sizes = [2, 32], strides = [1, 1]} : vector<2x96xf32> to vector<2x32xf32>
    %466 = arith.mulf %455, %465 : vector<2x32xf32>
    %467 = arith.addf %464, %466 : vector<2x32xf32>
    %468 = math.tanh %467 : vector<2x32xf32>
    %cst_61 = arith.constant 1.000000e+00 : f32
    %469 = vector.broadcast %cst_61 : f32 to vector<2x32xf32>
    %470 = arith.subf %469, %463 : vector<2x32xf32>
    %471 = arith.mulf %470, %468 : vector<2x32xf32>
    %472 = arith.mulf %463, %447 : vector<2x32xf32>
    %473 = arith.addf %471, %472 : vector<2x32xf32>
    %474 = tpu.concatenate %445, %473 in 1 : vector<2x32xf32>, vector<2x32xf32> -> vector<2x64xf32>
    %cst_62 = arith.constant dense<0.000000e+00> : vector<2x192xf32>
    %475 = tpu.matmul %474, %5, %cst_62 {dimension_numbers = #tpu.dot_dimension_numbers<[1], [0], [0], [1], [0, 0, 1, 1], [], []>} : vector<2x64xf32>, vector<64x192xf32>, vector<2x192xf32> -> vector<2x192xf32>
    %476 = vector.broadcast %6 : vector<1x192xf32> to vector<2x192xf32>
    %477 = arith.addf %475, %476 : vector<2x192xf32>
    %478 = vector.extract_strided_slice %11 {offsets = [7, 0], sizes = [1, 96], strides = [1, 1]} : vector<16x192xf32> to vector<1x96xf32>
    %479 = vector.extract_strided_slice %11 {offsets = [15, 0], sizes = [1, 96], strides = [1, 1]} : vector<16x192xf32> to vector<1x96xf32>
    %480 = tpu.concatenate %478, %479 in 0 : vector<1x96xf32>, vector<1x96xf32> -> vector<2x96xf32>
    %481 = vector.extract_strided_slice %11 {offsets = [0, 96], sizes = [1, 96], strides = [1, 1]} : vector<16x192xf32> to vector<1x96xf32>
    %482 = vector.extract_strided_slice %11 {offsets = [8, 96], sizes = [1, 96], strides = [1, 1]} : vector<16x192xf32> to vector<1x96xf32>
    %483 = tpu.concatenate %481, %482 in 0 : vector<1x96xf32>, vector<1x96xf32> -> vector<2x96xf32>
    %484 = vector.extract_strided_slice %477 {offsets = [0, 0], sizes = [2, 96], strides = [1, 1]} : vector<2x192xf32> to vector<2x96xf32>
    %485 = vector.extract_strided_slice %474 {offsets = [0, 0], sizes = [2, 32], strides = [1, 1]} : vector<2x64xf32> to vector<2x32xf32>
    %486 = vector.extract_strided_slice %480 {offsets = [0, 0], sizes = [2, 32], strides = [1, 1]} : vector<2x96xf32> to vector<2x32xf32>
    %487 = vector.extract_strided_slice %484 {offsets = [0, 0], sizes = [2, 32], strides = [1, 1]} : vector<2x96xf32> to vector<2x32xf32>
    %488 = arith.addf %486, %487 : vector<2x32xf32>
    %489 = arith.negf %488 : vector<2x32xf32>
    %490 = math.exp %489 : vector<2x32xf32>
    %cst_63 = arith.constant 1.000000e+00 : f32
    %491 = vector.broadcast %cst_63 : f32 to vector<2x32xf32>
    %492 = arith.addf %491, %490 : vector<2x32xf32>
    %493 = arith.divf %491, %492 : vector<2x32xf32>
    %494 = vector.extract_strided_slice %480 {offsets = [0, 32], sizes = [2, 32], strides = [1, 1]} : vector<2x96xf32> to vector<2x32xf32>
    %495 = vector.extract_strided_slice %484 {offsets = [0, 32], sizes = [2, 32], strides = [1, 1]} : vector<2x96xf32> to vector<2x32xf32>
    %496 = arith.addf %494, %495 : vector<2x32xf32>
    %497 = arith.negf %496 : vector<2x32xf32>
    %498 = math.exp %497 : vector<2x32xf32>
    %cst_64 = arith.constant 1.000000e+00 : f32
    %499 = vector.broadcast %cst_64 : f32 to vector<2x32xf32>
    %500 = arith.addf %499, %498 : vector<2x32xf32>
    %501 = arith.divf %499, %500 : vector<2x32xf32>
    %502 = vector.extract_strided_slice %480 {offsets = [0, 64], sizes = [2, 32], strides = [1, 1]} : vector<2x96xf32> to vector<2x32xf32>
    %503 = vector.extract_strided_slice %484 {offsets = [0, 64], sizes = [2, 32], strides = [1, 1]} : vector<2x96xf32> to vector<2x32xf32>
    %504 = arith.mulf %493, %503 : vector<2x32xf32>
    %505 = arith.addf %502, %504 : vector<2x32xf32>
    %506 = math.tanh %505 : vector<2x32xf32>
    %cst_65 = arith.constant 1.000000e+00 : f32
    %507 = vector.broadcast %cst_65 : f32 to vector<2x32xf32>
    %508 = arith.subf %507, %501 : vector<2x32xf32>
    %509 = arith.mulf %508, %506 : vector<2x32xf32>
    %510 = arith.mulf %501, %485 : vector<2x32xf32>
    %511 = arith.addf %509, %510 : vector<2x32xf32>
    %512 = vector.extract_strided_slice %477 {offsets = [0, 96], sizes = [2, 96], strides = [1, 1]} : vector<2x192xf32> to vector<2x96xf32>
    %513 = vector.extract_strided_slice %474 {offsets = [0, 32], sizes = [2, 32], strides = [1, 1]} : vector<2x64xf32> to vector<2x32xf32>
    %514 = vector.extract_strided_slice %483 {offsets = [0, 0], sizes = [2, 32], strides = [1, 1]} : vector<2x96xf32> to vector<2x32xf32>
    %515 = vector.extract_strided_slice %512 {offsets = [0, 0], sizes = [2, 32], strides = [1, 1]} : vector<2x96xf32> to vector<2x32xf32>
    %516 = arith.addf %514, %515 : vector<2x32xf32>
    %517 = arith.negf %516 : vector<2x32xf32>
    %518 = math.exp %517 : vector<2x32xf32>
    %cst_66 = arith.constant 1.000000e+00 : f32
    %519 = vector.broadcast %cst_66 : f32 to vector<2x32xf32>
    %520 = arith.addf %519, %518 : vector<2x32xf32>
    %521 = arith.divf %519, %520 : vector<2x32xf32>
    %522 = vector.extract_strided_slice %483 {offsets = [0, 32], sizes = [2, 32], strides = [1, 1]} : vector<2x96xf32> to vector<2x32xf32>
    %523 = vector.extract_strided_slice %512 {offsets = [0, 32], sizes = [2, 32], strides = [1, 1]} : vector<2x96xf32> to vector<2x32xf32>
    %524 = arith.addf %522, %523 : vector<2x32xf32>
    %525 = arith.negf %524 : vector<2x32xf32>
    %526 = math.exp %525 : vector<2x32xf32>
    %cst_67 = arith.constant 1.000000e+00 : f32
    %527 = vector.broadcast %cst_67 : f32 to vector<2x32xf32>
    %528 = arith.addf %527, %526 : vector<2x32xf32>
    %529 = arith.divf %527, %528 : vector<2x32xf32>
    %530 = vector.extract_strided_slice %483 {offsets = [0, 64], sizes = [2, 32], strides = [1, 1]} : vector<2x96xf32> to vector<2x32xf32>
    %531 = vector.extract_strided_slice %512 {offsets = [0, 64], sizes = [2, 32], strides = [1, 1]} : vector<2x96xf32> to vector<2x32xf32>
    %532 = arith.mulf %521, %531 : vector<2x32xf32>
    %533 = arith.addf %530, %532 : vector<2x32xf32>
    %534 = math.tanh %533 : vector<2x32xf32>
    %cst_68 = arith.constant 1.000000e+00 : f32
    %535 = vector.broadcast %cst_68 : f32 to vector<2x32xf32>
    %536 = arith.subf %535, %529 : vector<2x32xf32>
    %537 = arith.mulf %536, %534 : vector<2x32xf32>
    %538 = arith.mulf %529, %513 : vector<2x32xf32>
    %539 = arith.addf %537, %538 : vector<2x32xf32>
    %540 = tpu.concatenate %511, %539 in 1 : vector<2x32xf32>, vector<2x32xf32> -> vector<2x64xf32>
    %541 = vector.extract_strided_slice %78 {offsets = [0, 0], sizes = [1, 32], strides = [1, 1]} : vector<2x64xf32> to vector<1x32xf32>
    %542 = vector.extract_strided_slice %540 {offsets = [0, 32], sizes = [1, 32], strides = [1, 1]} : vector<2x64xf32> to vector<1x32xf32>
    %543 = tpu.concatenate %541, %542 in 1 : vector<1x32xf32>, vector<1x32xf32> -> vector<1x64xf32>
    %544 = vector.extract_strided_slice %144 {offsets = [0, 0], sizes = [1, 32], strides = [1, 1]} : vector<2x64xf32> to vector<1x32xf32>
    %545 = vector.extract_strided_slice %474 {offsets = [0, 32], sizes = [1, 32], strides = [1, 1]} : vector<2x64xf32> to vector<1x32xf32>
    %546 = tpu.concatenate %544, %545 in 1 : vector<1x32xf32>, vector<1x32xf32> -> vector<1x64xf32>
    %547 = vector.extract_strided_slice %210 {offsets = [0, 0], sizes = [1, 32], strides = [1, 1]} : vector<2x64xf32> to vector<1x32xf32>
    %548 = vector.extract_strided_slice %408 {offsets = [0, 32], sizes = [1, 32], strides = [1, 1]} : vector<2x64xf32> to vector<1x32xf32>
    %549 = tpu.concatenate %547, %548 in 1 : vector<1x32xf32>, vector<1x32xf32> -> vector<1x64xf32>
    %550 = vector.extract_strided_slice %276 {offsets = [0, 0], sizes = [1, 32], strides = [1, 1]} : vector<2x64xf32> to vector<1x32xf32>
    %551 = vector.extract_strided_slice %342 {offsets = [0, 32], sizes = [1, 32], strides = [1, 1]} : vector<2x64xf32> to vector<1x32xf32>
    %552 = tpu.concatenate %550, %551 in 1 : vector<1x32xf32>, vector<1x32xf32> -> vector<1x64xf32>
    %553 = vector.extract_strided_slice %342 {offsets = [0, 0], sizes = [1, 32], strides = [1, 1]} : vector<2x64xf32> to vector<1x32xf32>
    %554 = vector.extract_strided_slice %276 {offsets = [0, 32], sizes = [1, 32], strides = [1, 1]} : vector<2x64xf32> to vector<1x32xf32>
    %555 = tpu.concatenate %553, %554 in 1 : vector<1x32xf32>, vector<1x32xf32> -> vector<1x64xf32>
    %556 = vector.extract_strided_slice %408 {offsets = [0, 0], sizes = [1, 32], strides = [1, 1]} : vector<2x64xf32> to vector<1x32xf32>
    %557 = vector.extract_strided_slice %210 {offsets = [0, 32], sizes = [1, 32], strides = [1, 1]} : vector<2x64xf32> to vector<1x32xf32>
    %558 = tpu.concatenate %556, %557 in 1 : vector<1x32xf32>, vector<1x32xf32> -> vector<1x64xf32>
    %559 = vector.extract_strided_slice %474 {offsets = [0, 0], sizes = [1, 32], strides = [1, 1]} : vector<2x64xf32> to vector<1x32xf32>
    %560 = vector.extract_strided_slice %144 {offsets = [0, 32], sizes = [1, 32], strides = [1, 1]} : vector<2x64xf32> to vector<1x32xf32>
    %561 = tpu.concatenate %559, %560 in 1 : vector<1x32xf32>, vector<1x32xf32> -> vector<1x64xf32>
    %562 = vector.extract_strided_slice %540 {offsets = [0, 0], sizes = [1, 32], strides = [1, 1]} : vector<2x64xf32> to vector<1x32xf32>
    %563 = vector.extract_strided_slice %78 {offsets = [0, 32], sizes = [1, 32], strides = [1, 1]} : vector<2x64xf32> to vector<1x32xf32>
    %564 = tpu.concatenate %562, %563 in 1 : vector<1x32xf32>, vector<1x32xf32> -> vector<1x64xf32>
    %565 = vector.extract_strided_slice %78 {offsets = [1, 0], sizes = [1, 32], strides = [1, 1]} : vector<2x64xf32> to vector<1x32xf32>
    %566 = vector.extract_strided_slice %540 {offsets = [1, 32], sizes = [1, 32], strides = [1, 1]} : vector<2x64xf32> to vector<1x32xf32>
    %567 = tpu.concatenate %565, %566 in 1 : vector<1x32xf32>, vector<1x32xf32> -> vector<1x64xf32>
    %568 = vector.extract_strided_slice %144 {offsets = [1, 0], sizes = [1, 32], strides = [1, 1]} : vector<2x64xf32> to vector<1x32xf32>
    %569 = vector.extract_strided_slice %474 {offsets = [1, 32], sizes = [1, 32], strides = [1, 1]} : vector<2x64xf32> to vector<1x32xf32>
    %570 = tpu.concatenate %568, %569 in 1 : vector<1x32xf32>, vector<1x32xf32> -> vector<1x64xf32>
    %571 = vector.extract_strided_slice %210 {offsets = [1, 0], sizes = [1, 32], strides = [1, 1]} : vector<2x64xf32> to vector<1x32xf32>
    %572 = vector.extract_strided_slice %408 {offsets = [1, 32], sizes = [1, 32], strides = [1, 1]} : vector<2x64xf32> to vector<1x32xf32>
    %573 = tpu.concatenate %571, %572 in 1 : vector<1x32xf32>, vector<1x32xf32> -> vector<1x64xf32>
    %574 = vector.extract_strided_slice %276 {offsets = [1, 0], sizes = [1, 32], strides = [1, 1]} : vector<2x64xf32> to vector<1x32xf32>
    %575 = vector.extract_strided_slice %342 {offsets = [1, 32], sizes = [1, 32], strides = [1, 1]} : vector<2x64xf32> to vector<1x32xf32>
    %576 = tpu.concatenate %574, %575 in 1 : vector<1x32xf32>, vector<1x32xf32> -> vector<1x64xf32>
    %577 = vector.extract_strided_slice %342 {offsets = [1, 0], sizes = [1, 32], strides = [1, 1]} : vector<2x64xf32> to vector<1x32xf32>
    %578 = vector.extract_strided_slice %276 {offsets = [1, 32], sizes = [1, 32], strides = [1, 1]} : vector<2x64xf32> to vector<1x32xf32>
    %579 = tpu.concatenate %577, %578 in 1 : vector<1x32xf32>, vector<1x32xf32> -> vector<1x64xf32>
    %580 = vector.extract_strided_slice %408 {offsets = [1, 0], sizes = [1, 32], strides = [1, 1]} : vector<2x64xf32> to vector<1x32xf32>
    %581 = vector.extract_strided_slice %210 {offsets = [1, 32], sizes = [1, 32], strides = [1, 1]} : vector<2x64xf32> to vector<1x32xf32>
    %582 = tpu.concatenate %580, %581 in 1 : vector<1x32xf32>, vector<1x32xf32> -> vector<1x64xf32>
    %583 = vector.extract_strided_slice %474 {offsets = [1, 0], sizes = [1, 32], strides = [1, 1]} : vector<2x64xf32> to vector<1x32xf32>
    %584 = vector.extract_strided_slice %144 {offsets = [1, 32], sizes = [1, 32], strides = [1, 1]} : vector<2x64xf32> to vector<1x32xf32>
    %585 = tpu.concatenate %583, %584 in 1 : vector<1x32xf32>, vector<1x32xf32> -> vector<1x64xf32>
    %586 = vector.extract_strided_slice %540 {offsets = [1, 0], sizes = [1, 32], strides = [1, 1]} : vector<2x64xf32> to vector<1x32xf32>
    %587 = vector.extract_strided_slice %78 {offsets = [1, 32], sizes = [1, 32], strides = [1, 1]} : vector<2x64xf32> to vector<1x32xf32>
    %588 = tpu.concatenate %586, %587 in 1 : vector<1x32xf32>, vector<1x32xf32> -> vector<1x64xf32>
    %589 = tpu.concatenate %543, %546, %549, %552, %555, %558, %561, %564, %567, %570, %573, %576, %579, %582, %585, %588 in 0 : vector<1x64xf32>, vector<1x64xf32>, vector<1x64xf32>, vector<1x64xf32>, vector<1x64xf32>, vector<1x64xf32>, vector<1x64xf32>, vector<1x64xf32>, vector<1x64xf32>, vector<1x64xf32>, vector<1x64xf32>, vector<1x64xf32>, vector<1x64xf32>, vector<1x64xf32>, vector<1x64xf32>, vector<1x64xf32> -> vector<16x64xf32>
    %c0_69 = arith.constant 0 : index
    %c0_70 = arith.constant 0 : index
    %590 = vector.load %arg7[%c0_69, %c0_70] : memref<64x192xf32, #tpu.memory_space<vmem>>, vector<64x192xf32>
    %c0_71 = arith.constant 0 : index
    %c0_72 = arith.constant 0 : index
    %591 = vector.load %arg9[%c0_71, %c0_72] : memref<1x192xf32, #tpu.memory_space<vmem>>, vector<1x192xf32>
    %c0_73 = arith.constant 0 : index
    %c0_74 = arith.constant 0 : index
    %592 = vector.load %arg6[%c0_73, %c0_74] : memref<64x192xf32, #tpu.memory_space<vmem>>, vector<64x192xf32>
    %cst_75 = arith.constant dense<0.000000e+00> : vector<16x192xf32>
    %593 = tpu.matmul %589, %592, %cst_75 {dimension_numbers = #tpu.dot_dimension_numbers<[1], [0], [0], [1], [0, 0, 1, 1], [], []>} : vector<16x64xf32>, vector<64x192xf32>, vector<16x192xf32> -> vector<16x192xf32>
    %c0_76 = arith.constant 0 : index
    %c0_77 = arith.constant 0 : index
    %594 = vector.load %arg8[%c0_76, %c0_77] : memref<1x192xf32, #tpu.memory_space<vmem>>, vector<1x192xf32>
    %595 = vector.broadcast %594 : vector<1x192xf32> to vector<16x192xf32>
    %596 = arith.addf %593, %595 : vector<16x192xf32>
    %cst_78 = arith.constant 0.000000e+00 : f32
    %597 = vector.broadcast %cst_78 : f32 to vector<2x64xf32>
    %cst_79 = arith.constant dense<0.000000e+00> : vector<2x192xf32>
    %598 = tpu.matmul %597, %590, %cst_79 {dimension_numbers = #tpu.dot_dimension_numbers<[1], [0], [0], [1], [0, 0, 1, 1], [], []>} : vector<2x64xf32>, vector<64x192xf32>, vector<2x192xf32> -> vector<2x192xf32>
    %599 = vector.broadcast %591 : vector<1x192xf32> to vector<2x192xf32>
    %600 = arith.addf %598, %599 : vector<2x192xf32>
    %601 = vector.extract_strided_slice %596 {offsets = [0, 0], sizes = [1, 96], strides = [1, 1]} : vector<16x192xf32> to vector<1x96xf32>
    %602 = vector.extract_strided_slice %596 {offsets = [8, 0], sizes = [1, 96], strides = [1, 1]} : vector<16x192xf32> to vector<1x96xf32>
    %603 = tpu.concatenate %601, %602 in 0 : vector<1x96xf32>, vector<1x96xf32> -> vector<2x96xf32>
    %604 = vector.extract_strided_slice %596 {offsets = [7, 96], sizes = [1, 96], strides = [1, 1]} : vector<16x192xf32> to vector<1x96xf32>
    %605 = vector.extract_strided_slice %596 {offsets = [15, 96], sizes = [1, 96], strides = [1, 1]} : vector<16x192xf32> to vector<1x96xf32>
    %606 = tpu.concatenate %604, %605 in 0 : vector<1x96xf32>, vector<1x96xf32> -> vector<2x96xf32>
    %607 = vector.extract_strided_slice %600 {offsets = [0, 0], sizes = [2, 96], strides = [1, 1]} : vector<2x192xf32> to vector<2x96xf32>
    %608 = vector.extract_strided_slice %597 {offsets = [0, 0], sizes = [2, 32], strides = [1, 1]} : vector<2x64xf32> to vector<2x32xf32>
    %609 = vector.extract_strided_slice %603 {offsets = [0, 0], sizes = [2, 32], strides = [1, 1]} : vector<2x96xf32> to vector<2x32xf32>
    %610 = vector.extract_strided_slice %607 {offsets = [0, 0], sizes = [2, 32], strides = [1, 1]} : vector<2x96xf32> to vector<2x32xf32>
    %611 = arith.addf %609, %610 : vector<2x32xf32>
    %612 = arith.negf %611 : vector<2x32xf32>
    %613 = math.exp %612 : vector<2x32xf32>
    %cst_80 = arith.constant 1.000000e+00 : f32
    %614 = vector.broadcast %cst_80 : f32 to vector<2x32xf32>
    %615 = arith.addf %614, %613 : vector<2x32xf32>
    %616 = arith.divf %614, %615 : vector<2x32xf32>
    %617 = vector.extract_strided_slice %603 {offsets = [0, 32], sizes = [2, 32], strides = [1, 1]} : vector<2x96xf32> to vector<2x32xf32>
    %618 = vector.extract_strided_slice %607 {offsets = [0, 32], sizes = [2, 32], strides = [1, 1]} : vector<2x96xf32> to vector<2x32xf32>
    %619 = arith.addf %617, %618 : vector<2x32xf32>
    %620 = arith.negf %619 : vector<2x32xf32>
    %621 = math.exp %620 : vector<2x32xf32>
    %cst_81 = arith.constant 1.000000e+00 : f32
    %622 = vector.broadcast %cst_81 : f32 to vector<2x32xf32>
    %623 = arith.addf %622, %621 : vector<2x32xf32>
    %624 = arith.divf %622, %623 : vector<2x32xf32>
    %625 = vector.extract_strided_slice %603 {offsets = [0, 64], sizes = [2, 32], strides = [1, 1]} : vector<2x96xf32> to vector<2x32xf32>
    %626 = vector.extract_strided_slice %607 {offsets = [0, 64], sizes = [2, 32], strides = [1, 1]} : vector<2x96xf32> to vector<2x32xf32>
    %627 = arith.mulf %616, %626 : vector<2x32xf32>
    %628 = arith.addf %625, %627 : vector<2x32xf32>
    %629 = math.tanh %628 : vector<2x32xf32>
    %cst_82 = arith.constant 1.000000e+00 : f32
    %630 = vector.broadcast %cst_82 : f32 to vector<2x32xf32>
    %631 = arith.subf %630, %624 : vector<2x32xf32>
    %632 = arith.mulf %631, %629 : vector<2x32xf32>
    %633 = arith.mulf %624, %608 : vector<2x32xf32>
    %634 = arith.addf %632, %633 : vector<2x32xf32>
    %635 = vector.extract_strided_slice %600 {offsets = [0, 96], sizes = [2, 96], strides = [1, 1]} : vector<2x192xf32> to vector<2x96xf32>
    %636 = vector.extract_strided_slice %597 {offsets = [0, 32], sizes = [2, 32], strides = [1, 1]} : vector<2x64xf32> to vector<2x32xf32>
    %637 = vector.extract_strided_slice %606 {offsets = [0, 0], sizes = [2, 32], strides = [1, 1]} : vector<2x96xf32> to vector<2x32xf32>
    %638 = vector.extract_strided_slice %635 {offsets = [0, 0], sizes = [2, 32], strides = [1, 1]} : vector<2x96xf32> to vector<2x32xf32>
    %639 = arith.addf %637, %638 : vector<2x32xf32>
    %640 = arith.negf %639 : vector<2x32xf32>
    %641 = math.exp %640 : vector<2x32xf32>
    %cst_83 = arith.constant 1.000000e+00 : f32
    %642 = vector.broadcast %cst_83 : f32 to vector<2x32xf32>
    %643 = arith.addf %642, %641 : vector<2x32xf32>
    %644 = arith.divf %642, %643 : vector<2x32xf32>
    %645 = vector.extract_strided_slice %606 {offsets = [0, 32], sizes = [2, 32], strides = [1, 1]} : vector<2x96xf32> to vector<2x32xf32>
    %646 = vector.extract_strided_slice %635 {offsets = [0, 32], sizes = [2, 32], strides = [1, 1]} : vector<2x96xf32> to vector<2x32xf32>
    %647 = arith.addf %645, %646 : vector<2x32xf32>
    %648 = arith.negf %647 : vector<2x32xf32>
    %649 = math.exp %648 : vector<2x32xf32>
    %cst_84 = arith.constant 1.000000e+00 : f32
    %650 = vector.broadcast %cst_84 : f32 to vector<2x32xf32>
    %651 = arith.addf %650, %649 : vector<2x32xf32>
    %652 = arith.divf %650, %651 : vector<2x32xf32>
    %653 = vector.extract_strided_slice %606 {offsets = [0, 64], sizes = [2, 32], strides = [1, 1]} : vector<2x96xf32> to vector<2x32xf32>
    %654 = vector.extract_strided_slice %635 {offsets = [0, 64], sizes = [2, 32], strides = [1, 1]} : vector<2x96xf32> to vector<2x32xf32>
    %655 = arith.mulf %644, %654 : vector<2x32xf32>
    %656 = arith.addf %653, %655 : vector<2x32xf32>
    %657 = math.tanh %656 : vector<2x32xf32>
    %cst_85 = arith.constant 1.000000e+00 : f32
    %658 = vector.broadcast %cst_85 : f32 to vector<2x32xf32>
    %659 = arith.subf %658, %652 : vector<2x32xf32>
    %660 = arith.mulf %659, %657 : vector<2x32xf32>
    %661 = arith.mulf %652, %636 : vector<2x32xf32>
    %662 = arith.addf %660, %661 : vector<2x32xf32>
    %663 = tpu.concatenate %634, %662 in 1 : vector<2x32xf32>, vector<2x32xf32> -> vector<2x64xf32>
    %cst_86 = arith.constant dense<0.000000e+00> : vector<2x192xf32>
    %664 = tpu.matmul %663, %590, %cst_86 {dimension_numbers = #tpu.dot_dimension_numbers<[1], [0], [0], [1], [0, 0, 1, 1], [], []>} : vector<2x64xf32>, vector<64x192xf32>, vector<2x192xf32> -> vector<2x192xf32>
    %665 = vector.broadcast %591 : vector<1x192xf32> to vector<2x192xf32>
    %666 = arith.addf %664, %665 : vector<2x192xf32>
    %667 = vector.extract_strided_slice %596 {offsets = [1, 0], sizes = [1, 96], strides = [1, 1]} : vector<16x192xf32> to vector<1x96xf32>
    %668 = vector.extract_strided_slice %596 {offsets = [9, 0], sizes = [1, 96], strides = [1, 1]} : vector<16x192xf32> to vector<1x96xf32>
    %669 = tpu.concatenate %667, %668 in 0 : vector<1x96xf32>, vector<1x96xf32> -> vector<2x96xf32>
    %670 = vector.extract_strided_slice %596 {offsets = [6, 96], sizes = [1, 96], strides = [1, 1]} : vector<16x192xf32> to vector<1x96xf32>
    %671 = vector.extract_strided_slice %596 {offsets = [14, 96], sizes = [1, 96], strides = [1, 1]} : vector<16x192xf32> to vector<1x96xf32>
    %672 = tpu.concatenate %670, %671 in 0 : vector<1x96xf32>, vector<1x96xf32> -> vector<2x96xf32>
    %673 = vector.extract_strided_slice %666 {offsets = [0, 0], sizes = [2, 96], strides = [1, 1]} : vector<2x192xf32> to vector<2x96xf32>
    %674 = vector.extract_strided_slice %663 {offsets = [0, 0], sizes = [2, 32], strides = [1, 1]} : vector<2x64xf32> to vector<2x32xf32>
    %675 = vector.extract_strided_slice %669 {offsets = [0, 0], sizes = [2, 32], strides = [1, 1]} : vector<2x96xf32> to vector<2x32xf32>
    %676 = vector.extract_strided_slice %673 {offsets = [0, 0], sizes = [2, 32], strides = [1, 1]} : vector<2x96xf32> to vector<2x32xf32>
    %677 = arith.addf %675, %676 : vector<2x32xf32>
    %678 = arith.negf %677 : vector<2x32xf32>
    %679 = math.exp %678 : vector<2x32xf32>
    %cst_87 = arith.constant 1.000000e+00 : f32
    %680 = vector.broadcast %cst_87 : f32 to vector<2x32xf32>
    %681 = arith.addf %680, %679 : vector<2x32xf32>
    %682 = arith.divf %680, %681 : vector<2x32xf32>
    %683 = vector.extract_strided_slice %669 {offsets = [0, 32], sizes = [2, 32], strides = [1, 1]} : vector<2x96xf32> to vector<2x32xf32>
    %684 = vector.extract_strided_slice %673 {offsets = [0, 32], sizes = [2, 32], strides = [1, 1]} : vector<2x96xf32> to vector<2x32xf32>
    %685 = arith.addf %683, %684 : vector<2x32xf32>
    %686 = arith.negf %685 : vector<2x32xf32>
    %687 = math.exp %686 : vector<2x32xf32>
    %cst_88 = arith.constant 1.000000e+00 : f32
    %688 = vector.broadcast %cst_88 : f32 to vector<2x32xf32>
    %689 = arith.addf %688, %687 : vector<2x32xf32>
    %690 = arith.divf %688, %689 : vector<2x32xf32>
    %691 = vector.extract_strided_slice %669 {offsets = [0, 64], sizes = [2, 32], strides = [1, 1]} : vector<2x96xf32> to vector<2x32xf32>
    %692 = vector.extract_strided_slice %673 {offsets = [0, 64], sizes = [2, 32], strides = [1, 1]} : vector<2x96xf32> to vector<2x32xf32>
    %693 = arith.mulf %682, %692 : vector<2x32xf32>
    %694 = arith.addf %691, %693 : vector<2x32xf32>
    %695 = math.tanh %694 : vector<2x32xf32>
    %cst_89 = arith.constant 1.000000e+00 : f32
    %696 = vector.broadcast %cst_89 : f32 to vector<2x32xf32>
    %697 = arith.subf %696, %690 : vector<2x32xf32>
    %698 = arith.mulf %697, %695 : vector<2x32xf32>
    %699 = arith.mulf %690, %674 : vector<2x32xf32>
    %700 = arith.addf %698, %699 : vector<2x32xf32>
    %701 = vector.extract_strided_slice %666 {offsets = [0, 96], sizes = [2, 96], strides = [1, 1]} : vector<2x192xf32> to vector<2x96xf32>
    %702 = vector.extract_strided_slice %663 {offsets = [0, 32], sizes = [2, 32], strides = [1, 1]} : vector<2x64xf32> to vector<2x32xf32>
    %703 = vector.extract_strided_slice %672 {offsets = [0, 0], sizes = [2, 32], strides = [1, 1]} : vector<2x96xf32> to vector<2x32xf32>
    %704 = vector.extract_strided_slice %701 {offsets = [0, 0], sizes = [2, 32], strides = [1, 1]} : vector<2x96xf32> to vector<2x32xf32>
    %705 = arith.addf %703, %704 : vector<2x32xf32>
    %706 = arith.negf %705 : vector<2x32xf32>
    %707 = math.exp %706 : vector<2x32xf32>
    %cst_90 = arith.constant 1.000000e+00 : f32
    %708 = vector.broadcast %cst_90 : f32 to vector<2x32xf32>
    %709 = arith.addf %708, %707 : vector<2x32xf32>
    %710 = arith.divf %708, %709 : vector<2x32xf32>
    %711 = vector.extract_strided_slice %672 {offsets = [0, 32], sizes = [2, 32], strides = [1, 1]} : vector<2x96xf32> to vector<2x32xf32>
    %712 = vector.extract_strided_slice %701 {offsets = [0, 32], sizes = [2, 32], strides = [1, 1]} : vector<2x96xf32> to vector<2x32xf32>
    %713 = arith.addf %711, %712 : vector<2x32xf32>
    %714 = arith.negf %713 : vector<2x32xf32>
    %715 = math.exp %714 : vector<2x32xf32>
    %cst_91 = arith.constant 1.000000e+00 : f32
    %716 = vector.broadcast %cst_91 : f32 to vector<2x32xf32>
    %717 = arith.addf %716, %715 : vector<2x32xf32>
    %718 = arith.divf %716, %717 : vector<2x32xf32>
    %719 = vector.extract_strided_slice %672 {offsets = [0, 64], sizes = [2, 32], strides = [1, 1]} : vector<2x96xf32> to vector<2x32xf32>
    %720 = vector.extract_strided_slice %701 {offsets = [0, 64], sizes = [2, 32], strides = [1, 1]} : vector<2x96xf32> to vector<2x32xf32>
    %721 = arith.mulf %710, %720 : vector<2x32xf32>
    %722 = arith.addf %719, %721 : vector<2x32xf32>
    %723 = math.tanh %722 : vector<2x32xf32>
    %cst_92 = arith.constant 1.000000e+00 : f32
    %724 = vector.broadcast %cst_92 : f32 to vector<2x32xf32>
    %725 = arith.subf %724, %718 : vector<2x32xf32>
    %726 = arith.mulf %725, %723 : vector<2x32xf32>
    %727 = arith.mulf %718, %702 : vector<2x32xf32>
    %728 = arith.addf %726, %727 : vector<2x32xf32>
    %729 = tpu.concatenate %700, %728 in 1 : vector<2x32xf32>, vector<2x32xf32> -> vector<2x64xf32>
    %cst_93 = arith.constant dense<0.000000e+00> : vector<2x192xf32>
    %730 = tpu.matmul %729, %590, %cst_93 {dimension_numbers = #tpu.dot_dimension_numbers<[1], [0], [0], [1], [0, 0, 1, 1], [], []>} : vector<2x64xf32>, vector<64x192xf32>, vector<2x192xf32> -> vector<2x192xf32>
    %731 = vector.broadcast %591 : vector<1x192xf32> to vector<2x192xf32>
    %732 = arith.addf %730, %731 : vector<2x192xf32>
    %733 = vector.extract_strided_slice %596 {offsets = [2, 0], sizes = [1, 96], strides = [1, 1]} : vector<16x192xf32> to vector<1x96xf32>
    %734 = vector.extract_strided_slice %596 {offsets = [10, 0], sizes = [1, 96], strides = [1, 1]} : vector<16x192xf32> to vector<1x96xf32>
    %735 = tpu.concatenate %733, %734 in 0 : vector<1x96xf32>, vector<1x96xf32> -> vector<2x96xf32>
    %736 = vector.extract_strided_slice %596 {offsets = [5, 96], sizes = [1, 96], strides = [1, 1]} : vector<16x192xf32> to vector<1x96xf32>
    %737 = vector.extract_strided_slice %596 {offsets = [13, 96], sizes = [1, 96], strides = [1, 1]} : vector<16x192xf32> to vector<1x96xf32>
    %738 = tpu.concatenate %736, %737 in 0 : vector<1x96xf32>, vector<1x96xf32> -> vector<2x96xf32>
    %739 = vector.extract_strided_slice %732 {offsets = [0, 0], sizes = [2, 96], strides = [1, 1]} : vector<2x192xf32> to vector<2x96xf32>
    %740 = vector.extract_strided_slice %729 {offsets = [0, 0], sizes = [2, 32], strides = [1, 1]} : vector<2x64xf32> to vector<2x32xf32>
    %741 = vector.extract_strided_slice %735 {offsets = [0, 0], sizes = [2, 32], strides = [1, 1]} : vector<2x96xf32> to vector<2x32xf32>
    %742 = vector.extract_strided_slice %739 {offsets = [0, 0], sizes = [2, 32], strides = [1, 1]} : vector<2x96xf32> to vector<2x32xf32>
    %743 = arith.addf %741, %742 : vector<2x32xf32>
    %744 = arith.negf %743 : vector<2x32xf32>
    %745 = math.exp %744 : vector<2x32xf32>
    %cst_94 = arith.constant 1.000000e+00 : f32
    %746 = vector.broadcast %cst_94 : f32 to vector<2x32xf32>
    %747 = arith.addf %746, %745 : vector<2x32xf32>
    %748 = arith.divf %746, %747 : vector<2x32xf32>
    %749 = vector.extract_strided_slice %735 {offsets = [0, 32], sizes = [2, 32], strides = [1, 1]} : vector<2x96xf32> to vector<2x32xf32>
    %750 = vector.extract_strided_slice %739 {offsets = [0, 32], sizes = [2, 32], strides = [1, 1]} : vector<2x96xf32> to vector<2x32xf32>
    %751 = arith.addf %749, %750 : vector<2x32xf32>
    %752 = arith.negf %751 : vector<2x32xf32>
    %753 = math.exp %752 : vector<2x32xf32>
    %cst_95 = arith.constant 1.000000e+00 : f32
    %754 = vector.broadcast %cst_95 : f32 to vector<2x32xf32>
    %755 = arith.addf %754, %753 : vector<2x32xf32>
    %756 = arith.divf %754, %755 : vector<2x32xf32>
    %757 = vector.extract_strided_slice %735 {offsets = [0, 64], sizes = [2, 32], strides = [1, 1]} : vector<2x96xf32> to vector<2x32xf32>
    %758 = vector.extract_strided_slice %739 {offsets = [0, 64], sizes = [2, 32], strides = [1, 1]} : vector<2x96xf32> to vector<2x32xf32>
    %759 = arith.mulf %748, %758 : vector<2x32xf32>
    %760 = arith.addf %757, %759 : vector<2x32xf32>
    %761 = math.tanh %760 : vector<2x32xf32>
    %cst_96 = arith.constant 1.000000e+00 : f32
    %762 = vector.broadcast %cst_96 : f32 to vector<2x32xf32>
    %763 = arith.subf %762, %756 : vector<2x32xf32>
    %764 = arith.mulf %763, %761 : vector<2x32xf32>
    %765 = arith.mulf %756, %740 : vector<2x32xf32>
    %766 = arith.addf %764, %765 : vector<2x32xf32>
    %767 = vector.extract_strided_slice %732 {offsets = [0, 96], sizes = [2, 96], strides = [1, 1]} : vector<2x192xf32> to vector<2x96xf32>
    %768 = vector.extract_strided_slice %729 {offsets = [0, 32], sizes = [2, 32], strides = [1, 1]} : vector<2x64xf32> to vector<2x32xf32>
    %769 = vector.extract_strided_slice %738 {offsets = [0, 0], sizes = [2, 32], strides = [1, 1]} : vector<2x96xf32> to vector<2x32xf32>
    %770 = vector.extract_strided_slice %767 {offsets = [0, 0], sizes = [2, 32], strides = [1, 1]} : vector<2x96xf32> to vector<2x32xf32>
    %771 = arith.addf %769, %770 : vector<2x32xf32>
    %772 = arith.negf %771 : vector<2x32xf32>
    %773 = math.exp %772 : vector<2x32xf32>
    %cst_97 = arith.constant 1.000000e+00 : f32
    %774 = vector.broadcast %cst_97 : f32 to vector<2x32xf32>
    %775 = arith.addf %774, %773 : vector<2x32xf32>
    %776 = arith.divf %774, %775 : vector<2x32xf32>
    %777 = vector.extract_strided_slice %738 {offsets = [0, 32], sizes = [2, 32], strides = [1, 1]} : vector<2x96xf32> to vector<2x32xf32>
    %778 = vector.extract_strided_slice %767 {offsets = [0, 32], sizes = [2, 32], strides = [1, 1]} : vector<2x96xf32> to vector<2x32xf32>
    %779 = arith.addf %777, %778 : vector<2x32xf32>
    %780 = arith.negf %779 : vector<2x32xf32>
    %781 = math.exp %780 : vector<2x32xf32>
    %cst_98 = arith.constant 1.000000e+00 : f32
    %782 = vector.broadcast %cst_98 : f32 to vector<2x32xf32>
    %783 = arith.addf %782, %781 : vector<2x32xf32>
    %784 = arith.divf %782, %783 : vector<2x32xf32>
    %785 = vector.extract_strided_slice %738 {offsets = [0, 64], sizes = [2, 32], strides = [1, 1]} : vector<2x96xf32> to vector<2x32xf32>
    %786 = vector.extract_strided_slice %767 {offsets = [0, 64], sizes = [2, 32], strides = [1, 1]} : vector<2x96xf32> to vector<2x32xf32>
    %787 = arith.mulf %776, %786 : vector<2x32xf32>
    %788 = arith.addf %785, %787 : vector<2x32xf32>
    %789 = math.tanh %788 : vector<2x32xf32>
    %cst_99 = arith.constant 1.000000e+00 : f32
    %790 = vector.broadcast %cst_99 : f32 to vector<2x32xf32>
    %791 = arith.subf %790, %784 : vector<2x32xf32>
    %792 = arith.mulf %791, %789 : vector<2x32xf32>
    %793 = arith.mulf %784, %768 : vector<2x32xf32>
    %794 = arith.addf %792, %793 : vector<2x32xf32>
    %795 = tpu.concatenate %766, %794 in 1 : vector<2x32xf32>, vector<2x32xf32> -> vector<2x64xf32>
    %cst_100 = arith.constant dense<0.000000e+00> : vector<2x192xf32>
    %796 = tpu.matmul %795, %590, %cst_100 {dimension_numbers = #tpu.dot_dimension_numbers<[1], [0], [0], [1], [0, 0, 1, 1], [], []>} : vector<2x64xf32>, vector<64x192xf32>, vector<2x192xf32> -> vector<2x192xf32>
    %797 = vector.broadcast %591 : vector<1x192xf32> to vector<2x192xf32>
    %798 = arith.addf %796, %797 : vector<2x192xf32>
    %799 = vector.extract_strided_slice %596 {offsets = [3, 0], sizes = [1, 96], strides = [1, 1]} : vector<16x192xf32> to vector<1x96xf32>
    %800 = vector.extract_strided_slice %596 {offsets = [11, 0], sizes = [1, 96], strides = [1, 1]} : vector<16x192xf32> to vector<1x96xf32>
    %801 = tpu.concatenate %799, %800 in 0 : vector<1x96xf32>, vector<1x96xf32> -> vector<2x96xf32>
    %802 = vector.extract_strided_slice %596 {offsets = [4, 96], sizes = [1, 96], strides = [1, 1]} : vector<16x192xf32> to vector<1x96xf32>
    %803 = vector.extract_strided_slice %596 {offsets = [12, 96], sizes = [1, 96], strides = [1, 1]} : vector<16x192xf32> to vector<1x96xf32>
    %804 = tpu.concatenate %802, %803 in 0 : vector<1x96xf32>, vector<1x96xf32> -> vector<2x96xf32>
    %805 = vector.extract_strided_slice %798 {offsets = [0, 0], sizes = [2, 96], strides = [1, 1]} : vector<2x192xf32> to vector<2x96xf32>
    %806 = vector.extract_strided_slice %795 {offsets = [0, 0], sizes = [2, 32], strides = [1, 1]} : vector<2x64xf32> to vector<2x32xf32>
    %807 = vector.extract_strided_slice %801 {offsets = [0, 0], sizes = [2, 32], strides = [1, 1]} : vector<2x96xf32> to vector<2x32xf32>
    %808 = vector.extract_strided_slice %805 {offsets = [0, 0], sizes = [2, 32], strides = [1, 1]} : vector<2x96xf32> to vector<2x32xf32>
    %809 = arith.addf %807, %808 : vector<2x32xf32>
    %810 = arith.negf %809 : vector<2x32xf32>
    %811 = math.exp %810 : vector<2x32xf32>
    %cst_101 = arith.constant 1.000000e+00 : f32
    %812 = vector.broadcast %cst_101 : f32 to vector<2x32xf32>
    %813 = arith.addf %812, %811 : vector<2x32xf32>
    %814 = arith.divf %812, %813 : vector<2x32xf32>
    %815 = vector.extract_strided_slice %801 {offsets = [0, 32], sizes = [2, 32], strides = [1, 1]} : vector<2x96xf32> to vector<2x32xf32>
    %816 = vector.extract_strided_slice %805 {offsets = [0, 32], sizes = [2, 32], strides = [1, 1]} : vector<2x96xf32> to vector<2x32xf32>
    %817 = arith.addf %815, %816 : vector<2x32xf32>
    %818 = arith.negf %817 : vector<2x32xf32>
    %819 = math.exp %818 : vector<2x32xf32>
    %cst_102 = arith.constant 1.000000e+00 : f32
    %820 = vector.broadcast %cst_102 : f32 to vector<2x32xf32>
    %821 = arith.addf %820, %819 : vector<2x32xf32>
    %822 = arith.divf %820, %821 : vector<2x32xf32>
    %823 = vector.extract_strided_slice %801 {offsets = [0, 64], sizes = [2, 32], strides = [1, 1]} : vector<2x96xf32> to vector<2x32xf32>
    %824 = vector.extract_strided_slice %805 {offsets = [0, 64], sizes = [2, 32], strides = [1, 1]} : vector<2x96xf32> to vector<2x32xf32>
    %825 = arith.mulf %814, %824 : vector<2x32xf32>
    %826 = arith.addf %823, %825 : vector<2x32xf32>
    %827 = math.tanh %826 : vector<2x32xf32>
    %cst_103 = arith.constant 1.000000e+00 : f32
    %828 = vector.broadcast %cst_103 : f32 to vector<2x32xf32>
    %829 = arith.subf %828, %822 : vector<2x32xf32>
    %830 = arith.mulf %829, %827 : vector<2x32xf32>
    %831 = arith.mulf %822, %806 : vector<2x32xf32>
    %832 = arith.addf %830, %831 : vector<2x32xf32>
    %833 = vector.extract_strided_slice %798 {offsets = [0, 96], sizes = [2, 96], strides = [1, 1]} : vector<2x192xf32> to vector<2x96xf32>
    %834 = vector.extract_strided_slice %795 {offsets = [0, 32], sizes = [2, 32], strides = [1, 1]} : vector<2x64xf32> to vector<2x32xf32>
    %835 = vector.extract_strided_slice %804 {offsets = [0, 0], sizes = [2, 32], strides = [1, 1]} : vector<2x96xf32> to vector<2x32xf32>
    %836 = vector.extract_strided_slice %833 {offsets = [0, 0], sizes = [2, 32], strides = [1, 1]} : vector<2x96xf32> to vector<2x32xf32>
    %837 = arith.addf %835, %836 : vector<2x32xf32>
    %838 = arith.negf %837 : vector<2x32xf32>
    %839 = math.exp %838 : vector<2x32xf32>
    %cst_104 = arith.constant 1.000000e+00 : f32
    %840 = vector.broadcast %cst_104 : f32 to vector<2x32xf32>
    %841 = arith.addf %840, %839 : vector<2x32xf32>
    %842 = arith.divf %840, %841 : vector<2x32xf32>
    %843 = vector.extract_strided_slice %804 {offsets = [0, 32], sizes = [2, 32], strides = [1, 1]} : vector<2x96xf32> to vector<2x32xf32>
    %844 = vector.extract_strided_slice %833 {offsets = [0, 32], sizes = [2, 32], strides = [1, 1]} : vector<2x96xf32> to vector<2x32xf32>
    %845 = arith.addf %843, %844 : vector<2x32xf32>
    %846 = arith.negf %845 : vector<2x32xf32>
    %847 = math.exp %846 : vector<2x32xf32>
    %cst_105 = arith.constant 1.000000e+00 : f32
    %848 = vector.broadcast %cst_105 : f32 to vector<2x32xf32>
    %849 = arith.addf %848, %847 : vector<2x32xf32>
    %850 = arith.divf %848, %849 : vector<2x32xf32>
    %851 = vector.extract_strided_slice %804 {offsets = [0, 64], sizes = [2, 32], strides = [1, 1]} : vector<2x96xf32> to vector<2x32xf32>
    %852 = vector.extract_strided_slice %833 {offsets = [0, 64], sizes = [2, 32], strides = [1, 1]} : vector<2x96xf32> to vector<2x32xf32>
    %853 = arith.mulf %842, %852 : vector<2x32xf32>
    %854 = arith.addf %851, %853 : vector<2x32xf32>
    %855 = math.tanh %854 : vector<2x32xf32>
    %cst_106 = arith.constant 1.000000e+00 : f32
    %856 = vector.broadcast %cst_106 : f32 to vector<2x32xf32>
    %857 = arith.subf %856, %850 : vector<2x32xf32>
    %858 = arith.mulf %857, %855 : vector<2x32xf32>
    %859 = arith.mulf %850, %834 : vector<2x32xf32>
    %860 = arith.addf %858, %859 : vector<2x32xf32>
    %861 = tpu.concatenate %832, %860 in 1 : vector<2x32xf32>, vector<2x32xf32> -> vector<2x64xf32>
    %cst_107 = arith.constant dense<0.000000e+00> : vector<2x192xf32>
    %862 = tpu.matmul %861, %590, %cst_107 {dimension_numbers = #tpu.dot_dimension_numbers<[1], [0], [0], [1], [0, 0, 1, 1], [], []>} : vector<2x64xf32>, vector<64x192xf32>, vector<2x192xf32> -> vector<2x192xf32>
    %863 = vector.broadcast %591 : vector<1x192xf32> to vector<2x192xf32>
    %864 = arith.addf %862, %863 : vector<2x192xf32>
    %865 = vector.extract_strided_slice %596 {offsets = [4, 0], sizes = [1, 96], strides = [1, 1]} : vector<16x192xf32> to vector<1x96xf32>
    %866 = vector.extract_strided_slice %596 {offsets = [12, 0], sizes = [1, 96], strides = [1, 1]} : vector<16x192xf32> to vector<1x96xf32>
    %867 = tpu.concatenate %865, %866 in 0 : vector<1x96xf32>, vector<1x96xf32> -> vector<2x96xf32>
    %868 = vector.extract_strided_slice %596 {offsets = [3, 96], sizes = [1, 96], strides = [1, 1]} : vector<16x192xf32> to vector<1x96xf32>
    %869 = vector.extract_strided_slice %596 {offsets = [11, 96], sizes = [1, 96], strides = [1, 1]} : vector<16x192xf32> to vector<1x96xf32>
    %870 = tpu.concatenate %868, %869 in 0 : vector<1x96xf32>, vector<1x96xf32> -> vector<2x96xf32>
    %871 = vector.extract_strided_slice %864 {offsets = [0, 0], sizes = [2, 96], strides = [1, 1]} : vector<2x192xf32> to vector<2x96xf32>
    %872 = vector.extract_strided_slice %861 {offsets = [0, 0], sizes = [2, 32], strides = [1, 1]} : vector<2x64xf32> to vector<2x32xf32>
    %873 = vector.extract_strided_slice %867 {offsets = [0, 0], sizes = [2, 32], strides = [1, 1]} : vector<2x96xf32> to vector<2x32xf32>
    %874 = vector.extract_strided_slice %871 {offsets = [0, 0], sizes = [2, 32], strides = [1, 1]} : vector<2x96xf32> to vector<2x32xf32>
    %875 = arith.addf %873, %874 : vector<2x32xf32>
    %876 = arith.negf %875 : vector<2x32xf32>
    %877 = math.exp %876 : vector<2x32xf32>
    %cst_108 = arith.constant 1.000000e+00 : f32
    %878 = vector.broadcast %cst_108 : f32 to vector<2x32xf32>
    %879 = arith.addf %878, %877 : vector<2x32xf32>
    %880 = arith.divf %878, %879 : vector<2x32xf32>
    %881 = vector.extract_strided_slice %867 {offsets = [0, 32], sizes = [2, 32], strides = [1, 1]} : vector<2x96xf32> to vector<2x32xf32>
    %882 = vector.extract_strided_slice %871 {offsets = [0, 32], sizes = [2, 32], strides = [1, 1]} : vector<2x96xf32> to vector<2x32xf32>
    %883 = arith.addf %881, %882 : vector<2x32xf32>
    %884 = arith.negf %883 : vector<2x32xf32>
    %885 = math.exp %884 : vector<2x32xf32>
    %cst_109 = arith.constant 1.000000e+00 : f32
    %886 = vector.broadcast %cst_109 : f32 to vector<2x32xf32>
    %887 = arith.addf %886, %885 : vector<2x32xf32>
    %888 = arith.divf %886, %887 : vector<2x32xf32>
    %889 = vector.extract_strided_slice %867 {offsets = [0, 64], sizes = [2, 32], strides = [1, 1]} : vector<2x96xf32> to vector<2x32xf32>
    %890 = vector.extract_strided_slice %871 {offsets = [0, 64], sizes = [2, 32], strides = [1, 1]} : vector<2x96xf32> to vector<2x32xf32>
    %891 = arith.mulf %880, %890 : vector<2x32xf32>
    %892 = arith.addf %889, %891 : vector<2x32xf32>
    %893 = math.tanh %892 : vector<2x32xf32>
    %cst_110 = arith.constant 1.000000e+00 : f32
    %894 = vector.broadcast %cst_110 : f32 to vector<2x32xf32>
    %895 = arith.subf %894, %888 : vector<2x32xf32>
    %896 = arith.mulf %895, %893 : vector<2x32xf32>
    %897 = arith.mulf %888, %872 : vector<2x32xf32>
    %898 = arith.addf %896, %897 : vector<2x32xf32>
    %899 = vector.extract_strided_slice %864 {offsets = [0, 96], sizes = [2, 96], strides = [1, 1]} : vector<2x192xf32> to vector<2x96xf32>
    %900 = vector.extract_strided_slice %861 {offsets = [0, 32], sizes = [2, 32], strides = [1, 1]} : vector<2x64xf32> to vector<2x32xf32>
    %901 = vector.extract_strided_slice %870 {offsets = [0, 0], sizes = [2, 32], strides = [1, 1]} : vector<2x96xf32> to vector<2x32xf32>
    %902 = vector.extract_strided_slice %899 {offsets = [0, 0], sizes = [2, 32], strides = [1, 1]} : vector<2x96xf32> to vector<2x32xf32>
    %903 = arith.addf %901, %902 : vector<2x32xf32>
    %904 = arith.negf %903 : vector<2x32xf32>
    %905 = math.exp %904 : vector<2x32xf32>
    %cst_111 = arith.constant 1.000000e+00 : f32
    %906 = vector.broadcast %cst_111 : f32 to vector<2x32xf32>
    %907 = arith.addf %906, %905 : vector<2x32xf32>
    %908 = arith.divf %906, %907 : vector<2x32xf32>
    %909 = vector.extract_strided_slice %870 {offsets = [0, 32], sizes = [2, 32], strides = [1, 1]} : vector<2x96xf32> to vector<2x32xf32>
    %910 = vector.extract_strided_slice %899 {offsets = [0, 32], sizes = [2, 32], strides = [1, 1]} : vector<2x96xf32> to vector<2x32xf32>
    %911 = arith.addf %909, %910 : vector<2x32xf32>
    %912 = arith.negf %911 : vector<2x32xf32>
    %913 = math.exp %912 : vector<2x32xf32>
    %cst_112 = arith.constant 1.000000e+00 : f32
    %914 = vector.broadcast %cst_112 : f32 to vector<2x32xf32>
    %915 = arith.addf %914, %913 : vector<2x32xf32>
    %916 = arith.divf %914, %915 : vector<2x32xf32>
    %917 = vector.extract_strided_slice %870 {offsets = [0, 64], sizes = [2, 32], strides = [1, 1]} : vector<2x96xf32> to vector<2x32xf32>
    %918 = vector.extract_strided_slice %899 {offsets = [0, 64], sizes = [2, 32], strides = [1, 1]} : vector<2x96xf32> to vector<2x32xf32>
    %919 = arith.mulf %908, %918 : vector<2x32xf32>
    %920 = arith.addf %917, %919 : vector<2x32xf32>
    %921 = math.tanh %920 : vector<2x32xf32>
    %cst_113 = arith.constant 1.000000e+00 : f32
    %922 = vector.broadcast %cst_113 : f32 to vector<2x32xf32>
    %923 = arith.subf %922, %916 : vector<2x32xf32>
    %924 = arith.mulf %923, %921 : vector<2x32xf32>
    %925 = arith.mulf %916, %900 : vector<2x32xf32>
    %926 = arith.addf %924, %925 : vector<2x32xf32>
    %927 = tpu.concatenate %898, %926 in 1 : vector<2x32xf32>, vector<2x32xf32> -> vector<2x64xf32>
    %cst_114 = arith.constant dense<0.000000e+00> : vector<2x192xf32>
    %928 = tpu.matmul %927, %590, %cst_114 {dimension_numbers = #tpu.dot_dimension_numbers<[1], [0], [0], [1], [0, 0, 1, 1], [], []>} : vector<2x64xf32>, vector<64x192xf32>, vector<2x192xf32> -> vector<2x192xf32>
    %929 = vector.broadcast %591 : vector<1x192xf32> to vector<2x192xf32>
    %930 = arith.addf %928, %929 : vector<2x192xf32>
    %931 = vector.extract_strided_slice %596 {offsets = [5, 0], sizes = [1, 96], strides = [1, 1]} : vector<16x192xf32> to vector<1x96xf32>
    %932 = vector.extract_strided_slice %596 {offsets = [13, 0], sizes = [1, 96], strides = [1, 1]} : vector<16x192xf32> to vector<1x96xf32>
    %933 = tpu.concatenate %931, %932 in 0 : vector<1x96xf32>, vector<1x96xf32> -> vector<2x96xf32>
    %934 = vector.extract_strided_slice %596 {offsets = [2, 96], sizes = [1, 96], strides = [1, 1]} : vector<16x192xf32> to vector<1x96xf32>
    %935 = vector.extract_strided_slice %596 {offsets = [10, 96], sizes = [1, 96], strides = [1, 1]} : vector<16x192xf32> to vector<1x96xf32>
    %936 = tpu.concatenate %934, %935 in 0 : vector<1x96xf32>, vector<1x96xf32> -> vector<2x96xf32>
    %937 = vector.extract_strided_slice %930 {offsets = [0, 0], sizes = [2, 96], strides = [1, 1]} : vector<2x192xf32> to vector<2x96xf32>
    %938 = vector.extract_strided_slice %927 {offsets = [0, 0], sizes = [2, 32], strides = [1, 1]} : vector<2x64xf32> to vector<2x32xf32>
    %939 = vector.extract_strided_slice %933 {offsets = [0, 0], sizes = [2, 32], strides = [1, 1]} : vector<2x96xf32> to vector<2x32xf32>
    %940 = vector.extract_strided_slice %937 {offsets = [0, 0], sizes = [2, 32], strides = [1, 1]} : vector<2x96xf32> to vector<2x32xf32>
    %941 = arith.addf %939, %940 : vector<2x32xf32>
    %942 = arith.negf %941 : vector<2x32xf32>
    %943 = math.exp %942 : vector<2x32xf32>
    %cst_115 = arith.constant 1.000000e+00 : f32
    %944 = vector.broadcast %cst_115 : f32 to vector<2x32xf32>
    %945 = arith.addf %944, %943 : vector<2x32xf32>
    %946 = arith.divf %944, %945 : vector<2x32xf32>
    %947 = vector.extract_strided_slice %933 {offsets = [0, 32], sizes = [2, 32], strides = [1, 1]} : vector<2x96xf32> to vector<2x32xf32>
    %948 = vector.extract_strided_slice %937 {offsets = [0, 32], sizes = [2, 32], strides = [1, 1]} : vector<2x96xf32> to vector<2x32xf32>
    %949 = arith.addf %947, %948 : vector<2x32xf32>
    %950 = arith.negf %949 : vector<2x32xf32>
    %951 = math.exp %950 : vector<2x32xf32>
    %cst_116 = arith.constant 1.000000e+00 : f32
    %952 = vector.broadcast %cst_116 : f32 to vector<2x32xf32>
    %953 = arith.addf %952, %951 : vector<2x32xf32>
    %954 = arith.divf %952, %953 : vector<2x32xf32>
    %955 = vector.extract_strided_slice %933 {offsets = [0, 64], sizes = [2, 32], strides = [1, 1]} : vector<2x96xf32> to vector<2x32xf32>
    %956 = vector.extract_strided_slice %937 {offsets = [0, 64], sizes = [2, 32], strides = [1, 1]} : vector<2x96xf32> to vector<2x32xf32>
    %957 = arith.mulf %946, %956 : vector<2x32xf32>
    %958 = arith.addf %955, %957 : vector<2x32xf32>
    %959 = math.tanh %958 : vector<2x32xf32>
    %cst_117 = arith.constant 1.000000e+00 : f32
    %960 = vector.broadcast %cst_117 : f32 to vector<2x32xf32>
    %961 = arith.subf %960, %954 : vector<2x32xf32>
    %962 = arith.mulf %961, %959 : vector<2x32xf32>
    %963 = arith.mulf %954, %938 : vector<2x32xf32>
    %964 = arith.addf %962, %963 : vector<2x32xf32>
    %965 = vector.extract_strided_slice %930 {offsets = [0, 96], sizes = [2, 96], strides = [1, 1]} : vector<2x192xf32> to vector<2x96xf32>
    %966 = vector.extract_strided_slice %927 {offsets = [0, 32], sizes = [2, 32], strides = [1, 1]} : vector<2x64xf32> to vector<2x32xf32>
    %967 = vector.extract_strided_slice %936 {offsets = [0, 0], sizes = [2, 32], strides = [1, 1]} : vector<2x96xf32> to vector<2x32xf32>
    %968 = vector.extract_strided_slice %965 {offsets = [0, 0], sizes = [2, 32], strides = [1, 1]} : vector<2x96xf32> to vector<2x32xf32>
    %969 = arith.addf %967, %968 : vector<2x32xf32>
    %970 = arith.negf %969 : vector<2x32xf32>
    %971 = math.exp %970 : vector<2x32xf32>
    %cst_118 = arith.constant 1.000000e+00 : f32
    %972 = vector.broadcast %cst_118 : f32 to vector<2x32xf32>
    %973 = arith.addf %972, %971 : vector<2x32xf32>
    %974 = arith.divf %972, %973 : vector<2x32xf32>
    %975 = vector.extract_strided_slice %936 {offsets = [0, 32], sizes = [2, 32], strides = [1, 1]} : vector<2x96xf32> to vector<2x32xf32>
    %976 = vector.extract_strided_slice %965 {offsets = [0, 32], sizes = [2, 32], strides = [1, 1]} : vector<2x96xf32> to vector<2x32xf32>
    %977 = arith.addf %975, %976 : vector<2x32xf32>
    %978 = arith.negf %977 : vector<2x32xf32>
    %979 = math.exp %978 : vector<2x32xf32>
    %cst_119 = arith.constant 1.000000e+00 : f32
    %980 = vector.broadcast %cst_119 : f32 to vector<2x32xf32>
    %981 = arith.addf %980, %979 : vector<2x32xf32>
    %982 = arith.divf %980, %981 : vector<2x32xf32>
    %983 = vector.extract_strided_slice %936 {offsets = [0, 64], sizes = [2, 32], strides = [1, 1]} : vector<2x96xf32> to vector<2x32xf32>
    %984 = vector.extract_strided_slice %965 {offsets = [0, 64], sizes = [2, 32], strides = [1, 1]} : vector<2x96xf32> to vector<2x32xf32>
    %985 = arith.mulf %974, %984 : vector<2x32xf32>
    %986 = arith.addf %983, %985 : vector<2x32xf32>
    %987 = math.tanh %986 : vector<2x32xf32>
    %cst_120 = arith.constant 1.000000e+00 : f32
    %988 = vector.broadcast %cst_120 : f32 to vector<2x32xf32>
    %989 = arith.subf %988, %982 : vector<2x32xf32>
    %990 = arith.mulf %989, %987 : vector<2x32xf32>
    %991 = arith.mulf %982, %966 : vector<2x32xf32>
    %992 = arith.addf %990, %991 : vector<2x32xf32>
    %993 = tpu.concatenate %964, %992 in 1 : vector<2x32xf32>, vector<2x32xf32> -> vector<2x64xf32>
    %cst_121 = arith.constant dense<0.000000e+00> : vector<2x192xf32>
    %994 = tpu.matmul %993, %590, %cst_121 {dimension_numbers = #tpu.dot_dimension_numbers<[1], [0], [0], [1], [0, 0, 1, 1], [], []>} : vector<2x64xf32>, vector<64x192xf32>, vector<2x192xf32> -> vector<2x192xf32>
    %995 = vector.broadcast %591 : vector<1x192xf32> to vector<2x192xf32>
    %996 = arith.addf %994, %995 : vector<2x192xf32>
    %997 = vector.extract_strided_slice %596 {offsets = [6, 0], sizes = [1, 96], strides = [1, 1]} : vector<16x192xf32> to vector<1x96xf32>
    %998 = vector.extract_strided_slice %596 {offsets = [14, 0], sizes = [1, 96], strides = [1, 1]} : vector<16x192xf32> to vector<1x96xf32>
    %999 = tpu.concatenate %997, %998 in 0 : vector<1x96xf32>, vector<1x96xf32> -> vector<2x96xf32>
    %1000 = vector.extract_strided_slice %596 {offsets = [1, 96], sizes = [1, 96], strides = [1, 1]} : vector<16x192xf32> to vector<1x96xf32>
    %1001 = vector.extract_strided_slice %596 {offsets = [9, 96], sizes = [1, 96], strides = [1, 1]} : vector<16x192xf32> to vector<1x96xf32>
    %1002 = tpu.concatenate %1000, %1001 in 0 : vector<1x96xf32>, vector<1x96xf32> -> vector<2x96xf32>
    %1003 = vector.extract_strided_slice %996 {offsets = [0, 0], sizes = [2, 96], strides = [1, 1]} : vector<2x192xf32> to vector<2x96xf32>
    %1004 = vector.extract_strided_slice %993 {offsets = [0, 0], sizes = [2, 32], strides = [1, 1]} : vector<2x64xf32> to vector<2x32xf32>
    %1005 = vector.extract_strided_slice %999 {offsets = [0, 0], sizes = [2, 32], strides = [1, 1]} : vector<2x96xf32> to vector<2x32xf32>
    %1006 = vector.extract_strided_slice %1003 {offsets = [0, 0], sizes = [2, 32], strides = [1, 1]} : vector<2x96xf32> to vector<2x32xf32>
    %1007 = arith.addf %1005, %1006 : vector<2x32xf32>
    %1008 = arith.negf %1007 : vector<2x32xf32>
    %1009 = math.exp %1008 : vector<2x32xf32>
    %cst_122 = arith.constant 1.000000e+00 : f32
    %1010 = vector.broadcast %cst_122 : f32 to vector<2x32xf32>
    %1011 = arith.addf %1010, %1009 : vector<2x32xf32>
    %1012 = arith.divf %1010, %1011 : vector<2x32xf32>
    %1013 = vector.extract_strided_slice %999 {offsets = [0, 32], sizes = [2, 32], strides = [1, 1]} : vector<2x96xf32> to vector<2x32xf32>
    %1014 = vector.extract_strided_slice %1003 {offsets = [0, 32], sizes = [2, 32], strides = [1, 1]} : vector<2x96xf32> to vector<2x32xf32>
    %1015 = arith.addf %1013, %1014 : vector<2x32xf32>
    %1016 = arith.negf %1015 : vector<2x32xf32>
    %1017 = math.exp %1016 : vector<2x32xf32>
    %cst_123 = arith.constant 1.000000e+00 : f32
    %1018 = vector.broadcast %cst_123 : f32 to vector<2x32xf32>
    %1019 = arith.addf %1018, %1017 : vector<2x32xf32>
    %1020 = arith.divf %1018, %1019 : vector<2x32xf32>
    %1021 = vector.extract_strided_slice %999 {offsets = [0, 64], sizes = [2, 32], strides = [1, 1]} : vector<2x96xf32> to vector<2x32xf32>
    %1022 = vector.extract_strided_slice %1003 {offsets = [0, 64], sizes = [2, 32], strides = [1, 1]} : vector<2x96xf32> to vector<2x32xf32>
    %1023 = arith.mulf %1012, %1022 : vector<2x32xf32>
    %1024 = arith.addf %1021, %1023 : vector<2x32xf32>
    %1025 = math.tanh %1024 : vector<2x32xf32>
    %cst_124 = arith.constant 1.000000e+00 : f32
    %1026 = vector.broadcast %cst_124 : f32 to vector<2x32xf32>
    %1027 = arith.subf %1026, %1020 : vector<2x32xf32>
    %1028 = arith.mulf %1027, %1025 : vector<2x32xf32>
    %1029 = arith.mulf %1020, %1004 : vector<2x32xf32>
    %1030 = arith.addf %1028, %1029 : vector<2x32xf32>
    %1031 = vector.extract_strided_slice %996 {offsets = [0, 96], sizes = [2, 96], strides = [1, 1]} : vector<2x192xf32> to vector<2x96xf32>
    %1032 = vector.extract_strided_slice %993 {offsets = [0, 32], sizes = [2, 32], strides = [1, 1]} : vector<2x64xf32> to vector<2x32xf32>
    %1033 = vector.extract_strided_slice %1002 {offsets = [0, 0], sizes = [2, 32], strides = [1, 1]} : vector<2x96xf32> to vector<2x32xf32>
    %1034 = vector.extract_strided_slice %1031 {offsets = [0, 0], sizes = [2, 32], strides = [1, 1]} : vector<2x96xf32> to vector<2x32xf32>
    %1035 = arith.addf %1033, %1034 : vector<2x32xf32>
    %1036 = arith.negf %1035 : vector<2x32xf32>
    %1037 = math.exp %1036 : vector<2x32xf32>
    %cst_125 = arith.constant 1.000000e+00 : f32
    %1038 = vector.broadcast %cst_125 : f32 to vector<2x32xf32>
    %1039 = arith.addf %1038, %1037 : vector<2x32xf32>
    %1040 = arith.divf %1038, %1039 : vector<2x32xf32>
    %1041 = vector.extract_strided_slice %1002 {offsets = [0, 32], sizes = [2, 32], strides = [1, 1]} : vector<2x96xf32> to vector<2x32xf32>
    %1042 = vector.extract_strided_slice %1031 {offsets = [0, 32], sizes = [2, 32], strides = [1, 1]} : vector<2x96xf32> to vector<2x32xf32>
    %1043 = arith.addf %1041, %1042 : vector<2x32xf32>
    %1044 = arith.negf %1043 : vector<2x32xf32>
    %1045 = math.exp %1044 : vector<2x32xf32>
    %cst_126 = arith.constant 1.000000e+00 : f32
    %1046 = vector.broadcast %cst_126 : f32 to vector<2x32xf32>
    %1047 = arith.addf %1046, %1045 : vector<2x32xf32>
    %1048 = arith.divf %1046, %1047 : vector<2x32xf32>
    %1049 = vector.extract_strided_slice %1002 {offsets = [0, 64], sizes = [2, 32], strides = [1, 1]} : vector<2x96xf32> to vector<2x32xf32>
    %1050 = vector.extract_strided_slice %1031 {offsets = [0, 64], sizes = [2, 32], strides = [1, 1]} : vector<2x96xf32> to vector<2x32xf32>
    %1051 = arith.mulf %1040, %1050 : vector<2x32xf32>
    %1052 = arith.addf %1049, %1051 : vector<2x32xf32>
    %1053 = math.tanh %1052 : vector<2x32xf32>
    %cst_127 = arith.constant 1.000000e+00 : f32
    %1054 = vector.broadcast %cst_127 : f32 to vector<2x32xf32>
    %1055 = arith.subf %1054, %1048 : vector<2x32xf32>
    %1056 = arith.mulf %1055, %1053 : vector<2x32xf32>
    %1057 = arith.mulf %1048, %1032 : vector<2x32xf32>
    %1058 = arith.addf %1056, %1057 : vector<2x32xf32>
    %1059 = tpu.concatenate %1030, %1058 in 1 : vector<2x32xf32>, vector<2x32xf32> -> vector<2x64xf32>
    %cst_128 = arith.constant dense<0.000000e+00> : vector<2x192xf32>
    %1060 = tpu.matmul %1059, %590, %cst_128 {dimension_numbers = #tpu.dot_dimension_numbers<[1], [0], [0], [1], [0, 0, 1, 1], [], []>} : vector<2x64xf32>, vector<64x192xf32>, vector<2x192xf32> -> vector<2x192xf32>
    %1061 = vector.broadcast %591 : vector<1x192xf32> to vector<2x192xf32>
    %1062 = arith.addf %1060, %1061 : vector<2x192xf32>
    %1063 = vector.extract_strided_slice %596 {offsets = [7, 0], sizes = [1, 96], strides = [1, 1]} : vector<16x192xf32> to vector<1x96xf32>
    %1064 = vector.extract_strided_slice %596 {offsets = [15, 0], sizes = [1, 96], strides = [1, 1]} : vector<16x192xf32> to vector<1x96xf32>
    %1065 = tpu.concatenate %1063, %1064 in 0 : vector<1x96xf32>, vector<1x96xf32> -> vector<2x96xf32>
    %1066 = vector.extract_strided_slice %596 {offsets = [0, 96], sizes = [1, 96], strides = [1, 1]} : vector<16x192xf32> to vector<1x96xf32>
    %1067 = vector.extract_strided_slice %596 {offsets = [8, 96], sizes = [1, 96], strides = [1, 1]} : vector<16x192xf32> to vector<1x96xf32>
    %1068 = tpu.concatenate %1066, %1067 in 0 : vector<1x96xf32>, vector<1x96xf32> -> vector<2x96xf32>
    %1069 = vector.extract_strided_slice %1062 {offsets = [0, 0], sizes = [2, 96], strides = [1, 1]} : vector<2x192xf32> to vector<2x96xf32>
    %1070 = vector.extract_strided_slice %1059 {offsets = [0, 0], sizes = [2, 32], strides = [1, 1]} : vector<2x64xf32> to vector<2x32xf32>
    %1071 = vector.extract_strided_slice %1065 {offsets = [0, 0], sizes = [2, 32], strides = [1, 1]} : vector<2x96xf32> to vector<2x32xf32>
    %1072 = vector.extract_strided_slice %1069 {offsets = [0, 0], sizes = [2, 32], strides = [1, 1]} : vector<2x96xf32> to vector<2x32xf32>
    %1073 = arith.addf %1071, %1072 : vector<2x32xf32>
    %1074 = arith.negf %1073 : vector<2x32xf32>
    %1075 = math.exp %1074 : vector<2x32xf32>
    %cst_129 = arith.constant 1.000000e+00 : f32
    %1076 = vector.broadcast %cst_129 : f32 to vector<2x32xf32>
    %1077 = arith.addf %1076, %1075 : vector<2x32xf32>
    %1078 = arith.divf %1076, %1077 : vector<2x32xf32>
    %1079 = vector.extract_strided_slice %1065 {offsets = [0, 32], sizes = [2, 32], strides = [1, 1]} : vector<2x96xf32> to vector<2x32xf32>
    %1080 = vector.extract_strided_slice %1069 {offsets = [0, 32], sizes = [2, 32], strides = [1, 1]} : vector<2x96xf32> to vector<2x32xf32>
    %1081 = arith.addf %1079, %1080 : vector<2x32xf32>
    %1082 = arith.negf %1081 : vector<2x32xf32>
    %1083 = math.exp %1082 : vector<2x32xf32>
    %cst_130 = arith.constant 1.000000e+00 : f32
    %1084 = vector.broadcast %cst_130 : f32 to vector<2x32xf32>
    %1085 = arith.addf %1084, %1083 : vector<2x32xf32>
    %1086 = arith.divf %1084, %1085 : vector<2x32xf32>
    %1087 = vector.extract_strided_slice %1065 {offsets = [0, 64], sizes = [2, 32], strides = [1, 1]} : vector<2x96xf32> to vector<2x32xf32>
    %1088 = vector.extract_strided_slice %1069 {offsets = [0, 64], sizes = [2, 32], strides = [1, 1]} : vector<2x96xf32> to vector<2x32xf32>
    %1089 = arith.mulf %1078, %1088 : vector<2x32xf32>
    %1090 = arith.addf %1087, %1089 : vector<2x32xf32>
    %1091 = math.tanh %1090 : vector<2x32xf32>
    %cst_131 = arith.constant 1.000000e+00 : f32
    %1092 = vector.broadcast %cst_131 : f32 to vector<2x32xf32>
    %1093 = arith.subf %1092, %1086 : vector<2x32xf32>
    %1094 = arith.mulf %1093, %1091 : vector<2x32xf32>
    %1095 = arith.mulf %1086, %1070 : vector<2x32xf32>
    %1096 = arith.addf %1094, %1095 : vector<2x32xf32>
    %1097 = vector.extract_strided_slice %1062 {offsets = [0, 96], sizes = [2, 96], strides = [1, 1]} : vector<2x192xf32> to vector<2x96xf32>
    %1098 = vector.extract_strided_slice %1059 {offsets = [0, 32], sizes = [2, 32], strides = [1, 1]} : vector<2x64xf32> to vector<2x32xf32>
    %1099 = vector.extract_strided_slice %1068 {offsets = [0, 0], sizes = [2, 32], strides = [1, 1]} : vector<2x96xf32> to vector<2x32xf32>
    %1100 = vector.extract_strided_slice %1097 {offsets = [0, 0], sizes = [2, 32], strides = [1, 1]} : vector<2x96xf32> to vector<2x32xf32>
    %1101 = arith.addf %1099, %1100 : vector<2x32xf32>
    %1102 = arith.negf %1101 : vector<2x32xf32>
    %1103 = math.exp %1102 : vector<2x32xf32>
    %cst_132 = arith.constant 1.000000e+00 : f32
    %1104 = vector.broadcast %cst_132 : f32 to vector<2x32xf32>
    %1105 = arith.addf %1104, %1103 : vector<2x32xf32>
    %1106 = arith.divf %1104, %1105 : vector<2x32xf32>
    %1107 = vector.extract_strided_slice %1068 {offsets = [0, 32], sizes = [2, 32], strides = [1, 1]} : vector<2x96xf32> to vector<2x32xf32>
    %1108 = vector.extract_strided_slice %1097 {offsets = [0, 32], sizes = [2, 32], strides = [1, 1]} : vector<2x96xf32> to vector<2x32xf32>
    %1109 = arith.addf %1107, %1108 : vector<2x32xf32>
    %1110 = arith.negf %1109 : vector<2x32xf32>
    %1111 = math.exp %1110 : vector<2x32xf32>
    %cst_133 = arith.constant 1.000000e+00 : f32
    %1112 = vector.broadcast %cst_133 : f32 to vector<2x32xf32>
    %1113 = arith.addf %1112, %1111 : vector<2x32xf32>
    %1114 = arith.divf %1112, %1113 : vector<2x32xf32>
    %1115 = vector.extract_strided_slice %1068 {offsets = [0, 64], sizes = [2, 32], strides = [1, 1]} : vector<2x96xf32> to vector<2x32xf32>
    %1116 = vector.extract_strided_slice %1097 {offsets = [0, 64], sizes = [2, 32], strides = [1, 1]} : vector<2x96xf32> to vector<2x32xf32>
    %1117 = arith.mulf %1106, %1116 : vector<2x32xf32>
    %1118 = arith.addf %1115, %1117 : vector<2x32xf32>
    %1119 = math.tanh %1118 : vector<2x32xf32>
    %cst_134 = arith.constant 1.000000e+00 : f32
    %1120 = vector.broadcast %cst_134 : f32 to vector<2x32xf32>
    %1121 = arith.subf %1120, %1114 : vector<2x32xf32>
    %1122 = arith.mulf %1121, %1119 : vector<2x32xf32>
    %1123 = arith.mulf %1114, %1098 : vector<2x32xf32>
    %1124 = arith.addf %1122, %1123 : vector<2x32xf32>
    %1125 = tpu.concatenate %1096, %1124 in 1 : vector<2x32xf32>, vector<2x32xf32> -> vector<2x64xf32>
    %1126 = vector.extract_strided_slice %663 {offsets = [0, 0], sizes = [1, 32], strides = [1, 1]} : vector<2x64xf32> to vector<1x32xf32>
    %1127 = vector.extract_strided_slice %1125 {offsets = [0, 32], sizes = [1, 32], strides = [1, 1]} : vector<2x64xf32> to vector<1x32xf32>
    %1128 = tpu.concatenate %1126, %1127 in 1 : vector<1x32xf32>, vector<1x32xf32> -> vector<1x64xf32>
    %1129 = vector.extract_strided_slice %729 {offsets = [0, 0], sizes = [1, 32], strides = [1, 1]} : vector<2x64xf32> to vector<1x32xf32>
    %1130 = vector.extract_strided_slice %1059 {offsets = [0, 32], sizes = [1, 32], strides = [1, 1]} : vector<2x64xf32> to vector<1x32xf32>
    %1131 = tpu.concatenate %1129, %1130 in 1 : vector<1x32xf32>, vector<1x32xf32> -> vector<1x64xf32>
    %1132 = vector.extract_strided_slice %795 {offsets = [0, 0], sizes = [1, 32], strides = [1, 1]} : vector<2x64xf32> to vector<1x32xf32>
    %1133 = vector.extract_strided_slice %993 {offsets = [0, 32], sizes = [1, 32], strides = [1, 1]} : vector<2x64xf32> to vector<1x32xf32>
    %1134 = tpu.concatenate %1132, %1133 in 1 : vector<1x32xf32>, vector<1x32xf32> -> vector<1x64xf32>
    %1135 = vector.extract_strided_slice %861 {offsets = [0, 0], sizes = [1, 32], strides = [1, 1]} : vector<2x64xf32> to vector<1x32xf32>
    %1136 = vector.extract_strided_slice %927 {offsets = [0, 32], sizes = [1, 32], strides = [1, 1]} : vector<2x64xf32> to vector<1x32xf32>
    %1137 = tpu.concatenate %1135, %1136 in 1 : vector<1x32xf32>, vector<1x32xf32> -> vector<1x64xf32>
    %1138 = vector.extract_strided_slice %927 {offsets = [0, 0], sizes = [1, 32], strides = [1, 1]} : vector<2x64xf32> to vector<1x32xf32>
    %1139 = vector.extract_strided_slice %861 {offsets = [0, 32], sizes = [1, 32], strides = [1, 1]} : vector<2x64xf32> to vector<1x32xf32>
    %1140 = tpu.concatenate %1138, %1139 in 1 : vector<1x32xf32>, vector<1x32xf32> -> vector<1x64xf32>
    %1141 = vector.extract_strided_slice %993 {offsets = [0, 0], sizes = [1, 32], strides = [1, 1]} : vector<2x64xf32> to vector<1x32xf32>
    %1142 = vector.extract_strided_slice %795 {offsets = [0, 32], sizes = [1, 32], strides = [1, 1]} : vector<2x64xf32> to vector<1x32xf32>
    %1143 = tpu.concatenate %1141, %1142 in 1 : vector<1x32xf32>, vector<1x32xf32> -> vector<1x64xf32>
    %1144 = vector.extract_strided_slice %1059 {offsets = [0, 0], sizes = [1, 32], strides = [1, 1]} : vector<2x64xf32> to vector<1x32xf32>
    %1145 = vector.extract_strided_slice %729 {offsets = [0, 32], sizes = [1, 32], strides = [1, 1]} : vector<2x64xf32> to vector<1x32xf32>
    %1146 = tpu.concatenate %1144, %1145 in 1 : vector<1x32xf32>, vector<1x32xf32> -> vector<1x64xf32>
    %1147 = vector.extract_strided_slice %1125 {offsets = [0, 0], sizes = [1, 32], strides = [1, 1]} : vector<2x64xf32> to vector<1x32xf32>
    %1148 = vector.extract_strided_slice %663 {offsets = [0, 32], sizes = [1, 32], strides = [1, 1]} : vector<2x64xf32> to vector<1x32xf32>
    %1149 = tpu.concatenate %1147, %1148 in 1 : vector<1x32xf32>, vector<1x32xf32> -> vector<1x64xf32>
    %1150 = vector.extract_strided_slice %663 {offsets = [1, 0], sizes = [1, 32], strides = [1, 1]} : vector<2x64xf32> to vector<1x32xf32>
    %1151 = vector.extract_strided_slice %1125 {offsets = [1, 32], sizes = [1, 32], strides = [1, 1]} : vector<2x64xf32> to vector<1x32xf32>
    %1152 = tpu.concatenate %1150, %1151 in 1 : vector<1x32xf32>, vector<1x32xf32> -> vector<1x64xf32>
    %1153 = vector.extract_strided_slice %729 {offsets = [1, 0], sizes = [1, 32], strides = [1, 1]} : vector<2x64xf32> to vector<1x32xf32>
    %1154 = vector.extract_strided_slice %1059 {offsets = [1, 32], sizes = [1, 32], strides = [1, 1]} : vector<2x64xf32> to vector<1x32xf32>
    %1155 = tpu.concatenate %1153, %1154 in 1 : vector<1x32xf32>, vector<1x32xf32> -> vector<1x64xf32>
    %1156 = vector.extract_strided_slice %795 {offsets = [1, 0], sizes = [1, 32], strides = [1, 1]} : vector<2x64xf32> to vector<1x32xf32>
    %1157 = vector.extract_strided_slice %993 {offsets = [1, 32], sizes = [1, 32], strides = [1, 1]} : vector<2x64xf32> to vector<1x32xf32>
    %1158 = tpu.concatenate %1156, %1157 in 1 : vector<1x32xf32>, vector<1x32xf32> -> vector<1x64xf32>
    %1159 = vector.extract_strided_slice %861 {offsets = [1, 0], sizes = [1, 32], strides = [1, 1]} : vector<2x64xf32> to vector<1x32xf32>
    %1160 = vector.extract_strided_slice %927 {offsets = [1, 32], sizes = [1, 32], strides = [1, 1]} : vector<2x64xf32> to vector<1x32xf32>
    %1161 = tpu.concatenate %1159, %1160 in 1 : vector<1x32xf32>, vector<1x32xf32> -> vector<1x64xf32>
    %1162 = vector.extract_strided_slice %927 {offsets = [1, 0], sizes = [1, 32], strides = [1, 1]} : vector<2x64xf32> to vector<1x32xf32>
    %1163 = vector.extract_strided_slice %861 {offsets = [1, 32], sizes = [1, 32], strides = [1, 1]} : vector<2x64xf32> to vector<1x32xf32>
    %1164 = tpu.concatenate %1162, %1163 in 1 : vector<1x32xf32>, vector<1x32xf32> -> vector<1x64xf32>
    %1165 = vector.extract_strided_slice %993 {offsets = [1, 0], sizes = [1, 32], strides = [1, 1]} : vector<2x64xf32> to vector<1x32xf32>
    %1166 = vector.extract_strided_slice %795 {offsets = [1, 32], sizes = [1, 32], strides = [1, 1]} : vector<2x64xf32> to vector<1x32xf32>
    %1167 = tpu.concatenate %1165, %1166 in 1 : vector<1x32xf32>, vector<1x32xf32> -> vector<1x64xf32>
    %1168 = vector.extract_strided_slice %1059 {offsets = [1, 0], sizes = [1, 32], strides = [1, 1]} : vector<2x64xf32> to vector<1x32xf32>
    %1169 = vector.extract_strided_slice %729 {offsets = [1, 32], sizes = [1, 32], strides = [1, 1]} : vector<2x64xf32> to vector<1x32xf32>
    %1170 = tpu.concatenate %1168, %1169 in 1 : vector<1x32xf32>, vector<1x32xf32> -> vector<1x64xf32>
    %1171 = vector.extract_strided_slice %1125 {offsets = [1, 0], sizes = [1, 32], strides = [1, 1]} : vector<2x64xf32> to vector<1x32xf32>
    %1172 = vector.extract_strided_slice %663 {offsets = [1, 32], sizes = [1, 32], strides = [1, 1]} : vector<2x64xf32> to vector<1x32xf32>
    %1173 = tpu.concatenate %1171, %1172 in 1 : vector<1x32xf32>, vector<1x32xf32> -> vector<1x64xf32>
    %1174 = tpu.concatenate %1128, %1131, %1134, %1137, %1140, %1143, %1146, %1149, %1152, %1155, %1158, %1161, %1164, %1167, %1170, %1173 in 0 : vector<1x64xf32>, vector<1x64xf32>, vector<1x64xf32>, vector<1x64xf32>, vector<1x64xf32>, vector<1x64xf32>, vector<1x64xf32>, vector<1x64xf32>, vector<1x64xf32>, vector<1x64xf32>, vector<1x64xf32>, vector<1x64xf32>, vector<1x64xf32>, vector<1x64xf32>, vector<1x64xf32>, vector<1x64xf32> -> vector<16x64xf32>
    %c0_135 = arith.constant 0 : index
    %c0_136 = arith.constant 0 : index
    %1175 = vector.load %arg10[%c0_135, %c0_136] : memref<64x16xf32, #tpu.memory_space<vmem>>, vector<64x16xf32>
    %cst_137 = arith.constant dense<0.000000e+00> : vector<16x16xf32>
    %1176 = tpu.matmul %1174, %1175, %cst_137 {dimension_numbers = #tpu.dot_dimension_numbers<[1], [0], [0], [1], [0, 0, 1, 1], [], []>} : vector<16x64xf32>, vector<64x16xf32>, vector<16x16xf32> -> vector<16x16xf32>
    %c0_138 = arith.constant 0 : index
    %c0_139 = arith.constant 0 : index
    %1177 = vector.load %arg11[%c0_138, %c0_139] : memref<1x16xf32, #tpu.memory_space<vmem>>, vector<1x16xf32>
    %1178 = vector.broadcast %1177 : vector<1x16xf32> to vector<16x16xf32>
    %1179 = arith.addf %1176, %1178 : vector<16x16xf32>
    %c0_140 = arith.constant 0 : index
    %c0_141 = arith.constant 0 : index
    %1180 = vector.load %arg12[%c0_140, %c0_141] : memref<16x6xf32, #tpu.memory_space<vmem>>, vector<16x6xf32>
    %cst_142 = arith.constant dense<0.000000e+00> : vector<16x6xf32>
    %1181 = tpu.matmul %1179, %1180, %cst_142 {dimension_numbers = #tpu.dot_dimension_numbers<[1], [0], [0], [1], [0, 0, 1, 1], [], []>} : vector<16x16xf32>, vector<16x6xf32>, vector<16x6xf32> -> vector<16x6xf32>
    %c0_143 = arith.constant 0 : index
    %c0_144 = arith.constant 0 : index
    %1182 = vector.load %arg13[%c0_143, %c0_144] : memref<1x6xf32, #tpu.memory_space<vmem>>, vector<1x6xf32>
    %1183 = vector.broadcast %1182 : vector<1x6xf32> to vector<16x6xf32>
    %1184 = arith.addf %1181, %1183 : vector<16x6xf32>
    %1185 = arith.negf %1184 : vector<16x6xf32>
    %1186 = math.exp %1185 : vector<16x6xf32>
    %cst_145 = arith.constant 1.000000e+00 : f32
    %1187 = vector.broadcast %cst_145 : f32 to vector<16x6xf32>
    %1188 = arith.addf %1187, %1186 : vector<16x6xf32>
    %1189 = arith.divf %1187, %1188 : vector<16x6xf32>
    %1190 = vector.extract_strided_slice %1189 {offsets = [0, 0], sizes = [8, 6], strides = [1, 1]} : vector<16x6xf32> to vector<8x6xf32>
    %c0_146 = arith.constant 0 : index
    %c0_147 = arith.constant 0 : index
    %c0_148 = arith.constant 0 : index
    %1191 = vector.load %arg14[%c0_146, %c0_147, %c0_148] : memref<2x8x6xf32, #tpu.memory_space<vmem>>, vector<1x8x6xf32>
    %1192 = vector.shape_cast %1191 : vector<1x8x6xf32> to vector<8x6xf32>
    %1193 = vector.shape_cast %1190 : vector<8x6xf32> to vector<1x8x6xf32>
    tpu.vector_store %arg14[%c0_146, %c0_147, %c0_148], %1193 {strides = array<i32>} : memref<2x8x6xf32, #tpu.memory_space<vmem>>, vector<1x8x6xf32>,
    %1194 = vector.extract_strided_slice %1189 {offsets = [8, 0], sizes = [8, 6], strides = [1, 1]} : vector<16x6xf32> to vector<8x6xf32>
    %c1_149 = arith.constant 1 : index
    %c0_150 = arith.constant 0 : index
    %c0_151 = arith.constant 0 : index
    %1195 = vector.load %arg14[%c1_149, %c0_150, %c0_151] : memref<2x8x6xf32, #tpu.memory_space<vmem>>, vector<1x8x6xf32>
    %1196 = vector.shape_cast %1195 : vector<1x8x6xf32> to vector<8x6xf32>
    %1197 = vector.shape_cast %1194 : vector<8x6xf32> to vector<1x8x6xf32>
    tpu.vector_store %arg14[%c1_149, %c0_150, %c0_151], %1197 {strides = array<i32>} : memref<2x8x6xf32, #tpu.memory_space<vmem>>, vector<1x8x6xf32>,
    return
  }
  func.func @transform_0(%arg0: i32) -> (i32, i32, i32) {
    %c0_i32 = arith.constant 0 : i32
    %c0_i32_0 = arith.constant 0 : i32
    %c0_i32_1 = arith.constant 0 : i32
    %c0_i32_2 = arith.constant 0 : i32
    return %c0_i32, %c0_i32_0, %c0_i32_1 : i32, i32, i32
  }
  func.func @transform_1(%arg0: i32) -> (i32, i32) {
    %c0_i32 = arith.constant 0 : i32
    %c0_i32_0 = arith.constant 0 : i32
    %c0_i32_1 = arith.constant 0 : i32
    return %c0_i32, %c0_i32_0 : i32, i32
  }
  func.func @transform_2(%arg0: i32) -> (i32, i32) {
    %c0_i32 = arith.constant 0 : i32
    %c0_i32_0 = arith.constant 0 : i32
    %c0_i32_1 = arith.constant 0 : i32
    return %c0_i32, %c0_i32_0 : i32, i32
  }
  func.func @transform_3(%arg0: i32) -> (i32, i32) {
    %c0_i32 = arith.constant 0 : i32
    %c0_i32_0 = arith.constant 0 : i32
    %c0_i32_1 = arith.constant 0 : i32
    return %c0_i32, %c0_i32_0 : i32, i32
  }
  func.func @transform_4(%arg0: i32) -> (i32, i32) {
    %c0_i32 = arith.constant 0 : i32
    %c0_i32_0 = arith.constant 0 : i32
    %c0_i32_1 = arith.constant 0 : i32
    return %c0_i32, %c0_i32_0 : i32, i32
  }
  func.func @transform_5(%arg0: i32) -> (i32, i32) {
    %c0_i32 = arith.constant 0 : i32
    %c0_i32_0 = arith.constant 0 : i32
    %c0_i32_1 = arith.constant 0 : i32
    return %c0_i32, %c0_i32_0 : i32, i32
  }
  func.func @transform_6(%arg0: i32) -> (i32, i32) {
    %c0_i32 = arith.constant 0 : i32
    %c0_i32_0 = arith.constant 0 : i32
    %c0_i32_1 = arith.constant 0 : i32
    return %c0_i32, %c0_i32_0 : i32, i32
  }
  func.func @transform_7(%arg0: i32) -> (i32, i32) {
    %c0_i32 = arith.constant 0 : i32
    %c0_i32_0 = arith.constant 0 : i32
    %c0_i32_1 = arith.constant 0 : i32
    return %c0_i32, %c0_i32_0 : i32, i32
  }
  func.func @transform_8(%arg0: i32) -> (i32, i32) {
    %c0_i32 = arith.constant 0 : i32
    %c0_i32_0 = arith.constant 0 : i32
    %c0_i32_1 = arith.constant 0 : i32
    return %c0_i32, %c0_i32_0 : i32, i32
  }
  func.func @transform_9(%arg0: i32) -> (i32, i32) {
    %c0_i32 = arith.constant 0 : i32
    %c0_i32_0 = arith.constant 0 : i32
    %c0_i32_1 = arith.constant 0 : i32
    return %c0_i32, %c0_i32_0 : i32, i32
  }
  func.func @transform_10(%arg0: i32) -> (i32, i32) {
    %c0_i32 = arith.constant 0 : i32
    %c0_i32_0 = arith.constant 0 : i32
    %c0_i32_1 = arith.constant 0 : i32
    return %c0_i32, %c0_i32_0 : i32, i32
  }
  func.func @transform_11(%arg0: i32) -> (i32, i32) {
    %c0_i32 = arith.constant 0 : i32
    %c0_i32_0 = arith.constant 0 : i32
    %c0_i32_1 = arith.constant 0 : i32
    return %c0_i32, %c0_i32_0 : i32, i32
  }
  func.func @transform_12(%arg0: i32) -> (i32, i32) {
    %c0_i32 = arith.constant 0 : i32
    %c0_i32_0 = arith.constant 0 : i32
    %c0_i32_1 = arith.constant 0 : i32
    return %c0_i32, %c0_i32_0 : i32, i32
  }
  func.func @transform_13(%arg0: i32) -> (i32, i32, i32) {
    %c0_i32 = arith.constant 0 : i32
    %c0_i32_0 = arith.constant 0 : i32
    %c0_i32_1 = arith.constant 0 : i32
    %c0_i32_2 = arith.constant 0 : i32
    return %c0_i32, %c0_i32_0, %c0_i32_1 : i32, i32, i32
  }
}

</mosaic_0001>

<bundles_post_ra>
// kernel: net_forward.3
= control target key start
LH: loop header
LB: loop body
LE: loop exit
PB: predicated region body
PF: predicated region fallthrough
CT: control target
= control target key end

     0   :  { %v3945_v3 = vmov 0.0   ;;  %s3946_s17 = smov 64   ;;  %vm308_vm0 = vcmask 1040384   ;;  %s3948_s19 = smov 32   ;;  %vm390_vm1 = vcmask 261120   ;;  %vm230_vm2 = vcmask 523264   ;;  %s5180_s1 = inlined_call_operand.vmem [shape: f32[256,192], index: 1, kind: input, shape index: {}]   ;;  %s5181_s2 = inlined_call_operand.vmem [shape: f32[64,192], index: 2, kind: input, shape index: {}]   ;;  %s5182_s0 = inlined_call_operand.vmem [shape: f32[2,8,256], index: 0, kind: input, shape index: {}]   ;;  %s5183_s4 = inlined_call_operand.vmem [shape: f32[1,192], index: 4, kind: input, shape index: {}]   ;;  %s5184_s3 = inlined_call_operand.vmem [shape: f32[1,192], index: 3, kind: input, shape index: {}]   ;;  %s5185_s6 = inlined_call_operand.vmem [shape: f32[64,192], index: 6, kind: input, shape index: {}]   ;;  %s5186_s5 = inlined_call_operand.vmem [shape: f32[64,192], index: 5, kind: input, shape index: {}]   ;;  %s5187_s8 = inlined_call_operand.vmem [shape: f32[1,192], index: 8, kind: input, shape index: {}]   ;;  %s5188_s7 = inlined_call_operand.vmem [shape: f32[1,192], index: 7, kind: input, shape index: {}]   ;;  %s5189_s9 = inlined_call_operand.vmem [shape: f32[64,16], index: 9, kind: input, shape index: {}]   ;;  %s5190_s11 = inlined_call_operand.vmem [shape: f32[16,6], index: 11, kind: input, shape index: {}]   ;;  %s5191_s10 = inlined_call_operand.vmem [shape: f32[1,16], index: 10, kind: input, shape index: {}]   ;;  %s5192_s12 = inlined_call_operand.vmem [shape: f32[1,6], index: 12, kind: input, shape index: {}]   ;;  %s5193_s13 = inlined_call_operand.vmem [shape: f32[2,8,6], index: 13, kind: output, shape index: {}]  }
   0x1   :  { %v67_v0 = vld [vmem:[%s5180_s1 + $0x8] sm:$0xff]  ;;  %v69_v1 = vld [vmem:[%s5180_s1 + $0x18] sm:$0xff]  ;;  %298 = vmatprep.mubr.f32.mxu1 %v3945_v3  ;;  %v66_v6 = vld [vmem:[%s5180_s1] sm:$0xff]  ;;  %vm1532_vm3 = vcmask 1041408   ;;  %vm1534_vm4 = vcmask 1042432   ;;  %vm1536_vm5 = vcmask 1043456  }
   0x2   :  { %v50_v2 = vld [vmem:[%s5181_s2 + $0x8] sm:$0xff]  ;;  %v3321_v4 = vpack.c.bf16 %v69_v1, %v67_v0  ;;  %v52_v5 = vld [vmem:[%s5181_s2 + $0x18] sm:$0xff]  ;;  %v68_v7 = vld [vmem:[%s5180_s1 + $0x10] sm:$0xff]  ;;  %vm1538_vm6 = vcmask 1044480   ;;  %vm1540_vm7 = vcmask 1045504   ;;  %vm1542_vm8 = vcmask 1046528  }
   0x3   :  { %v4038_v8 = vpack.c.bf16 %v52_v5, %v50_v2  ;;  %v3323_v9 = vpack.c.bf16 %v68_v7, %v66_v6  ;;  %v49_v10 = vld [vmem:[%s5181_s2] sm:$0xff]  ;;  %v51_v11 = vld [vmem:[%s5181_s2 + $0x10] sm:$0xff]  ;;  %v71_v12 = vld [vmem:[%s5180_s1 + $0x28] sm:$0xff]  ;;  %vm3104_vm9 = vcmask 130048   ;;  %vm3198_vm10 = vcmask 48128  }
   0x4   :  { %3322 = vmatprep.subr.bf16.mxu0 %v3321_v4  ;;  %v4049_v13 = vpack.c.bf16 %v51_v11, %v49_v10  ;;  %v73_v14 = vld [vmem:[%s5180_s1 + $0x38] sm:$0xff]  ;;  %v54_v15 = vld [vmem:[%s5181_s2 + $0x28] sm:$0xff]  ;;  %v70_v19 = vld [vmem:[%s5180_s1 + $0x20] sm:$0xff] }
   0x5   :  { %v56_v16 = vld [vmem:[%s5181_s2 + $0x38] sm:$0xff]  ;;  %3386 = vmatprep.subr.bf16.mxu1 %v4038_v8  ;;  %3324 = vmatpush1.bf16.msra.mxu0 %v3323_v9  ;;  %v3325_v17 = vpack.c.bf16 %v73_v14, %v71_v12  ;;  %v72_v20 = vld [vmem:[%s5180_s1 + $0x30] sm:$0xff]  ;;  %v53_v21 = vld [vmem:[%s5181_s2 + $0x20] sm:$0xff] }
   0x6   :  { %v4061_v18 = vpack.c.bf16 %v56_v16, %v54_v15  ;;  %3388 = vmatpush1.bf16.msra.mxu1 %v4049_v13  ;;  %v3327_v22 = vpack.c.bf16 %v72_v20, %v70_v19  ;;  %v55_v23 = vld [vmem:[%s5181_s2 + $0x30] sm:$0xff]  ;;  %v75_v24 = vld [vmem:[%s5180_s1 + $0x48] sm:$0xff]  ;;  %v77_v25 = vld [vmem:[%s5180_s1 + $0x58] sm:$0xff] }
   0x7   :  { %3326 = vmatprep.subr.bf16.mxu0 %v3325_v17  ;;  %v4083_v26 = vpack.c.bf16 %v55_v23, %v53_v21  ;;  %v3329_v27 = vpack.c.bf16 %v77_v25, %v75_v24  ;;  %v58_v28 = vld [vmem:[%s5181_s2 + $0x48] sm:$0xff]  ;;  %v60_v29 = vld [vmem:[%s5181_s2 + $0x58] sm:$0xff]  ;;  %v74_v30 = vld [vmem:[%s5180_s1 + $0x40] sm:$0xff] }
   0x8   :  { %3390 = vmatprep.subr.bf16.mxu1 %v4061_v18  ;;  %v4094_v31 = vpack.c.bf16 %v60_v29, %v58_v28  ;;  %v76_v32 = vld [vmem:[%s5180_s1 + $0x50] sm:$0xff]  ;;  %v57_v33 = vld [vmem:[%s5181_s2 + $0x40] sm:$0xff]  ;;  %v79_v36 = vld [vmem:[%s5180_s1 + $0x68] sm:$0xff] }
   0x9   :  { %v59_v34 = vld [vmem:[%s5181_s2 + $0x50] sm:$0xff]  ;;  %3328 = vmatpush1.bf16.msra.mxu0 %v3327_v22  ;;  %v3331_v35 = vpack.c.bf16 %v76_v32, %v74_v30  ;;  %v81_v37 = vld [vmem:[%s5180_s1 + $0x78] sm:$0xff]  ;;  %v62_v38 = vld [vmem:[%s5181_s2 + $0x68] sm:$0xff] }
   0xa   :  { %3392 = vmatpush1.bf16.msra.mxu1 %v4083_v26  ;;  %3330 = vmatprep.subr.bf16.mxu0 %v3329_v27  ;;  %v4115_v39 = vpack.c.bf16 %v59_v34, %v57_v33  ;;  %v3333_v40 = vpack.c.bf16 %v81_v37, %v79_v36  ;;  %v64_v41 = vld [vmem:[%s5181_s2 + $0x78] sm:$0xff]  ;;  %v78_v42 = vld [vmem:[%s5180_s1 + $0x60] sm:$0xff]  ;;  %v80_v43 = vld [vmem:[%s5180_s1 + $0x70] sm:$0xff] }
   0xb   :  { %3394 = vmatprep.subr.bf16.mxu1 %v4094_v31  ;;  %v4127_v44 = vpack.c.bf16 %v64_v41, %v62_v38  ;;  %v61_v45 = vld [vmem:[%s5181_s2 + $0x60] sm:$0xff]  ;;  %v63_v46 = vld [vmem:[%s5181_s2 + $0x70] sm:$0xff]  ;;  %v83_v47 = vld [vmem:[%s5180_s1 + $0x88] sm:$0xff]  ;;  %v3335_v49 = vpack.c.bf16 %v80_v43, %v78_v42 }
   0xc   :  { %v85_v48 = vld [vmem:[%s5180_s1 + $0x98] sm:$0xff]  ;;  %v4142_v50 = vpack.c.bf16 %v63_v46, %v61_v45  ;;  %v82_v52 = vld [vmem:[%s5180_s1 + $0x80] sm:$0xff]  ;;  %v84_v53 = vld [vmem:[%s5180_s1 + $0x90] sm:$0xff] }
   0xd   :  { %3332 = vmatpush1.bf16.msra.mxu0 %v3331_v35  ;;  %v3337_v51 = vpack.c.bf16 %v85_v48, %v83_v47  ;;  %v87_v54 = vld [vmem:[%s5180_s1 + $0xa8] sm:$0xff]  ;;  %v89_v55 = vld [vmem:[%s5180_s1 + $0xb8] sm:$0xff]  ;;  %v3339_v56 = vpack.c.bf16 %v84_v53, %v82_v52  ;;  %v86_v58 = vld [vmem:[%s5180_s1 + $0xa0] sm:$0xff] }
   0xe   :  { %3396 = vmatpush1.bf16.msra.mxu1 %v4115_v39  ;;  %3334 = vmatprep.subr.bf16.mxu0 %v3333_v40  ;;  %v3341_v57 = vpack.c.bf16 %v89_v55, %v87_v54  ;;  %v88_v59 = vld [vmem:[%s5180_s1 + $0xb0] sm:$0xff]  ;;  %v91_v60 = vld [vmem:[%s5180_s1 + $0xc8] sm:$0xff]  ;;  %v93_v61 = vld [vmem:[%s5180_s1 + $0xd8] sm:$0xff] }
   0xf   :  { %3398 = vmatprep.subr.bf16.mxu1 %v4127_v44  ;;  %v3343_v62 = vpack.c.bf16 %v88_v59, %v86_v58  ;;  %v3345_v63 = vpack.c.bf16 %v93_v61, %v91_v60  ;;  %v90_v0 = vld [vmem:[%s5180_s1 + $0xc0] sm:$0xff]  ;;  %v92_v1 = vld [vmem:[%s5180_s1 + $0xd0] sm:$0xff]  ;;  %v95_v2 = vld [vmem:[%s5180_s1 + $0xe8] sm:$0xff] }
  0x10   :  { %v97_v4 = vld [vmem:[%s5180_s1 + $0xf8] sm:$0xff]  ;;  %v3347_v5 = vpack.c.bf16 %v92_v1, %v90_v0  ;;  %v94_v7 = vld [vmem:[%s5180_s1 + $0xe0] sm:$0xff]  ;;  %v96_v9 = vld [vmem:[%s5180_s1 + $0xf0] sm:$0xff] }
  0x11   :  { %3336 = vmatpush1.bf16.msra.mxu0 %v3335_v49  ;;  %v3349_v6 = vpack.c.bf16 %v97_v4, %v95_v2  ;;  %v99_v10 = vld [vmem:[%s5180_s1 + $0x108] sm:$0xff]  ;;  %v101_v11 = vld [vmem:[%s5180_s1 + $0x118] sm:$0xff]  ;;  %v3351_v14 = vpack.c.bf16 %v96_v9, %v94_v7  ;;  %v98_v16 = vld [vmem:[%s5180_s1 + $0x100] sm:$0xff]  ;;  %v132_v7 = vlaneseq }
  0x12   :  { %3400 = vmatpush1.bf16.msra.mxu1 %v4142_v50  ;;  %3338 = vmatprep.subr.bf16.mxu0 %v3337_v51  ;;  %v45_v12 = vld [vmem:[%s5182_s0 + $0x8] sm:$0xff]  ;;  %v3353_v15 = vpack.c.bf16 %v101_v11, %v99_v10  ;;  %v100_v17 = vld [vmem:[%s5180_s1 + $0x110] sm:$0xff]  ;;  %v105_v20 = vld [vmem:[%s5180_s1 + $0x138] sm:$0xff] }
  0x13   :  { %3402 = vmatprep.subr.bf16.mxu1 %v4038_v8  ;;  %206 = vmatprep.mubr.f32.mxu0 %v45_v12  ;;  %v103_v19 = vld [vmem:[%s5180_s1 + $0x128] sm:$0xff]  ;;  %v3355_v21 = vpack.c.bf16 %v100_v17, %v98_v16  ;;  %v102_v23 = vld [vmem:[%s5180_s1 + $0x120] sm:$0xff]  ;;  %v104_v24 = vld [vmem:[%s5180_s1 + $0x130] sm:$0xff]  ;;  %v133_v9 = vshrl.u32 %v132_v7, 7 }
  0x14   :  { %v3357_v22 = vpack.c.bf16 %v105_v20, %v103_v19  ;;  %v107_v25 = vld [vmem:[%s5180_s1 + $0x148] sm:$0xff]  ;;  %v109_v27 = vld [vmem:[%s5180_s1 + $0x158] sm:$0xff]  ;;  %v3359_v28 = vpack.c.bf16 %v104_v24, %v102_v23  ;;  %v106_v30 = vld [vmem:[%s5180_s1 + $0x140] sm:$0xff] }
  0x15   :  { %299 = vmatmul.mubr.f32.vlgmr.msra.gmra.mrb[0].mxu1 %v3945_v3  ;;  %3340 = vmatpush1.bf16.msra.mxu0 %v3339_v56  ;;  %v3361_v29 = vpack.c.bf16 %v109_v27, %v107_v25  ;;  %v108_v32 = vld [vmem:[%s5180_s1 + $0x150] sm:$0xff]  ;;  %v111_v33 = vld [vmem:[%s5180_s1 + $0x168] sm:$0xff]  ;;  %v113_v34 = vld [vmem:[%s5180_s1 + $0x178] sm:$0xff]  ;;  %v4317_v10 = vsub.s32 0, %v133_v9 }
  0x16   :  { %3342 = vmatprep.subr.bf16.mxu0 %v3341_v57  ;;  %3404 = vmatpush1.bf16.msra.mxu1 %v4049_v13  ;;  %v3363_v35 = vpack.c.bf16 %v108_v32, %v106_v30  ;;  %v3365_v36 = vpack.c.bf16 %v113_v34, %v111_v33  ;;  %v110_v37 = vld [vmem:[%s5180_s1 + $0x160] sm:$0xff]  ;;  %v112_v38 = vld [vmem:[%s5180_s1 + $0x170] sm:$0xff]  ;;  %v115_v40 = vld [vmem:[%s5180_s1 + $0x188] sm:$0xff] }
  0x17   :  { %3406 = vmatprep.subr.bf16.mxu1 %v4061_v18  ;;  %459 = vmatprep.mubr.f32.mxu1 %v3945_v3  ;;  %v117_v41 = vld [vmem:[%s5180_s1 + $0x198] sm:$0xff]  ;;  %v3367_v42 = vpack.c.bf16 %v112_v38, %v110_v37  ;;  %v114_v45 = vld [vmem:[%s5180_s1 + $0x180] sm:$0xff]  ;;  %v116_v46 = vld [vmem:[%s5180_s1 + $0x190] sm:$0xff] }
  0x18   :  { %v3369_v43 = vpack.c.bf16 %v117_v41, %v115_v40  ;;  %v119_v47 = vld [vmem:[%s5180_s1 + $0x1a8] sm:$0xff]  ;;  %v121_v48 = vld [vmem:[%s5180_s1 + $0x1b8] sm:$0xff]  ;;  %v3371_v49 = vpack.c.bf16 %v116_v46, %v114_v45  ;;  %v118_v52 = vld [vmem:[%s5180_s1 + $0x1a0] sm:$0xff] }
  0x19   :  { %3344 = vmatpush1.bf16.msra.mxu0 %v3343_v62  ;;  %v3373_v51 = vpack.c.bf16 %v121_v48, %v119_v47  ;;  %v120_v53 = vld [vmem:[%s5180_s1 + $0x1b0] sm:$0xff]  ;;  %v123_v54 = vld [vmem:[%s5180_s1 + $0x1c8] sm:$0xff]  ;;  %v125_v55 = vld [vmem:[%s5180_s1 + $0x1d8] sm:$0xff] }
  0x1a   :  { %3346 = vmatprep.subr.bf16.mxu0 %v3345_v63  ;;  %3408 = vmatpush1.bf16.msra.mxu1 %v4083_v26  ;;  %v3375_v56 = vpack.c.bf16 %v120_v53, %v118_v52  ;;  %v3377_v57 = vpack.c.bf16 %v125_v55, %v123_v54  ;;  %v122_v58 = vld [vmem:[%s5180_s1 + $0x1c0] sm:$0xff]  ;;  %v124_v59 = vld [vmem:[%s5180_s1 + $0x1d0] sm:$0xff]  ;;  %v127_v60 = vld [vmem:[%s5180_s1 + $0x1e8] sm:$0xff] }
  0x1b   :  { %3410 = vmatprep.subr.bf16.mxu1 %v4094_v31  ;;  %v129_v61 = vld [vmem:[%s5180_s1 + $0x1f8] sm:$0xff]  ;;  %v3379_v62 = vpack.c.bf16 %v124_v59, %v122_v58  ;;  %v126_v0 = vld [vmem:[%s5180_s1 + $0x1e0] sm:$0xff]  ;;  %v128_v1 = vld [vmem:[%s5180_s1 + $0x1f0] sm:$0xff] }
  0x1c   :  { %v3381_v63 = vpack.c.bf16 %v129_v61, %v127_v60  ;;  %v3383_v2 = vpack.c.bf16 %v128_v1, %v126_v0  ;;  %v44_v4 = vld [vmem:[%s5182_s0] sm:$0xff] }
  0x1d   :  { %3348 = vmatpush1.bf16.msra.mxu0 %v3347_v5  ;;  %v3207_v5 = vld [vmem:[%s5182_s0 + $0x18] sm:$0xff]  ;;  %v65_v11 = vld [vmem:[%s5183_s4] sm:$0x3] }
  0x1e   :  { %3350 = vmatprep.subr.bf16.mxu0 %v3349_v6  ;;  %3412 = vmatpush1.bf16.msra.mxu1 %v4115_v39  ;;  %v3206_v6 = vld [vmem:[%s5182_s0 + $0x10] sm:$0xff]  ;;  %v4323_v12 = vrot.slane %v65_v11, %v4317_v10 }
  0x1f   :  { %3414 = vmatprep.subr.bf16.mxu1 %v4127_v44 }
  0x21   :  { %3352 = vmatpush1.bf16.msra.mxu0 %v3351_v14  ;;  %v4325_v14 = vsub.s32 1, %v133_v9 }
  0x22   :  { %3354 = vmatprep.subr.bf16.mxu0 %v3353_v15  ;;  %3416 = vmatpush1.bf16.msra.mxu1 %v4142_v50 }
  0x23   :  { %3418 = vmatprep.subr.bf16.mxu1 %v4038_v8  ;;  %v4331_v17 = vrot.slane %v65_v11, %v4325_v14 }
  0x25   :  { %3356 = vmatpush1.bf16.msra.mxu0 %v3355_v21  ;;  %v130_v21 = vld [vmem:[%s5184_s3] sm:$0x3]  ;;  %s3947_s3 = smov 96  }
  0x26   :  { %3358 = vmatprep.subr.bf16.mxu0 %v3357_v22  ;;  %v135_v22 = vrot.slane %v130_v21, %v4317_v10  ;;  %v139_v23 = vrot.slane %v130_v21, %v4325_v14 }
  0x29   :  { %3360 = vmatpush1.bf16.msra.mxu0 %v3359_v28 }
  0x2a   :  { %3362 = vmatprep.subr.bf16.mxu0 %v3361_v29 }
  0x2d   :  { %3364 = vmatpush1.bf16.msra.mxu0 %v3363_v35 }
  0x2e   :  { %3366 = vmatprep.subr.bf16.mxu0 %v3365_v36 }
  0x31   :  { %3368 = vmatpush1.bf16.msra.mxu0 %v3367_v42 }
  0x32   :  { %3370 = vmatprep.subr.bf16.mxu0 %v3369_v43 }
  0x35   :  { %3372 = vmatpush1.bf16.msra.mxu0 %v3371_v49 }
  0x36   :  { %3374 = vmatprep.subr.bf16.mxu0 %v3373_v51 }
  0x39   :  { %3376 = vmatpush1.bf16.msra.mxu0 %v3375_v56 }
  0x3a   :  { %3378 = vmatprep.subr.bf16.mxu0 %v3377_v57 }
  0x3d   :  { %3380 = vmatpush1.bf16.msra.mxu0 %v3379_v62 }
  0x3e   :  { %3382 = vmatprep.subr.bf16.mxu0 %v3381_v63 }
  0x41   :  { %3384 = vmatpush1.bf16.msra.mxu0 %v3383_v2 }
  0x42   :  { %3450 = vmatprep.subr.bf16.mxu0 %v4038_v8 }
  0x44   :  { %207 = vmatmul.mubr.f32.vlgmr.msra.gmra.mrb[0].mxu0 %v44_v4 }
  0x45   :  { %212 = vmatprep.mubr.f32.mxu0 %v3207_v5  ;;  %3452 = vmatpush1.bf16.msra.mxu0 %v4049_v13 }
  0x46   :  { %3454 = vmatprep.subr.bf16.mxu0 %v4061_v18 }
  0x48   :  { %213 = vmatmul.mubr.f32.gmra.mrb[2].mxu0 %v3206_v6 }
  0x49   :  { %3456 = vmatpush1.bf16.msra.mxu0 %v4083_v26  ;;  %946 = vmatprep.mubr.f32.mxu0 %v3945_v3 }
  0x4a   :  { %3458 = vmatprep.subr.bf16.mxu0 %v4094_v31 }
  0x4d   :  { %3460 = vmatpush1.bf16.msra.mxu0 %v4115_v39 }
  0x4e   :  { %3462 = vmatprep.subr.bf16.mxu0 %v4127_v44 }
  0x51   :  { %3464 = vmatpush1.bf16.msra.mxu0 %v4142_v50 }
  0x52   :  { %3482 = vmatprep.subr.bf16.mxu0 %v4038_v8 }
  0xe8   :  { %v300_v15 = vpop.f32.mrb[0].mxu1 }
  0xe9   :  { %v4328_v16 = vadd.f32 %v300_v15, %v4323_v12  ;;  %v302_v19 = vpop.f32.mrb[1].mxu1 }
  0xea   :  { %v4336_v20 = vadd.f32 %v302_v19, %v4331_v17 }
  0xeb   :  { %331 = vrot.lane.b32.xlu0 %v4328_v16, %s3946_s17 }
  0xef   :  { %364 = vrot.lane.b32.xlu0 %v4336_v20, %s3946_s17 }
 0x117   :  { %v208_v24 = vpop.f32.mrb[0].mxu0 }
 0x118   :  { %v209_v25 = vadd.f32 %v208_v24, %v135_v22  ;;  %v210_v27 = vpop.f32.mrb[1].mxu0 }
 0x119   :  { %v211_v28 = vadd.f32 %v210_v27, %v139_v23 }
 0x11a   :  { %v466_v29 = vrot.slane %v209_v25, 1  ;;  %v312_v32 = vrot.slane %v209_v25, 7  ;;  %v469_v34 = vrot.slane %v209_v25, 6  ;;  %v627_v35 = vrot.slane %v209_v25, 2 }
 0x11b   :  { %v214_v30 = vpop.f32.mrb[2].mxu0  ;;  %v313_v33 = vrot.slane %v211_v28, 7  ;;  %v470_v38 = vrot.slane %v211_v28, 6  ;;  %v632_v40 = vrot.slane %v209_v25, 5  ;;  %v633_v41 = vrot.slane %v211_v28, 5 }
 0x11c   :  { %v215_v36 = vadd.f32 %v214_v30, %v135_v22  ;;  %v216_v37 = vpop.f32.mrb[3].mxu0  ;;  %v790_v43 = vrot.slane %v209_v25, 3  ;;  %v795_v45 = vrot.slane %v209_v25, 4  ;;  %v796_v46 = vrot.slane %v211_v28, 4 }
 0x11d   :  { %v217_v42 = vadd.f32 %v216_v37, %v139_v23  ;;  %v953_v62 = vrot.slane %v211_v28, 3  ;;  %v1259_v63 = vrot.slane %v211_v28, 1  ;;  %v1106_v4 = vrot.slane %v211_v28, 2 }
 0x11e   :  { %v306_v47 = vrot.slane %v215_v36, 7  ;;  %v317_v48 = vrot.slane %v215_v36, 6  ;;  %v4346_v49 = vsel %vm308_vm0, %v466_v29, %v215_v36  ;;  %v473_v51 = vrot.slane %v215_v36, 5 }
 0x11f   :  { %v318_v52 = vrot.slane %v217_v42, 6  ;;  %v474_v53 = vrot.slane %v217_v42, 5  ;;  %v629_v54 = vrot.slane %v215_v36, 1  ;;  %v636_v55 = vrot.slane %v215_v36, 4 }
 0x120   :  { %v4349_v56 = vsel %vm308_vm0, %v209_v25, %v306_v47  ;;  %v4352_v57 = vsel %vm308_vm0, %v312_v32, %v317_v48  ;;  %v4355_v58 = vsel %vm308_vm0, %v469_v34, %v473_v51  ;;  %v637_v59 = vrot.slane %v217_v42, 4 }
 0x121   :  { %v322_v60 = vsel %vm308_vm0, %v313_v33, %v318_v52  ;;  %v4359_v61 = vsel %vm308_vm0, %v470_v38, %v474_v53  ;;  %v4362_v0 = vsel %vm308_vm0, %v627_v35, %v629_v54  ;;  %v4365_v1 = vsel %vm308_vm0, %v632_v40, %v636_v55 }
 0x122   :  { %v4368_v2 = vsel %vm308_vm0, %v633_v41, %v637_v59  ;;  %v792_v5 = vrot.slane %v215_v36, 2  ;;  %v799_v6 = vrot.slane %v215_v36, 3  ;;  %v800_v7 = vrot.slane %v217_v42, 3 }
 0x123   :  { %v955_v9 = vrot.slane %v217_v42, 2  ;;  %v1108_v11 = vrot.slane %v217_v42, 1  ;;  %v4377_v21 = vsel %vm308_vm0, %v1259_v63, %v217_v42  ;;  %v1410_v25 = vrot.slane %v217_v42, 7 }
 0x124   :  { %v4371_v15 = vsel %vm308_vm0, %v790_v43, %v792_v5  ;;  %v4374_v19 = vsel %vm308_vm0, %v795_v45, %v799_v6  ;;  %v4380_v22 = vsel %vm308_vm0, %v796_v46, %v800_v7  ;;  %v323_v29 = vadd.f32 %v4349_v56, %v4328_v16 }
 0x125   :  { %v4383_v23 = vsel %vm308_vm0, %v953_v62, %v955_v9  ;;  %v4386_v24 = vsel %vm308_vm0, %v1106_v4, %v1108_v11  ;;  %v4389_v27 = vsel %vm308_vm0, %v211_v28, %v1410_v25  ;;  %v349_v32 = vadd.f32 %v4352_v57, %v4328_v16 }
 0x126   :  { %v3208_v30 = vmul.f32 -1.442695, %v323_v29  ;;  %v356_v52 = vadd.f32 %v322_v60, %v4336_v20 }
 0x127   :  { %v3209_v33 = vmul.f32 -1.442695, %v349_v32 }
 0x128   :  { %3681 = vpow2.f32 %v3208_v30  ;;  %v3210_v53 = vmul.f32 -1.442695, %v356_v52 }
 0x129   :  { %3683 = vpow2.f32 %v3209_v33 }
 0x132   :  { %v3682_v34 = vpop.eup %3681 }
 0x133   :  { %v327_v35 = vadd.f32 1.0, %v3682_v34  ;;  %v3684_v36 = vpop.eup %3683 }
 0x134   :  { %v353_v37 = vadd.f32 1.0, %v3684_v36 }
 0x135   :  { %3685 = vrcp.f32 %v327_v35 }
 0x136   :  { %3687 = vrcp.f32 %v353_v37 }
 0x13f   :  { %v3686_v38 = vpop.eup %3685 }
 0x140   :  { %v3688_v41 = vpop.eup %3687  ;;  %v341_v59 = vsub.f32 1.0, %v3686_v38  ;;  %v347_v4 = vmul.f32 0.0, %v3686_v38 }
 0x15d   :  { %v332_v40 = vpop.permute.xlu0 %331 }
 0x15e   :  { %v334_v28 = vmul.f32 %v3686_v38, %v332_v40 }
 0x160   :  { %336 = vrot.lane.b32.xlu1 %v334_v28, %s3946_s17 }
 0x161   :  { %v365_v42 = vpop.permute.xlu0 %364 }
 0x162   :  { %v367_v43 = vmul.f32 %v3688_v41, %v365_v42 }
 0x164   :  { %369 = vrot.lane.b32.xlu1 %v367_v43, %s3946_s17 }
 0x1d2   :  { %v337_v16 = vpop.permute.xlu1 %336 }
 0x1d3   :  { %v339_v45 = vadd.f32 %v337_v16, %v4349_v56 }
 0x1d5   :  { %3689 = vtanh.f32 %v339_v45 }
 0x1d6   :  { %v370_v46 = vpop.permute.xlu1 %369 }
 0x1d7   :  { %v372_v47 = vadd.f32 %v370_v46, %v322_v60 }
 0x1d9   :  { %3691 = vtanh.f32 %v372_v47 }
 0x1da   :  { %3693 = vpow2.f32 %v3210_v53 }
 0x1df   :  { %v3690_v48 = vpop.eup %3689 }
 0x1e0   :  { %343 = vrot.lane.b32.xlu0 %v3690_v48, %s3947_s3 }
 0x1e3   :  { %v3692_v51 = vpop.eup %3691 }
 0x1e4   :  { %376 = vrot.lane.b32.xlu1 %v3692_v51, %s3947_s3  ;;  %v3694_v54 = vpop.eup %3693 }
 0x1e5   :  { %v360_v55 = vadd.f32 1.0, %v3694_v54 }
 0x1e7   :  { %3695 = vrcp.f32 %v360_v55 }
 0x1f1   :  { %v3696_v62 = vpop.eup %3695 }
 0x1f2   :  { %v374_v7 = vsub.f32 1.0, %v3696_v62  ;;  %v380_v11 = vmul.f32 0.0, %v3696_v62 }
 0x252   :  { %v344_v63 = vpop.permute.xlu0 %343 }
 0x253   :  { %v346_v5 = vmul.f32 %v344_v63, %v341_v59 }
 0x255   :  { %v348_v6 = vadd.f32 %v347_v4, %v346_v5 }
 0x256   :  { %v377_v9 = vpop.permute.xlu1 %376 }
 0x257   :  { %v379_v25 = vmul.f32 %v377_v9, %v374_v7  ;;  %383 = vrot.lane.b32.xlu0 %v348_v6, %s3947_s3 }
 0x259   :  { %v381_v29 = vadd.f32 %v380_v11, %v379_v25 }
 0x25b   :  { %387 = vrot.lane.b32.xlu1 %v381_v29, %s3948_s19 }
 0x2c9   :  { %v384_v20 = vpop.permute.xlu0 %383 }
 0x2cd   :  { %v388_v60 = vpop.permute.xlu1 %387 }
 0x2ce   :  { %v4404_v30 = vsel %vm390_vm1, %v384_v20, %v388_v60 }
 0x2cf   :  { %3211 = vmatmul.mubr.msk.f32.vlgmr.msra.gmra.mrb[2].mxu1 %vm230_vm2, %v4404_v30 }
 0x2d0   :  { %3420 = vmatpush1.bf16.msra.mxu1 %v4049_v13  ;;  %620 = vmatprep.mubr.f32.mxu1 %v3945_v3 }
 0x2d1   :  { %3422 = vmatprep.subr.bf16.mxu1 %v4061_v18 }
 0x2d4   :  { %3424 = vmatpush1.bf16.msra.mxu1 %v4083_v26 }
 0x2d5   :  { %3426 = vmatprep.subr.bf16.mxu1 %v4094_v31 }
 0x2d8   :  { %3428 = vmatpush1.bf16.msra.mxu1 %v4115_v39 }
 0x2d9   :  { %3430 = vmatprep.subr.bf16.mxu1 %v4127_v44 }
 0x2dc   :  { %3432 = vmatpush1.bf16.msra.mxu1 %v4142_v50 }
 0x2dd   :  { %3434 = vmatprep.subr.bf16.mxu1 %v4038_v8 }
 0x3a2   :  { %v461_v32 = vpop.f32.mrb[2].mxu1 }
 0x3a3   :  { %v462_v33 = vadd.f32 %v461_v32, %v4323_v12  ;;  %v463_v34 = vpop.f32.mrb[3].mxu1 }
 0x3a4   :  { %v464_v35 = vadd.f32 %v463_v34, %v4331_v17 }
 0x3a5   :  { %487 = vrot.lane.b32.xlu0 %v462_v33, %s3946_s17  ;;  %v479_v36 = vadd.f32 %v4346_v49, %v462_v33  ;;  %v508_v37 = vadd.f32 %v4355_v58, %v462_v33 }
 0x3a6   :  { %523 = vrot.lane.b32.xlu1 %v464_v35, %s3946_s17  ;;  %v515_v63 = vadd.f32 %v4359_v61, %v464_v35 }
 0x3a7   :  { %v3212_v38 = vmul.f32 -1.442695, %v479_v36  ;;  %v3213_v40 = vmul.f32 -1.442695, %v508_v37 }
 0x3a8   :  { %v3214_v4 = vmul.f32 -1.442695, %v515_v63 }
 0x3a9   :  { %3697 = vpow2.f32 %v3212_v38 }
 0x3aa   :  { %3699 = vpow2.f32 %v3213_v40 }
 0x3b3   :  { %v3698_v28 = vpop.eup %3697 }
 0x3b4   :  { %v3700_v41 = vpop.eup %3699  ;;  %v483_v42 = vadd.f32 1.0, %v3698_v28 }
 0x3b5   :  { %v512_v43 = vadd.f32 1.0, %v3700_v41 }
 0x3b6   :  { %3701 = vrcp.f32 %v483_v42 }
 0x3b7   :  { %3703 = vrcp.f32 %v512_v43 }
 0x3c0   :  { %v3702_v16 = vpop.eup %3701 }
 0x3c1   :  { %v3704_v46 = vpop.eup %3703  ;;  %v497_v9 = vsub.f32 1.0, %v3702_v16 }
 0x417   :  { %v488_v45 = vpop.permute.xlu0 %487 }
 0x418   :  { %v490_v47 = vmul.f32 %v3702_v16, %v488_v45  ;;  %v524_v48 = vpop.permute.xlu1 %523 }
 0x419   :  { %v526_v51 = vmul.f32 %v3704_v46, %v524_v48 }
 0x41a   :  { %492 = vrot.lane.b32.xlu0 %v490_v47, %s3946_s17 }
 0x41b   :  { %528 = vrot.lane.b32.xlu1 %v526_v51, %s3946_s17 }
 0x41f   :  { %503 = vrot.lane.b32.xlu1 %v4404_v30, %s3948_s19 }
 0x423   :  { %539 = vrot.lane.b32.xlu1 %v4404_v30, %s3947_s3 }
 0x48c   :  { %v493_v52 = vpop.permute.xlu0 %492 }
 0x48d   :  { %v495_v53 = vadd.f32 %v493_v52, %v4346_v49  ;;  %v529_v54 = vpop.permute.xlu1 %528 }
 0x48e   :  { %v531_v55 = vadd.f32 %v529_v54, %v4359_v61 }
 0x48f   :  { %3705 = vtanh.f32 %v495_v53 }
 0x490   :  { %3707 = vtanh.f32 %v531_v55 }
 0x491   :  { %3709 = vpow2.f32 %v3214_v4  ;;  %v504_v7 = vpop.permute.xlu1 %503 }
 0x492   :  { %v506_v29 = vmul.f32 %v3702_v16, %v504_v7 }
 0x495   :  { %v540_v60 = vpop.permute.xlu1 %539 }
 0x499   :  { %v3706_v59 = vpop.eup %3705 }
 0x49a   :  { %499 = vrot.lane.b32.xlu0 %v3706_v59, %s3947_s3  ;;  %v3708_v62 = vpop.eup %3707 }
 0x49b   :  { %v3710_v5 = vpop.eup %3709 }
 0x49c   :  { %v519_v6 = vadd.f32 1.0, %v3710_v5 }
 0x49e   :  { %535 = vrot.lane.b32.xlu0 %v3708_v62, %s3947_s3  ;;  %3711 = vrcp.f32 %v519_v6 }
 0x4a8   :  { %v3712_v11 = vpop.eup %3711 }
 0x4a9   :  { %v533_v33 = vsub.f32 1.0, %v3712_v11  ;;  %v542_v36 = vmul.f32 %v3712_v11, %v540_v60 }
 0x50c   :  { %v500_v25 = vpop.permute.xlu0 %499 }
 0x50d   :  { %v502_v20 = vmul.f32 %v500_v25, %v497_v9 }
 0x50f   :  { %v507_v32 = vadd.f32 %v506_v29, %v502_v20 }
 0x510   :  { %v536_v34 = vpop.permute.xlu0 %535 }
 0x511   :  { %v538_v37 = vmul.f32 %v536_v34, %v533_v33  ;;  %545 = vrot.lane.b32.xlu0 %v507_v32, %s3947_s3 }
 0x513   :  { %v543_v61 = vadd.f32 %v542_v36, %v538_v37 }
 0x515   :  { %549 = vrot.lane.b32.xlu1 %v543_v61, %s3948_s19 }
 0x583   :  { %v546_v35 = vpop.permute.xlu0 %545 }
 0x587   :  { %v550_v38 = vpop.permute.xlu1 %549 }
 0x588   :  { %v4437_v40 = vsel %vm390_vm1, %v546_v35, %v550_v38 }
 0x589   :  { %3215 = vmatmul.mubr.msk.f32.vlgmr.msra.gmra.mrb[4].mxu1 %vm230_vm2, %v4437_v40 }
 0x58a   :  { %3436 = vmatpush1.bf16.msra.mxu1 %v4049_v13  ;;  %783 = vmatprep.mubr.f32.mxu1 %v3945_v3 }
 0x58b   :  { %3438 = vmatprep.subr.bf16.mxu1 %v4061_v18 }
 0x58e   :  { %3440 = vmatpush1.bf16.msra.mxu1 %v4083_v26 }
 0x58f   :  { %3442 = vmatprep.subr.bf16.mxu1 %v4094_v31 }
 0x592   :  { %3444 = vmatpush1.bf16.msra.mxu1 %v4115_v39 }
 0x593   :  { %3446 = vmatprep.subr.bf16.mxu1 %v4127_v44 }
 0x596   :  { %3448 = vmatpush1.bf16.msra.mxu1 %v4142_v50 }
 0x597   :  { %3466 = vmatprep.subr.bf16.mxu1 %v4038_v8 }
 0x65c   :  { %v622_v28 = vpop.f32.mrb[4].mxu1 }
 0x65d   :  { %v623_v41 = vadd.f32 %v622_v28, %v4323_v12  ;;  %v624_v42 = vpop.f32.mrb[5].mxu1 }
 0x65e   :  { %v625_v43 = vadd.f32 %v624_v42, %v4331_v17 }
 0x65f   :  { %650 = vrot.lane.b32.xlu0 %v623_v41, %s3946_s17  ;;  %v642_v16 = vadd.f32 %v4362_v0, %v623_v41  ;;  %v671_v45 = vadd.f32 %v4365_v1, %v623_v41 }
 0x660   :  { %686 = vrot.lane.b32.xlu1 %v625_v43, %s3946_s17  ;;  %v678_v29 = vadd.f32 %v4368_v2, %v625_v43 }
 0x661   :  { %v3216_v46 = vmul.f32 -1.442695, %v642_v16  ;;  %v3217_v47 = vmul.f32 -1.442695, %v671_v45 }
 0x662   :  { %v3218_v20 = vmul.f32 -1.442695, %v678_v29 }
 0x663   :  { %3713 = vpow2.f32 %v3216_v46 }
 0x664   :  { %3715 = vpow2.f32 %v3217_v47 }
 0x66d   :  { %v3714_v48 = vpop.eup %3713 }
 0x66e   :  { %v3716_v51 = vpop.eup %3715  ;;  %v646_v52 = vadd.f32 1.0, %v3714_v48 }
 0x66f   :  { %v675_v53 = vadd.f32 1.0, %v3716_v51 }
 0x670   :  { %3717 = vrcp.f32 %v646_v52 }
 0x671   :  { %3719 = vrcp.f32 %v675_v53 }
 0x67a   :  { %v3718_v54 = vpop.eup %3717 }
 0x67b   :  { %v3720_v59 = vpop.eup %3719  ;;  %v660_v34 = vsub.f32 1.0, %v3718_v54 }
 0x6d1   :  { %v651_v55 = vpop.permute.xlu0 %650 }
 0x6d2   :  { %v653_v62 = vmul.f32 %v3718_v54, %v651_v55  ;;  %v687_v63 = vpop.permute.xlu1 %686 }
 0x6d3   :  { %v689_v4 = vmul.f32 %v3720_v59, %v687_v63 }
 0x6d4   :  { %655 = vrot.lane.b32.xlu0 %v653_v62, %s3946_s17 }
 0x6d5   :  { %691 = vrot.lane.b32.xlu1 %v689_v4, %s3946_s17 }
 0x6d9   :  { %666 = vrot.lane.b32.xlu1 %v4437_v40, %s3948_s19 }
 0x6dd   :  { %702 = vrot.lane.b32.xlu1 %v4437_v40, %s3947_s3 }
 0x746   :  { %v656_v5 = vpop.permute.xlu0 %655 }
 0x747   :  { %v658_v6 = vadd.f32 %v656_v5, %v4362_v0  ;;  %v692_v7 = vpop.permute.xlu1 %691 }
 0x748   :  { %v694_v9 = vadd.f32 %v692_v7, %v4368_v2 }
 0x749   :  { %3721 = vtanh.f32 %v658_v6 }
 0x74a   :  { %3723 = vtanh.f32 %v694_v9 }
 0x74b   :  { %3725 = vpow2.f32 %v3218_v20  ;;  %v667_v33 = vpop.permute.xlu1 %666 }
 0x74c   :  { %v669_v61 = vmul.f32 %v3718_v54, %v667_v33 }
 0x74f   :  { %v703_v38 = vpop.permute.xlu1 %702 }
 0x753   :  { %v3722_v11 = vpop.eup %3721 }
 0x754   :  { %662 = vrot.lane.b32.xlu0 %v3722_v11, %s3947_s3  ;;  %v3724_v25 = vpop.eup %3723 }
 0x755   :  { %v3726_v60 = vpop.eup %3725 }
 0x756   :  { %v682_v32 = vadd.f32 1.0, %v3726_v60 }
 0x758   :  { %698 = vrot.lane.b32.xlu0 %v3724_v25, %s3947_s3  ;;  %3727 = vrcp.f32 %v682_v32 }
 0x762   :  { %v3728_v36 = vpop.eup %3727 }
 0x763   :  { %v696_v41 = vsub.f32 1.0, %v3728_v36  ;;  %v705_v16 = vmul.f32 %v3728_v36, %v703_v38 }
 0x7c6   :  { %v663_v37 = vpop.permute.xlu0 %662 }
 0x7c7   :  { %v665_v35 = vmul.f32 %v663_v37, %v660_v34 }
 0x7c9   :  { %v670_v28 = vadd.f32 %v669_v61, %v665_v35 }
 0x7ca   :  { %v699_v42 = vpop.permute.xlu0 %698 }
 0x7cb   :  { %v701_v45 = vmul.f32 %v699_v42, %v696_v41  ;;  %708 = vrot.lane.b32.xlu0 %v670_v28, %s3947_s3 }
 0x7cd   :  { %v706_v2 = vadd.f32 %v705_v16, %v701_v45 }
 0x7cf   :  { %712 = vrot.lane.b32.xlu1 %v706_v2, %s3948_s19 }
 0x83d   :  { %v709_v43 = vpop.permute.xlu0 %708 }
 0x841   :  { %v713_v46 = vpop.permute.xlu1 %712 }
 0x842   :  { %v4470_v47 = vsel %vm390_vm1, %v709_v43, %v713_v46 }
 0x843   :  { %3219 = vmatmul.mubr.msk.f32.vlgmr.msra.gmra.mrb[6].mxu1 %vm230_vm2, %v4470_v47 }
 0x844   :  { %3468 = vmatpush1.bf16.msra.mxu1 %v4049_v13  ;;  %1099 = vmatprep.mubr.f32.mxu1 %v3945_v3 }
 0x845   :  { %3470 = vmatprep.subr.bf16.mxu1 %v4061_v18 }
 0x848   :  { %3472 = vmatpush1.bf16.msra.mxu1 %v4083_v26 }
 0x849   :  { %3474 = vmatprep.subr.bf16.mxu1 %v4094_v31 }
 0x84c   :  { %3476 = vmatpush1.bf16.msra.mxu1 %v4115_v39 }
 0x84d   :  { %3478 = vmatprep.subr.bf16.mxu1 %v4127_v44 }
 0x850   :  { %3480 = vmatpush1.bf16.msra.mxu1 %v4142_v50 }
 0x851   :  { %3498 = vmatprep.subr.bf16.mxu1 %v4038_v8 }
 0x916   :  { %v785_v48 = vpop.f32.mrb[6].mxu1 }
 0x917   :  { %v786_v51 = vadd.f32 %v785_v48, %v4323_v12  ;;  %v787_v52 = vpop.f32.mrb[7].mxu1 }
 0x918   :  { %v788_v53 = vadd.f32 %v787_v52, %v4331_v17 }
 0x919   :  { %813 = vrot.lane.b32.xlu0 %v786_v51, %s3946_s17  ;;  %v805_v54 = vadd.f32 %v4371_v15, %v786_v51  ;;  %v834_v55 = vadd.f32 %v4374_v19, %v786_v51 }
 0x91a   :  { %849 = vrot.lane.b32.xlu1 %v788_v53, %s3946_s17  ;;  %v841_v37 = vadd.f32 %v4380_v22, %v788_v53 }
 0x91b   :  { %v3220_v59 = vmul.f32 -1.442695, %v805_v54  ;;  %v3221_v62 = vmul.f32 -1.442695, %v834_v55 }
 0x91c   :  { %v3222_v61 = vmul.f32 -1.442695, %v841_v37 }
 0x91d   :  { %3729 = vpow2.f32 %v3220_v59 }
 0x91e   :  { %3731 = vpow2.f32 %v3221_v62 }
 0x927   :  { %v3730_v63 = vpop.eup %3729 }
 0x928   :  { %v3732_v8 = vpop.eup %3731  ;;  %v809_v4 = vadd.f32 1.0, %v3730_v63 }
 0x929   :  { %v838_v5 = vadd.f32 1.0, %v3732_v8 }
 0x92a   :  { %3733 = vrcp.f32 %v809_v4 }
 0x92b   :  { %3735 = vrcp.f32 %v838_v5 }
 0x934   :  { %v3734_v6 = vpop.eup %3733 }
 0x935   :  { %v3736_v9 = vpop.eup %3735  ;;  %v823_v41 = vsub.f32 1.0, %v3734_v6 }
 0x98b   :  { %v814_v7 = vpop.permute.xlu0 %813 }
 0x98c   :  { %v816_v11 = vmul.f32 %v3734_v6, %v814_v7  ;;  %v850_v25 = vpop.permute.xlu1 %849 }
 0x98d   :  { %v852_v29 = vmul.f32 %v3736_v9, %v850_v25 }
 0x98e   :  { %818 = vrot.lane.b32.xlu0 %v816_v11, %s3946_s17 }
 0x98f   :  { %854 = vrot.lane.b32.xlu1 %v852_v29, %s3946_s17 }
 0x993   :  { %829 = vrot.lane.b32.xlu1 %v4470_v47, %s3948_s19 }
 0x997   :  { %865 = vrot.lane.b32.xlu1 %v4470_v47, %s3947_s3 }
 0xa00   :  { %v819_v20 = vpop.permute.xlu0 %818 }
 0xa01   :  { %v821_v60 = vadd.f32 %v819_v20, %v4371_v15  ;;  %v855_v32 = vpop.permute.xlu1 %854 }
 0xa02   :  { %v857_v33 = vadd.f32 %v855_v32, %v4380_v22 }
 0xa03   :  { %3737 = vtanh.f32 %v821_v60 }
 0xa04   :  { %3739 = vtanh.f32 %v857_v33 }
 0xa05   :  { %3741 = vpow2.f32 %v3222_v61  ;;  %v830_v28 = vpop.permute.xlu1 %829 }
 0xa06   :  { %v832_v45 = vmul.f32 %v3734_v6, %v830_v28 }
 0xa09   :  { %v866_v43 = vpop.permute.xlu1 %865 }
 0xa0d   :  { %v3738_v34 = vpop.eup %3737 }
 0xa0e   :  { %825 = vrot.lane.b32.xlu0 %v3738_v34, %s3947_s3  ;;  %v3740_v36 = vpop.eup %3739 }
 0xa0f   :  { %v3742_v35 = vpop.eup %3741 }
 0xa10   :  { %v845_v38 = vadd.f32 1.0, %v3742_v35 }
 0xa12   :  { %861 = vrot.lane.b32.xlu0 %v3740_v36, %s3947_s3  ;;  %3743 = vrcp.f32 %v845_v38 }
 0xa1c   :  { %v3744_v42 = vpop.eup %3743 }
 0xa1d   :  { %v859_v48 = vsub.f32 1.0, %v3744_v42  ;;  %v868_v52 = vmul.f32 %v3744_v42, %v866_v43 }
 0xa80   :  { %v826_v16 = vpop.permute.xlu0 %825 }
 0xa81   :  { %v828_v2 = vmul.f32 %v826_v16, %v823_v41 }
 0xa83   :  { %v833_v46 = vadd.f32 %v832_v45, %v828_v2 }
 0xa84   :  { %v862_v51 = vpop.permute.xlu0 %861 }
 0xa85   :  { %v864_v54 = vmul.f32 %v862_v51, %v859_v48  ;;  %871 = vrot.lane.b32.xlu0 %v833_v46, %s3947_s3 }
 0xa87   :  { %v869_v22 = vadd.f32 %v868_v52, %v864_v54 }
 0xa89   :  { %875 = vrot.lane.b32.xlu1 %v869_v22, %s3948_s19 }
 0xaf7   :  { %v872_v53 = vpop.permute.xlu0 %871 }
 0xafb   :  { %v876_v55 = vpop.permute.xlu1 %875 }
 0xafc   :  { %v4503_v59 = vsel %vm390_vm1, %v872_v53, %v876_v55 }
 0xafd   :  { %3223 = vmatmul.mubr.msk.f32.vlgmr.msra.gmra.mrb[4].mxu0 %vm230_vm2, %v4503_v59 }
 0xafe   :  { %3484 = vmatpush1.bf16.msra.mxu0 %v4049_v13  ;;  %1252 = vmatprep.mubr.f32.mxu0 %v3945_v3 }
 0xaff   :  { %3486 = vmatprep.subr.bf16.mxu0 %v4061_v18 }
 0xb02   :  { %3488 = vmatpush1.bf16.msra.mxu0 %v4083_v26 }
 0xb03   :  { %3490 = vmatprep.subr.bf16.mxu0 %v4094_v31 }
 0xb06   :  { %3492 = vmatpush1.bf16.msra.mxu0 %v4115_v39 }
 0xb07   :  { %3494 = vmatprep.subr.bf16.mxu0 %v4127_v44 }
 0xb0a   :  { %3496 = vmatpush1.bf16.msra.mxu0 %v4142_v50 }
 0xbd0   :  { %v948_v62 = vpop.f32.mrb[4].mxu0 }
 0xbd1   :  { %v949_v63 = vadd.f32 %v948_v62, %v4323_v12  ;;  %v950_v8 = vpop.f32.mrb[5].mxu0 }
 0xbd2   :  { %v951_v4 = vadd.f32 %v950_v8, %v4331_v17 }
 0xbd3   :  { %966 = vrot.lane.b32.xlu0 %v949_v63, %s3946_s17  ;;  %v958_v5 = vadd.f32 %v949_v63, %v4374_v19  ;;  %v987_v6 = vadd.f32 %v949_v63, %v4371_v15 }
 0xbd4   :  { %1002 = vrot.lane.b32.xlu1 %v951_v4, %s3946_s17  ;;  %v994_v42 = vadd.f32 %v4383_v23, %v951_v4 }
 0xbd5   :  { %v3224_v7 = vmul.f32 -1.442695, %v958_v5  ;;  %v3225_v9 = vmul.f32 -1.442695, %v987_v6 }
 0xbd6   :  { %v3226_v16 = vmul.f32 -1.442695, %v994_v42 }
 0xbd7   :  { %3745 = vpow2.f32 %v3224_v7 }
 0xbd8   :  { %3747 = vpow2.f32 %v3225_v9 }
 0xbe1   :  { %v3746_v11 = vpop.eup %3745 }
 0xbe2   :  { %v3748_v25 = vpop.eup %3747  ;;  %v962_v29 = vadd.f32 1.0, %v3746_v11 }
 0xbe3   :  { %v991_v20 = vadd.f32 1.0, %v3748_v25 }
 0xbe4   :  { %3749 = vrcp.f32 %v962_v29 }
 0xbe5   :  { %3751 = vrcp.f32 %v991_v20 }
 0xbee   :  { %v3750_v60 = vpop.eup %3749 }
 0xbef   :  { %v3752_v33 = vpop.eup %3751 }
 0xc45   :  { %v967_v32 = vpop.permute.xlu0 %966 }
 0xc46   :  { %v969_v34 = vmul.f32 %v3750_v60, %v967_v32  ;;  %v1003_v36 = vpop.permute.xlu1 %1002 }
 0xc47   :  { %v1005_v37 = vmul.f32 %v3752_v33, %v1003_v36 }
 0xc48   :  { %971 = vrot.lane.b32.xlu0 %v969_v34, %s3946_s17 }
 0xc49   :  { %1007 = vrot.lane.b32.xlu1 %v1005_v37, %s3946_s17 }
 0xc4d   :  { %982 = vrot.lane.b32.xlu1 %v4503_v59, %s3948_s19 }
 0xc51   :  { %1018 = vrot.lane.b32.xlu1 %v4503_v59, %s3947_s3 }
 0xcba   :  { %v972_v15 = vpop.permute.xlu0 %971 }
 0xcbb   :  { %v974_v61 = vadd.f32 %v972_v15, %v4374_v19  ;;  %v1008_v35 = vpop.permute.xlu1 %1007  ;;  %v976_v19 = vsub.f32 1.0, %v3750_v60 }
 0xcbc   :  { %v1010_v38 = vadd.f32 %v1008_v35, %v4383_v23 }
 0xcbd   :  { %3753 = vtanh.f32 %v974_v61 }
 0xcbe   :  { %3755 = vtanh.f32 %v1010_v38 }
 0xcbf   :  { %3757 = vpow2.f32 %v3226_v16  ;;  %v983_v43 = vpop.permute.xlu1 %982 }
 0xcc0   :  { %v985_v51 = vmul.f32 %v3750_v60, %v983_v43 }
 0xcc3   :  { %v1019_v54 = vpop.permute.xlu1 %1018 }
 0xcc7   :  { %v3754_v28 = vpop.eup %3753 }
 0xcc8   :  { %978 = vrot.lane.b32.xlu0 %v3754_v28, %s3947_s3  ;;  %v3756_v41 = vpop.eup %3755 }
 0xcc9   :  { %v3758_v45 = vpop.eup %3757 }
 0xcca   :  { %v998_v2 = vadd.f32 1.0, %v3758_v45 }
 0xccc   :  { %1014 = vrot.lane.b32.xlu0 %v3756_v41, %s3947_s3  ;;  %3759 = vrcp.f32 %v998_v2 }
 0xcd6   :  { %v3760_v46 = vpop.eup %3759 }
 0xcd7   :  { %v1012_v53 = vsub.f32 1.0, %v3760_v46  ;;  %v1021_v62 = vmul.f32 %v3760_v46, %v1019_v54 }
 0xd3a   :  { %v979_v48 = vpop.permute.xlu0 %978 }
 0xd3b   :  { %v981_v52 = vmul.f32 %v979_v48, %v976_v19 }
 0xd3d   :  { %v986_v22 = vadd.f32 %v985_v51, %v981_v52 }
 0xd3e   :  { %v1015_v55 = vpop.permute.xlu0 %1014 }
 0xd3f   :  { %v1017_v63 = vmul.f32 %v1015_v55, %v1012_v53  ;;  %1024 = vrot.lane.b32.xlu0 %v986_v22, %s3947_s3 }
 0xd41   :  { %v1022_v23 = vadd.f32 %v1021_v62, %v1017_v63 }
 0xd43   :  { %1028 = vrot.lane.b32.xlu1 %v1022_v23, %s3948_s19 }
 0xdb1   :  { %v1025_v8 = vpop.permute.xlu0 %1024 }
 0xdb5   :  { %v1029_v4 = vpop.permute.xlu1 %1028 }
 0xdb6   :  { %v4535_v5 = vsel %vm390_vm1, %v1025_v8, %v1029_v4 }
 0xdb7   :  { %3227 = vmatmul.mubr.msk.f32.vlgmr.msra.gmra.mrb[8].mxu1 %vm230_vm2, %v4535_v5 }
 0xdb8   :  { %3500 = vmatpush1.bf16.msra.mxu1 %v4049_v13  ;;  %1403 = vmatprep.mubr.f32.mxu1 %v3945_v3 }
 0xdb9   :  { %3502 = vmatprep.subr.bf16.mxu1 %v4061_v18 }
 0xdbc   :  { %3504 = vmatpush1.bf16.msra.mxu1 %v4083_v26 }
 0xdbd   :  { %3506 = vmatprep.subr.bf16.mxu1 %v4094_v31 }
 0xdc0   :  { %3508 = vmatpush1.bf16.msra.mxu1 %v4115_v39 }
 0xdc1   :  { %3510 = vmatprep.subr.bf16.mxu1 %v4127_v44 }
 0xdc4   :  { %3512 = vmatpush1.bf16.msra.mxu1 %v4142_v50 }
 0xe8a   :  { %v1101_v6 = vpop.f32.mrb[8].mxu1 }
 0xe8b   :  { %v1102_v7 = vadd.f32 %v1101_v6, %v4323_v12  ;;  %v1103_v9 = vpop.f32.mrb[9].mxu1 }
 0xe8c   :  { %v1104_v13 = vadd.f32 %v1103_v9, %v4331_v17 }
 0xe8d   :  { %1119 = vrot.lane.b32.xlu0 %v1102_v7, %s3946_s17  ;;  %v1111_v18 = vadd.f32 %v1102_v7, %v4365_v1  ;;  %v1140_v26 = vadd.f32 %v1102_v7, %v4362_v0 }
 0xe8e   :  { %1155 = vrot.lane.b32.xlu1 %v1104_v13, %s3946_s17  ;;  %v1147_v38 = vadd.f32 %v4386_v24, %v1104_v13 }
 0xe8f   :  { %v3228_v31 = vmul.f32 -1.442695, %v1111_v18  ;;  %v3229_v39 = vmul.f32 -1.442695, %v1140_v26 }
 0xe90   :  { %v3230_v28 = vmul.f32 -1.442695, %v1147_v38 }
 0xe91   :  { %3761 = vpow2.f32 %v3228_v31 }
 0xe92   :  { %3763 = vpow2.f32 %v3229_v39 }
 0xe9b   :  { %v3762_v44 = vpop.eup %3761 }
 0xe9c   :  { %v3764_v50 = vpop.eup %3763  ;;  %v1115_v11 = vadd.f32 1.0, %v3762_v44 }
 0xe9d   :  { %v1144_v25 = vadd.f32 1.0, %v3764_v50 }
 0xe9e   :  { %3765 = vrcp.f32 %v1115_v11 }
 0xe9f   :  { %3767 = vrcp.f32 %v1144_v25 }
 0xea8   :  { %v3766_v29 = vpop.eup %3765 }
 0xea9   :  { %v3768_v60 = vpop.eup %3767 }
 0xeff   :  { %v1120_v20 = vpop.permute.xlu0 %1119 }
 0xf00   :  { %v1122_v32 = vmul.f32 %v3766_v29, %v1120_v20  ;;  %v1156_v33 = vpop.permute.xlu1 %1155 }
 0xf01   :  { %v1158_v34 = vmul.f32 %v3768_v60, %v1156_v33 }
 0xf02   :  { %1124 = vrot.lane.b32.xlu0 %v1122_v32, %s3946_s17 }
 0xf03   :  { %1160 = vrot.lane.b32.xlu1 %v1158_v34, %s3946_s17 }
 0xf07   :  { %1135 = vrot.lane.b32.xlu1 %v4535_v5, %s3948_s19 }
 0xf0b   :  { %1171 = vrot.lane.b32.xlu1 %v4535_v5, %s3947_s3 }
 0xf74   :  { %v1125_v0 = vpop.permute.xlu0 %1124 }
 0xf75   :  { %v1127_v36 = vadd.f32 %v1125_v0, %v4365_v1  ;;  %v1161_v37 = vpop.permute.xlu1 %1160  ;;  %v1129_v1 = vsub.f32 1.0, %v3766_v29 }
 0xf76   :  { %v1163_v15 = vadd.f32 %v1161_v37, %v4386_v24 }
 0xf77   :  { %3769 = vtanh.f32 %v1127_v36 }
 0xf78   :  { %3771 = vtanh.f32 %v1163_v15 }
 0xf79   :  { %3773 = vpow2.f32 %v3230_v28  ;;  %v1136_v16 = vpop.permute.xlu1 %1135 }
 0xf7a   :  { %v1138_v43 = vmul.f32 %v3766_v29, %v1136_v16 }
 0xf7d   :  { %v1172_v46 = vpop.permute.xlu1 %1171 }
 0xf81   :  { %v3770_v61 = vpop.eup %3769 }
 0xf82   :  { %1131 = vrot.lane.b32.xlu0 %v3770_v61, %s3947_s3  ;;  %v3772_v35 = vpop.eup %3771 }
 0xf83   :  { %v3774_v41 = vpop.eup %3773 }
 0xf84   :  { %v1151_v42 = vadd.f32 1.0, %v3774_v41 }
 0xf86   :  { %1167 = vrot.lane.b32.xlu0 %v3772_v35, %s3947_s3  ;;  %3775 = vrcp.f32 %v1151_v42 }
 0xf90   :  { %v3776_v45 = vpop.eup %3775 }
 0xf91   :  { %v1165_v51 = vsub.f32 1.0, %v3776_v45  ;;  %v1174_v54 = vmul.f32 %v3776_v45, %v1172_v46 }
 0xff4   :  { %v1132_v2 = vpop.permute.xlu0 %1131 }
 0xff5   :  { %v1134_v19 = vmul.f32 %v1132_v2, %v1129_v1 }
 0xff7   :  { %v1139_v48 = vadd.f32 %v1138_v43, %v1134_v19 }
 0xff8   :  { %v1168_v52 = vpop.permute.xlu0 %1167 }
 0xff9   :  { %v1170_v22 = vmul.f32 %v1168_v52, %v1165_v51  ;;  %1177 = vrot.lane.b32.xlu0 %v1139_v48, %s3947_s3 }
 0xffb   :  { %v1175_v24 = vadd.f32 %v1174_v54, %v1170_v22 }
 0xffd   :  { %1181 = vrot.lane.b32.xlu1 %v1175_v24, %s3948_s19 }
0x106b   :  { %v1178_v53 = vpop.permute.xlu0 %1177 }
0x106f   :  { %v1182_v55 = vpop.permute.xlu1 %1181 }
0x1070   :  { %v4567_v62 = vsel %vm390_vm1, %v1178_v53, %v1182_v55 }
0x1071   :  { %3231 = vmatmul.mubr.msk.f32.vlgmr.msra.gmra.mrb[6].mxu0 %vm230_vm2, %v4567_v62 }
0x1072   :  { %1666 = vmatprep.mubr.f32.mxu0 %v3945_v3 }
0x1144   :  { %v1254_v63 = vpop.f32.mrb[6].mxu0 }
0x1145   :  { %v1255_v23 = vadd.f32 %v1254_v63, %v4323_v12  ;;  %v1256_v8 = vpop.f32.mrb[7].mxu0 }
0x1146   :  { %v1257_v4 = vadd.f32 %v1256_v8, %v4331_v17 }
0x1147   :  { %1270 = vrot.lane.b32.xlu0 %v1255_v23, %s3946_s17  ;;  %v1262_v6 = vadd.f32 %v1255_v23, %v4355_v58  ;;  %v1291_v7 = vadd.f32 %v1255_v23, %v4346_v49 }
0x1148   :  { %1306 = vrot.lane.b32.xlu1 %v1257_v4, %s3946_s17  ;;  %v1298_v36 = vadd.f32 %v4377_v21, %v1257_v4 }
0x1149   :  { %v3232_v9 = vmul.f32 -1.442695, %v1262_v6  ;;  %v3233_v13 = vmul.f32 -1.442695, %v1291_v7 }
0x114a   :  { %v3234_v37 = vmul.f32 -1.442695, %v1298_v36 }
0x114b   :  { %3777 = vpow2.f32 %v3232_v9 }
0x114c   :  { %3779 = vpow2.f32 %v3233_v13 }
0x1155   :  { %v3778_v18 = vpop.eup %3777 }
0x1156   :  { %v3780_v26 = vpop.eup %3779  ;;  %v1266_v31 = vadd.f32 1.0, %v3778_v18 }
0x1157   :  { %v1295_v39 = vadd.f32 1.0, %v3780_v26 }
0x1158   :  { %3781 = vrcp.f32 %v1266_v31 }
0x1159   :  { %3783 = vrcp.f32 %v1295_v39 }
0x1162   :  { %v3782_v44 = vpop.eup %3781 }
0x1163   :  { %v3784_v11 = vpop.eup %3783 }
0x11b9   :  { %v1271_v50 = vpop.permute.xlu0 %1270 }
0x11ba   :  { %v1273_v25 = vmul.f32 %v3782_v44, %v1271_v50  ;;  %v1307_v29 = vpop.permute.xlu1 %1306  ;;  %v1552_v50 = vld [vmem:[%s5185_s6 + $0x8] sm:$0xff] }
0x11bb   :  { %v1309_v20 = vmul.f32 %v3784_v11, %v1307_v29  ;;  %v1554_v11 = vld [vmem:[%s5185_s6 + $0x18] sm:$0xff] }
0x11bc   :  { %1275 = vrot.lane.b32.xlu0 %v1273_v25, %s3946_s17  ;;  %v1551_v25 = vld [vmem:[%s5185_s6] sm:$0xff]  ;;  %v4626_v29 = vpack.c.bf16 %v1554_v11, %v1552_v50 }
0x11bd   :  { %1311 = vrot.lane.b32.xlu1 %v1309_v20, %s3946_s17  ;;  %v1556_v20 = vld [vmem:[%s5185_s6 + $0x28] sm:$0xff] }
0x11be   :  { %3530 = vmatprep.subr.bf16.mxu1 %v4626_v29 }
0x11c1   :  { %1286 = vrot.lane.b32.xlu1 %v4567_v62, %s3948_s19 }
0x11c5   :  { %1322 = vrot.lane.b32.xlu1 %v4567_v62, %s3947_s3 }
0x122e   :  { %v1276_v49 = vpop.permute.xlu0 %1275 }
0x122f   :  { %v1278_v60 = vadd.f32 %v1276_v49, %v4355_v58  ;;  %v1312_v32 = vpop.permute.xlu1 %1311  ;;  %v1280_v58 = vsub.f32 1.0, %v3782_v44  ;;  %v1558_v49 = vld [vmem:[%s5185_s6 + $0x38] sm:$0xff] }
0x1230   :  { %v1314_v33 = vadd.f32 %v1312_v32, %v4377_v21  ;;  %v4639_v32 = vpack.c.bf16 %v1558_v49, %v1556_v20 }
0x1231   :  { %3785 = vtanh.f32 %v1278_v60 }
0x1232   :  { %3787 = vtanh.f32 %v1314_v33  ;;  %v1555_v33 = vld [vmem:[%s5185_s6 + $0x20] sm:$0xff] }
0x1233   :  { %3789 = vpow2.f32 %v3234_v37  ;;  %v1287_v35 = vpop.permute.xlu1 %1286  ;;  %v1562_v37 = vld [vmem:[%s5185_s6 + $0x58] sm:$0xff] }
0x1234   :  { %v1289_v41 = vmul.f32 %v3782_v44, %v1287_v35  ;;  %v1561_v35 = vld [vmem:[%s5185_s6 + $0x50] sm:$0xff] }
0x1237   :  { %v1323_v16 = vpop.permute.xlu1 %1322 }
0x123b   :  { %v3786_v34 = vpop.eup %3785 }
0x123c   :  { %1282 = vrot.lane.b32.xlu0 %v3786_v34, %s3947_s3  ;;  %v3788_v0 = vpop.eup %3787  ;;  %v1557_v34 = vld [vmem:[%s5185_s6 + $0x30] sm:$0xff] }
0x123d   :  { %v3790_v15 = vpop.eup %3789 }
0x123e   :  { %v1302_v61 = vadd.f32 1.0, %v3790_v15  ;;  %v4656_v15 = vpack.c.bf16 %v1557_v34, %v1555_v33 }
0x1240   :  { %1318 = vrot.lane.b32.xlu0 %v3788_v0, %s3947_s3  ;;  %3791 = vrcp.f32 %v1302_v61  ;;  %v1560_v0 = vld [vmem:[%s5185_s6 + $0x48] sm:$0xff]  ;;  %v1559_v61 = vld [vmem:[%s5185_s6 + $0x40] sm:$0xff] }
0x124a   :  { %v3792_v38 = vpop.eup %3791 }
0x124b   :  { %v1316_v45 = vsub.f32 1.0, %v3792_v38  ;;  %v1325_v43 = vmul.f32 %v3792_v38, %v1323_v16  ;;  %v1564_v38 = vld [vmem:[%s5185_s6 + $0x68] sm:$0xff] }
0x12ae   :  { %v1283_v28 = vpop.permute.xlu0 %1282 }
0x12af   :  { %v1285_v42 = vmul.f32 %v1283_v28, %v1280_v58  ;;  %v4665_v58 = vpack.c.bf16 %v1562_v37, %v1560_v0  ;;  %v1569_v28 = vld [vmem:[%s5186_s5 + $0x8] sm:$0xff] }
0x12b1   :  { %v1290_v1 = vadd.f32 %v1289_v41, %v1285_v42  ;;  %v1571_v41 = vld [vmem:[%s5186_s5 + $0x18] sm:$0xff] }
0x12b2   :  { %v1319_v2 = vpop.permute.xlu0 %1318  ;;  %v1566_v42 = vld [vmem:[%s5185_s6 + $0x78] sm:$0xff]  ;;  %v3513_v16 = vpack.c.bf16 %v1571_v41, %v1569_v28 }
0x12b3   :  { %v1321_v19 = vmul.f32 %v1319_v2, %v1316_v45  ;;  %1328 = vrot.lane.b32.xlu0 %v1290_v1, %s3947_s3  ;;  %v1568_v1 = vld [vmem:[%s5186_s5] sm:$0xff]  ;;  %v1570_v45 = vld [vmem:[%s5186_s5 + $0x10] sm:$0xff] }
0x12b4   :  { %3514 = vmatprep.subr.bf16.mxu0 %v3513_v16 }
0x12b5   :  { %v1326_v21 = vadd.f32 %v1325_v43, %v1321_v19  ;;  %v3515_v43 = vpack.c.bf16 %v1570_v45, %v1568_v1  ;;  %v4687_v19 = vpack.c.bf16 %v1561_v35, %v1559_v61 }
0x12b7   :  { %1332 = vrot.lane.b32.xlu1 %v1326_v21, %s3948_s19  ;;  %v4690_v21 = vpack.c.bf16 %v1566_v42, %v1564_v38  ;;  %3516 = vmatpush1.bf16.msra.mxu0 %v3515_v43  ;;  %v1491_v43 = vsel %vm390_vm1, %v4535_v5, %v4503_v59 }
0x1325   :  { %v1329_v46 = vpop.permute.xlu0 %1328 }
0x1329   :  { %v1333_v48 = vpop.permute.xlu1 %1332 }
0x132a   :  { %v4592_v51 = vsel %vm390_vm1, %v1329_v46, %v1333_v48  ;;  %v1563_v46 = vld [vmem:[%s5185_s6 + $0x60] sm:$0xff]  ;;  %v1565_v48 = vld [vmem:[%s5185_s6 + $0x70] sm:$0xff] }
0x132b   :  { %3235 = vmatmul.mubr.msk.f32.vlgmr.msra.gmra.mrb[10].mxu1 %vm230_vm2, %v4592_v51 }
0x132c   :  { %1754 = vmatprep.mubr.f32.mxu1 %v3945_v3 }
0x13fe   :  { %v1405_v52 = vpop.f32.mrb[10].mxu1 }
0x13ff   :  { %v1406_v54 = vadd.f32 %v1405_v52, %v4323_v12  ;;  %v1407_v22 = vpop.f32.mrb[11].mxu1  ;;  %v4699_v52 = vpack.c.bf16 %v1565_v48, %v1563_v46  ;;  %v1488_v46 = vsel %vm390_vm1, %v4437_v40, %v4592_v51  ;;  %v1489_v48 = vsel %vm390_vm1, %v4470_v47, %v4567_v62 }
0x1400   :  { %v4599_v24 = vadd.f32 %v1407_v22, %v4331_v17 }
0x1401   :  { %1421 = vrot.lane.b32.xlu0 %v1406_v54, %s3946_s17  ;;  %v1413_v53 = vadd.f32 %v1406_v54, %v4352_v57  ;;  %v1442_v55 = vadd.f32 %v1406_v54, %v4349_v56 }
0x1402   :  { %1457 = vrot.lane.b32.xlu1 %v4599_v24, %s3946_s17  ;;  %v1449_v54 = vadd.f32 %v4389_v27, %v4599_v24 }
0x1403   :  { %v3236_v63 = vmul.f32 -1.442695, %v1413_v53  ;;  %v3237_v23 = vmul.f32 -1.442695, %v1442_v55 }
0x1404   :  { %v3238_v22 = vmul.f32 -1.442695, %v1449_v54 }
0x1405   :  { %3793 = vpow2.f32 %v3236_v63  ;;  %v1573_v63 = vld [vmem:[%s5186_s5 + $0x28] sm:$0xff] }
0x1406   :  { %3795 = vpow2.f32 %v3237_v23  ;;  %v1575_v23 = vld [vmem:[%s5186_s5 + $0x38] sm:$0xff] }
0x140f   :  { %v3794_v8 = vpop.eup %3793 }
0x1410   :  { %v3796_v4 = vpop.eup %3795  ;;  %v1417_v12 = vadd.f32 1.0, %v3794_v8  ;;  %v1572_v8 = vld [vmem:[%s5186_s5 + $0x20] sm:$0xff] }
0x1411   :  { %v1446_v6 = vadd.f32 1.0, %v3796_v4  ;;  %v3517_v4 = vpack.c.bf16 %v1575_v23, %v1573_v63  ;;  %v1523_v23 = vrot.slane %v1491_v43, 5 }
0x1412   :  { %3797 = vrcp.f32 %v1417_v12  ;;  %v1577_v12 = vld [vmem:[%s5186_s5 + $0x48] sm:$0xff] }
0x1413   :  { %3799 = vrcp.f32 %v1446_v6  ;;  %3518 = vmatprep.subr.bf16.mxu0 %v3517_v4  ;;  %v1579_v6 = vld [vmem:[%s5186_s5 + $0x58] sm:$0xff] }
0x141c   :  { %v4606_v17 = vpop.eup %3797 }
0x141d   :  { %v3800_v9 = vpop.eup %3799 }
0x1473   :  { %v1422_v7 = vpop.permute.xlu0 %1421 }
0x1474   :  { %v1424_v13 = vmul.f32 %v4606_v17, %v1422_v7  ;;  %v1458_v18 = vpop.permute.xlu1 %1457 }
0x1475   :  { %v1460_v26 = vmul.f32 %v3800_v9, %v1458_v18  ;;  %v3521_v9 = vpack.c.bf16 %v1579_v6, %v1577_v12  ;;  %v1578_v18 = vld [vmem:[%s5186_s5 + $0x50] sm:$0xff] }
0x1476   :  { %1426 = vrot.lane.b32.xlu0 %v1424_v13, %s3946_s17  ;;  %v1576_v13 = vld [vmem:[%s5186_s5 + $0x40] sm:$0xff] }
0x1477   :  { %1462 = vrot.lane.b32.xlu1 %v1460_v26, %s3946_s17  ;;  %v3523_v26 = vpack.c.bf16 %v1578_v18, %v1576_v13 }
0x147b   :  { %1437 = vrot.lane.b32.xlu1 %v4592_v51, %s3948_s19 }
0x147f   :  { %1473 = vrot.lane.b32.xlu1 %v4592_v51, %s3947_s3 }
0x14e8   :  { %v1427_v56 = vpop.permute.xlu0 %1426 }
0x14e9   :  { %v1429_v31 = vadd.f32 %v1427_v56, %v4352_v57  ;;  %v1463_v39 = vpop.permute.xlu1 %1462  ;;  %v1553_v57 = vld [vmem:[%s5185_s6 + $0x10] sm:$0xff]  ;;  %v1431_v56 = vsub.f32 1.0, %v4606_v17 }
0x14ea   :  { %v1465_v44 = vadd.f32 %v1463_v39, %v4389_v27  ;;  %v4637_v60 = vpack.c.bf16 %v1553_v57, %v1551_v25  ;;  %v1574_v27 = vld [vmem:[%s5186_s5 + $0x30] sm:$0xff]  ;;  %v1583_v39 = vld [vmem:[%s5186_s5 + $0x78] sm:$0xff]  ;;  %v1580_v25 = vld [vmem:[%s5186_s5 + $0x60] sm:$0xff] }
0x14eb   :  { %3801 = vtanh.f32 %v1429_v31  ;;  %v3519_v24 = vpack.c.bf16 %v1574_v27, %v1572_v8  ;;  %v1581_v31 = vld [vmem:[%s5186_s5 + $0x68] sm:$0xff]  ;;  %v1582_v57 = vld [vmem:[%s5186_s5 + $0x70] sm:$0xff]  ;;  %v1496_v8 = vrot.slane %v1488_v46, 7 }
0x14ec   :  { %3803 = vtanh.f32 %v1465_v44  ;;  %3532 = vmatpush1.bf16.msra.mxu1 %v4637_v60  ;;  %v3525_v11 = vpack.c.bf16 %v1583_v39, %v1581_v31  ;;  %v3527_v33 = vpack.c.bf16 %v1582_v57, %v1580_v25 }
0x14ed   :  { %3534 = vmatprep.subr.bf16.mxu1 %v4639_v32  ;;  %3805 = vpow2.f32 %v3238_v22  ;;  %3520 = vmatpush1.bf16.msra.mxu0 %v3519_v24  ;;  %v1438_v7 = vpop.permute.xlu1 %1437  ;;  %v1505_v22 = vrot.slane %v1491_v43, 4  ;;  %v1493_v24 = vsel %vm390_vm1, %v4592_v51, %v4437_v40 }
0x14ee   :  { %3522 = vmatprep.subr.bf16.mxu0 %v3521_v9  ;;  %v1440_v20 = vmul.f32 %v4606_v17, %v1438_v7  ;;  %v1567_v17 = vld [vmem:[%s5187_s8] sm:$0x3]  ;;  %v1519_v7 = vrot.slane %v1489_v48, 7 }
0x14ef   :  { %v4761_v28 = vrot.slane %v1567_v17, %v4317_v10  ;;  %v4764_v41 = vrot.slane %v1567_v17, %v4325_v14 }
0x14f0   :  { %3536 = vmatpush1.bf16.msra.mxu1 %v4656_v15 }
0x14f1   :  { %3538 = vmatprep.subr.bf16.mxu1 %v4665_v58  ;;  %3524 = vmatpush1.bf16.msra.mxu0 %v3523_v26  ;;  %v1474_v34 = vpop.permute.xlu1 %1473  ;;  %v1511_v26 = vrot.slane %v1493_v24, 2 }
0x14f2   :  { %3526 = vmatprep.subr.bf16.mxu0 %v3525_v11 }
0x14f4   :  { %3540 = vmatpush1.bf16.msra.mxu1 %v4687_v19 }
0x14f5   :  { %v3802_v36 = vpop.eup %3801  ;;  %3542 = vmatprep.subr.bf16.mxu1 %v4690_v21  ;;  %3528 = vmatpush1.bf16.msra.mxu0 %v3527_v33 }
0x14f6   :  { %1433 = vrot.lane.b32.xlu0 %v3802_v36, %s3947_s3  ;;  %v3804_v2 = vpop.eup %3803  ;;  %3546 = vmatprep.subr.bf16.mxu0 %v4626_v29 }
0x14f7   :  { %v3806_v53 = vpop.eup %3805 }
0x14f8   :  { %3544 = vmatpush1.bf16.msra.mxu1 %v4699_v52  ;;  %v1453_v55 = vadd.f32 1.0, %v3806_v53 }
0x14f9   :  { %3562 = vmatprep.subr.bf16.mxu1 %v4626_v29 }
0x14fa   :  { %1469 = vrot.lane.b32.xlu0 %v3804_v2, %s3947_s3  ;;  %3807 = vrcp.f32 %v1453_v55  ;;  %v1490_v2 = vsel %vm390_vm1, %v4503_v59, %v4535_v5  ;;  %v1492_v59 = vsel %vm390_vm1, %v4567_v62, %v4470_v47  ;;  %v1499_v5 = vrot.slane %v1489_v48, 6 }
0x14fb   :  { %1755 = vmatmul.mubr.f32.vlgmr.msra.gmra.mrb[12].mxu1 %v3945_v3  ;;  %v1502_v54 = vrot.slane %v1490_v2, 5  ;;  %v1521_v53 = vrot.slane %v1490_v2, 6  ;;  %v1508_v47 = vrot.slane %v1492_v59, 3 }
0x14fc   :  { %3564 = vmatpush1.bf16.msra.mxu1 %v4637_v60  ;;  %2074 = vmatprep.mubr.f32.mxu1 %v3945_v3 }
0x14fd   :  { %3566 = vmatprep.subr.bf16.mxu1 %v4639_v32 }
0x1500   :  { %3568 = vmatpush1.bf16.msra.mxu1 %v4656_v15 }
0x1501   :  { %3570 = vmatprep.subr.bf16.mxu1 %v4665_v58 }
0x1504   :  { %3572 = vmatpush1.bf16.msra.mxu1 %v4687_v19  ;;  %v3808_v44 = vpop.eup %3807 }
0x1505   :  { %3574 = vmatprep.subr.bf16.mxu1 %v4690_v21  ;;  %v1467_v36 = vsub.f32 1.0, %v3808_v44  ;;  %v1476_v61 = vmul.f32 %v3808_v44, %v1474_v34  ;;  %v1527_v44 = vrot.slane %v1493_v24, 3  ;;  %v1584_v34 = vld [vmem:[%s5188_s7] sm:$0x3] }
0x1508   :  { %3576 = vmatpush1.bf16.msra.mxu1 %v4699_v52 }
0x1509   :  { %3594 = vmatprep.subr.bf16.mxu1 %v4626_v29 }
0x1568   :  { %v1434_v50 = vpop.permute.xlu0 %1433 }
0x1569   :  { %v1436_v49 = vmul.f32 %v1434_v50, %v1431_v56  ;;  %v1525_v56 = vrot.slane %v1492_v59, 4 }
0x156b   :  { %v1441_v0 = vadd.f32 %v1440_v20, %v1436_v49 }
0x156c   :  { %v1470_v37 = vpop.permute.xlu0 %1469 }
0x156d   :  { %v1472_v35 = vmul.f32 %v1470_v37, %v1467_v36  ;;  %1479 = vrot.lane.b32.xlu0 %v1441_v0, %s3947_s3  ;;  %v1589_v0 = vrot.slane %v1584_v34, %v4317_v10  ;;  %v1593_v36 = vrot.slane %v1584_v34, %v4325_v14 }
0x156f   :  { %v1477_v38 = vadd.f32 %v1476_v61, %v1472_v35 }
0x1571   :  { %1483 = vrot.lane.b32.xlu1 %v1477_v38, %s3948_s19 }
0x15ce   :  { %v1756_v42 = vpop.f32.mrb[12].mxu1 }
0x15cf   :  { %v4767_v16 = vadd.f32 %v1756_v42, %v4761_v28  ;;  %v1758_v1 = vpop.f32.mrb[13].mxu1 }
0x15d0   :  { %v4770_v45 = vadd.f32 %v1758_v1, %v4764_v41 }
0x15d1   :  { %1786 = vrot.lane.b32.xlu0 %v4767_v16, %s3946_s17 }
0x15d2   :  { %1819 = vrot.lane.b32.xlu1 %v4770_v45, %s3946_s17 }
0x15df   :  { %v1480_v55 = vpop.permute.xlu0 %1479 }
0x15e3   :  { %v1484_v63 = vpop.permute.xlu1 %1483 }
0x15e4   :  { %v1486_v4 = vsel %vm390_vm1, %v1480_v55, %v1484_v63 }
0x15e5   :  { %v1487_v27 = vsel %vm390_vm1, %v4404_v30, %v1486_v4  ;;  %v1494_v9 = vsel %vm390_vm1, %v1486_v4, %v4404_v30 }
0x15e6   :  { %v1517_v12 = vrot.slane %v1487_v27, 1  ;;  %v1531_v6 = vsel %vm308_vm0, %v1487_v27, %v1496_v8  ;;  %v1514_v31 = vrot.slane %v1494_v9, 1  ;;  %v1529_v49 = vrot.slane %v1494_v9, 2 }
0x15e7   :  { %v1533_v13 = vsel %vm1532_vm3, %v1531_v6, %v1499_v5 }
0x15e8   :  { %v1535_v62 = vsel %vm1534_vm4, %v1533_v13, %v1502_v54  ;;  %v1544_v18 = vsel %vm308_vm0, %v1517_v12, %v1488_v46 }
0x15e9   :  { %v1545_v40 = vsel %vm1532_vm3, %v1544_v18, %v1519_v7  ;;  %v1537_v51 = vsel %vm1536_vm5, %v1535_v62, %v1505_v22 }
0x15ea   :  { %v1539_v39 = vsel %vm1538_vm6, %v1537_v51, %v1508_v47  ;;  %v1546_v30 = vsel %vm1534_vm4, %v1545_v40, %v1521_v53 }
0x15eb   :  { %v1541_v50 = vsel %vm1540_vm7, %v1539_v39, %v1511_v26  ;;  %v1547_v11 = vsel %vm1536_vm5, %v1546_v30, %v1523_v23 }
0x15ec   :  { %v1543_v25 = vsel %vm1542_vm8, %v1541_v50, %v1514_v31  ;;  %v1548_v57 = vsel %vm1538_vm6, %v1547_v11, %v1525_v56 }
0x15ed   :  { %3239 = vmatmul.mubr.msk.f32.vlgmr.msra.gmra.mrb[8].mxu0 %vm230_vm2, %v1543_v25  ;;  %v1549_v20 = vsel %vm1540_vm7, %v1548_v57, %v1527_v44 }
0x15ee   :  { %1672 = vmatprep.mubr.f32.mxu0 %v3945_v3  ;;  %3548 = vmatpush1.bf16.msra.mxu0 %v4637_v60  ;;  %v1550_v33 = vsel %vm1542_vm8, %v1549_v20, %v1529_v49 }
0x15ef   :  { %3550 = vmatprep.subr.bf16.mxu0 %v4639_v32 }
0x15f1   :  { %3240 = vmatmul.mubr.msk.f32.gmra.mrb[10].mxu0 %vm230_vm2, %v1550_v33 }
0x15f2   :  { %3552 = vmatpush1.bf16.msra.mxu0 %v4656_v15  ;;  %1913 = vmatprep.mubr.f32.mxu0 %v3945_v3 }
0x15f3   :  { %3554 = vmatprep.subr.bf16.mxu0 %v4665_v58 }
0x15f6   :  { %3556 = vmatpush1.bf16.msra.mxu0 %v4687_v19 }
0x15f7   :  { %3558 = vmatprep.subr.bf16.mxu0 %v4690_v21 }
0x15fa   :  { %3560 = vmatpush1.bf16.msra.mxu0 %v4699_v52 }
0x15fb   :  { %3578 = vmatprep.subr.bf16.mxu0 %v4626_v29 }
0x16c0   :  { %v1668_v37 = vpop.f32.mrb[8].mxu0 }
0x16c1   :  { %v1669_v61 = vadd.f32 %v1668_v37, %v1589_v0  ;;  %v1670_v35 = vpop.f32.mrb[9].mxu0 }
0x16c2   :  { %v1671_v38 = vadd.f32 %v1670_v35, %v1593_v36 }
0x16c3   :  { %v1767_v17 = vrot.slane %v1669_v61, 7  ;;  %v1920_v42 = vrot.slane %v1669_v61, 1  ;;  %v1923_v43 = vrot.slane %v1669_v61, 6  ;;  %v2081_v48 = vrot.slane %v1669_v61, 2 }
0x16c4   :  { %v1674_v1 = vpop.f32.mrb[10].mxu0  ;;  %v1768_v2 = vrot.slane %v1671_v38, 7  ;;  %v1924_v46 = vrot.slane %v1671_v38, 6  ;;  %v2086_v53 = vrot.slane %v1669_v61, 5  ;;  %v2087_v55 = vrot.slane %v1671_v38, 5 }
0x16c5   :  { %v1675_v54 = vadd.f32 %v1674_v1, %v1589_v0  ;;  %v1676_v22 = vpop.f32.mrb[11].mxu0  ;;  %v2244_v63 = vrot.slane %v1669_v61, 3  ;;  %v2249_v10 = vrot.slane %v1669_v61, 4  ;;  %v2250_v8 = vrot.slane %v1671_v38, 4 }
0x16c6   :  { %v1677_v23 = vadd.f32 %v1676_v22, %v1593_v36  ;;  %v2407_v14 = vrot.slane %v1671_v38, 3  ;;  %v2713_v30 = vrot.slane %v1671_v38, 1  ;;  %v2560_v20 = vrot.slane %v1671_v38, 2 }
0x16c7   :  { %v1762_v4 = vrot.slane %v1675_v54, 7  ;;  %v1772_v59 = vrot.slane %v1675_v54, 6  ;;  %v4831_v5 = vsel %vm308_vm0, %v1920_v42, %v1675_v54  ;;  %v1927_v27 = vrot.slane %v1675_v54, 5 }
0x16c8   :  { %v1773_v24 = vrot.slane %v1677_v23, 6  ;;  %v1928_v12 = vrot.slane %v1677_v23, 5  ;;  %v2083_v6 = vrot.slane %v1675_v54, 1  ;;  %v2090_v7 = vrot.slane %v1675_v54, 4 }
0x16c9   :  { %v4834_v9 = vsel %vm308_vm0, %v1767_v17, %v1772_v59  ;;  %v4837_v13 = vsel %vm308_vm0, %v1669_v61, %v1762_v4  ;;  %v4840_v47 = vsel %vm308_vm0, %v1923_v43, %v1927_v27  ;;  %v2091_v62 = vrot.slane %v1677_v23, 4 }
0x16ca   :  { %v1804_v18 = vadd.f32 %v4834_v9, %v4767_v16  ;;  %v1778_v26 = vadd.f32 %v4837_v13, %v4767_v16  ;;  %v1777_v40 = vsel %vm308_vm0, %v1768_v2, %v1773_v24  ;;  %v4848_v51 = vsel %vm308_vm0, %v1924_v46, %v1928_v12  ;;  %v1820_v46 = vpop.permute.xlu1 %1819 }
0x16cb   :  { %v4851_v56 = vsel %vm308_vm0, %v2081_v48, %v2083_v6  ;;  %v4854_v31 = vsel %vm308_vm0, %v2086_v53, %v2090_v7  ;;  %v4857_v39 = vsel %vm308_vm0, %v2087_v55, %v2091_v62  ;;  %v2246_v11 = vrot.slane %v1675_v54, 2  ;;  %v1787_v48 = vpop.permute.xlu0 %1786 }
0x16cc   :  { %v3242_v44 = vmul.f32 -1.442695, %v1804_v18  ;;  %v3241_v50 = vmul.f32 -1.442695, %v1778_v26  ;;  %v2253_v25 = vrot.slane %v1675_v54, 3  ;;  %v2254_v16 = vrot.slane %v1677_v23, 3 }
0x16cd   :  { %v2409_v57 = vrot.slane %v1677_v23, 2  ;;  %v2562_v49 = vrot.slane %v1677_v23, 1  ;;  %v4860_v33 = vsel %vm308_vm0, %v2244_v63, %v2246_v11  ;;  %v4866_v0 = vsel %vm308_vm0, %v2713_v30, %v1677_v23 }
0x16ce   :  { %3809 = vpow2.f32 %v3242_v44  ;;  %v4863_v34 = vsel %vm308_vm0, %v2249_v10, %v2253_v25  ;;  %v4869_v36 = vsel %vm308_vm0, %v2250_v8, %v2254_v16  ;;  %v2864_v35 = vrot.slane %v1677_v23, 7 }
0x16cf   :  { %3811 = vpow2.f32 %v3241_v50  ;;  %v4872_v37 = vsel %vm308_vm0, %v2407_v14, %v2409_v57  ;;  %v4875_v61 = vsel %vm308_vm0, %v2560_v20, %v2562_v49  ;;  %v1811_v4 = vadd.f32 %v1777_v40, %v4770_v45 }
0x16d0   :  { %v4878_v17 = vsel %vm308_vm0, %v1671_v38, %v2864_v35 }
0x16d1   :  { %v3243_v59 = vmul.f32 -1.442695, %v1811_v4 }
0x16d8   :  { %v3810_v42 = vpop.eup %3809 }
0x16d9   :  { %v3812_v1 = vpop.eup %3811  ;;  %v1808_v2 = vadd.f32 1.0, %v3810_v42 }
0x16da   :  { %v1782_v43 = vadd.f32 1.0, %v3812_v1 }
0x16db   :  { %3813 = vrcp.f32 %v1808_v2 }
0x16dc   :  { %3815 = vrcp.f32 %v1782_v43 }
0x16e5   :  { %v3814_v54 = vpop.eup %3813 }
0x16e6   :  { %v3816_v22 = vpop.eup %3815  ;;  %v1822_v53 = vmul.f32 %v3814_v54, %v1820_v46 }
0x16e7   :  { %v1789_v55 = vmul.f32 %v3816_v22, %v1787_v48  ;;  %v1796_v62 = vsub.f32 1.0, %v3816_v22  ;;  %v1802_v44 = vmul.f32 0.0, %v3816_v22 }
0x16e8   :  { %1824 = vrot.lane.b32.xlu1 %v1822_v53, %s3946_s17 }
0x16e9   :  { %1791 = vrot.lane.b32.xlu0 %v1789_v55, %s3946_s17 }
0x175a   :  { %v1825_v63 = vpop.permute.xlu1 %1824 }
0x175b   :  { %v1827_v23 = vadd.f32 %v1825_v63, %v1777_v40  ;;  %v1792_v38 = vpop.permute.xlu0 %1791 }
0x175c   :  { %v1794_v10 = vadd.f32 %v1792_v38, %v4837_v13 }
0x175d   :  { %3817 = vtanh.f32 %v1827_v23 }
0x175e   :  { %3819 = vtanh.f32 %v1794_v10 }
0x175f   :  { %3821 = vpow2.f32 %v3243_v59 }
0x1767   :  { %v3818_v8 = vpop.eup %3817 }
0x1768   :  { %v3820_v14 = vpop.eup %3819  ;;  %1831 = vrot.lane.b32.xlu1 %v3818_v8, %s3947_s3 }
0x1769   :  { %1798 = vrot.lane.b32.xlu0 %v3820_v14, %s3947_s3  ;;  %v3822_v27 = vpop.eup %3821 }
0x176a   :  { %v1815_v24 = vadd.f32 1.0, %v3822_v27 }
0x176c   :  { %3823 = vrcp.f32 %v1815_v24 }
0x1776   :  { %v3824_v12 = vpop.eup %3823 }
0x1777   :  { %v1829_v6 = vsub.f32 1.0, %v3824_v12  ;;  %v1835_v18 = vmul.f32 0.0, %v3824_v12 }
0x17da   :  { %v1832_v7 = vpop.permute.xlu1 %1831 }
0x17db   :  { %v1834_v26 = vmul.f32 %v1832_v7, %v1829_v6  ;;  %v1799_v30 = vpop.permute.xlu0 %1798 }
0x17dc   :  { %v1801_v50 = vmul.f32 %v1799_v30, %v1796_v62 }
0x17dd   :  { %v1836_v11 = vadd.f32 %v1835_v18, %v1834_v26 }
0x17de   :  { %v1803_v25 = vadd.f32 %v1802_v44, %v1801_v50 }
0x17df   :  { %1842 = vrot.lane.b32.xlu1 %v1836_v11, %s3948_s19 }
0x17e0   :  { %1838 = vrot.lane.b32.xlu0 %v1803_v25, %s3947_s3 }
0x1851   :  { %v1843_v45 = vpop.permute.xlu1 %1842 }
0x1852   :  { %v1839_v40 = vpop.permute.xlu0 %1838 }
0x1853   :  { %v4889_v16 = vsel %vm390_vm1, %v1839_v40, %v1843_v45 }
0x1854   :  { %3244 = vmatmul.mubr.msk.f32.vlgmr.msra.gmra.mrb[12].mxu0 %vm230_vm2, %v4889_v16 }
0x1855   :  { %3580 = vmatpush1.bf16.msra.mxu0 %v4637_v60  ;;  %2237 = vmatprep.mubr.f32.mxu0 %v3945_v3 }
0x1856   :  { %3582 = vmatprep.subr.bf16.mxu0 %v4639_v32 }
0x1859   :  { %3584 = vmatpush1.bf16.msra.mxu0 %v4656_v15 }
0x185a   :  { %3586 = vmatprep.subr.bf16.mxu0 %v4665_v58 }
0x185d   :  { %3588 = vmatpush1.bf16.msra.mxu0 %v4687_v19 }
0x185e   :  { %3590 = vmatprep.subr.bf16.mxu0 %v4690_v21 }
0x1861   :  { %3592 = vmatpush1.bf16.msra.mxu0 %v4699_v52 }
0x1862   :  { %3610 = vmatprep.subr.bf16.mxu0 %v4626_v29 }
0x1927   :  { %v1915_v57 = vpop.f32.mrb[12].mxu0 }
0x1928   :  { %v1916_v20 = vadd.f32 %v1915_v57, %v4761_v28  ;;  %v1917_v49 = vpop.f32.mrb[13].mxu0 }
0x1929   :  { %v1918_v35 = vadd.f32 %v1917_v49, %v4764_v41 }
0x192a   :  { %1941 = vrot.lane.b32.xlu0 %v1916_v20, %s3946_s17  ;;  %v1933_v42 = vadd.f32 %v4831_v5, %v1916_v20  ;;  %v1962_v1 = vadd.f32 %v4840_v47, %v1916_v20 }
0x192b   :  { %1977 = vrot.lane.b32.xlu1 %v1918_v35, %s3946_s17  ;;  %v1969_v12 = vadd.f32 %v4848_v51, %v1918_v35 }
0x192c   :  { %v3245_v2 = vmul.f32 -1.442695, %v1933_v42  ;;  %v3246_v43 = vmul.f32 -1.442695, %v1962_v1 }
0x192d   :  { %v3247_v6 = vmul.f32 -1.442695, %v1969_v12 }
0x192e   :  { %3825 = vpow2.f32 %v3245_v2 }
0x192f   :  { %3827 = vpow2.f32 %v3246_v43 }
0x1938   :  { %v3826_v46 = vpop.eup %3825 }
0x1939   :  { %v3828_v48 = vpop.eup %3827  ;;  %v1937_v54 = vadd.f32 1.0, %v3826_v46 }
0x193a   :  { %v1966_v22 = vadd.f32 1.0, %v3828_v48 }
0x193b   :  { %3829 = vrcp.f32 %v1937_v54 }
0x193c   :  { %3831 = vrcp.f32 %v1966_v22 }
0x1945   :  { %v3830_v53 = vpop.eup %3829 }
0x1946   :  { %v3832_v63 = vpop.eup %3831  ;;  %v1951_v26 = vsub.f32 1.0, %v3830_v53 }
0x199c   :  { %v1942_v55 = vpop.permute.xlu0 %1941 }
0x199d   :  { %v1944_v23 = vmul.f32 %v3830_v53, %v1942_v55  ;;  %v1978_v38 = vpop.permute.xlu1 %1977 }
0x199e   :  { %v1980_v10 = vmul.f32 %v3832_v63, %v1978_v38 }
0x199f   :  { %1946 = vrot.lane.b32.xlu0 %v1944_v23, %s3946_s17 }
0x19a0   :  { %1982 = vrot.lane.b32.xlu1 %v1980_v10, %s3946_s17 }
0x19a4   :  { %1957 = vrot.lane.b32.xlu1 %v4889_v16, %s3948_s19 }
0x19a8   :  { %1993 = vrot.lane.b32.xlu1 %v4889_v16, %s3947_s3 }
0x1a11   :  { %v1947_v8 = vpop.permute.xlu0 %1946 }
0x1a12   :  { %v1949_v14 = vadd.f32 %v1947_v8, %v4831_v5  ;;  %v1983_v4 = vpop.permute.xlu1 %1982 }
0x1a13   :  { %v1985_v59 = vadd.f32 %v1983_v4, %v4848_v51 }
0x1a14   :  { %3833 = vtanh.f32 %v1949_v14 }
0x1a15   :  { %3835 = vtanh.f32 %v1985_v59 }
0x1a16   :  { %3837 = vpow2.f32 %v3247_v6  ;;  %v1958_v18 = vpop.permute.xlu1 %1957 }
0x1a17   :  { %v1960_v50 = vmul.f32 %v3830_v53, %v1958_v18 }
0x1a1a   :  { %v1994_v25 = vpop.permute.xlu1 %1993 }
0x1a1e   :  { %v3834_v27 = vpop.eup %3833 }
0x1a1f   :  { %1953 = vrot.lane.b32.xlu0 %v3834_v27, %s3947_s3  ;;  %v3836_v24 = vpop.eup %3835 }
0x1a20   :  { %v3838_v7 = vpop.eup %3837 }
0x1a21   :  { %v1973_v62 = vadd.f32 1.0, %v3838_v7 }
0x1a23   :  { %1989 = vrot.lane.b32.xlu0 %v3836_v24, %s3947_s3  ;;  %3839 = vrcp.f32 %v1973_v62 }
0x1a2d   :  { %v3840_v30 = vpop.eup %3839 }
0x1a2e   :  { %v1987_v40 = vsub.f32 1.0, %v3840_v30  ;;  %v1996_v20 = vmul.f32 %v3840_v30, %v1994_v25 }
0x1a91   :  { %v1954_v44 = vpop.permute.xlu0 %1953 }
0x1a92   :  { %v1956_v11 = vmul.f32 %v1954_v44, %v1951_v26 }
0x1a94   :  { %v1961_v45 = vadd.f32 %v1960_v50, %v1956_v11 }
0x1a95   :  { %v1990_v57 = vpop.permute.xlu0 %1989 }
0x1a96   :  { %v1992_v49 = vmul.f32 %v1990_v57, %v1987_v40  ;;  %1999 = vrot.lane.b32.xlu0 %v1961_v45, %s3947_s3 }
0x1a98   :  { %v1997_v51 = vadd.f32 %v1996_v20, %v1992_v49 }
0x1a9a   :  { %2003 = vrot.lane.b32.xlu1 %v1997_v51, %s3948_s19 }
0x1b08   :  { %v2000_v35 = vpop.permute.xlu0 %1999 }
0x1b0c   :  { %v2004_v42 = vpop.permute.xlu1 %2003 }
0x1b0d   :  { %v4922_v1 = vsel %vm390_vm1, %v2000_v35, %v2004_v42 }
0x1b0e   :  { %3248 = vmatmul.mubr.msk.f32.vlgmr.msra.gmra.mrb[14].mxu1 %vm230_vm2, %v4922_v1 }
0x1b0f   :  { %3596 = vmatpush1.bf16.msra.mxu1 %v4637_v60  ;;  %2400 = vmatprep.mubr.f32.mxu1 %v3945_v3 }
0x1b10   :  { %3598 = vmatprep.subr.bf16.mxu1 %v4639_v32 }
0x1b13   :  { %3600 = vmatpush1.bf16.msra.mxu1 %v4656_v15 }
0x1b14   :  { %3602 = vmatprep.subr.bf16.mxu1 %v4665_v58 }
0x1b17   :  { %3604 = vmatpush1.bf16.msra.mxu1 %v4687_v19 }
0x1b18   :  { %3606 = vmatprep.subr.bf16.mxu1 %v4690_v21 }
0x1b1b   :  { %3608 = vmatpush1.bf16.msra.mxu1 %v4699_v52 }
0x1b1c   :  { %3626 = vmatprep.subr.bf16.mxu1 %v4626_v29 }
0x1be1   :  { %v2076_v2 = vpop.f32.mrb[14].mxu1 }
0x1be2   :  { %v2077_v43 = vadd.f32 %v2076_v2, %v4761_v28  ;;  %v2078_v46 = vpop.f32.mrb[15].mxu1 }
0x1be3   :  { %v2079_v48 = vadd.f32 %v2078_v46, %v4764_v41 }
0x1be4   :  { %2104 = vrot.lane.b32.xlu0 %v2077_v43, %s3946_s17  ;;  %v2096_v54 = vadd.f32 %v4851_v56, %v2077_v43  ;;  %v2125_v22 = vadd.f32 %v4854_v31, %v2077_v43 }
0x1be5   :  { %2140 = vrot.lane.b32.xlu1 %v2079_v48, %s3946_s17  ;;  %v2132_v30 = vadd.f32 %v4857_v39, %v2079_v48 }
0x1be6   :  { %v3249_v53 = vmul.f32 -1.442695, %v2096_v54  ;;  %v3250_v55 = vmul.f32 -1.442695, %v2125_v22 }
0x1be7   :  { %v3251_v44 = vmul.f32 -1.442695, %v2132_v30 }
0x1be8   :  { %3841 = vpow2.f32 %v3249_v53 }
0x1be9   :  { %3843 = vpow2.f32 %v3250_v55 }
0x1bf2   :  { %v3842_v63 = vpop.eup %3841 }
0x1bf3   :  { %v3844_v23 = vpop.eup %3843  ;;  %v2100_v38 = vadd.f32 1.0, %v3842_v63 }
0x1bf4   :  { %v2129_v10 = vadd.f32 1.0, %v3844_v23 }
0x1bf5   :  { %3845 = vrcp.f32 %v2100_v38 }
0x1bf6   :  { %3847 = vrcp.f32 %v2129_v10 }
0x1bff   :  { %v3846_v8 = vpop.eup %3845 }
0x1c00   :  { %v3848_v4 = vpop.eup %3847  ;;  %v2114_v45 = vsub.f32 1.0, %v3846_v8 }
0x1c56   :  { %v2105_v14 = vpop.permute.xlu0 %2104 }
0x1c57   :  { %v2107_v59 = vmul.f32 %v3846_v8, %v2105_v14  ;;  %v2141_v27 = vpop.permute.xlu1 %2140 }
0x1c58   :  { %v2143_v24 = vmul.f32 %v3848_v4, %v2141_v27 }
0x1c59   :  { %2109 = vrot.lane.b32.xlu0 %v2107_v59, %s3946_s17 }
0x1c5a   :  { %2145 = vrot.lane.b32.xlu1 %v2143_v24, %s3946_s17 }
0x1c5e   :  { %2120 = vrot.lane.b32.xlu1 %v4922_v1, %s3948_s19 }
0x1c62   :  { %2156 = vrot.lane.b32.xlu1 %v4922_v1, %s3947_s3 }
0x1ccb   :  { %v2110_v12 = vpop.permute.xlu0 %2109 }
0x1ccc   :  { %v2112_v6 = vadd.f32 %v2110_v12, %v4851_v56  ;;  %v2146_v7 = vpop.permute.xlu1 %2145 }
0x1ccd   :  { %v2148_v62 = vadd.f32 %v2146_v7, %v4857_v39 }
0x1cce   :  { %3849 = vtanh.f32 %v2112_v6 }
0x1ccf   :  { %3851 = vtanh.f32 %v2148_v62 }
0x1cd0   :  { %3853 = vpow2.f32 %v3251_v44  ;;  %v2121_v25 = vpop.permute.xlu1 %2120 }
0x1cd1   :  { %v2123_v20 = vmul.f32 %v3846_v8, %v2121_v25 }
0x1cd4   :  { %v2157_v51 = vpop.permute.xlu1 %2156 }
0x1cd8   :  { %v3850_v18 = vpop.eup %3849 }
0x1cd9   :  { %2116 = vrot.lane.b32.xlu0 %v3850_v18, %s3947_s3  ;;  %v3852_v26 = vpop.eup %3851 }
0x1cda   :  { %v3854_v50 = vpop.eup %3853 }
0x1cdb   :  { %v2136_v11 = vadd.f32 1.0, %v3854_v50 }
0x1cdd   :  { %2152 = vrot.lane.b32.xlu0 %v3852_v26, %s3947_s3  ;;  %3855 = vrcp.f32 %v2136_v11 }
0x1ce7   :  { %v3856_v40 = vpop.eup %3855 }
0x1ce8   :  { %v2150_v42 = vsub.f32 1.0, %v3856_v40  ;;  %v2159_v43 = vmul.f32 %v3856_v40, %v2157_v51 }
0x1d4b   :  { %v2117_v57 = vpop.permute.xlu0 %2116 }
0x1d4c   :  { %v2119_v49 = vmul.f32 %v2117_v57, %v2114_v45 }
0x1d4e   :  { %v2124_v35 = vadd.f32 %v2123_v20, %v2119_v49 }
0x1d4f   :  { %v2153_v2 = vpop.permute.xlu0 %2152 }
0x1d50   :  { %v2155_v46 = vmul.f32 %v2153_v2, %v2150_v42  ;;  %2162 = vrot.lane.b32.xlu0 %v2124_v35, %s3947_s3 }
0x1d52   :  { %v2160_v39 = vadd.f32 %v2159_v43, %v2155_v46 }
0x1d54   :  { %2166 = vrot.lane.b32.xlu1 %v2160_v39, %s3948_s19 }
0x1dc2   :  { %v2163_v48 = vpop.permute.xlu0 %2162 }
0x1dc6   :  { %v2167_v54 = vpop.permute.xlu1 %2166 }
0x1dc7   :  { %v4955_v22 = vsel %vm390_vm1, %v2163_v48, %v2167_v54 }
0x1dc8   :  { %3252 = vmatmul.mubr.msk.f32.vlgmr.msra.gmra.mrb[14].mxu0 %vm230_vm2, %v4955_v22 }
0x1dc9   :  { %3612 = vmatpush1.bf16.msra.mxu0 %v4637_v60  ;;  %2553 = vmatprep.mubr.f32.mxu0 %v3945_v3 }
0x1dca   :  { %3614 = vmatprep.subr.bf16.mxu0 %v4639_v32 }
0x1dcd   :  { %3616 = vmatpush1.bf16.msra.mxu0 %v4656_v15 }
0x1dce   :  { %3618 = vmatprep.subr.bf16.mxu0 %v4665_v58 }
0x1dd1   :  { %3620 = vmatpush1.bf16.msra.mxu0 %v4687_v19 }
0x1dd2   :  { %3622 = vmatprep.subr.bf16.mxu0 %v4690_v21 }
0x1dd5   :  { %3624 = vmatpush1.bf16.msra.mxu0 %v4699_v52 }
0x1dd6   :  { %3642 = vmatprep.subr.bf16.mxu0 %v4626_v29 }
0x1e9b   :  { %v2239_v53 = vpop.f32.mrb[14].mxu0 }
0x1e9c   :  { %v2240_v55 = vadd.f32 %v2239_v53, %v4761_v28  ;;  %v2241_v63 = vpop.f32.mrb[15].mxu0 }
0x1e9d   :  { %v2242_v23 = vadd.f32 %v2241_v63, %v4764_v41 }
0x1e9e   :  { %2267 = vrot.lane.b32.xlu0 %v2240_v55, %s3946_s17  ;;  %v2259_v38 = vadd.f32 %v4860_v33, %v2240_v55  ;;  %v2288_v10 = vadd.f32 %v4863_v34, %v2240_v55 }
0x1e9f   :  { %2303 = vrot.lane.b32.xlu1 %v2242_v23, %s3946_s17  ;;  %v2295_v45 = vadd.f32 %v4869_v36, %v2242_v23 }
0x1ea0   :  { %v3253_v8 = vmul.f32 -1.442695, %v2259_v38  ;;  %v3254_v14 = vmul.f32 -1.442695, %v2288_v10 }
0x1ea1   :  { %v3255_v40 = vmul.f32 -1.442695, %v2295_v45 }
0x1ea2   :  { %3857 = vpow2.f32 %v3253_v8 }
0x1ea3   :  { %3859 = vpow2.f32 %v3254_v14 }
0x1eac   :  { %v3858_v4 = vpop.eup %3857 }
0x1ead   :  { %v3860_v29 = vpop.eup %3859  ;;  %v2263_v59 = vadd.f32 1.0, %v3858_v4 }
0x1eae   :  { %v2292_v27 = vadd.f32 1.0, %v3860_v29 }
0x1eaf   :  { %3861 = vrcp.f32 %v2263_v59 }
0x1eb0   :  { %3863 = vrcp.f32 %v2292_v27 }
0x1eb9   :  { %v3862_v24 = vpop.eup %3861 }
0x1eba   :  { %v3864_v6 = vpop.eup %3863  ;;  %v2277_v51 = vsub.f32 1.0, %v3862_v24 }
0x1f10   :  { %v2268_v12 = vpop.permute.xlu0 %2267 }
0x1f11   :  { %v2270_v7 = vmul.f32 %v3862_v24, %v2268_v12  ;;  %v2304_v62 = vpop.permute.xlu1 %2303 }
0x1f12   :  { %v2306_v18 = vmul.f32 %v3864_v6, %v2304_v62 }
0x1f13   :  { %2272 = vrot.lane.b32.xlu0 %v2270_v7, %s3946_s17 }
0x1f14   :  { %2308 = vrot.lane.b32.xlu1 %v2306_v18, %s3946_s17 }
0x1f18   :  { %2283 = vrot.lane.b32.xlu1 %v4955_v22, %s3948_s19 }
0x1f1c   :  { %2319 = vrot.lane.b32.xlu1 %v4955_v22, %s3947_s3 }
0x1f85   :  { %v2273_v26 = vpop.permute.xlu0 %2272 }
0x1f86   :  { %v2275_v30 = vadd.f32 %v2273_v26, %v4860_v33  ;;  %v2309_v44 = vpop.permute.xlu1 %2308 }
0x1f87   :  { %v2311_v50 = vadd.f32 %v2309_v44, %v4869_v36 }
0x1f88   :  { %3865 = vtanh.f32 %v2275_v30 }
0x1f89   :  { %3867 = vtanh.f32 %v2311_v50 }
0x1f8a   :  { %3869 = vpow2.f32 %v3255_v40  ;;  %v2284_v49 = vpop.permute.xlu1 %2283 }
0x1f8b   :  { %v2286_v2 = vmul.f32 %v3862_v24, %v2284_v49 }
0x1f8e   :  { %v2320_v46 = vpop.permute.xlu1 %2319 }
0x1f92   :  { %v3866_v11 = vpop.eup %3865 }
0x1f93   :  { %2279 = vrot.lane.b32.xlu0 %v3866_v11, %s3947_s3  ;;  %v3868_v25 = vpop.eup %3867 }
0x1f94   :  { %v3870_v57 = vpop.eup %3869 }
0x1f95   :  { %v2299_v20 = vadd.f32 1.0, %v3870_v57 }
0x1f97   :  { %2315 = vrot.lane.b32.xlu0 %v3868_v25, %s3947_s3  ;;  %3871 = vrcp.f32 %v2299_v20 }
0x1fa1   :  { %v3872_v35 = vpop.eup %3871 }
0x1fa2   :  { %v2313_v48 = vsub.f32 1.0, %v3872_v35  ;;  %v2322_v53 = vmul.f32 %v3872_v35, %v2320_v46 }
0x2005   :  { %v2280_v42 = vpop.permute.xlu0 %2279 }
0x2006   :  { %v2282_v43 = vmul.f32 %v2280_v42, %v2277_v51 }
0x2008   :  { %v2287_v39 = vadd.f32 %v2286_v2, %v2282_v43 }
0x2009   :  { %v2316_v54 = vpop.permute.xlu0 %2315 }
0x200a   :  { %v2318_v55 = vmul.f32 %v2316_v54, %v2313_v48  ;;  %2325 = vrot.lane.b32.xlu0 %v2287_v39, %s3947_s3 }
0x200c   :  { %v2323_v36 = vadd.f32 %v2322_v53, %v2318_v55 }
0x200e   :  { %2329 = vrot.lane.b32.xlu1 %v2323_v36, %s3948_s19 }
0x207c   :  { %v2326_v63 = vpop.permute.xlu0 %2325 }
0x2080   :  { %v2330_v23 = vpop.permute.xlu1 %2329 }
0x2081   :  { %v4988_v38 = vsel %vm390_vm1, %v2326_v63, %v2330_v23 }
0x2082   :  { %3256 = vmatmul.mubr.msk.f32.vlgmr.msra.gmra.mrb[16].mxu1 %vm230_vm2, %v4988_v38 }
0x2083   :  { %3628 = vmatpush1.bf16.msra.mxu1 %v4637_v60  ;;  %2706 = vmatprep.mubr.f32.mxu1 %v3945_v3 }
0x2084   :  { %3630 = vmatprep.subr.bf16.mxu1 %v4639_v32 }
0x2087   :  { %3632 = vmatpush1.bf16.msra.mxu1 %v4656_v15 }
0x2088   :  { %3634 = vmatprep.subr.bf16.mxu1 %v4665_v58 }
0x208b   :  { %3636 = vmatpush1.bf16.msra.mxu1 %v4687_v19 }
0x208c   :  { %3638 = vmatprep.subr.bf16.mxu1 %v4690_v21 }
0x208f   :  { %3640 = vmatpush1.bf16.msra.mxu1 %v4699_v52 }
0x2155   :  { %v2402_v10 = vpop.f32.mrb[16].mxu1 }
0x2156   :  { %v2403_v8 = vadd.f32 %v2402_v10, %v4761_v28  ;;  %v2404_v14 = vpop.f32.mrb[17].mxu1 }
0x2157   :  { %v2405_v4 = vadd.f32 %v2404_v14, %v4764_v41 }
0x2158   :  { %2420 = vrot.lane.b32.xlu0 %v2403_v8, %s3946_s17  ;;  %v2412_v29 = vadd.f32 %v2403_v8, %v4863_v34  ;;  %v2441_v59 = vadd.f32 %v2403_v8, %v4860_v33 }
0x2159   :  { %2456 = vrot.lane.b32.xlu1 %v2405_v4, %s3946_s17  ;;  %v2448_v49 = vadd.f32 %v4872_v37, %v2405_v4 }
0x215a   :  { %v3257_v27 = vmul.f32 -1.442695, %v2412_v29  ;;  %v3258_v24 = vmul.f32 -1.442695, %v2441_v59 }
0x215b   :  { %v3259_v51 = vmul.f32 -1.442695, %v2448_v49 }
0x215c   :  { %3873 = vpow2.f32 %v3257_v27 }
0x215d   :  { %3875 = vpow2.f32 %v3258_v24 }
0x2166   :  { %v3874_v12 = vpop.eup %3873 }
0x2167   :  { %v3876_v6 = vpop.eup %3875  ;;  %v2416_v7 = vadd.f32 1.0, %v3874_v12 }
0x2168   :  { %v2445_v62 = vadd.f32 1.0, %v3876_v6 }
0x2169   :  { %3877 = vrcp.f32 %v2416_v7 }
0x216a   :  { %3879 = vrcp.f32 %v2445_v62 }
0x2173   :  { %v3878_v18 = vpop.eup %3877 }
0x2174   :  { %v3880_v30 = vpop.eup %3879 }
0x21ca   :  { %v2421_v26 = vpop.permute.xlu0 %2420 }
0x21cb   :  { %v2423_v44 = vmul.f32 %v3878_v18, %v2421_v26  ;;  %v2457_v50 = vpop.permute.xlu1 %2456 }
0x21cc   :  { %v2459_v11 = vmul.f32 %v3880_v30, %v2457_v50 }
0x21cd   :  { %2425 = vrot.lane.b32.xlu0 %v2423_v44, %s3946_s17 }
0x21ce   :  { %2461 = vrot.lane.b32.xlu1 %v2459_v11, %s3946_s17 }
0x21d2   :  { %2436 = vrot.lane.b32.xlu1 %v4988_v38, %s3948_s19 }
0x21d6   :  { %2472 = vrot.lane.b32.xlu1 %v4988_v38, %s3947_s3 }
0x223f   :  { %v2426_v33 = vpop.permute.xlu0 %2425 }
0x2240   :  { %v2428_v25 = vadd.f32 %v2426_v33, %v4863_v34  ;;  %v2462_v45 = vpop.permute.xlu1 %2461  ;;  %v2430_v34 = vsub.f32 1.0, %v3878_v18 }
0x2241   :  { %v2464_v40 = vadd.f32 %v2462_v45, %v4872_v37 }
0x2242   :  { %3881 = vtanh.f32 %v2428_v25 }
0x2243   :  { %3883 = vtanh.f32 %v2464_v40 }
0x2244   :  { %3885 = vpow2.f32 %v3259_v51  ;;  %v2437_v2 = vpop.permute.xlu1 %2436 }
0x2245   :  { %v2439_v39 = vmul.f32 %v3878_v18, %v2437_v2 }
0x2248   :  { %v2473_v54 = vpop.permute.xlu1 %2472 }
0x224c   :  { %v3882_v57 = vpop.eup %3881 }
0x224d   :  { %2432 = vrot.lane.b32.xlu0 %v3882_v57, %s3947_s3  ;;  %v3884_v20 = vpop.eup %3883 }
0x224e   :  { %v3886_v35 = vpop.eup %3885 }
0x224f   :  { %v2452_v42 = vadd.f32 1.0, %v3886_v35 }
0x2251   :  { %2468 = vrot.lane.b32.xlu0 %v3884_v20, %s3947_s3  ;;  %3887 = vrcp.f32 %v2452_v42 }
0x225b   :  { %v3888_v43 = vpop.eup %3887 }
0x225c   :  { %v2466_v55 = vsub.f32 1.0, %v3888_v43  ;;  %v2475_v63 = vmul.f32 %v3888_v43, %v2473_v54 }
0x22bf   :  { %v2433_v46 = vpop.permute.xlu0 %2432 }
0x22c0   :  { %v2435_v48 = vmul.f32 %v2433_v46, %v2430_v34 }
0x22c2   :  { %v2440_v53 = vadd.f32 %v2439_v39, %v2435_v48 }
0x22c3   :  { %v2469_v36 = vpop.permute.xlu0 %2468 }
0x22c4   :  { %v2471_v23 = vmul.f32 %v2469_v36, %v2466_v55  ;;  %2478 = vrot.lane.b32.xlu0 %v2440_v53, %s3947_s3 }
0x22c6   :  { %v2476_v37 = vadd.f32 %v2475_v63, %v2471_v23 }
0x22c8   :  { %2482 = vrot.lane.b32.xlu1 %v2476_v37, %s3948_s19 }
0x2336   :  { %v2479_v10 = vpop.permute.xlu0 %2478 }
0x233a   :  { %v2483_v8 = vpop.permute.xlu1 %2482 }
0x233b   :  { %v5020_v14 = vsel %vm390_vm1, %v2479_v10, %v2483_v8 }
0x233c   :  { %3260 = vmatmul.mubr.msk.f32.vlgmr.msra.gmra.mrb[16].mxu0 %vm230_vm2, %v5020_v14 }
0x233d   :  { %3644 = vmatpush1.bf16.msra.mxu0 %v4637_v60  ;;  %2857 = vmatprep.mubr.f32.mxu0 %v3945_v3 }
0x233e   :  { %3646 = vmatprep.subr.bf16.mxu0 %v4639_v32 }
0x2341   :  { %3648 = vmatpush1.bf16.msra.mxu0 %v4656_v15 }
0x2342   :  { %3650 = vmatprep.subr.bf16.mxu0 %v4665_v58 }
0x2345   :  { %3652 = vmatpush1.bf16.msra.mxu0 %v4687_v19 }
0x2346   :  { %3654 = vmatprep.subr.bf16.mxu0 %v4690_v21 }
0x2349   :  { %3656 = vmatpush1.bf16.msra.mxu0 %v4699_v52 }
0x240f   :  { %v2555_v4 = vpop.f32.mrb[16].mxu0 }
0x2410   :  { %v2556_v29 = vadd.f32 %v2555_v4, %v4761_v28  ;;  %v2557_v59 = vpop.f32.mrb[17].mxu0 }
0x2411   :  { %v2558_v60 = vadd.f32 %v2557_v59, %v4764_v41 }
0x2412   :  { %2573 = vrot.lane.b32.xlu0 %v2556_v29, %s3946_s17  ;;  %v2565_v3 = vadd.f32 %v2556_v29, %v4854_v31  ;;  %v2594_v32 = vadd.f32 %v2556_v29, %v4851_v56 }
0x2413   :  { %2609 = vrot.lane.b32.xlu1 %v2558_v60, %s3946_s17  ;;  %v2601_v33 = vadd.f32 %v4875_v61, %v2558_v60 }
0x2414   :  { %v3261_v15 = vmul.f32 -1.442695, %v2565_v3  ;;  %v3262_v58 = vmul.f32 -1.442695, %v2594_v32 }
0x2415   :  { %v3263_v25 = vmul.f32 -1.442695, %v2601_v33 }
0x2416   :  { %3889 = vpow2.f32 %v3261_v15 }
0x2417   :  { %3891 = vpow2.f32 %v3262_v58 }
0x2420   :  { %v3890_v19 = vpop.eup %3889 }
0x2421   :  { %v3892_v21 = vpop.eup %3891  ;;  %v2569_v52 = vadd.f32 1.0, %v3890_v19 }
0x2422   :  { %v2598_v27 = vadd.f32 1.0, %v3892_v21 }
0x2423   :  { %3893 = vrcp.f32 %v2569_v52 }
0x2424   :  { %3895 = vrcp.f32 %v2598_v27 }
0x242d   :  { %v3894_v24 = vpop.eup %3893 }
0x242e   :  { %v3896_v6 = vpop.eup %3895 }
0x2484   :  { %v2574_v12 = vpop.permute.xlu0 %2573 }
0x2485   :  { %v2576_v7 = vmul.f32 %v3894_v24, %v2574_v12  ;;  %v2610_v62 = vpop.permute.xlu1 %2609 }
0x2486   :  { %v2612_v18 = vmul.f32 %v3896_v6, %v2610_v62 }
0x2487   :  { %2578 = vrot.lane.b32.xlu0 %v2576_v7, %s3946_s17 }
0x2488   :  { %2614 = vrot.lane.b32.xlu1 %v2612_v18, %s3946_s17 }
0x248c   :  { %2589 = vrot.lane.b32.xlu1 %v5020_v14, %s3948_s19 }
0x2490   :  { %2625 = vrot.lane.b32.xlu1 %v5020_v14, %s3947_s3 }
0x24f9   :  { %v2579_v56 = vpop.permute.xlu0 %2578 }
0x24fa   :  { %v2581_v26 = vadd.f32 %v2579_v56, %v4854_v31  ;;  %v2615_v30 = vpop.permute.xlu1 %2614  ;;  %v2583_v31 = vsub.f32 1.0, %v3894_v24 }
0x24fb   :  { %v2617_v44 = vadd.f32 %v2615_v30, %v4875_v61 }
0x24fc   :  { %3897 = vtanh.f32 %v2581_v26 }
0x24fd   :  { %3899 = vtanh.f32 %v2617_v44 }
0x24fe   :  { %3901 = vpow2.f32 %v3263_v25  ;;  %v2590_v57 = vpop.permute.xlu1 %2589 }
0x24ff   :  { %v2592_v51 = vmul.f32 %v3894_v24, %v2590_v57 }
0x2502   :  { %v2626_v42 = vpop.permute.xlu1 %2625 }
0x2506   :  { %v3898_v50 = vpop.eup %3897 }
0x2507   :  { %2585 = vrot.lane.b32.xlu0 %v3898_v50, %s3947_s3  ;;  %v3900_v11 = vpop.eup %3899 }
0x2508   :  { %v3902_v45 = vpop.eup %3901 }
0x2509   :  { %v2605_v40 = vadd.f32 1.0, %v3902_v45 }
0x250b   :  { %2621 = vrot.lane.b32.xlu0 %v3900_v11, %s3947_s3  ;;  %3903 = vrcp.f32 %v2605_v40 }
0x2515   :  { %v3904_v20 = vpop.eup %3903 }
0x2516   :  { %v2619_v34 = vsub.f32 1.0, %v3904_v20  ;;  %v2628_v46 = vmul.f32 %v3904_v20, %v2626_v42 }
0x2579   :  { %v2586_v49 = vpop.permute.xlu0 %2585 }
0x257a   :  { %v2588_v35 = vmul.f32 %v2586_v49, %v2583_v31 }
0x257c   :  { %v2593_v2 = vadd.f32 %v2592_v51, %v2588_v35 }
0x257d   :  { %v2622_v43 = vpop.permute.xlu0 %2621 }
0x257e   :  { %v2624_v39 = vmul.f32 %v2622_v43, %v2619_v34  ;;  %2631 = vrot.lane.b32.xlu0 %v2593_v2, %s3947_s3 }
0x2580   :  { %v2629_v61 = vadd.f32 %v2628_v46, %v2624_v39 }
0x2582   :  { %2635 = vrot.lane.b32.xlu1 %v2629_v61, %s3948_s19 }
0x25f0   :  { %v2632_v48 = vpop.permute.xlu0 %2631 }
0x25f4   :  { %v2636_v54 = vpop.permute.xlu1 %2635 }
0x25f5   :  { %v5052_v53 = vsel %vm390_vm1, %v2632_v48, %v2636_v54 }
0x25f6   :  { %3264 = vmatmul.mubr.msk.f32.vlgmr.msra.gmra.mrb[18].mxu1 %vm230_vm2, %v5052_v53 }
0x26c9   :  { %v2708_v55 = vpop.f32.mrb[18].mxu1 }
0x26ca   :  { %v2709_v36 = vadd.f32 %v2708_v55, %v4761_v28  ;;  %v2710_v63 = vpop.f32.mrb[19].mxu1 }
0x26cb   :  { %v2711_v23 = vadd.f32 %v2710_v63, %v4764_v41 }
0x26cc   :  { %2724 = vrot.lane.b32.xlu0 %v2709_v36, %s3946_s17  ;;  %v2716_v37 = vadd.f32 %v2709_v36, %v4840_v47  ;;  %v2745_v10 = vadd.f32 %v2709_v36, %v4831_v5 }
0x26cd   :  { %2760 = vrot.lane.b32.xlu1 %v2711_v23, %s3946_s17  ;;  %v2752_v62 = vadd.f32 %v4866_v0, %v2711_v23 }
0x26ce   :  { %v3265_v8 = vmul.f32 -1.442695, %v2716_v37  ;;  %v3266_v4 = vmul.f32 -1.442695, %v2745_v10 }
0x26cf   :  { %v3267_v18 = vmul.f32 -1.442695, %v2752_v62 }
0x26d0   :  { %3905 = vpow2.f32 %v3265_v8 }
0x26d1   :  { %3907 = vpow2.f32 %v3266_v4 }
0x26da   :  { %v3906_v29 = vpop.eup %3905 }
0x26db   :  { %v3908_v59 = vpop.eup %3907  ;;  %v2720_v60 = vadd.f32 1.0, %v3906_v29 }
0x26dc   :  { %v2749_v3 = vadd.f32 1.0, %v3908_v59 }
0x26dd   :  { %3909 = vrcp.f32 %v2720_v60  ;;  %v2999_v60 = vld [vmem:[%s5189_s9] sm:$0xff] }
0x26de   :  { %3911 = vrcp.f32 %v2749_v3  ;;  %v3000_v3 = vld [vmem:[%s5189_s9 + $0x8] sm:$0xff] }
0x26e7   :  { %v3910_v32 = vpop.eup %3909 }
0x26e8   :  { %v3912_v58 = vpop.eup %3911 }
0x273e   :  { %v2725_v15 = vpop.permute.xlu0 %2724 }
0x273f   :  { %v2727_v19 = vmul.f32 %v3910_v32, %v2725_v15  ;;  %v2761_v21 = vpop.permute.xlu1 %2760 }
0x2740   :  { %v2763_v52 = vmul.f32 %v3912_v58, %v2761_v21 }
0x2741   :  { %2729 = vrot.lane.b32.xlu0 %v2727_v19, %s3946_s17 }
0x2742   :  { %2765 = vrot.lane.b32.xlu1 %v2763_v52, %s3946_s17 }
0x2746   :  { %2740 = vrot.lane.b32.xlu1 %v5052_v53, %s3948_s19 }
0x274a   :  { %2776 = vrot.lane.b32.xlu1 %v5052_v53, %s3947_s3 }
0x27b3   :  { %v2730_v5 = vpop.permute.xlu0 %2729 }
0x27b4   :  { %v2732_v27 = vadd.f32 %v2730_v5, %v4840_v47  ;;  %v2766_v24 = vpop.permute.xlu1 %2765  ;;  %v2734_v47 = vsub.f32 1.0, %v3910_v32  ;;  %v3001_v5 = vld [vmem:[%s5189_s9 + $0x10] sm:$0xff] }
0x27b5   :  { %v2768_v12 = vadd.f32 %v2766_v24, %v4866_v0 }
0x27b6   :  { %3913 = vtanh.f32 %v2732_v27  ;;  %v3002_v27 = vld [vmem:[%s5189_s9 + $0x18] sm:$0xff] }
0x27b7   :  { %3915 = vtanh.f32 %v2768_v12  ;;  %v3661_v24 = vpack.c.bf16 %v3002_v27, %v3001_v5  ;;  %v3272_v5 = vld [vmem:[%s5191_s10] ss:$0 sm:$0xff] }
0x27b8   :  { %3917 = vpow2.f32 %v3267_v18  ;;  %v2741_v30 = vpop.permute.xlu1 %2740 }
0x27b9   :  { %v2743_v11 = vmul.f32 %v3910_v32, %v2741_v30  ;;  %v3657_v32 = vpack.c.bf16 %v3000_v3, %v2999_v60  ;;  %v3004_v30 = vld [vmem:[%s5189_s9 + $0x28] sm:$0xff] }
0x27bb   :  { %3658 = vmatprep.subr.bf16.mxu1 %v3657_v32 }
0x27bc   :  { %v2777_v25 = vpop.permute.xlu1 %2776  ;;  %3660 = vmatpush3.bf16.msra.mxu1 %v3657_v32 }
0x27bd   :  { %3662 = vmatprep.subr.bf16.mxu1 %v3661_v24 }
0x27c0   :  { %v3914_v6 = vpop.eup %3913  ;;  %3664 = vmatpush3.bf16.msra.mxu1 %v3661_v24 }
0x27c1   :  { %2736 = vrot.lane.b32.xlu0 %v3914_v6, %s3947_s3  ;;  %v3916_v7 = vpop.eup %3915 }
0x27c2   :  { %v3918_v56 = vpop.eup %3917 }
0x27c3   :  { %v2756_v26 = vadd.f32 1.0, %v3918_v56 }
0x27c5   :  { %2772 = vrot.lane.b32.xlu0 %v3916_v7, %s3947_s3  ;;  %3919 = vrcp.f32 %v2756_v26  ;;  %v3003_v26 = vld [vmem:[%s5189_s9 + $0x20] sm:$0xff] }
0x27cf   :  { %v3920_v44 = vpop.eup %3919 }
0x27d0   :  { %v2770_v40 = vsub.f32 1.0, %v3920_v44  ;;  %v2779_v31 = vmul.f32 %v3920_v44, %v2777_v25 }
0x2833   :  { %v2737_v50 = vpop.permute.xlu0 %2736 }
0x2834   :  { %v2739_v33 = vmul.f32 %v2737_v50, %v2734_v47  ;;  %v3005_v47 = vld [vmem:[%s5189_s9 + $0x30] sm:$0xff] }
0x2836   :  { %v2744_v45 = vadd.f32 %v2743_v11, %v2739_v33  ;;  %v3665_v11 = vpack.c.bf16 %v3004_v30, %v3003_v26  ;;  %v3006_v33 = vld [vmem:[%s5189_s9 + $0x38] sm:$0xff] }
0x2837   :  { %v2773_v57 = vpop.permute.xlu0 %2772 }
0x2838   :  { %v2775_v20 = vmul.f32 %v2773_v57, %v2770_v40  ;;  %2782 = vrot.lane.b32.xlu0 %v2744_v45, %s3947_s3  ;;  %v3669_v45 = vpack.c.bf16 %v3006_v33, %v3005_v47  ;;  %3666 = vmatprep.subr.bf16.mxu1 %v3665_v11 }
0x2839   :  { %3668 = vmatpush3.bf16.msra.mxu1 %v3665_v11 }
0x283a   :  { %v2780_v0 = vadd.f32 %v2779_v31, %v2775_v20  ;;  %3670 = vmatprep.subr.bf16.mxu1 %v3669_v45 }
0x283c   :  { %2786 = vrot.lane.b32.xlu1 %v2780_v0, %s3948_s19  ;;  %v2943_v0 = vsel %vm390_vm1, %v4955_v22, %v5052_v53 }
0x283d   :  { %3672 = vmatpush3.bf16.msra.mxu1 %v3669_v45 }
0x28aa   :  { %v2783_v49 = vpop.permute.xlu0 %2782 }
0x28ae   :  { %v2787_v51 = vpop.permute.xlu1 %2786 }
0x28af   :  { %v5076_v35 = vsel %vm390_vm1, %v2783_v49, %v2787_v51  ;;  %v2944_v49 = vsel %vm390_vm1, %v4988_v38, %v5020_v14 }
0x28b0   :  { %3268 = vmatmul.mubr.msk.f32.vlgmr.msra.gmra.mrb[18].mxu0 %vm230_vm2, %v5076_v35  ;;  %v2942_v20 = vsel %vm390_vm1, %v4922_v1, %v5076_v35 }
0x2983   :  { %v2859_v42 = vpop.f32.mrb[18].mxu0 }
0x2984   :  { %v2860_v2 = vadd.f32 %v2859_v42, %v4761_v28  ;;  %v2861_v34 = vpop.f32.mrb[19].mxu0 }
0x2985   :  { %v2862_v43 = vadd.f32 %v2861_v34, %v4764_v41  ;;  %v2950_v34 = vrot.slane %v2942_v20, 7 }
0x2986   :  { %2875 = vrot.lane.b32.xlu0 %v2860_v2, %s3946_s17  ;;  %v2867_v46 = vadd.f32 %v2860_v2, %v4834_v9  ;;  %v2896_v39 = vadd.f32 %v2860_v2, %v4837_v13  ;;  %v2945_v2 = vsel %vm390_vm1, %v5020_v14, %v4988_v38  ;;  %v2973_v14 = vrot.slane %v2943_v0, 7 }
0x2987   :  { %2911 = vrot.lane.b32.xlu1 %v2862_v43, %s3946_s17  ;;  %v2903_v58 = vadd.f32 %v4878_v17, %v2862_v43  ;;  %v2959_v38 = vrot.slane %v2945_v2, 4 }
0x2988   :  { %v3269_v61 = vmul.f32 -1.442695, %v2867_v46  ;;  %v3270_v48 = vmul.f32 -1.442695, %v2896_v39  ;;  %v2946_v46 = vsel %vm390_vm1, %v5052_v53, %v4955_v22  ;;  %v2953_v39 = vrot.slane %v2943_v0, 6 }
0x2989   :  { %v3271_v19 = vmul.f32 -1.442695, %v2903_v58  ;;  %v2975_v22 = vrot.slane %v2944_v49, 6  ;;  %v2962_v53 = vrot.slane %v2946_v46, 3 }
0x298a   :  { %3921 = vpow2.f32 %v3269_v61 }
0x298b   :  { %3923 = vpow2.f32 %v3270_v48  ;;  %v2956_v48 = vrot.slane %v2944_v49, 5 }
0x2994   :  { %v3922_v54 = vpop.eup %3921 }
0x2995   :  { %v3924_v55 = vpop.eup %3923  ;;  %v2871_v36 = vadd.f32 1.0, %v3922_v54  ;;  %v2947_v54 = vsel %vm390_vm1, %v5076_v35, %v4922_v1 }
0x2996   :  { %v2900_v63 = vadd.f32 1.0, %v3924_v55 }
0x2997   :  { %3925 = vrcp.f32 %v2871_v36 }
0x2998   :  { %3927 = vrcp.f32 %v2900_v63 }
0x29a1   :  { %v3926_v28 = vpop.eup %3925 }
0x29a2   :  { %v3928_v23 = vpop.eup %3927  ;;  %v2885_v6 = vsub.f32 1.0, %v3926_v28 }
0x29f8   :  { %v2876_v41 = vpop.permute.xlu0 %2875 }
0x29f9   :  { %v2878_v37 = vmul.f32 %v3926_v28, %v2876_v41  ;;  %v2912_v10 = vpop.permute.xlu1 %2911 }
0x29fa   :  { %v2914_v8 = vmul.f32 %v3928_v23, %v2912_v10  ;;  %v2965_v10 = vrot.slane %v2947_v54, 2 }
0x29fb   :  { %2880 = vrot.lane.b32.xlu0 %v2878_v37, %s3946_s17  ;;  %v2977_v37 = vrot.slane %v2945_v2, 5 }
0x29fc   :  { %2916 = vrot.lane.b32.xlu1 %v2914_v8, %s3946_s17  ;;  %v2979_v8 = vrot.slane %v2946_v46, 4 }
0x2a00   :  { %2891 = vrot.lane.b32.xlu1 %v5076_v35, %s3948_s19 }
0x2a04   :  { %2927 = vrot.lane.b32.xlu1 %v5076_v35, %s3947_s3 }
0x2a6d   :  { %v2881_v13 = vpop.permute.xlu0 %2880 }
0x2a6e   :  { %v2883_v4 = vadd.f32 %v2881_v13, %v4834_v9  ;;  %v2917_v29 = vpop.permute.xlu1 %2916 }
0x2a6f   :  { %v2919_v59 = vadd.f32 %v2917_v29, %v4878_v17  ;;  %v2981_v29 = vrot.slane %v2947_v54, 3 }
0x2a70   :  { %3929 = vtanh.f32 %v2883_v4 }
0x2a71   :  { %3931 = vtanh.f32 %v2919_v59 }
0x2a72   :  { %3933 = vpow2.f32 %v3271_v19  ;;  %v2892_v12 = vpop.permute.xlu1 %2891  ;;  %v3095_v19 = vld [vmem:[%s5190_s11] sm:$0xff] }
0x2a73   :  { %v2894_v62 = vmul.f32 %v3926_v28, %v2892_v12 }
0x2a76   :  { %v2928_v56 = vpop.permute.xlu1 %2927 }
0x2a7a   :  { %v3930_v15 = vpop.eup %3929 }
0x2a7b   :  { %2887 = vrot.lane.b32.xlu0 %v3930_v15, %s3947_s3  ;;  %v3932_v9 = vpop.eup %3931 }
0x2a7c   :  { %v3934_v21 = vpop.eup %3933 }
0x2a7d   :  { %v2907_v52 = vadd.f32 1.0, %v3934_v21  ;;  %v3096_v21 = vld [vmem:[%s5190_s11 + $0x8] sm:$0xff] }
0x2a7f   :  { %2923 = vrot.lane.b32.xlu0 %v3932_v9, %s3947_s3  ;;  %3935 = vrcp.f32 %v2907_v52  ;;  %v3673_v52 = vpack.c.bf16 %v3096_v21, %v3095_v19 }
0x2a81   :  { %3674 = vmatprep.subr.bf16.mxu0 %v3673_v52 }
0x2a82   :  { %3676 = vmatpush3.bf16.msra.mxu0 %v3673_v52 }
0x2a89   :  { %v3936_v7 = vpop.eup %3935 }
0x2a8a   :  { %v2921_v50 = vsub.f32 1.0, %v3936_v7  ;;  %v2930_v40 = vmul.f32 %v3936_v7, %v2928_v56  ;;  %v3275_v7 = vld [vmem:[%s5192_s12] ss:$0 sm:$0xff] }
0x2aed   :  { %v2888_v17 = vpop.permute.xlu0 %2887 }
0x2aee   :  { %v2890_v18 = vmul.f32 %v2888_v17, %v2885_v6 }
0x2af0   :  { %v2895_v44 = vadd.f32 %v2894_v62, %v2890_v18 }
0x2af1   :  { %v2924_v25 = vpop.permute.xlu0 %2923 }
0x2af2   :  { %v2926_v57 = vmul.f32 %v2924_v25, %v2921_v50  ;;  %2933 = vrot.lane.b32.xlu0 %v2895_v44, %s3947_s3 }
0x2af4   :  { %v2931_v31 = vadd.f32 %v2930_v40, %v2926_v57 }
0x2af6   :  { %2937 = vrot.lane.b32.xlu1 %v2931_v31, %s3948_s19 }
0x2b64   :  { %v2934_v51 = vpop.permute.xlu0 %2933 }
0x2b68   :  { %v2938_v42 = vpop.permute.xlu1 %2937 }
0x2b69   :  { %v2940_v43 = vsel %vm390_vm1, %v2934_v51, %v2938_v42 }
0x2b6a   :  { %v2941_v61 = vsel %vm390_vm1, %v4889_v16, %v2940_v43  ;;  %v2948_v63 = vsel %vm390_vm1, %v2940_v43, %v4889_v16 }
0x2b6b   :  { %v2971_v55 = vrot.slane %v2941_v61, 1  ;;  %v2985_v36 = vsel %vm308_vm0, %v2941_v61, %v2950_v34  ;;  %v2968_v13 = vrot.slane %v2948_v63, 1  ;;  %v2983_v3 = vrot.slane %v2948_v63, 2 }
0x2b6c   :  { %v2986_v28 = vsel %vm1532_vm3, %v2985_v36, %v2953_v39 }
0x2b6d   :  { %v2987_v41 = vsel %vm1534_vm4, %v2986_v28, %v2956_v48  ;;  %v2992_v23 = vsel %vm308_vm0, %v2971_v55, %v2942_v20 }
0x2b6e   :  { %v2993_v1 = vsel %vm1532_vm3, %v2992_v23, %v2973_v14  ;;  %v2988_v35 = vsel %vm1536_vm5, %v2987_v41, %v2959_v38 }
0x2b6f   :  { %v2994_v4 = vsel %vm1534_vm4, %v2993_v1, %v2975_v22  ;;  %v2989_v16 = vsel %vm1538_vm6, %v2988_v35, %v2962_v53 }
0x2b70   :  { %v2990_v59 = vsel %vm1540_vm7, %v2989_v16, %v2965_v10  ;;  %v2995_v60 = vsel %vm1536_vm5, %v2994_v4, %v2977_v37 }
0x2b71   :  { %v2991_v32 = vsel %vm1542_vm8, %v2990_v59, %v2968_v13  ;;  %v2996_v15 = vsel %vm1538_vm6, %v2995_v60, %v2979_v8 }
0x2b72   :  { %3311 = vmatprep.mubr.msk.f32.mxu1 %vm230_vm2, %v2991_v32  ;;  %v2997_v9 = vsel %vm1540_vm7, %v2996_v15, %v2981_v29 }
0x2b73   :  { %v2998_v58 = vsel %vm1542_vm8, %v2997_v9, %v2983_v3 }
0x2b74   :  { %3312 = vmatmul.mubr.msk.f32.vlgmr.msra.gmra.mrb[20].mxu1 %vm230_vm2, %v2998_v58 }
0x2c47   :  { %v3313_v27 = vpop.f32.mrb[20].mxu1 }
0x2c48   :  { %v3086_v24 = vpop.f32.mrb[21].mxu1  ;;  %v3092_v6 = vadd.f32 %v3313_v27, %v3272_v5 }
0x2c49   :  { %v3087_v12 = vadd.f32 %v3272_v5, %v3086_v24 }
0x2c4b   :  { %3318 = vmatprep.mubr.msk.f32.mxu0 %vm3104_vm9, %v3087_v12 }
0x2c4c   :  { %3319 = vmatmul.mubr.msk.f32.vlgmr.msra.gmra.mrb[20].mxu0 %vm3104_vm9, %v3092_v6 }
0x2d1f   :  { %v3320_v17 = vpop.f32.mrb[20].mxu0 }
0x2d20   :  { %v3183_v62 = vadd.f32 %v3320_v17, %v3275_v7  ;;  %v3177_v18 = vpop.f32.mrb[21].mxu0 }
0x2d21   :  { %v3178_v56 = vadd.f32 %v3275_v7, %v3177_v18 }
0x2d22   :  { %v3279_v26 = vmul.f32 -1.442695, %v3183_v62 }
0x2d23   :  { %v3278_v30 = vmul.f32 -1.442695, %v3178_v56 }
0x2d24   :  { %3937 = vpow2.f32 %v3279_v26 }
0x2d25   :  { %3939 = vpow2.f32 %v3278_v30 }
0x2d2e   :  { %v3938_v47 = vpop.eup %3937 }
0x2d2f   :  { %v3940_v44 = vpop.eup %3939  ;;  %v3193_v50 = vadd.f32 1.0, %v3938_v47 }
0x2d30   :  { %v3192_v11 = vadd.f32 1.0, %v3940_v44 }
0x2d31   :  { %3941 = vrcp.f32 %v3193_v50 }
0x2d32   :  { %3943 = vrcp.f32 %v3192_v11 }
0x2d3b   :  { %v3942_v33 = vpop.eup %3941 }
0x2d3c   :  { %v3944_v25 = vpop.eup %3943  ;;  %3280 = vst.msk [vmem:[%s5193_s13 + $0x8] sm:$0xff] %vm3198_vm10, %v3942_v33 }
0x2d3d   :  { %3199 = vst.msk [vmem:[%s5193_s13] sm:$0xff] %vm3198_vm10, %v3944_v25 }

// kernel: net_forward.2
= control target key start
LH: loop header
LB: loop body
LE: loop exit
PB: predicated region body
PF: predicated region fallthrough
CT: control target
= control target key end

     0   :  { %s11627_s21 = smov 0   ;;  %s14612_s0 = inlined_call_operand.vmem [shape: f32[2,320,16], index: 0, kind: input, shape index: {}]   ;;  %s14613_s1 = inlined_call_operand.vmem [shape: f32[16,128], index: 1, kind: input, shape index: {}]   ;;  %s14614_s2 = inlined_call_operand.vmem [shape: bf16[9,128,128], index: 2, kind: input, shape index: {}]   ;;  %s14615_s3 = inlined_call_operand.vmem [shape: bf16[9,128,128], index: 3, kind: input, shape index: {}]   ;;  %s14616_s4 = inlined_call_operand.vmem [shape: f32[3,128], index: 4, kind: input, shape index: {}]   ;;  %s14617_s5 = inlined_call_operand.vmem [shape: f32[3,128], index: 5, kind: input, shape index: {}]   ;;  %s14618_s6 = inlined_call_operand.vmem [shape: f32[2,8,256], index: 6, kind: output, shape index: {}]  }
   0x1 LB: > { %s10071_s22 = sadd.s32 4294967295, %s11587_s21   ;;  %p10075_p0 = scmp.ge.s32.totalorder %s11587_s21, 1  ;;  %s11587_s21 = sphi %s11627_s21, %s16_s21  }
   0x2   : > { %p212_p1 = scmp.lt.s32.totalorder %s11587_s21, 3 }
   0x4   : > { %p213_p2 = pnand %p10075_p0, %p212_p1 }
   0x6   : > { %216 = sbr.rel (%p213_p2) target bundleno = 1809 (0x711), region = 44 }
   0xd   : > { %v295_v0 = vld [vmem:[%s14613_s1] sm:$0xff]  ;;  %v296_v1 = vld [vmem:[%s14613_s1 + $0x8] sm:$0xff]  ;;  %p242_p3 = scmp.lt.s32.totalorder %s10071_s22, 1  ;;  %vm297_vm0 = vcmask 130048   ;;  %v683_v43 = vlaneseq  ;;  %v11589_v47 = vmov 1966171168  }
   0xe   : > { %v11317_v2 = vpack.c.bf16 %v296_v1, %v295_v0  ;;  %v253_v46 = vld [vmem:[%s14616_s4] sm:$0x7]  ;;  %v853_v48 = vunpack.c.l.s4 %v11589_v47  ;;  %vm5371_vm1 = vcmask 1044480   ;;  %vm6012_vm2 = vcmask 1042434  }
   0xf   : > { %s14709_s22 = smov (!%p242_p3, %s10071_s22), 1  ;;  %v11729_v44 = vshrl.u32 %v683_v43, 7  ;;  %v254_v49 = vld [vmem:[%s14617_s5] sm:$0x7]  ;;  %vm6014_vm3 = vcmask 1043459   ;;  %vm6016_vm4 = vcmask 1044484  }
  0x10   : > { %11318 = vmatprep.subr.bf16.mxu0 %v11317_v2  ;;  %11321 = vmatprep.subr.bf16.mxu1 %v11317_v2  ;;  %s11419_s27 = smul.u32 320, %s14709_s22  ;;  %v854_v52 = vunpack.c.0.s8 %v853_v48  ;;  %vm6018_vm5 = vcmask 1045509   ;;  %vm6020_vm6 = vcmask 1046534   ;;  %vm6022_vm7 = vcmask 1047559  }
  0x11   : > { %11320 = vmatpush3.bf16.msra.mxu0 %v11317_v2  ;;  %11322 = vmatpush3.bf16.msra.mxu1 %v11317_v2  ;;  %14626 = vst [vmem:[#allocation2_spill] sm:$0xff] %v11729_v44  ;;  %v685_v45 = vsub.s32 0, %v11729_v44  ;;  %vm6082_vm8 = vcmask 1040384   ;;  %vm6083_vm9 = vsmask.f32 256 }
  0x12   : > { %s11647_s30 = scalar_lea.vmem %s14612_s0, %s11419_s27  ;;  %v11746_v60 = vsub.s32 %v854_v52, %v11729_v44  ;;  %vm13097_vm10 = vmand %vm6082_vm8, %vm6083_vm9  ;;  %vm6094_vm11 = vsmask.f32 4352  ;;  %vm6160_vm13 = vsmask.f32 3328  ;;  %vm6161_vm14 = vsmask.f32 7440 }
  0x13   : > { %v255_v3 = vld [vmem:[%s11647_s30] sm:$0xff]  ;;  %v277_v4 = vld [vmem:[%s11647_s30 + $0xb0] sm:$0xff]  ;;  %v256_v5 = vld [vmem:[%s11647_s30 + $0x8] sm:$0xff]  ;;  %v11738_v50 = vrot.slane %v253_v46, %v685_v45  ;;  %v11740_v51 = vrot.slane %v254_v49, %v685_v45  ;;  %vm6543_vm9 = vcmask 1046532   ;;  %s10616_s27 = sshll.u32 %s14709_s22, 4 }
  0x14   : > { %10861 = vmatprep.mubr.msk.f32.mxu0 %vm297_vm0, %v255_v3  ;;  %10894 = vmatprep.mubr.msk.f32.mxu1 %vm297_vm0, %v277_v4  ;;  %v278_v6 = vld [vmem:[%s11647_s30 + $0xb8] sm:$0xff]  ;;  %v257_v7 = vld [vmem:[%s11647_s30 + $0x10] sm:$0xff]  ;;  %v279_v8 = vld [vmem:[%s11647_s30 + $0xc0] sm:$0xff] }
  0x15   : > { %10862 = vmatmul.mubr.msk.f32.vlgmr.msra.gmra.mrb[0].mxu0 %vm297_vm0, %v256_v5  ;;  %10895 = vmatmul.mubr.msk.f32.vlgmr.msra.gmra.mrb[0].mxu1 %vm297_vm0, %v278_v6  ;;  %v258_v9 = vld [vmem:[%s11647_s30 + $0x18] sm:$0xff]  ;;  %v280_v10 = vld [vmem:[%s11647_s30 + $0xc8] sm:$0xff]  ;;  %v259_v11 = vld [vmem:[%s11647_s30 + $0x20] sm:$0xff] }
  0x16   : > { %10864 = vmatprep.mubr.msk.f32.mxu0 %vm297_vm0, %v257_v7  ;;  %10897 = vmatprep.mubr.msk.f32.mxu1 %vm297_vm0, %v279_v8  ;;  %v281_v12 = vld [vmem:[%s11647_s30 + $0xd0] sm:$0xff]  ;;  %v260_v13 = vld [vmem:[%s11647_s30 + $0x28] sm:$0xff]  ;;  %v282_v14 = vld [vmem:[%s11647_s30 + $0xd8] sm:$0xff] }
  0x17   : > { %v261_v15 = vld [vmem:[%s11647_s30 + $0x30] sm:$0xff]  ;;  %v283_v16 = vld [vmem:[%s11647_s30 + $0xe0] sm:$0xff]  ;;  %v262_v17 = vld [vmem:[%s11647_s30 + $0x38] sm:$0xff] }
  0x18   : > { %v284_v18 = vld [vmem:[%s11647_s30 + $0xe8] sm:$0xff]  ;;  %v263_v19 = vld [vmem:[%s11647_s30 + $0x40] sm:$0xff]  ;;  %v285_v20 = vld [vmem:[%s11647_s30 + $0xf0] sm:$0xff] }
  0x19   : > { %10865 = vmatmul.mubr.msk.f32.gmra.mrb[2].mxu0 %vm297_vm0, %v258_v9  ;;  %10898 = vmatmul.mubr.msk.f32.gmra.mrb[2].mxu1 %vm297_vm0, %v280_v10  ;;  %v264_v21 = vld [vmem:[%s11647_s30 + $0x48] sm:$0xff]  ;;  %v286_v22 = vld [vmem:[%s11647_s30 + $0xf8] sm:$0xff]  ;;  %v265_v23 = vld [vmem:[%s11647_s30 + $0x50] sm:$0xff] }
  0x1a   : > { %10867 = vmatprep.mubr.msk.f32.mxu0 %vm297_vm0, %v259_v11  ;;  %10900 = vmatprep.mubr.msk.f32.mxu1 %vm297_vm0, %v281_v12  ;;  %v287_v24 = vld [vmem:[%s11647_s30 + $0x100] sm:$0xff]  ;;  %v266_v25 = vld [vmem:[%s11647_s30 + $0x58] sm:$0xff]  ;;  %v288_v26 = vld [vmem:[%s11647_s30 + $0x108] sm:$0xff] }
  0x1b   : > { %v267_v27 = vld [vmem:[%s11647_s30 + $0x60] sm:$0xff]  ;;  %v289_v28 = vld [vmem:[%s11647_s30 + $0x110] sm:$0xff]  ;;  %v268_v29 = vld [vmem:[%s11647_s30 + $0x68] sm:$0xff] }
  0x1c   : > { %v290_v30 = vld [vmem:[%s11647_s30 + $0x118] sm:$0xff]  ;;  %v269_v31 = vld [vmem:[%s11647_s30 + $0x70] sm:$0xff]  ;;  %v291_v32 = vld [vmem:[%s11647_s30 + $0x120] sm:$0xff] }
  0x1d   : > { %10868 = vmatmul.mubr.msk.f32.gmra.mrb[4].mxu0 %vm297_vm0, %v260_v13  ;;  %10901 = vmatmul.mubr.msk.f32.gmra.mrb[4].mxu1 %vm297_vm0, %v282_v14  ;;  %v270_v33 = vld [vmem:[%s11647_s30 + $0x78] sm:$0xff]  ;;  %v292_v34 = vld [vmem:[%s11647_s30 + $0x128] sm:$0xff]  ;;  %v271_v35 = vld [vmem:[%s11647_s30 + $0x80] sm:$0xff] }
  0x1e   : > { %10870 = vmatprep.mubr.msk.f32.mxu0 %vm297_vm0, %v261_v15  ;;  %10903 = vmatprep.mubr.msk.f32.mxu1 %vm297_vm0, %v283_v16  ;;  %v293_v36 = vld [vmem:[%s11647_s30 + $0x130] sm:$0xff]  ;;  %v272_v37 = vld [vmem:[%s11647_s30 + $0x88] sm:$0xff]  ;;  %v294_v38 = vld [vmem:[%s11647_s30 + $0x138] sm:$0xff] }
  0x1f   : > { %v273_v39 = vld [vmem:[%s11647_s30 + $0x90] sm:$0xff]  ;;  %v274_v40 = vld [vmem:[%s11647_s30 + $0x98] sm:$0xff]  ;;  %v275_v41 = vld [vmem:[%s11647_s30 + $0xa0] sm:$0xff] }
  0x20   : > { %v276_v42 = vld [vmem:[%s11647_s30 + $0xa8] sm:$0xff]  ;;  %vm13104_vm12 = vmand %vm5371_vm1, %vm6094_vm11  ;;  %s251_s30 = scalar_lea.vmem %s14618_s6, %s10616_s27 }
  0x21   : > { %10871 = vmatmul.mubr.msk.f32.gmra.mrb[6].mxu0 %vm297_vm0, %v262_v17  ;;  %10904 = vmatmul.mubr.msk.f32.gmra.mrb[6].mxu1 %vm297_vm0, %v284_v18  ;;  %vm13144_vm15 = vmor %vm6160_vm13, %vm6161_vm14  ;;  %vm8291_vm14 = vsmask.f32 5392 }
  0x22   : > { %10873 = vmatprep.mubr.msk.f32.mxu0 %vm297_vm0, %v263_v19  ;;  %10906 = vmatprep.mubr.msk.f32.mxu1 %vm297_vm0, %v285_v20 }
  0x25   : > { %10874 = vmatmul.mubr.msk.f32.gmra.mrb[8].mxu0 %vm297_vm0, %v264_v21  ;;  %10907 = vmatmul.mubr.msk.f32.gmra.mrb[8].mxu1 %vm297_vm0, %v286_v22 }
  0x26   : > { %10876 = vmatprep.mubr.msk.f32.mxu0 %vm297_vm0, %v265_v23  ;;  %10909 = vmatprep.mubr.msk.f32.mxu1 %vm297_vm0, %v287_v24 }
  0x29   : > { %10877 = vmatmul.mubr.msk.f32.gmra.mrb[10].mxu0 %vm297_vm0, %v266_v25  ;;  %10910 = vmatmul.mubr.msk.f32.gmra.mrb[10].mxu1 %vm297_vm0, %v288_v26 }
  0x2a   : > { %10879 = vmatprep.mubr.msk.f32.mxu0 %vm297_vm0, %v267_v27  ;;  %10912 = vmatprep.mubr.msk.f32.mxu1 %vm297_vm0, %v289_v28 }
  0x2d   : > { %10880 = vmatmul.mubr.msk.f32.gmra.mrb[12].mxu0 %vm297_vm0, %v268_v29  ;;  %10913 = vmatmul.mubr.msk.f32.gmra.mrb[12].mxu1 %vm297_vm0, %v290_v30 }
  0x2e   : > { %10882 = vmatprep.mubr.msk.f32.mxu0 %vm297_vm0, %v269_v31  ;;  %10915 = vmatprep.mubr.msk.f32.mxu1 %vm297_vm0, %v291_v32 }
  0x31   : > { %10883 = vmatmul.mubr.msk.f32.gmra.mrb[14].mxu0 %vm297_vm0, %v270_v33  ;;  %10916 = vmatmul.mubr.msk.f32.gmra.mrb[14].mxu1 %vm297_vm0, %v292_v34 }
  0x32   : > { %10885 = vmatprep.mubr.msk.f32.mxu0 %vm297_vm0, %v271_v35  ;;  %10918 = vmatprep.mubr.msk.f32.mxu1 %vm297_vm0, %v293_v36 }
  0x35   : > { %10886 = vmatmul.mubr.msk.f32.gmra.mrb[16].mxu0 %vm297_vm0, %v272_v37  ;;  %10919 = vmatmul.mubr.msk.f32.gmra.mrb[16].mxu1 %vm297_vm0, %v294_v38 }
  0x36   : > { %10888 = vmatprep.mubr.msk.f32.mxu0 %vm297_vm0, %v273_v39 }
  0x39   : > { %10889 = vmatmul.mubr.msk.f32.gmra.mrb[18].mxu0 %vm297_vm0, %v274_v40 }
  0x3a   : > { %10891 = vmatprep.mubr.msk.f32.mxu0 %vm297_vm0, %v275_v41 }
  0x3d   : > { %10892 = vmatmul.mubr.msk.f32.gmra.mrb[20].mxu0 %vm297_vm0, %v276_v42  ;;  %vm6542_vm0 = vcmask 1042432  }
  0x3e   : > { %vm13368_vm11 = vmor %vm6542_vm0, %vm6543_vm9 }
  0xe8   : > { %v10863_v53 = vpop.f32.mrb[0].mxu0  ;;  %v10896_v54 = vpop.f32.mrb[0].mxu1 }
  0xe9   : > { %v688_v55 = vmul.f32 %v10863_v53, %v11738_v50  ;;  %v484_v56 = vpop.f32.mrb[1].mxu0  ;;  %v594_v57 = vpop.f32.mrb[1].mxu1  ;;  %v710_v3 = vmul.f32 %v10896_v54, %v11738_v50 }
  0xea   : > { %v687_v58 = vmul.f32 %v11738_v50, %v484_v56  ;;  %v709_v12 = vmul.f32 %v11738_v50, %v594_v57 }
  0xeb   : > { %v732_v59 = vadd.f32 %v11740_v51, %v688_v55  ;;  %v11765_v17 = vadd.f32 %v11740_v51, %v710_v3 }
  0xec   : > { %v731_v61 = vadd.f32 %v11740_v51, %v687_v58  ;;  %v10866_v62 = vpop.f32.mrb[2].mxu0  ;;  %v11749_v63 = vpop.f32.mrb[2].mxu1  ;;  %v11796_v48 = vadd.f32 %v11740_v51, %v709_v12 }
  0xed   : > { %v772_v0 = vmax.f32 %v732_v59, 0.0  ;;  %v690_v1 = vmul.f32 %v10866_v62, %v11738_v50  ;;  %v494_v2 = vpop.f32.mrb[3].mxu0  ;;  %v11753_v4 = vpop.f32.mrb[3].mxu1 }
  0xee   : > { %v771_v5 = vmax.f32 %v731_v61, 0.0  ;;  %v689_v23 = vmul.f32 %v11738_v50, %v494_v2 }
  0xef   : > { %v900_v6 = vcombine.high %v772_v0, %v772_v0  ;;  %v907_v7 = vrot.slane %v772_v0, %v11746_v60  ;;  %v734_v8 = vadd.f32 %v11740_v51, %v690_v1 }
  0xf0   : > { %v851_v9 = vcombine.high %v771_v5, %v771_v5  ;;  %v858_v10 = vrot.slane %v771_v5, %v11746_v60  ;;  %v11758_v11 = vpop.f32.mrb[4].mxu0  ;;  %v11761_v13 = vpop.f32.mrb[4].mxu1  ;;  %v733_v47 = vadd.f32 %v11740_v51, %v689_v23 }
  0xf1   : > { %v914_v14 = vrot.slane %v900_v6, %v11746_v60  ;;  %v915_v15 = vcombine.high %v907_v7, %v907_v7  ;;  %v774_v16 = vmax.f32 %v734_v8, 0.0  ;;  %v11767_v18 = vpop.f32.mrb[5].mxu0  ;;  %v11769_v19 = vpop.f32.mrb[5].mxu1  ;;  %v923_v20 = vrot.slane %v907_v7, %v11746_v60 }
  0xf2   : > { %v865_v21 = vrot.slane %v851_v9, %v11746_v60  ;;  %v866_v22 = vcombine.high %v858_v10, %v858_v10  ;;  %v874_v27 = vrot.slane %v858_v10, %v11746_v60 }
  0xf3   : > { %v916_v24 = vcombine.high %v914_v14, %v914_v14  ;;  %v930_v25 = vrot.slane %v914_v14, %v11746_v60  ;;  %v937_v26 = vrot.slane %v915_v15, %v11746_v60  ;;  %v998_v31 = vcombine.high %v774_v16, %v774_v16 }
  0xf4   : > { %v867_v28 = vcombine.high %v865_v21, %v865_v21  ;;  %v881_v29 = vrot.slane %v865_v21, %v11746_v60  ;;  %v888_v30 = vrot.slane %v866_v22, %v11746_v60  ;;  %v11779_v32 = vpop.f32.mrb[6].mxu0  ;;  %v11781_v33 = vpop.f32.mrb[6].mxu1  ;;  %v1005_v37 = vrot.slane %v774_v16, %v11746_v60 }
  0xf5   : > { %v11784_v34 = vrot.slane %v916_v24, %v11746_v60  ;;  %v946_v35 = vcombine.high %v930_v25, %v930_v25  ;;  %v10120_v36 = vcombine.high %v923_v20, %v937_v26  ;;  %v11787_v38 = vpop.f32.mrb[7].mxu0  ;;  %v11789_v39 = vpop.f32.mrb[7].mxu1  ;;  %v1012_v59 = vrot.slane %v998_v31, %v11746_v60 }
  0xf6   : > { %v895_v40 = vrot.slane %v867_v28, %v11746_v60  ;;  %v897_v41 = vcombine.high %v881_v29, %v881_v29  ;;  %v2811_v42 = vcombine.low %v874_v27, %v888_v30  ;;  %v10119_v43 = vcombine.high %v874_v27, %v888_v30 }
  0xf7   : > { %v2890_v45 = vcombine.low %v930_v25, %v11784_v34  ;;  %v2897_v46 = vrot.slane %v10120_v36, %v11746_v60  ;;  %v2833_v54 = vrot.slane %v881_v29, %v11746_v60  ;;  %v2911_v57 = vrot.slane %v946_v35, %v11746_v60 }
  0xf8   : > { %v899_v49 = vcombine.high %v895_v40, %v895_v40  ;;  %v2819_v52 = vrot.slane %v2811_v42, %v11746_v60  ;;  %v2826_v53 = vrot.slane %v10119_v43, %v11746_v60  ;;  %v11801_v55 = vpop.f32.mrb[8].mxu0  ;;  %v2850_v58 = vcombine.low %v895_v40, %v897_v41 }
  0xf9   : > { %v2904_v56 = vrot.slane %v2890_v45, %v11746_v60  ;;  %v2872_v61 = vrot.slane %v937_v26, %v11746_v60  ;;  %v1013_v1 = vcombine.high %v1005_v37, %v1005_v37  ;;  %v2848_v3 = vrot.slane %v2833_v54, %v11746_v60 }
  0xfa   : > { %v2834_v62 = vcombine.low %v2819_v52, %v2826_v53  ;;  %v2851_v0 = vcombine.low %v899_v49, %v923_v20  ;;  %v1014_v5 = vcombine.high %v1012_v59, %v1012_v59  ;;  %v11809_v6 = vrot.slane %v1005_v37, %v11746_v60 }
  0xfb   : > { %v2912_v2 = vcombine.low %v2897_v46, %v2904_v56  ;;  %v2858_v8 = vrot.slane %v2850_v58, %v11746_v60  ;;  %v1035_v10 = vrot.slane %v1013_v1, %v11746_v60  ;;  %v2926_v14 = vrot.slane %v2911_v57, %v11746_v60 }
  0xfc   : > { %v2841_v7 = vrot.slane %v2834_v62, %v11746_v60  ;;  %v2865_v9 = vrot.slane %v2851_v0, %v11746_v60  ;;  %v11818_v15 = vrot.slane %v1014_v5, %v11746_v60  ;;  %v1043_v16 = vcombine.high %v11809_v6, %v11809_v6 }
  0xfd   : > { %v2919_v12 = vrot.slane %v2912_v2, %v11746_v60  ;;  %v11823_v22 = vrot.slane %v1012_v59, %v11746_v60  ;;  %v1045_v23 = vcombine.high %v1035_v10, %v1035_v10  ;;  %v773_v26 = vmax.f32 %v733_v47, 0.0 }
  0xfe   : > { %v2849_v20 = vcombine.low %v2841_v7, %v2848_v3  ;;  %v2873_v21 = vcombine.low %v2858_v8, %v2865_v9  ;;  %v3006_v25 = vcombine.low %v1035_v10, %v1043_v16  ;;  %v11826_v27 = vmax.f32 %v11765_v17, 0.0  ;;  %v11839_v17 = vpop.f32.mrb[8].mxu1 }
  0xff   : > { %v2927_v24 = vcombine.low %v2919_v12, %v2926_v14  ;;  %v2887_v28 = vrot.slane %v2872_v61, %v11746_v60  ;;  %v3007_v31 = vcombine.low %v1045_v23, %v11823_v22  ;;  %v3028_v37 = vrot.slane %v11818_v15, %v11746_v60 }
 0x100   : > { %v2880_v29 = vrot.slane %v2873_v21, %v11746_v60  ;;  %v5372_v30 = vsel %vm5371_vm1, %v2849_v20, -inf  ;;  %v11837_v40 = vmul.f32 %v11749_v63, %v11738_v50  ;;  %v3014_v43 = vrot.slane %v3006_v25, %v11746_v60  ;;  %v11858_v20 = vpop.f32.mrb[9].mxu0 }
 0x101   : > { %v5386_v35 = vsel %vm5371_vm1, %v2927_v24, -inf  ;;  %v5373_v36 = vrot.slane %v5372_v30, 4  ;;  %v3021_v45 = vrot.slane %v3007_v31, %v11746_v60  ;;  %v948_v47 = vcombine.high %v11784_v34, %v11784_v34 }
 0x102   : > { %v5387_v41 = vrot.slane %v5386_v35, 4  ;;  %v2888_v42 = vcombine.low %v2880_v29, %v2887_v28  ;;  %v949_v49 = vcombine.high %v773_v26, %v773_v26  ;;  %v956_v52 = vrot.slane %v773_v26, %v11746_v60 }
 0x103   : > { %v5374_v46 = vmax.f32 %v5372_v30, %v5373_v36  ;;  %v3029_v63 = vcombine.low %v3014_v43, %v3021_v45  ;;  %v692_v56 = vmul.f32 %v11758_v11, %v11738_v50  ;;  %v2989_v62 = vrot.slane %v11809_v6, %v11746_v60 }
 0x104   : > { %v5388_v53 = vmax.f32 %v5386_v35, %v5387_v41  ;;  %v5379_v54 = vsel %vm5371_vm1, %v2888_v42, -inf  ;;  %v963_v59 = vrot.slane %v949_v49, %v11746_v60  ;;  %v964_v61 = vcombine.high %v956_v52, %v956_v52 }
 0x105   : > { %v5375_v57 = vrot.slane %v5374_v46, 2  ;;  %v5380_v58 = vrot.slane %v5379_v54, 4  ;;  %v3036_v34 = vrot.slane %v3029_v63, %v11746_v60  ;;  %v3043_v0 = vrot.slane %v3028_v37, %v11746_v60 }
 0x106   : > { %v972_v1 = vrot.slane %v956_v52, %v11746_v60  ;;  %v5389_v2 = vrot.slane %v5388_v53, 2  ;;  %v965_v7 = vcombine.high %v963_v59, %v963_v59  ;;  %v986_v11 = vrot.slane %v964_v61, %v11746_v60 }
 0x107   : > { %v5376_v3 = vmax.f32 %v5374_v46, %v5375_v57  ;;  %v5381_v5 = vmax.f32 %v5379_v54, %v5380_v58  ;;  %v3044_v8 = vcombine.low %v3036_v34, %v3043_v0  ;;  %v736_v10 = vadd.f32 %v11740_v51, %v692_v56 }
 0x108   : > { %v994_v9 = vcombine.high %v972_v1, %v972_v1  ;;  %v993_v6 = vrot.slane %v965_v7, %v11746_v60  ;;  %v2928_v16 = vcombine.low %v948_v47, %v972_v1  ;;  %v979_v23 = vrot.slane %v963_v59, %v11746_v60 }
 0x109   : > { %v5377_v12 = vrot.slane %v5376_v3, 1  ;;  %v5382_v14 = vrot.slane %v5381_v5, 2  ;;  %v5407_v21 = vsel %vm5371_vm1, %v3044_v8, -inf  ;;  %v996_v24 = vcombine.high %v986_v11, %v986_v11 }
 0x10a   : > { %v2929_v25 = vcombine.low %v986_v11, %v994_v9  ;;  %v5408_v29 = vrot.slane %v5407_v21, 4  ;;  %v2936_v30 = vrot.slane %v2928_v16, %v11746_v60  ;;  %v5390_v31 = vmax.f32 %v5388_v53, %v5389_v2 }
 0x10b   : > { %v5378_v26 = vmax.f32 %v5376_v3, %v5377_v12  ;;  %v5383_v28 = vmax.f32 %v5381_v5, %v5382_v14  ;;  %v2950_v36 = vrot.slane %v996_v24, %v11746_v60  ;;  %v2967_v37 = vcombine.low %v979_v23, %v993_v6 }
 0x10c   : > { %v2943_v35 = vrot.slane %v2929_v25, %v11746_v60  ;;  %v5409_v42 = vmax.f32 %v5407_v21, %v5408_v29  ;;  %v10121_v43 = vcombine.high %v979_v23, %v993_v6  ;;  %v1978_v45 = vcombine.high %v11826_v27, %v11826_v27 }
 0x10d   : > { %v5384_v41 = vrot.slane %v5383_v28, 1  ;;  %v3004_v46 = vrot.slane %v2989_v62, %v11746_v60  ;;  %v2975_v49 = vrot.slane %v2967_v37, %v11746_v60  ;;  %v1985_v52 = vrot.slane %v11826_v27, %v11746_v60 }
 0x10e   : > { %v2951_v47 = vcombine.low %v2936_v30, %v2943_v35  ;;  %v5820_v54 = vpack.c.bf16 %v5378_v26, %v5378_v26  ;;  %v5410_v63 = vrot.slane %v5409_v42, 2  ;;  %v2982_v56 = vrot.slane %v10121_v43, %v11746_v60  ;;  %v11890_v35 = vpop.f32.mrb[9].mxu1 }
 0x10f   : > { %v5385_v53 = vmax.f32 %v5383_v28, %v5384_v41  ;;  %v5391_v57 = vrot.slane %v5390_v31, 1  ;;  %v2965_v59 = vrot.slane %v2950_v36, %v11746_v60  ;;  %v776_v61 = vmax.f32 %v736_v10, 0.0 }
 0x110   : > { %v2958_v58 = vrot.slane %v2951_v47, %v11746_v60  ;;  %v10122_v62 = vcombine.high %v11823_v22, %v11818_v15  ;;  %v5411_v0 = vmax.f32 %v5409_v42, %v5410_v63  ;;  %v2990_v1 = vcombine.low %v2975_v49, %v2982_v56 }
 0x111   : > { %v5821_v34 = vpack.c.bf16 %v5385_v53, %v5385_v53  ;;  %v1096_v3 = vcombine.high %v776_v61, %v776_v61  ;;  %v1103_v27 = vrot.slane %v776_v61, %v11746_v60  ;;  %v1992_v5 = vrot.slane %v1978_v45, %v11746_v60 }
 0x112   : > { %v2966_v2 = vcombine.low %v2958_v58, %v2965_v59  ;;  %v5948_v7 = vunpack.c.l.b16 %v5820_v54  ;;  %v2997_v11 = vrot.slane %v2990_v1, %v11746_v60  ;;  %v1993_v9 = vcombine.high %v1985_v52, %v1985_v52 }
 0x113   : > { %v5949_v8 = vunpack.c.l.b16 %v5821_v34  ;;  %v5392_v12 = vmax.f32 %v5390_v31, %v5391_v57  ;;  %v1110_v14 = vrot.slane %v1096_v3, %v11746_v60  ;;  %v1111_v6 = vcombine.high %v1103_v27, %v1103_v27 }
 0x114   : > { %v5393_v10 = vsel %vm5371_vm1, %v2966_v2, -inf  ;;  %v5412_v22 = vrot.slane %v5411_v0, 1  ;;  %v3005_v16 = vcombine.low %v2997_v11, %v3004_v46  ;;  %v1119_v23 = vrot.slane %v1103_v27, %v11746_v60 }
 0x115   : > { %v11882_v15 = vsel %vm6012_vm2, %v5949_v8, %v5948_v7  ;;  %v5394_v21 = vrot.slane %v5393_v10, 4  ;;  %v1133_v24 = vrot.slane %v1111_v6, %v11746_v60  ;;  %v1994_v25 = vcombine.high %v1992_v5, %v1992_v5 }
 0x116   : > { %v2001_v26 = vrot.slane %v1985_v52, %v11746_v60  ;;  %v5400_v29 = vsel %vm5371_vm1, %v3005_v16, -inf  ;;  %v1126_v30 = vrot.slane %v1110_v14, %v11746_v60  ;;  %v2015_v31 = vrot.slane %v1993_v9, %v11746_v60 }
 0x117   : > { %v5395_v28 = vmax.f32 %v5393_v10, %v5394_v21  ;;  %v5822_v36 = vpack.c.bf16 %v5392_v12, %v5392_v12  ;;  %v5401_v37 = vrot.slane %v5400_v29, 4  ;;  %v3123_v41 = vcombine.low %v1119_v23, %v1133_v24 }
 0x118   : > { %v2008_v42 = vrot.slane %v1992_v5, %v11746_v60  ;;  %v5413_v43 = vmax.f32 %v5411_v0, %v5412_v22  ;;  %v1112_v46 = vcombine.high %v1110_v14, %v1110_v14  ;;  %v10123_v47 = vcombine.high %v1119_v23, %v1133_v24 }
 0x119   : > { %v5396_v45 = vrot.slane %v5395_v28, 2  ;;  %v5402_v49 = vmax.f32 %v5400_v29, %v5401_v37  ;;  %v3131_v52 = vrot.slane %v3123_v41, %v11746_v60  ;;  %v2022_v53 = vrot.slane %v1994_v25, %v11746_v60 }
 0x11a   : > { %v2023_v54 = vcombine.high %v2001_v26, %v2001_v26  ;;  %v3138_v56 = vrot.slane %v10123_v47, %v11746_v60  ;;  %v3145_v57 = vrot.slane %v1126_v30, %v11746_v60  ;;  %v2025_v58 = vcombine.high %v2015_v31, %v2015_v31 }
 0x11b   : > { %v5397_v63 = vmax.f32 %v5395_v28, %v5396_v45  ;;  %v11898_v59 = vrot.slane %v10122_v62, %v11746_v60  ;;  %v793_v34 = vmax.f32 %v11796_v48, 0.0  ;;  %v11903_v0 = vmul.f32 %v11738_v50, %v11753_v4  ;;  %v11929_v45 = vpop.f32.mrb[10].mxu0 }
 0x11c   : > { %v4254_v61 = vcombine.low %v2015_v31, %v2023_v54  ;;  %v5403_v1 = vrot.slane %v5402_v49, 2  ;;  %v3146_v2 = vcombine.low %v3131_v52, %v3138_v56  ;;  %v4255_v3 = vcombine.low %v2025_v58, %v2008_v42 }
 0x11d   : > { %v4276_v27 = vrot.slane %v2022_v53, %v11746_v60  ;;  %v11906_v5 = vunpack.c.l.b16 %v5822_v36  ;;  %v5825_v7 = vpack.c.bf16 %v5413_v43, %v5413_v43  ;;  %v11909_v8 = vrot.slane %v1112_v46, %v11746_v60 }
 0x11e   : > { %v4262_v62 = vrot.slane %v4254_v61, %v11746_v60  ;;  %v5398_v11 = vrot.slane %v5397_v63, 1  ;;  %v3153_v48 = vrot.slane %v3146_v2, %v11746_v60  ;;  %v3160_v9 = vrot.slane %v3145_v57, %v11746_v60 }
 0x11f   : > { %v4269_v4 = vrot.slane %v4255_v3, %v11746_v60  ;;  %v1142_v12 = vcombine.high %v1126_v30, %v1126_v30  ;;  %v4237_v10 = vrot.slane %v2001_v26, %v11746_v60  ;;  %v691_v14 = vmul.f32 %v11738_v50, %v11767_v18 }
 0x120   : > { %v1929_v6 = vcombine.high %v793_v34, %v793_v34  ;;  %v5404_v22 = vmax.f32 %v5402_v49, %v5403_v1  ;;  %v3161_v16 = vcombine.low %v3153_v48, %v3160_v9  ;;  %v4291_v23 = vrot.slane %v4276_v27, %v11746_v60 }
 0x121   : > { %v4277_v21 = vcombine.low %v4262_v62, %v4269_v4  ;;  %v11919_v24 = vunpack.c.l.b16 %v5825_v7  ;;  %v10138_v25 = vcombine.high %v2008_v42, %v2022_v53  ;;  %v735_v28 = vadd.f32 %v11740_v51, %v691_v14 }
 0x122   : > { %v1943_v29 = vrot.slane %v1929_v6, %v11746_v60  ;;  %v5399_v31 = vmax.f32 %v5397_v63, %v5398_v11  ;;  %v5428_v30 = vsel %vm5371_vm1, %v3161_v16, -inf  ;;  %v1936_v18 = vrot.slane %v793_v34, %v11746_v60 }
 0x123   : > { %v4284_v26 = vrot.slane %v4277_v21, %v11746_v60  ;;  %v11927_v36 = vcombine.low %v11909_v8, %v1142_v12  ;;  %v5429_v37 = vrot.slane %v5428_v30, 4  ;;  %v775_v41 = vmax.f32 %v735_v28, 0.0 }
 0x124   : > { %v1945_v43 = vcombine.high %v1943_v29, %v1943_v29  ;;  %v5405_v42 = vrot.slane %v5404_v22, 1  ;;  %v11932_v46 = vrot.slane %v4237_v10, %v11746_v60  ;;  %v1959_v49 = vrot.slane %v1943_v29, %v11746_v60 }
 0x125   : > { %v4292_v47 = vcombine.low %v4284_v26, %v4291_v23  ;;  %v5430_v52 = vmax.f32 %v5428_v30, %v5429_v37  ;;  %v11936_v53 = vrot.slane %v10138_v25, %v11746_v60  ;;  %v1047_v54 = vcombine.high %v775_v41, %v775_v41 }
 0x126   : > { %v1054_v63 = vrot.slane %v775_v41, %v11746_v60  ;;  %v5823_v56 = vpack.c.bf16 %v5399_v31, %v5399_v31  ;;  %v1944_v58 = vcombine.high %v1936_v18, %v1936_v18  ;;  %v1973_v61 = vrot.slane %v1945_v43, %v11746_v60 }
 0x127   : > { %v5631_v57 = vsel %vm5371_vm1, %v4292_v47, -inf  ;;  %v5431_v34 = vrot.slane %v5430_v52, 2  ;;  %v1061_v2 = vrot.slane %v1047_v54, %v11746_v60  ;;  %v5406_v27 = vmax.f32 %v5404_v22, %v5405_v42 }
 0x128   : > { %v5632_v1 = vrot.slane %v5631_v57, 4  ;;  %v1062_v3 = vcombine.high %v1054_v63, %v1054_v63  ;;  %v1070_v7 = vrot.slane %v1054_v63, %v11746_v60  ;;  %v11944_v62 = vrot.slane %v1936_v18, %v11746_v60 }
 0x129   : > { %v4215_v11 = vcombine.low %v1959_v49, %v1973_v61  ;;  %v5432_v48 = vmax.f32 %v5430_v52, %v5431_v34  ;;  %v1063_v4 = vcombine.high %v1061_v2, %v1061_v2  ;;  %v1077_v12 = vrot.slane %v1061_v2, %v11746_v60  ;;  %v11963_v34 = vpop.f32.mrb[11].mxu0 }
 0x12a   : > { %v5633_v9 = vmax.f32 %v5631_v57, %v5632_v1  ;;  %v1084_v10 = vrot.slane %v1062_v3, %v11746_v60  ;;  %v1092_v14 = vcombine.high %v1070_v7, %v1070_v7  ;;  %v1966_v6 = vrot.slane %v1944_v58, %v11746_v60 }
 0x12b   : > { %v10137_v16 = vcombine.high %v1959_v49, %v1973_v61  ;;  %v5433_v21 = vrot.slane %v5432_v48, 1  ;;  %v1091_v22 = vrot.slane %v1063_v4, %v11746_v60  ;;  %v1093_v25 = vcombine.high %v1077_v12, %v1077_v12 }
 0x12c   : > { %v5634_v23 = vrot.slane %v5633_v9, 2  ;;  %v1094_v28 = vcombine.high %v1084_v10, %v1084_v10  ;;  %v3046_v29 = vcombine.low %v1070_v7, %v1084_v10  ;;  %v4223_v31 = vrot.slane %v4215_v11, %v11746_v60 }
 0x12d   : > { %v756_v30 = vadd.f32 %v11740_v51, %v11837_v40  ;;  %v5824_v26 = vpack.c.bf16 %v5406_v27, %v5406_v27  ;;  %v11953_v18 = vunpack.c.l.b16 %v5823_v56  ;;  %v3085_v41 = vcombine.low %v1091_v22, %v1093_v25 }
 0x12e   : > { %v5635_v37 = vmax.f32 %v5633_v9, %v5634_v23  ;;  %v3060_v43 = vrot.slane %v3046_v29, %v11746_v60  ;;  %v3067_v42 = vrot.slane %v1092_v14, %v11746_v60  ;;  %v3084_v47 = vcombine.low %v1094_v28, %v1077_v12 }
 0x12f   : > { %v4230_v49 = vrot.slane %v10137_v16, %v11746_v60  ;;  %v5434_v52 = vmax.f32 %v5432_v48, %v5433_v21  ;;  %v3099_v54 = vrot.slane %v3085_v41, %v11746_v60  ;;  %v1974_v63 = vcombine.high %v11944_v62, %v11944_v62 }
 0x130   : > { %v1976_v57 = vcombine.high %v1966_v6, %v1966_v6  ;;  %v3068_v40 = vcombine.low %v11898_v59, %v3060_v43  ;;  %v3092_v56 = vrot.slane %v3084_v47, %v11746_v60  ;;  %v796_v61 = vmax.f32 %v756_v30, 0.0 }
 0x131   : > { %v4238_v58 = vcombine.low %v4223_v31, %v4230_v49  ;;  %v11965_v1 = vunpack.c.l.b16 %v5824_v26  ;;  %v5636_v2 = vrot.slane %v5635_v37, 1  ;;  %v1095_v3 = vcombine.high %v1091_v22, %v1091_v22 }
 0x132   : > { %v755_v27 = vadd.f32 %v11740_v51, %v11903_v0  ;;  %v3075_v7 = vrot.slane %v3068_v40, %v11746_v60  ;;  %v3082_v11 = vrot.slane %v3067_v42, %v11746_v60  ;;  %v2076_v59 = vcombine.high %v796_v61, %v796_v61 }
 0x133   : > { %v4245_v48 = vrot.slane %v4238_v58, %v11746_v60  ;;  %v3107_v9 = vcombine.low %v3092_v56, %v3099_v54  ;;  %v11972_v4 = vcombine.low %v1966_v6, %v1974_v63  ;;  %v2083_v12 = vrot.slane %v796_v61, %v11746_v60 }
 0x134   : > { %v795_v10 = vmax.f32 %v755_v27, 0.0  ;;  %v5828_v14 = vpack.c.bf16 %v5434_v52, %v5434_v52  ;;  %v3083_v16 = vcombine.low %v3075_v7, %v3082_v11  ;;  %v11976_v21 = vrot.slane %v1976_v57, %v11746_v60  ;;  %v12000_v11 = vpop.f32.mrb[10].mxu1 }
 0x135   : > { %v4253_v0 = vcombine.low %v4245_v48, %v11932_v46  ;;  %v5637_v23 = vmax.f32 %v5635_v37, %v5636_v2  ;;  %v3106_v22 = vrot.slane %v1095_v3, %v11746_v60  ;;  %v2091_v25 = vcombine.high %v2083_v12, %v2083_v12 }
 0x136   : > { %v2027_v28 = vcombine.high %v795_v10, %v795_v10  ;;  %v5414_v29 = vsel %vm5371_vm1, %v3083_v16, -inf  ;;  %v2090_v31 = vrot.slane %v2076_v59, %v11746_v60  ;;  %v2099_v30 = vrot.slane %v2083_v12, %v11746_v60 }
 0x137   : > { %v5624_v6 = vsel %vm5371_vm1, %v4253_v0, -inf  ;;  %v3114_v26 = vrot.slane %v3107_v9, %v11746_v60  ;;  %v5415_v41 = vrot.slane %v5414_v29, 4  ;;  %v2113_v42 = vrot.slane %v2091_v25, %v11746_v60 }
 0x138   : > { %v5625_v43 = vrot.slane %v5624_v6, 4  ;;  %v11989_v37 = vrot.slane %v2090_v31, %v11746_v60  ;;  %v2034_v47 = vrot.slane %v795_v10, %v11746_v60  ;;  %v2041_v49 = vrot.slane %v2027_v28, %v11746_v60 }
 0x139   : > { %v5857_v52 = vpack.c.bf16 %v5637_v23, %v5637_v23  ;;  %v3121_v54 = vrot.slane %v3106_v22, %v11746_v60  ;;  %v5416_v63 = vmax.f32 %v5414_v29, %v5415_v41  ;;  %v4371_v40 = vcombine.low %v2099_v30, %v2113_v42 }
 0x13a   : > { %v5626_v57 = vmax.f32 %v5624_v6, %v5625_v43  ;;  %v10139_v56 = vcombine.high %v2099_v30, %v2113_v42  ;;  %v4393_v58 = vrot.slane %v11989_v37, %v11746_v60  ;;  %v2042_v61 = vcombine.high %v2034_v47, %v2034_v47 }
 0x13b   : > { %v11996_v2 = vunpack.c.l.b16 %v5828_v14  ;;  %v3122_v3 = vcombine.low %v3114_v26, %v3121_v54  ;;  %v5417_v27 = vrot.slane %v5416_v63, 2  ;;  %v4379_v48 = vrot.slane %v4371_v40, %v11746_v60  ;;  %v12017_v40 = vpop.f32.mrb[11].mxu1 }
 0x13c   : > { %v4386_v59 = vrot.slane %v10139_v56, %v11746_v60  ;;  %v2043_v9 = vcombine.high %v2041_v49, %v2041_v49  ;;  %v694_v12 = vmul.f32 %v11779_v32, %v11738_v50  ;;  %v12006_v10 = vunpack.c.l.b16 %v5857_v52 }
 0x13d   : > { %v5627_v16 = vrot.slane %v5626_v57, 2  ;;  %v4408_v14 = vrot.slane %v4393_v58, %v11746_v60  ;;  %v2050_v0 = vrot.slane %v2034_v47, %v11746_v60  ;;  %v2057_v22 = vrot.slane %v2041_v49, %v11746_v60 }
 0x13e   : > { %14627 = vst [vmem:[#allocation3_spill] sm:$0xff] %v12006_v10  ;;  %v4394_v23 = vcombine.low %v4379_v48, %v4386_v59  ;;  %v2064_v25 = vrot.slane %v2042_v61, %v11746_v60  ;;  %v2071_v28 = vrot.slane %v2043_v9, %v11746_v60  ;;  %v5418_v29 = vmax.f32 %v5416_v63, %v5417_v27 }
 0x13f   : > { %v5421_v6 = vsel %vm5371_vm1, %v3122_v3, -inf  ;;  %v2092_v30 = vcombine.high %v2090_v31, %v2090_v31  ;;  %v2072_v26 = vcombine.high %v2050_v0, %v2050_v0  ;;  %v2073_v41 = vcombine.high %v2057_v22, %v2057_v22 }
 0x140   : > { %v4401_v32 = vrot.slane %v4394_v23, %v11746_v60  ;;  %v2074_v43 = vcombine.high %v2064_v25, %v2064_v25  ;;  %v2075_v42 = vcombine.high %v2071_v28, %v2071_v28  ;;  %v5628_v52 = vmax.f32 %v5626_v57, %v5627_v16 }
 0x141   : > { %v4294_v54 = vcombine.low %v2050_v0, %v2064_v25  ;;  %v4315_v47 = vrot.slane %v2072_v26, %v11746_v60  ;;  %v738_v49 = vadd.f32 %v11740_v51, %v694_v12  ;;  %v4333_v63 = vcombine.low %v2071_v28, %v2073_v41 }
 0x142   : > { %v4409_v56 = vcombine.low %v4401_v32, %v4408_v14  ;;  %v4332_v58 = vcombine.low %v2074_v43, %v2057_v22  ;;  %v4354_v61 = vrot.slane %v2075_v42, %v11746_v60  ;;  %v5419_v31 = vrot.slane %v5418_v29, 1 }
 0x143   : > { %v5422_v3 = vrot.slane %v5421_v6, 4  ;;  %v12021_v27 = vrot.slane %v2092_v30, %v11746_v60  ;;  %v4308_v48 = vrot.slane %v4294_v54, %v11746_v60  ;;  %v2122_v57 = vcombine.high %v11989_v37, %v11989_v37 }
 0x144   : > { %v5652_v59 = vsel %vm5371_vm1, %v4409_v56, -inf  ;;  %v4340_v9 = vrot.slane %v4332_v58, %v11746_v60  ;;  %v4347_v12 = vrot.slane %v4333_v63, %v11746_v60  ;;  %v5629_v16 = vrot.slane %v5628_v52, 1 }
 0x145   : > { %v5653_v14 = vrot.slane %v5652_v59, 4  ;;  %v4316_v0 = vcombine.low %v11936_v53, %v4308_v48  ;;  %v4330_v23 = vrot.slane %v4315_v47, %v11746_v60  ;;  %v4369_v25 = vrot.slane %v4354_v61, %v11746_v60 }
 0x146   : > { %v4355_v22 = vcombine.low %v4340_v9, %v4347_v12  ;;  %v778_v28 = vmax.f32 %v738_v49, 0.0  ;;  %v714_v30 = vmul.f32 %v11761_v13, %v11738_v50  ;;  %v5420_v37 = vmax.f32 %v5418_v29, %v5419_v31 }
 0x147   : > { %v5654_v26 = vmax.f32 %v5652_v59, %v5653_v14  ;;  %v4323_v32 = vrot.slane %v4316_v0, %v11746_v60  ;;  %v693_v41 = vmul.f32 %v11738_v50, %v11787_v38  ;;  %v12040_v47 = vmax.f32 %v5421_v6, %v5422_v3 }
 0x148   : > { %v4362_v43 = vrot.slane %v4355_v22, %v11746_v60  ;;  %v1194_v42 = vcombine.high %v778_v28, %v778_v28  ;;  %v1201_v53 = vrot.slane %v778_v28, %v11746_v60  ;;  %v758_v54 = vadd.f32 %v11740_v51, %v714_v30  ;;  %v12053_v30 = vpop.f32.mrb[12].mxu0 }
 0x149   : > { %v5630_v49 = vmax.f32 %v5628_v52, %v5629_v16  ;;  %v5655_v56 = vrot.slane %v5654_v26, 2  ;;  %v4331_v58 = vcombine.low %v4323_v32, %v4330_v23  ;;  %v5826_v38 = vpack.c.bf16 %v5420_v37, %v5420_v37 }
 0x14a   : > { %v4370_v13 = vcombine.low %v4362_v43, %v4369_v25  ;;  %v1208_v29 = vrot.slane %v1194_v42, %v11746_v60  ;;  %v1209_v63 = vcombine.high %v1201_v53, %v1201_v53  ;;  %v12044_v61 = vrot.slane %v1201_v53, %v11746_v60 }
 0x14b   : > { %v5656_v31 = vmax.f32 %v5654_v26, %v5655_v56  ;;  %v5638_v48 = vsel %vm5371_vm1, %v4331_v58, -inf  ;;  %v798_v59 = vmax.f32 %v758_v54, 0.0  ;;  %v737_v52 = vadd.f32 %v11740_v51, %v693_v41 }
 0x14c   : > { %v5639_v9 = vrot.slane %v5638_v48, 4  ;;  %v5645_v12 = vsel %vm5371_vm1, %v4370_v13, -inf  ;;  %v1210_v6 = vcombine.high %v1208_v29, %v1208_v29  ;;  %v1231_v14 = vrot.slane %v1209_v63, %v11746_v60 }
 0x14d   : > { %v5657_v3 = vrot.slane %v5656_v31, 1  ;;  %v5646_v16 = vrot.slane %v5645_v12, 4  ;;  %v1239_v0 = vcombine.high %v12044_v61, %v12044_v61  ;;  %v5856_v23 = vpack.c.bf16 %v5630_v49, %v5630_v49 }
 0x14e   : > { %v5640_v22 = vmax.f32 %v5638_v48, %v5639_v9  ;;  %v2174_v25 = vcombine.high %v798_v59, %v798_v59  ;;  %v2181_v28 = vrot.slane %v798_v59, %v11746_v60  ;;  %v12057_v26 = vcombine.low %v12021_v27, %v2122_v57 }
 0x14f   : > { %v5658_v32 = vmax.f32 %v5656_v31, %v5657_v3  ;;  %v1238_v41 = vrot.slane %v1210_v6, %v11746_v60  ;;  %v12060_v42 = vmax.f32 %v5645_v12, %v5646_v16  ;;  %v12062_v53 = vcombine.low %v1231_v14, %v1239_v0 }
 0x150   : > { %v5641_v43 = vrot.slane %v5640_v22, 2  ;;  %v2188_v54 = vrot.slane %v2174_v25, %v11746_v60  ;;  %v12065_v49 = vunpack.c.l.b16 %v5826_v38  ;;  %v1224_v56 = vrot.slane %v1208_v29, %v11746_v60  ;;  %v12117_v38 = vpop.f32.mrb[12].mxu1 }
 0x151   : > { %14628 = vst [vmem:[#allocation4_spill] sm:$0xff] %v12060_v42  ;;  %v1241_v58 = vcombine.high %v1231_v14, %v1231_v14  ;;  %v777_v13 = vmax.f32 %v737_v52, 0.0  ;;  %v12068_v63 = vunpack.c.l.b16 %v5856_v23  ;;  %v2189_v48 = vcombine.high %v2181_v28, %v2181_v28 }
 0x152   : > { %14629 = vst [vmem:[#allocation5_spill] sm:$0xff] %v12065_v49  ;;  %v5642_v57 = vmax.f32 %v5640_v22, %v5641_v43  ;;  %v1144_v31 = vcombine.high %v11909_v8, %v11909_v8  ;;  %v3279_v59 = vcombine.low %v1224_v56, %v1238_v41  ;;  %v10125_v9 = vcombine.high %v1224_v56, %v1238_v41 }
 0x153   : > { %14630 = vst [vmem:[#allocation6_spill] sm:$0xff] %v12068_v63  ;;  %v2190_v12 = vcombine.high %v2188_v54, %v2188_v54  ;;  %v12073_v6 = vrot.slane %v2181_v28, %v11746_v60  ;;  %v5860_v3 = vpack.c.bf16 %v5658_v32, %v5658_v32  ;;  %v3255_v29 = vrot.slane %v12062_v53, %v11746_v60 }
 0x154   : > { %v3170_v52 = vrot.slane %v11927_v36, %v11746_v60  ;;  %v5643_v16 = vrot.slane %v5642_v57, 1  ;;  %v12081_v14 = vrot.slane %v1241_v58, %v11746_v60  ;;  %v1145_v8 = vcombine.high %v777_v13, %v777_v13 }
 0x155   : > { %v1152_v0 = vrot.slane %v777_v13, %v11746_v60  ;;  %v12085_v23 = vrot.slane %v2188_v54, %v11746_v60  ;;  %v2211_v22 = vrot.slane %v2189_v48, %v11746_v60  ;;  %v12089_v25 = vrot.slane %v2190_v12, %v11746_v60 }
 0x156   : > { %v2219_v28 = vcombine.high %v12073_v6, %v12073_v6  ;;  %v12094_v36 = vrot.slane %v3279_v59, %v11746_v60  ;;  %v12097_v32 = vrot.slane %v10125_v9, %v11746_v60  ;;  %v1159_v41 = vrot.slane %v1145_v8, %v11746_v60 }
 0x157   : > { %v713_v43 = vmul.f32 %v11738_v50, %v11769_v19  ;;  %v12102_v53 = vunpack.c.l.b16 %v5860_v3  ;;  %v2221_v54 = vcombine.high %v2211_v22, %v2211_v22  ;;  %v1160_v56 = vcombine.high %v1152_v0, %v1152_v0 }
 0x158   : > { %v1168_v58 = vrot.slane %v1152_v0, %v11746_v60  ;;  %v12105_v13 = vmax.f32 %v5642_v57, %v5643_v16  ;;  %v3277_v48 = vrot.slane %v12081_v14, %v11746_v60  ;;  %v1161_v59 = vcombine.high %v1159_v41, %v1159_v41 }
 0x159   : > { %v2124_v9 = vcombine.high %v12021_v27, %v12021_v27  ;;  %v12111_v12 = vcombine.low %v2211_v22, %v2219_v28  ;;  %v1175_v3 = vrot.slane %v1159_v41, %v11746_v60  ;;  %v1182_v8 = vrot.slane %v1160_v56, %v11746_v60 }
 0x15a   : > { %v1189_v16 = vrot.slane %v1161_v59, %v11746_v60  ;;  %v3163_v14 = vcombine.low %v1144_v31, %v1168_v58  ;;  %v757_v0 = vadd.f32 %v11740_v51, %v713_v43  ;;  %v12124_v27 = vrot.slane %v2221_v54, %v11746_v60 }
 0x15b   : > { %v1191_v22 = vcombine.high %v1175_v3, %v1175_v3  ;;  %v3184_v28 = vrot.slane %v1182_v8, %v11746_v60  ;;  %v10124_v7 = vcombine.high %v1168_v58, %v1182_v8  ;;  %v716_v43 = vmul.f32 %v11781_v33, %v11738_v50 }
 0x15c   : > { %v1193_v41 = vcombine.high %v1189_v16, %v1189_v16  ;;  %v3177_v56 = vrot.slane %v3163_v14, %v11746_v60  ;;  %v3202_v46 = vcombine.low %v1175_v3, %v1189_v16  ;;  %v797_v37 = vmax.f32 %v757_v0, 0.0 }
 0x15d   : > { %v3209_v59 = vrot.slane %v10124_v7, %v11746_v60  ;;  %v3223_v31 = vrot.slane %v1191_v22, %v11746_v60  ;;  %v3199_v14 = vrot.slane %v3184_v28, %v11746_v60  ;;  %v4418_v16 = vrot.slane %v12057_v26, %v11746_v60 }
 0x15e   : > { %v3185_v54 = vcombine.low %v3170_v52, %v3177_v56  ;;  %v3216_v19 = vrot.slane %v3202_v46, %v11746_v60  ;;  %v3240_v58 = vcombine.low %v1193_v41, %v12044_v61  ;;  %v2125_v8 = vcombine.high %v797_v37, %v797_v37  ;;  %v12146_v56 = vpop.f32.mrb[13].mxu0 }
 0x15f   : > { %v2132_v3 = vrot.slane %v797_v37, %v11746_v60  ;;  %v760_v7 = vadd.f32 %v11740_v51, %v716_v43  ;;  %v3238_v46 = vrot.slane %v3223_v31, %v11746_v60 }
 0x160   : > { %v3192_v0 = vrot.slane %v3185_v54, %v11746_v60  ;;  %v3224_v22 = vcombine.low %v3209_v59, %v3216_v19  ;;  %v3248_v33 = vrot.slane %v3240_v58, %v11746_v60  ;;  %v2139_v52 = vrot.slane %v2125_v8, %v11746_v60 }
 0x161   : > { %v2140_v61 = vcombine.high %v2132_v3, %v2132_v3  ;;  %v2148_v41 = vrot.slane %v2132_v3, %v11746_v60  ;;  %v800_v28 = vmax.f32 %v760_v7, 0.0 }
 0x162   : > { %v3200_v37 = vcombine.low %v3192_v0, %v3199_v14  ;;  %v3231_v26 = vrot.slane %v3224_v22, %v11746_v60  ;;  %v3263_v57 = vcombine.low %v3248_v33, %v3255_v29  ;;  %v2141_v43 = vcombine.high %v2139_v52, %v2139_v52 }
 0x163   : > { %v2155_v54 = vrot.slane %v2139_v52, %v11746_v60  ;;  %v2162_v19 = vrot.slane %v2140_v61, %v11746_v60  ;;  %v4411_v59 = vcombine.low %v2124_v9, %v2148_v41  ;;  %v2272_v58 = vcombine.high %v800_v28, %v800_v28 }
 0x164   : > { %v3239_v8 = vcombine.low %v3231_v26, %v3238_v46  ;;  %v3270_v31 = vrot.slane %v3263_v57, %v11746_v60  ;;  %v5435_v44 = vsel %vm5371_vm1, %v3200_v37, -inf  ;;  %v2169_v3 = vrot.slane %v2141_v43, %v11746_v60 }
 0x165   : > { %v5436_v7 = vrot.slane %v5435_v44, 4  ;;  %v2171_v10 = vcombine.high %v2155_v54, %v2155_v54  ;;  %v4425_v14 = vrot.slane %v4411_v59, %v11746_v60  ;;  %v4432_v29 = vrot.slane %v2162_v19, %v11746_v60 }
 0x166   : > { %v3278_v0 = vcombine.low %v3270_v31, %v3277_v48  ;;  %v5442_v22 = vsel %vm5371_vm1, %v3239_v8, -inf  ;;  %v2173_v33 = vcombine.high %v2169_v3, %v2169_v3  ;;  %v10140_v52 = vcombine.high %v2148_v41, %v2162_v19 }
 0x167   : > { %v5437_v9 = vmax.f32 %v5435_v44, %v5436_v7  ;;  %v5443_v61 = vrot.slane %v5442_v22, 4  ;;  %v4433_v46 = vcombine.low %v4418_v16, %v4425_v14  ;;  %v4447_v57 = vrot.slane %v4432_v29, %v11746_v60  ;;  %v12167_v7 = vpop.f32.mrb[13].mxu1 }
 0x168   : > { %v5449_v37 = vsel %vm5371_vm1, %v3278_v0, -inf  ;;  %v4450_v26 = vcombine.low %v2155_v54, %v2169_v3  ;;  %v4457_v43 = vrot.slane %v10140_v52, %v11746_v60  ;;  %v4471_v63 = vrot.slane %v2171_v10, %v11746_v60 }
 0x169   : > { %v5438_v59 = vrot.slane %v5437_v9, 2  ;;  %v5444_v42 = vmax.f32 %v5442_v22, %v5443_v61  ;;  %v5450_v49 = vrot.slane %v5449_v37, 4  ;;  %v4440_v48 = vrot.slane %v4433_v46, %v11746_v60 }
 0x16a   : > { %v4525_v41 = vrot.slane %v12124_v27, %v11746_v60  ;;  %v4464_v44 = vrot.slane %v4450_v26, %v11746_v60  ;;  %v4488_v16 = vcombine.low %v2173_v33, %v12073_v6  ;;  %v2279_v19 = vrot.slane %v800_v28, %v11746_v60 }
 0x16b   : > { %v5439_v8 = vmax.f32 %v5437_v9, %v5438_v59  ;;  %v5445_v54 = vrot.slane %v5444_v42, 2  ;;  %v5451_v31 = vmax.f32 %v5449_v37, %v5450_v49  ;;  %v4448_v3 = vcombine.low %v4440_v48, %v4447_v57 }
 0x16c   : > { %v4472_v10 = vcombine.low %v4457_v43, %v4464_v44  ;;  %v4486_v14 = vrot.slane %v4471_v63, %v11746_v60  ;;  %v4496_v29 = vrot.slane %v4488_v16, %v11746_v60  ;;  %v2286_v0 = vrot.slane %v2272_v58, %v11746_v60 }
 0x16d   : > { %v5440_v27 = vrot.slane %v5439_v8, 1  ;;  %v5446_v22 = vmax.f32 %v5444_v42, %v5445_v54  ;;  %v5452_v52 = vrot.slane %v5451_v31, 2  ;;  %v5659_v6 = vsel %vm5371_vm1, %v4448_v3, -inf }
 0x16e   : > { %v4479_v28 = vrot.slane %v4472_v10, %v11746_v60  ;;  %v14631_v49 = vrot.slane %v12111_v12, %v11746_v60  ;;  %v5660_v9 = vrot.slane %v5659_v6, 4  ;;  %v2287_v61 = vcombine.high %v2279_v19, %v2279_v19 }
 0x16f   : > { %v5858_v63 = vpack.c.bf16 %v12105_v13, %v12105_v13  ;;  %v5441_v46 = vmax.f32 %v5439_v8, %v5440_v27  ;;  %v5447_v57 = vrot.slane %v5446_v22, 1  ;;  %v5453_v58 = vmax.f32 %v5451_v31, %v5452_v52 }
 0x170   : > { %v4511_v33 = vcombine.low %v4496_v29, %v14631_v49  ;;  %v4487_v37 = vcombine.low %v4479_v28, %v4486_v14  ;;  %v5661_v26 = vmax.f32 %v5659_v6, %v5660_v9  ;;  %v2288_v43 = vcombine.high %v2286_v0, %v2286_v0 }
 0x171   : > { %v5448_v59 = vmax.f32 %v5446_v22, %v5447_v57  ;;  %v5454_v48 = vrot.slane %v5453_v58, 1  ;;  %v5829_v44 = vpack.c.bf16 %v5441_v46, %v5441_v46  ;;  %v2302_v16 = vrot.slane %v2286_v0, %v11746_v60 }
 0x172   : > { %v4518_v42 = vrot.slane %v4511_v33, %v11746_v60  ;;  %v5662_v54 = vrot.slane %v5661_v26, 2  ;;  %v5666_v3 = vsel %vm5371_vm1, %v4487_v37, -inf  ;;  %v2309_v10 = vrot.slane %v2287_v61, %v11746_v60 }
 0x173   : > { %v5830_v13 = vpack.c.bf16 %v5448_v59, %v5448_v59  ;;  %v5957_v8 = vunpack.c.l.b16 %v5829_v44  ;;  %v5667_v29 = vrot.slane %v5666_v3, 4  ;;  %v715_v31 = vmul.f32 %v11738_v50, %v11789_v39 }
 0x174   : > { %v4526_v12 = vcombine.low %v4518_v42, %v4525_v41  ;;  %v5663_v14 = vmax.f32 %v5661_v26, %v5662_v54  ;;  %v2295_v22 = vrot.slane %v2279_v19, %v11746_v60  ;;  %v2316_v52 = vrot.slane %v2288_v43, %v11746_v60  ;;  %v12194_v19 = vpop.f32.mrb[14].mxu0 }
 0x175   : > { %v5958_v0 = vunpack.c.l.b16 %v5830_v13  ;;  %v6024_v41 = vsel %vm6012_vm2, %v5957_v8, %v11996_v2  ;;  %v5668_v6 = vmax.f32 %v5666_v3, %v5667_v29  ;;  %v2318_v28 = vcombine.high %v2302_v16, %v2302_v16 }
 0x176   : > { %v5673_v27 = vsel %vm5371_vm1, %v4526_v12, -inf  ;;  %v5455_v49 = vmax.f32 %v5453_v58, %v5454_v48  ;;  %v5664_v33 = vrot.slane %v5663_v14, 1  ;;  %v2319_v61 = vcombine.high %v2309_v10, %v2309_v10 }
 0x177   : > { %v5674_v9 = vrot.slane %v5673_v27, 4  ;;  %v12191_v46 = vsel %vm6014_vm3, %v5958_v0, %v6024_v41  ;;  %v5669_v39 = vrot.slane %v5668_v6, 2  ;;  %v2317_v57 = vcombine.high %v2295_v22, %v2295_v22 }
 0x178   : > { %v759_v37 = vadd.f32 %v11740_v51, %v715_v31  ;;  %v3302_v42 = vcombine.low %v12094_v36, %v12097_v32  ;;  %v5665_v26 = vmax.f32 %v5663_v14, %v5664_v33  ;;  %v4644_v43 = vcombine.low %v2319_v61, %v2302_v16 }
 0x179   : > { %v5675_v2 = vmax.f32 %v5673_v27, %v5674_v9  ;;  %v14632_v58 = vcombine.low %v12085_v23, %v12089_v25  ;;  %v5670_v48 = vmax.f32 %v5668_v6, %v5669_v39  ;;  %v2320_v44 = vcombine.high %v2316_v52, %v2316_v52 }
 0x17a   : > { %v4645_v12 = vcombine.low %v2316_v52, %v2318_v28  ;;  %v12202_v54 = vunpack.c.l.b16 %v5858_v63  ;;  %v14634_v3 = vcombine.high %v12085_v23, %v12089_v25  ;;  %v5831_v8 = vpack.c.bf16 %v5455_v49, %v5455_v49 }
 0x17b   : > { %v4535_v59 = vrot.slane %v14632_v58, %v11746_v60  ;;  %v5861_v29 = vpack.c.bf16 %v5665_v26, %v5665_v26  ;;  %v5676_v31 = vrot.slane %v5675_v2, 2  ;;  %v4606_v14 = vcombine.low %v2295_v22, %v2309_v10 }
 0x17c   : > { %14633 = vst [vmem:[#allocation7_spill] sm:$0xff] %v12202_v54  ;;  %v4542_v13 = vrot.slane %v14634_v3, %v11746_v60  ;;  %v12209_v16 = vrot.slane %v2317_v57, %v11746_v60  ;;  %v799_v27 = vmax.f32 %v759_v37, 0.0  ;;  %v4652_v41 = vrot.slane %v4644_v43, %v11746_v60 }
 0x17d   : > { %v5989_v0 = vunpack.c.l.b16 %v5861_v29  ;;  %v4659_v52 = vrot.slane %v4645_v12, %v11746_v60  ;;  %v696_v63 = vmul.f32 %v11801_v55, %v11738_v50  ;;  %v5671_v6 = vrot.slane %v5670_v48, 1 }
 0x17e   : > { %v4666_v23 = vrot.slane %v2320_v44, %v11746_v60  ;;  %v2223_v25 = vcombine.high %v799_v27, %v799_v27  ;;  %v2230_v28 = vrot.slane %v799_v27, %v11746_v60  ;;  %v4550_v49 = vcombine.low %v4535_v59, %v4542_v13 }
 0x17f   : > { %v12217_v10 = vunpack.c.l.b16 %v5831_v8  ;;  %v12221_v22 = vsel %vm6012_vm2, %v5989_v0, %v12102_v53  ;;  %v740_v33 = vadd.f32 %v11740_v51, %v696_v63  ;;  %v5677_v9 = vmax.f32 %v5675_v2, %v5676_v31 }
 0x180   : > { %14635 = vst [vmem:[#allocation8_spill] sm:$0xff] %v12221_v22  ;;  %v4620_v61 = vrot.slane %v4606_v14, %v11746_v60  ;;  %v2237_v55 = vrot.slane %v2223_v25, %v11746_v60  ;;  %v2238_v39 = vcombine.high %v2230_v28, %v2230_v28  ;;  %v4642_v57 = vrot.slane %v12209_v16, %v11746_v60  ;;  %v12236_v16 = vpop.f32.mrb[14].mxu1 }
 0x181   : > { %v4667_v37 = vcombine.low %v4652_v41, %v4659_v52  ;;  %v2246_v26 = vrot.slane %v2230_v28, %v11746_v60  ;;  %v780_v43 = vmax.f32 %v740_v33, 0.0  ;;  %v5672_v58 = vmax.f32 %v5670_v48, %v5671_v6 }
 0x182   : > { %v4681_v59 = vrot.slane %v4666_v23, %v11746_v60  ;;  %v2239_v53 = vcombine.high %v2237_v55, %v2237_v55  ;;  %v2253_v44 = vrot.slane %v2237_v55, %v11746_v60  ;;  %v2260_v2 = vrot.slane %v2238_v39, %v11746_v60 }
 0x183   : > { %v2268_v12 = vcombine.high %v2246_v26, %v2246_v26  ;;  %v4549_v3 = vrot.slane %v2246_v26, %v11746_v60  ;;  %v4557_v13 = vrot.slane %v4550_v49, %v11746_v60  ;;  %v5678_v8 = vrot.slane %v5677_v9, 1 }
 0x184   : > { %v2267_v29 = vrot.slane %v2239_v53, %v11746_v60  ;;  %v1292_v31 = vcombine.high %v780_v43, %v780_v43  ;;  %v1299_v14 = vrot.slane %v780_v43, %v11746_v60  ;;  %v4674_v48 = vrot.slane %v4667_v37, %v11746_v60 }
 0x185   : > { %v2270_v27 = vcombine.high %v2260_v2, %v2260_v2  ;;  %v4564_v0 = vrot.slane %v4549_v3, %v11746_v60  ;;  %v718_v41 = vmul.f32 %v11839_v17, %v11738_v50  ;;  %v5862_v52 = vpack.c.bf16 %v5672_v58, %v5672_v58 }
 0x186   : > { %v4566_v63 = vcombine.low %v2260_v2, %v2268_v12  ;;  %v10142_v6 = vcombine.high %v2253_v44, %v2267_v29  ;;  %v1306_v23 = vrot.slane %v1292_v31, %v11746_v60  ;;  %v4588_v49 = vrot.slane %v2267_v29, %v11746_v60 }
 0x187   : > { %v4565_v25 = vcombine.low %v4557_v13, %v4564_v0  ;;  %v4567_v28 = vcombine.low %v2270_v27, %v2253_v44  ;;  %v1307_v33 = vcombine.high %v1299_v14, %v1299_v14  ;;  %v12244_v55 = vmax.f32 %v5677_v9, %v5678_v8  ;;  %v12255_v9 = vpop.f32.mrb[15].mxu0 }
 0x188   : > { %v4574_v39 = vrot.slane %v4566_v63, %v11746_v60  ;;  %v4613_v37 = vrot.slane %v10142_v6, %v11746_v60  ;;  %v1308_v26 = vcombine.high %v1306_v23, %v1306_v23  ;;  %v4682_v43 = vcombine.low %v4674_v48, %v4681_v59 }
 0x189   : > { %v4581_v17 = vrot.slane %v4567_v28, %v11746_v60  ;;  %v5680_v58 = vsel %vm5371_vm1, %v4565_v25, -inf  ;;  %v762_v53 = vadd.f32 %v11740_v51, %v718_v41  ;;  %v1322_v44 = vrot.slane %v1306_v23, %v11746_v60 }
 0x18a   : > { %v4628_v2 = vcombine.low %v4613_v37, %v4620_v61  ;;  %v5681_v12 = vrot.slane %v5680_v58, 4  ;;  %v12253_v3 = vrot.slane %v1307_v33, %v11746_v60  ;;  %v12257_v13 = vunpack.c.l.b16 %v5862_v52 }
 0x18b   : > { %v4589_v8 = vcombine.low %v4574_v39, %v4581_v17  ;;  %v4603_v59 = vrot.slane %v4588_v49, %v11746_v60  ;;  %v1336_v29 = vrot.slane %v1308_v26, %v11746_v60  ;;  %v1338_v27 = vcombine.high %v1322_v44, %v1322_v44 }
 0x18c   : > { %14636 = vst [vmem:[#allocation9_spill] sm:$0xff] %v12257_v13  ;;  %v4635_v31 = vrot.slane %v4628_v2, %v11746_v60  ;;  %v5682_v48 = vmax.f32 %v5680_v58, %v5681_v12  ;;  %v1339_v61 = vcombine.high %v12253_v3, %v12253_v3  ;;  %v5701_v0 = vsel %vm5371_vm1, %v4682_v43, -inf }
 0x18d   : > { %v4596_v41 = vrot.slane %v4589_v8, %v11746_v60  ;;  %v1340_v63 = vcombine.high %v1336_v29, %v1336_v29  ;;  %v802_v6 = vmax.f32 %v762_v53, 0.0  ;;  %v3397_v28 = vcombine.low %v1336_v29, %v1338_v27 }
 0x18e   : > { %v4643_v52 = vcombine.low %v4635_v31, %v4642_v57  ;;  %v5683_v23 = vrot.slane %v5682_v48, 2  ;;  %v3396_v25 = vcombine.low %v1339_v61, %v1322_v44  ;;  %v5863_v49 = vpack.c.bf16 %v12244_v55, %v12244_v55 }
 0x18f   : > { %v4604_v33 = vcombine.low %v4596_v41, %v4603_v59  ;;  %v1315_v39 = vrot.slane %v1299_v14, %v11746_v60  ;;  %v3418_v37 = vrot.slane %v1340_v63, %v11746_v60  ;;  %v3411_v58 = vrot.slane %v3397_v28, %v11746_v60 }
 0x190   : > { %v5684_v26 = vmax.f32 %v5682_v48, %v5683_v23  ;;  %v5694_v17 = vsel %vm5371_vm1, %v4643_v52, -inf  ;;  %v3404_v43 = vrot.slane %v3396_v25, %v11746_v60  ;;  %v5702_v53 = vrot.slane %v5701_v0, 4 }
 0x191   : > { %v5687_v57 = vsel %vm5371_vm1, %v4604_v33, -inf  ;;  %v5695_v2 = vrot.slane %v5694_v17, 4  ;;  %v2370_v12 = vcombine.high %v802_v6, %v802_v6  ;;  %v2377_v59 = vrot.slane %v802_v6, %v11746_v60 }
 0x192   : > { %v5685_v44 = vrot.slane %v5684_v26, 1  ;;  %v5688_v8 = vrot.slane %v5687_v57, 4  ;;  %v3419_v55 = vcombine.low %v3404_v43, %v3411_v58  ;;  %v1337_v14 = vcombine.high %v1315_v39, %v1315_v39 }
 0x193   : > { %v3433_v29 = vrot.slane %v3418_v37, %v11746_v60  ;;  %v2384_v31 = vrot.slane %v2370_v12, %v11746_v60  ;;  %v695_v48 = vmul.f32 %v11738_v50, %v11858_v20  ;;  %v5696_v61 = vmax.f32 %v5694_v17, %v5695_v2  ;;  %v12288_v20 = vpop.f32.mrb[15].mxu1 }
 0x194   : > { %v5689_v27 = vmax.f32 %v5687_v57, %v5688_v8  ;;  %v3426_v41 = vrot.slane %v3419_v55, %v11746_v60  ;;  %v2385_v63 = vcombine.high %v2377_v59, %v2377_v59  ;;  %v5686_v52 = vmax.f32 %v5684_v26, %v5685_v44 }
 0x195   : > { %v2386_v23 = vcombine.high %v2384_v31, %v2384_v31  ;;  %v12281_v25 = vrot.slane %v2377_v59, %v11746_v60  ;;  %v2400_v6 = vrot.slane %v2384_v31, %v11746_v60  ;;  %v12284_v28 = vmax.f32 %v5701_v0, %v5702_v53 }
 0x196   : > { %v3358_v33 = vcombine.low %v1315_v39, %v12253_v3  ;;  %v3434_v37 = vcombine.low %v3426_v41, %v3433_v29  ;;  %v2407_v43 = vrot.slane %v2385_v63, %v11746_v60  ;;  %v12291_v17 = vrot.slane %v1337_v14, %v11746_v60 }
 0x197   : > { %v12294_v26 = vrot.slane %v2386_v23, %v11746_v60  ;;  %v2416_v58 = vcombine.high %v2400_v6, %v2400_v6  ;;  %v739_v57 = vadd.f32 %v11740_v51, %v695_v48  ;;  %v12297_v2 = vunpack.c.l.b16 %v5863_v49 }
 0x198   : > { %v5690_v0 = vrot.slane %v5689_v27, 2  ;;  %v5697_v53 = vrot.slane %v5696_v61, 2  ;;  %v5477_v3 = vsel %vm5371_vm1, %v3434_v37, -inf  ;;  %v5864_v39 = vpack.c.bf16 %v5686_v52, %v5686_v52 }
 0x199   : > { %14637 = vst [vmem:[#allocation10_spill] sm:$0xff] %v12297_v2  ;;  %v5478_v12 = vrot.slane %v5477_v3, 4  ;;  %v10144_v44 = vcombine.high %v12281_v25, %v2407_v43  ;;  %v4762_v8 = vcombine.low %v2400_v6, %v12294_v26  ;;  %v12304_v59 = vrot.slane %v3358_v33, %v11746_v60 }
 0x19a   : > { %v4783_v14 = vrot.slane %v2416_v58, %v11746_v60  ;;  %v779_v29 = vmax.f32 %v739_v57, 0.0  ;;  %v3309_v41 = vrot.slane %v3302_v42, %v11746_v60  ;;  %v5691_v63 = vmax.f32 %v5689_v27, %v5690_v0 }
 0x19b   : > { %v4769_v31 = vrot.slane %v10144_v44, %v11746_v60  ;;  %v4776_v48 = vrot.slane %v4762_v8, %v11746_v60  ;;  %v12315_v52 = vmax.f32 %v5696_v61, %v5697_v53  ;;  %v12318_v33 = vunpack.c.l.b16 %v5864_v39  ;;  %v12321_v44 = vpop.f32.mrb[16].mxu0 }
 0x19c   : > { %v1243_v23 = vcombine.high %v779_v29, %v779_v29  ;;  %v1250_v6 = vrot.slane %v779_v29, %v11746_v60  ;;  %v5479_v37 = vmax.f32 %v5477_v3, %v5478_v12  ;;  %v4798_v57 = vrot.slane %v4783_v14, %v11746_v60 }
 0x19d   : > { %14638 = vst [vmem:[#allocation11_spill] sm:$0xff] %v12318_v33  ;;  %v4784_v58 = vcombine.low %v4769_v31, %v4776_v48  ;;  %v4744_v32 = vrot.slane %v2407_v43, %v11746_v60  ;;  %v12330_v27 = vsel %vm6016_vm4, %v12217_v10, %v12191_v46  ;;  %v717_v61 = vmul.f32 %v11738_v50, %v11890_v35 }
 0x19e   : > { %v1257_v8 = vrot.slane %v1243_v23, %v11746_v60  ;;  %v1258_v55 = vcombine.high %v1250_v6, %v1250_v6  ;;  %v1266_v36 = vrot.slane %v1250_v6, %v11746_v60  ;;  %v5692_v0 = vrot.slane %v5691_v63, 1 }
 0x19f   : > { %v4791_v42 = vrot.slane %v4784_v58, %v11746_v60  ;;  %v5480_v12 = vrot.slane %v5479_v37, 2  ;;  %v761_v10 = vadd.f32 %v11740_v51, %v717_v61  ;;  %v12341_v35 = vrot.slane %v4744_v32, %v11746_v60 }
 0x1a0   : > { %v1259_v3 = vcombine.high %v1257_v8, %v1257_v8  ;;  %v1280_v39 = vrot.slane %v1258_v55, %v11746_v60  ;;  %v1288_v29 = vcombine.high %v1266_v36, %v1266_v36  ;;  %v3301_v43 = vrot.slane %v1266_v36, %v11746_v60 }
 0x1a1   : > { %v4799_v14 = vcombine.low %v4791_v42, %v4798_v57  ;;  %v1273_v31 = vrot.slane %v1257_v8, %v11746_v60  ;;  %v12345_v58 = vmax.f32 %v5691_v63, %v5692_v0  ;;  %v5481_v53 = vmax.f32 %v5479_v37, %v5480_v12 }
 0x1a2   : > { %v1287_v48 = vrot.slane %v1259_v3, %v11746_v60  ;;  %v1290_v46 = vcombine.high %v1280_v39, %v1280_v39  ;;  %v3316_v6 = vrot.slane %v3301_v43, %v11746_v60  ;;  %v3318_v55 = vcombine.low %v1280_v39, %v1288_v29 }
 0x1a3   : > { %v5722_v23 = vsel %vm5371_vm1, %v4799_v14, -inf  ;;  %v801_v49 = vmax.f32 %v761_v10, 0.0  ;;  %v698_v0 = vmul.f32 %v11929_v45, %v11738_v50 }
 0x1a4   : > { %v5723_v57 = vrot.slane %v5722_v23, 4  ;;  %v3319_v42 = vcombine.low %v1290_v46, %v1273_v31  ;;  %v10126_v36 = vcombine.high %v1273_v31, %v1287_v48  ;;  %v3317_v8 = vcombine.low %v3309_v41, %v3316_v6 }
 0x1a5   : > { %v3340_v3 = vrot.slane %v1287_v48, %v11746_v60  ;;  %v3326_v61 = vrot.slane %v3318_v55, %v11746_v60  ;;  %v2321_v39 = vcombine.high %v801_v49, %v801_v49  ;;  %v2328_v63 = vrot.slane %v801_v49, %v11746_v60 }
 0x1a6   : > { %v5724_v33 = vmax.f32 %v5722_v23, %v5723_v57  ;;  %v3333_v32 = vrot.slane %v3319_v42, %v11746_v60  ;;  %v3365_v14 = vrot.slane %v10126_v36, %v11746_v60  ;;  %v5456_v43 = vsel %vm5371_vm1, %v3317_v8, -inf }
 0x1a7   : > { %v5457_v29 = vrot.slane %v5456_v43, 4  ;;  %v5482_v31 = vrot.slane %v5481_v53, 1  ;;  %v2335_v48 = vrot.slane %v2321_v39, %v11746_v60  ;;  %v2336_v46 = vcombine.high %v2328_v63, %v2328_v63 }
 0x1a8   : > { %v5725_v37 = vrot.slane %v5724_v33, 2  ;;  %v3341_v41 = vcombine.low %v3326_v61, %v3333_v32  ;;  %v3380_v12 = vcombine.low %v3365_v14, %v12304_v59  ;;  %v2344_v10 = vrot.slane %v2328_v63, %v11746_v60 }
 0x1a9   : > { %v3355_v6 = vrot.slane %v3340_v3, %v11746_v60  ;;  %v5458_v55 = vmax.f32 %v5456_v43, %v5457_v29  ;;  %v2337_v45 = vcombine.high %v2335_v48, %v2335_v48  ;;  %v2351_v42 = vrot.slane %v2335_v48, %v11746_v60  ;;  %v12368_v43 = vpop.f32.mrb[16].mxu1 }
 0x1aa   : > { %v3348_v23 = vrot.slane %v3341_v41, %v11746_v60  ;;  %v3387_v49 = vrot.slane %v3380_v12, %v11746_v60  ;;  %v5726_v57 = vmax.f32 %v5724_v33, %v5725_v37  ;;  %v2358_v59 = vrot.slane %v2336_v46, %v11746_v60 }
 0x1ab   : > { %v14639_v8 = vrot.slane %v12291_v17, %v11746_v60  ;;  %v5459_v32 = vrot.slane %v5458_v55, 2  ;;  %v742_v14 = vadd.f32 %v11740_v51, %v698_v0  ;;  %v2365_v39 = vrot.slane %v2337_v45, %v11746_v60 }
 0x1ac   : > { %v3356_v36 = vcombine.low %v3348_v23, %v3355_v6  ;;  %v2367_v3 = vcombine.high %v2351_v42, %v2351_v42  ;;  %v4683_v63 = vcombine.low %v2344_v10, %v2358_v59  ;;  %v10143_v41 = vcombine.high %v2344_v10, %v2358_v59 }
 0x1ad   : > { %v3395_v61 = vcombine.low %v3387_v49, %v14639_v8  ;;  %v12370_v33 = vmax.f32 %v5481_v53, %v5482_v31  ;;  %v5460_v37 = vmax.f32 %v5458_v55, %v5459_v32  ;;  %v5727_v48 = vrot.slane %v5726_v57, 1 }
 0x1ae   : > { %v5463_v12 = vsel %vm5371_vm1, %v3356_v36, -inf  ;;  %v2369_v46 = vcombine.high %v2365_v39, %v2365_v39  ;;  %v4691_v0 = vrot.slane %v4683_v63, %v11746_v60  ;;  %v4698_v6 = vrot.slane %v10143_v41, %v11746_v60 }
 0x1af   : > { %v5470_v29 = vsel %vm5371_vm1, %v3395_v61, -inf  ;;  %v5464_v17 = vrot.slane %v5463_v12, 4  ;;  %v5461_v23 = vrot.slane %v5460_v37, 1  ;;  %v4705_v10 = vrot.slane %v2351_v42, %v11746_v60 }
 0x1b0   : > { %v782_v49 = vmax.f32 %v742_v14, 0.0  ;;  %v5471_v53 = vrot.slane %v5470_v29, 4  ;;  %v4722_v31 = vcombine.low %v2365_v39, %v2367_v3  ;;  %v4723_v55 = vcombine.low %v2369_v46, %v12281_v25 }
 0x1b1   : > { %v5465_v45 = vmax.f32 %v5463_v12, %v5464_v17  ;;  %v5865_v59 = vpack.c.bf16 %v12345_v58, %v12345_v58  ;;  %v5462_v36 = vmax.f32 %v5460_v37, %v5461_v23  ;;  %v4706_v8 = vcombine.low %v4691_v0, %v4698_v6  ;;  %v12388_v0 = vpop.f32.mrb[17].mxu0 }
 0x1b2   : > { %v4720_v61 = vrot.slane %v4705_v10, %v11746_v60  ;;  %v5728_v32 = vmax.f32 %v5726_v57, %v5727_v48  ;;  %v4730_v2 = vrot.slane %v4722_v31, %v11746_v60  ;;  %v4737_v41 = vrot.slane %v4723_v55, %v11746_v60 }
 0x1b3   : > { %v5466_v63 = vrot.slane %v5465_v45, 2  ;;  %v5832_v42 = vpack.c.bf16 %v5462_v36, %v5462_v36  ;;  %v4713_v14 = vrot.slane %v4706_v8, %v11746_v60  ;;  %v1390_v12 = vcombine.high %v782_v49, %v782_v49 }
 0x1b4   : > { %v1397_v39 = vrot.slane %v782_v49, %v11746_v60  ;;  %v5835_v25 = vpack.c.bf16 %v12370_v33, %v12370_v33  ;;  %v5472_v3 = vmax.f32 %v5470_v29, %v5471_v53  ;;  %v4745_v37 = vcombine.low %v4730_v2, %v4737_v41 }
 0x1b5   : > { %v5467_v58 = vmax.f32 %v5465_v45, %v5466_v63  ;;  %v5960_v17 = vunpack.c.l.b16 %v5832_v42  ;;  %v4721_v57 = vcombine.low %v4713_v14, %v4720_v61  ;;  %v1404_v48 = vrot.slane %v1390_v12, %v11746_v60 }
 0x1b6   : > { %v1405_v46 = vcombine.high %v1397_v39, %v1397_v39  ;;  %v5870_v23 = vpack.c.bf16 %v5728_v32, %v5728_v32  ;;  %v4752_v10 = vrot.slane %v4745_v37, %v11746_v60  ;;  %v697_v49 = vmul.f32 %v11738_v50, %v11963_v34 }
 0x1b7   : > { %v5468_v6 = vrot.slane %v5467_v58, 1  ;;  %v6027_v33 = vsel %vm6018_vm5, %v5960_v17, %v12330_v27  ;;  %v5708_v2 = vsel %vm5371_vm1, %v4721_v57, -inf  ;;  %v1406_v29 = vcombine.high %v1404_v48, %v1404_v48 }
 0x1b8   : > { %v1420_v45 = vrot.slane %v1404_v48, %v11746_v60  ;;  %v5473_v31 = vrot.slane %v5472_v3, 2  ;;  %v4760_v55 = vcombine.low %v4752_v10, %v12341_v35  ;;  %v5709_v36 = vrot.slane %v5708_v2, 4  ;;  %v12417_v48 = vpop.f32.mrb[17].mxu1 }
 0x1b9   : > { %v5469_v53 = vmax.f32 %v5467_v58, %v5468_v6  ;;  %v12399_v8 = vrot.slane %v1397_v39, %v11746_v60  ;;  %v12402_v61 = vrot.slane %v1405_v46, %v11746_v60  ;;  %v12405_v34 = vrot.slane %v1406_v29, %v11746_v60 }
 0x1ba   : > { %v1436_v27 = vcombine.high %v1420_v45, %v1420_v45  ;;  %v5710_v63 = vmax.f32 %v5708_v2, %v5709_v36  ;;  %v5715_v41 = vsel %vm5371_vm1, %v4760_v55, -inf  ;;  %v741_v42 = vadd.f32 %v11740_v51, %v697_v49 }
 0x1bb   : > { %v5833_v32 = vpack.c.bf16 %v5469_v53, %v5469_v53  ;;  %v12409_v14 = vunpack.c.l.b16 %v5865_v59  ;;  %v5716_v35 = vrot.slane %v5715_v41, 4  ;;  %v10128_v12 = vcombine.high %v12399_v8, %v12402_v61 }
 0x1bc   : > { %v3514_v39 = vcombine.low %v1420_v45, %v12405_v34  ;;  %v12414_v58 = vunpack.c.l.b16 %v5835_v25  ;;  %v5711_v17 = vrot.slane %v5710_v63, 2  ;;  %v3535_v57 = vrot.slane %v1436_v27, %v11746_v60 }
 0x1bd   : > { %14640 = vst [vmem:[#allocation12_spill] sm:$0xff] %v12409_v14  ;;  %v5961_v37 = vunpack.c.l.b16 %v5833_v32  ;;  %v12419_v46 = vunpack.c.l.b16 %v5870_v23  ;;  %v5717_v6 = vmax.f32 %v5715_v41, %v5716_v35  ;;  %v3521_v59 = vrot.slane %v10128_v12, %v11746_v60 }
 0x1be   : > { %v3528_v10 = vrot.slane %v3514_v39, %v11746_v60  ;;  %v12423_v49 = vmax.f32 %v5472_v3, %v5473_v31  ;;  %v5712_v25 = vmax.f32 %v5710_v63, %v5711_v17  ;;  %v781_v29 = vmax.f32 %v741_v42, 0.0 }
 0x1bf   : > { %14641 = vst [vmem:[#allocation13_spill] sm:$0xff] %v12419_v46  ;;  %v12426_v2 = vsel %vm6020_vm6, %v5961_v37, %v6027_v33  ;;  %v5718_v45 = vrot.slane %v5717_v6, 2  ;;  %v720_v55 = vmul.f32 %v12000_v11, %v11738_v50  ;;  %v719_v23 = vmul.f32 %v11738_v50, %v12017_v40 }
 0x1c0   : > { %v3536_v53 = vcombine.low %v3521_v59, %v3528_v10  ;;  %v5713_v36 = vrot.slane %v5712_v25, 1  ;;  %v3550_v27 = vrot.slane %v3535_v57, %v11746_v60  ;;  %v1341_v32 = vcombine.high %v781_v29, %v781_v29 }
 0x1c1   : > { %v1348_v3 = vrot.slane %v781_v29, %v11746_v60  ;;  %v5719_v31 = vmax.f32 %v5717_v6, %v5718_v45  ;;  %v764_v63 = vadd.f32 %v11740_v51, %v720_v55  ;;  %v763_v41 = vadd.f32 %v11740_v51, %v719_v23 }
 0x1c2   : > { %v3543_v33 = vrot.slane %v3536_v53, %v11746_v60  ;;  %v5714_v42 = vmax.f32 %v5712_v25, %v5713_v36  ;;  %v3496_v11 = vrot.slane %v12402_v61, %v11746_v60  ;;  %v1355_v35 = vrot.slane %v1341_v32, %v11746_v60 }
 0x1c3   : > { %v1356_v40 = vcombine.high %v1348_v3, %v1348_v3  ;;  %v5720_v12 = vrot.slane %v5719_v31, 1  ;;  %v1364_v37 = vrot.slane %v1348_v3, %v11746_v60  ;;  %v804_v17 = vmax.f32 %v764_v63, 0.0 }
 0x1c4   : > { %v3551_v39 = vcombine.low %v3543_v33, %v3550_v27  ;;  %v5868_v57 = vpack.c.bf16 %v5714_v42, %v5714_v42  ;;  %v1357_v6 = vcombine.high %v1355_v35, %v1355_v35  ;;  %v1371_v59 = vrot.slane %v1355_v35, %v11746_v60 }
 0x1c5   : > { %v1378_v10 = vrot.slane %v1356_v40, %v11746_v60  ;;  %v5721_v29 = vmax.f32 %v5719_v31, %v5720_v12  ;;  %v2468_v45 = vcombine.high %v804_v17, %v804_v17  ;;  %v803_v53 = vmax.f32 %v763_v41, 0.0 }
 0x1c6   : > { %v5498_v25 = vsel %vm5371_vm1, %v3551_v39, -inf  ;;  %v1385_v55 = vrot.slane %v1357_v6, %v11746_v60  ;;  %v1387_v23 = vcombine.high %v1371_v59, %v1371_v59  ;;  %v2475_v36 = vrot.slane %v804_v17, %v11746_v60 }
 0x1c7   : > { %v5499_v61 = vrot.slane %v5498_v25, 4  ;;  %v5869_v27 = vpack.c.bf16 %v5721_v29, %v5721_v29  ;;  %v5996_v32 = vunpack.c.l.b16 %v5868_v57  ;;  %v3435_v3 = vcombine.low %v1364_v37, %v1378_v10 }
 0x1c8   : > { %v10127_v33 = vcombine.high %v1364_v37, %v1378_v10  ;;  %v1389_v42 = vcombine.high %v1385_v55, %v1385_v55  ;;  %v3474_v35 = vcombine.low %v1385_v55, %v1387_v23  ;;  %v2482_v40 = vrot.slane %v2468_v45, %v11746_v60 }
 0x1c9   : > { %v5500_v63 = vmax.f32 %v5498_v25, %v5499_v61  ;;  %v5997_v31 = vunpack.c.l.b16 %v5869_v27  ;;  %v3443_v12 = vrot.slane %v3435_v3, %v11746_v60  ;;  %v3457_v39 = vrot.slane %v1371_v59, %v11746_v60 }
 0x1ca   : > { %v3450_v41 = vrot.slane %v10127_v33, %v11746_v60  ;;  %v3475_v14 = vcombine.low %v1389_v42, %v12399_v8  ;;  %v3482_v17 = vrot.slane %v3474_v35, %v11746_v60  ;;  %v2483_v57 = vcombine.high %v2475_v36, %v2475_v36 }
 0x1cb   : > { %v5501_v6 = vrot.slane %v5500_v63, 2  ;;  %v12453_v37 = vsel %vm6012_vm2, %v5997_v31, %v5996_v32  ;;  %v2484_v29 = vcombine.high %v2482_v40, %v2482_v40  ;;  %v12456_v25 = vrot.slane %v2475_v36, %v11746_v60  ;;  %v12470_v36 = vpop.f32.mrb[18].mxu0 }
 0x1cc   : > { %14642 = vst [vmem:[#allocation14_spill] sm:$0xff] %v12453_v37  ;;  %v3458_v10 = vcombine.low %v3443_v12, %v3450_v41  ;;  %v3489_v61 = vrot.slane %v3475_v14, %v11746_v60  ;;  %v12460_v55 = vrot.slane %v2482_v40, %v11746_v60  ;;  %v2505_v59 = vrot.slane %v2483_v57, %v11746_v60 }
 0x1cd   : > { %v5502_v45 = vmax.f32 %v5500_v63, %v5501_v6  ;;  %v3472_v23 = vrot.slane %v3457_v39, %v11746_v60  ;;  %v12466_v27 = vrot.slane %v2484_v29, %v11746_v60  ;;  %v2513_v32 = vcombine.high %v12456_v25, %v12456_v25 }
 0x1ce   : > { %v3465_v8 = vrot.slane %v3458_v10, %v11746_v60  ;;  %v5475_v3 = vrot.slane %v12423_v49, 1  ;;  %v3497_v33 = vcombine.low %v3482_v17, %v3489_v61  ;;  %v2515_v63 = vcombine.high %v2505_v59, %v2505_v59 }
 0x1cf   : > { %v5503_v14 = vrot.slane %v5502_v45, 1  ;;  %v4878_v35 = vcombine.low %v2505_v59, %v2513_v32  ;;  %v4900_v40 = vrot.slane %v12466_v27, %v11746_v60  ;;  %v2419_v31 = vcombine.high %v803_v53, %v803_v53 }
 0x1d0   : > { %v3473_v42 = vcombine.low %v3465_v8, %v3472_v23  ;;  %v3511_v12 = vrot.slane %v3496_v11, %v11746_v60  ;;  %v3504_v39 = vrot.slane %v3497_v33, %v11746_v60  ;;  %v4879_v6 = vcombine.low %v2515_v63, %v12460_v55 }
 0x1d1   : > { %v5504_v41 = vmax.f32 %v5502_v45, %v5503_v14  ;;  %v4886_v10 = vrot.slane %v4878_v35, %v11746_v60  ;;  %v2418_v17 = vcombine.high %v12294_v26, %v12294_v26  ;;  %v2426_v29 = vrot.slane %v803_v53, %v11746_v60 }
 0x1d2   : > { %v5484_v57 = vsel %vm5371_vm1, %v3473_v42, -inf  ;;  %v3512_v61 = vcombine.low %v3504_v39, %v3511_v12  ;;  %v4861_v8 = vrot.slane %v12456_v25, %v11746_v60  ;;  %v4893_v11 = vrot.slane %v4879_v6, %v11746_v60 }
 0x1d3   : > { %v5485_v59 = vrot.slane %v5484_v57, 4  ;;  %v4915_v45 = vrot.slane %v4900_v40, %v11746_v60  ;;  %v2433_v23 = vrot.slane %v2419_v31, %v11746_v60  ;;  %v2434_v32 = vcombine.high %v2426_v29, %v2426_v29 }
 0x1d4   : > { %v2442_v14 = vrot.slane %v2426_v29, %v11746_v60  ;;  %v5838_v33 = vpack.c.bf16 %v5504_v41, %v5504_v41  ;;  %v5491_v26 = vsel %vm5371_vm1, %v3512_v61, -inf  ;;  %v4901_v42 = vcombine.low %v4886_v10, %v4893_v11  ;;  %v12497_v11 = vpop.f32.mrb[19].mxu0 }
 0x1d5   : > { %v5486_v63 = vmax.f32 %v5484_v57, %v5485_v59  ;;  %v5492_v53 = vrot.slane %v5491_v26, 4  ;;  %v2435_v35 = vcombine.high %v2433_v23, %v2433_v23  ;;  %v2449_v12 = vrot.slane %v2433_v23, %v11746_v60 }
 0x1d6   : > { %v2456_v25 = vrot.slane %v2434_v32, %v11746_v60  ;;  %v4908_v6 = vrot.slane %v4901_v42, %v11746_v60  ;;  %v2464_v40 = vcombine.high %v2442_v14, %v2442_v14  ;;  %v4800_v46 = vcombine.low %v2418_v17, %v2442_v14 }
 0x1d7   : > { %v5487_v39 = vrot.slane %v5486_v63, 2  ;;  %v5493_v31 = vmax.f32 %v5491_v26, %v5492_v53  ;;  %v2463_v37 = vrot.slane %v2435_v35, %v11746_v60  ;;  %v700_v41 = vmul.f32 %v12053_v30, %v11738_v50 }
 0x1d8   : > { %v2466_v29 = vcombine.high %v2456_v25, %v2456_v25  ;;  %v4916_v10 = vcombine.low %v4908_v6, %v4915_v45  ;;  %v4801_v61 = vcombine.low %v2456_v25, %v2464_v40  ;;  %v4808_v59 = vrot.slane %v4800_v46, %v11746_v60 }
 0x1d9   : > { %v5488_v57 = vmax.f32 %v5486_v63, %v5487_v39  ;;  %v5494_v23 = vrot.slane %v5493_v31, 2  ;;  %v4839_v42 = vcombine.low %v2449_v12, %v2463_v37  ;;  %v10145_v13 = vcombine.high %v2449_v12, %v2463_v37 }
 0x1da   : > { %v4822_v32 = vrot.slane %v2466_v29, %v11746_v60  ;;  %v5743_v14 = vsel %vm5371_vm1, %v4916_v10, -inf  ;;  %v4815_v26 = vrot.slane %v4801_v61, %v11746_v60  ;;  %v744_v53 = vadd.f32 %v11740_v51, %v700_v41 }
 0x1db   : > { %v5489_v17 = vrot.slane %v5488_v57, 1  ;;  %v5495_v30 = vmax.f32 %v5493_v31, %v5494_v23  ;;  %v5744_v63 = vrot.slane %v5743_v14, 4  ;;  %v4847_v46 = vrot.slane %v4839_v42, %v11746_v60 }
 0x1dc   : > { %v4837_v45 = vrot.slane %v4822_v32, %v11746_v60  ;;  %v4823_v25 = vcombine.low %v4808_v59, %v4815_v26  ;;  %v4854_v39 = vrot.slane %v10145_v13, %v11746_v60  ;;  %v784_v6 = vmax.f32 %v744_v53, 0.0 }
 0x1dd   : > { %v5490_v35 = vmax.f32 %v5488_v57, %v5489_v17  ;;  %v5476_v37 = vmax.f32 %v12423_v49, %v5475_v3  ;;  %v5496_v12 = vrot.slane %v5495_v30, 1  ;;  %v4876_v40 = vrot.slane %v4861_v8, %v11746_v60 }
 0x1de   : > { %v5745_v29 = vmax.f32 %v5743_v14, %v5744_v63  ;;  %v4830_v41 = vrot.slane %v4823_v25, %v11746_v60  ;;  %v4862_v31 = vcombine.low %v4847_v46, %v4854_v39  ;;  %v1488_v61 = vcombine.high %v784_v6, %v784_v6 }
 0x1df   : > { %v5836_v10 = vpack.c.bf16 %v5490_v35, %v5490_v35  ;;  %v5966_v23 = vunpack.c.l.b16 %v5838_v33  ;;  %v5497_v32 = vmax.f32 %v5495_v30, %v5496_v12  ;;  %v1495_v57 = vrot.slane %v784_v6, %v11746_v60 }
 0x1e0   : > { %v5746_v22 = vrot.slane %v5745_v29, 2  ;;  %v4838_v59 = vcombine.low %v4830_v41, %v4837_v45  ;;  %v4869_v13 = vrot.slane %v4862_v31, %v11746_v60  ;;  %v1502_v42 = vrot.slane %v1488_v61, %v11746_v60 }
 0x1e1   : > { %v722_v49 = vmul.f32 %v12117_v38, %v11738_v50  ;;  %v5837_v3 = vpack.c.bf16 %v5497_v32, %v5497_v32  ;;  %v1503_v17 = vcombine.high %v1495_v57, %v1495_v57  ;;  %v1511_v14 = vrot.slane %v1495_v57, %v11746_v60 }
 0x1e2   : > { %v5747_v8 = vmax.f32 %v5745_v29, %v5746_v22  ;;  %v5964_v26 = vunpack.c.l.b16 %v5836_v10  ;;  %v4877_v53 = vcombine.low %v4869_v13, %v4876_v40  ;;  %v5729_v33 = vsel %vm5371_vm1, %v4838_v59, -inf  ;;  %v12521_v10 = vpop.f32.mrb[20].mxu0 }
 0x1e3   : > { %v1504_v30 = vcombine.high %v1502_v42, %v1502_v42  ;;  %v5965_v63 = vunpack.c.l.b16 %v5837_v3  ;;  %v5730_v45 = vrot.slane %v5729_v33, 4  ;;  %v1525_v35 = vrot.slane %v1503_v17, %v11746_v60 }
 0x1e4   : > { %v5748_v46 = vrot.slane %v5747_v8, 1  ;;  %v5736_v25 = vsel %vm5371_vm1, %v4877_v53, -inf  ;;  %v1533_v38 = vcombine.high %v1511_v14, %v1511_v14  ;;  %v766_v22 = vadd.f32 %v11740_v51, %v722_v49 }
 0x1e5   : > { %v1532_v39 = vrot.slane %v1504_v30, %v11746_v60  ;;  %v6030_v6 = vsel %vm6012_vm2, %v5965_v63, %v5964_v26  ;;  %v5731_v29 = vmax.f32 %v5729_v33, %v5730_v45  ;;  %v5737_v40 = vrot.slane %v5736_v25, 4 }
 0x1e6   : > { %v5749_v12 = vmax.f32 %v5747_v8, %v5748_v46  ;;  %v12524_v41 = vsel %vm6014_vm3, %v5966_v23, %v6030_v6  ;;  %v1518_v31 = vrot.slane %v1502_v42, %v11746_v60  ;;  %v1535_v61 = vcombine.high %v1525_v35, %v1525_v35 }
 0x1e7   : > { %v3630_v32 = vcombine.low %v1525_v35, %v1533_v38  ;;  %v5834_v57 = vpack.c.bf16 %v5476_v37, %v5476_v37  ;;  %v5732_v59 = vrot.slane %v5731_v29, 2  ;;  %v5738_v13 = vmax.f32 %v5736_v25, %v5737_v40 }
 0x1e8   : > { %v699_v49 = vmul.f32 %v11738_v50, %v12146_v56  ;;  %v10146_v3 = vcombine.high %v12460_v55, %v12466_v27  ;;  %v3613_v8 = vrot.slane %v1511_v14, %v11746_v60  ;;  %v3631_v17 = vcombine.low %v1535_v61, %v1518_v31  ;;  %v12536_v56 = vpop.f32.mrb[21].mxu0 }
 0x1e9   : > { %v806_v26 = vmax.f32 %v766_v22, 0.0  ;;  %v5873_v53 = vpack.c.bf16 %v5749_v12, %v5749_v12  ;;  %v5733_v23 = vmax.f32 %v5731_v29, %v5732_v59  ;;  %v5739_v33 = vrot.slane %v5738_v13, 2 }
 0x1ea   : > { %v3652_v42 = vrot.slane %v1532_v39, %v11746_v60  ;;  %v3638_v30 = vrot.slane %v3630_v32, %v11746_v60  ;;  %v3645_v37 = vrot.slane %v3631_v17, %v11746_v60  ;;  %v12538_v45 = vunpack.c.l.b16 %v5834_v57 }
 0x1eb   : > { %v2566_v63 = vcombine.high %v806_v26, %v806_v26  ;;  %v2573_v46 = vrot.slane %v806_v26, %v11746_v60  ;;  %v5734_v55 = vrot.slane %v5733_v23, 1  ;;  %v5740_v27 = vmax.f32 %v5738_v13, %v5739_v33 }
 0x1ec   : > { %v743_v14 = vadd.f32 %v11740_v51, %v699_v49  ;;  %v3653_v35 = vcombine.low %v3638_v30, %v3645_v37  ;;  %v10130_v25 = vcombine.high %v1518_v31, %v1532_v39  ;;  %v12543_v6 = vrot.slane %v10146_v3, %v11746_v60 }
 0x1ed   : > { %v2581_v38 = vcombine.high %v2573_v46, %v2573_v46  ;;  %v2589_v22 = vrot.slane %v2573_v46, %v11746_v60  ;;  %v12546_v12 = vrot.slane %v3613_v8, %v11746_v60  ;;  %v2580_v29 = vrot.slane %v2566_v63, %v11746_v60 }
 0x1ee   : > { %v783_v40 = vmax.f32 %v743_v14, 0.0  ;;  %v12549_v61 = vunpack.c.l.b16 %v5873_v53  ;;  %v3660_v32 = vrot.slane %v3653_v35, %v11746_v60  ;;  %v3667_v57 = vrot.slane %v3652_v42, %v11746_v60 }
 0x1ef   : > { %v2603_v39 = vrot.slane %v2581_v38, %v11746_v60  ;;  %v12554_v31 = vmax.f32 %v5733_v23, %v5734_v55  ;;  %v5741_v59 = vrot.slane %v5740_v27, 1  ;;  %v12557_v13 = vrot.slane %v2580_v29, %v11746_v60 }
 0x1f0   : > { %14643 = vst [vmem:[#allocation15_spill] sm:$0xff] %v12549_v61  ;;  %v1439_v49 = vcombine.high %v783_v40, %v783_v40  ;;  %v3668_v3 = vcombine.low %v3660_v32, %v3667_v57  ;;  %v12560_v8 = vrot.slane %v10130_v25, %v11746_v60  ;;  %v1446_v26 = vrot.slane %v783_v40, %v11746_v60 }
 0x1f1   : > { %v4995_v17 = vcombine.low %v2589_v22, %v2603_v39  ;;  %v10147_v53 = vcombine.high %v2589_v22, %v2603_v39  ;;  %v5017_v33 = vrot.slane %v12557_v13, %v11746_v60  ;;  %v1438_v23 = vcombine.high %v12405_v34, %v12405_v34 }
 0x1f2   : > { %v721_v42 = vmul.f32 %v11738_v50, %v12167_v7  ;;  %v5519_v30 = vsel %vm5371_vm1, %v3668_v3, -inf  ;;  %v2582_v37 = vcombine.high %v2580_v29, %v2580_v29  ;;  %v1453_v46 = vrot.slane %v1439_v49, %v11746_v60 }
 0x1f3   : > { %v5003_v63 = vrot.slane %v4995_v17, %v11746_v60  ;;  %v12572_v55 = vmax.f32 %v5740_v27, %v5741_v59  ;;  %v5871_v14 = vpack.c.bf16 %v12554_v31, %v12554_v31  ;;  %v5520_v35 = vrot.slane %v5519_v30, 4 }
 0x1f4   : > { %v5010_v25 = vrot.slane %v10147_v53, %v11746_v60  ;;  %v5032_v34 = vrot.slane %v5017_v33, %v11746_v60  ;;  %v1454_v38 = vcombine.high %v1446_v26, %v1446_v26  ;;  %v1455_v22 = vcombine.high %v1453_v46, %v1453_v46 }
 0x1f5   : > { %v1462_v7 = vrot.slane %v1446_v26, %v11746_v60  ;;  %v5521_v40 = vmax.f32 %v5519_v30, %v5520_v35  ;;  %v1469_v32 = vrot.slane %v1453_v46, %v11746_v60  ;;  %v765_v57 = vadd.f32 %v11740_v51, %v721_v42 }
 0x1f6   : > { %v5018_v29 = vcombine.low %v5003_v63, %v5010_v25  ;;  %v1476_v27 = vrot.slane %v1454_v38, %v11746_v60  ;;  %v1483_v39 = vrot.slane %v1455_v22, %v11746_v60  ;;  %v12584_v17 = vrot.slane %v2582_v37, %v11746_v60 }
 0x1f7   : > { %v1484_v59 = vcombine.high %v1462_v7, %v1462_v7  ;;  %v3552_v49 = vcombine.low %v1438_v23, %v1462_v7  ;;  %v5522_v3 = vrot.slane %v5521_v40, 2  ;;  %v805_v33 = vmax.f32 %v765_v57, 0.0 }
 0x1f8   : > { %v5025_v53 = vrot.slane %v5018_v29, %v11746_v60  ;;  %v1486_v26 = vcombine.high %v1476_v27, %v1476_v27  ;;  %v3591_v46 = vcombine.low %v1469_v32, %v1483_v39  ;;  %v10129_v25 = vcombine.high %v1469_v32, %v1483_v39 }
 0x1f9   : > { %v3553_v30 = vcombine.low %v1476_v27, %v1484_v59  ;;  %v3560_v63 = vrot.slane %v3552_v49, %v11746_v60  ;;  %v2517_v38 = vcombine.high %v805_v33, %v805_v33  ;;  %v2524_v7 = vrot.slane %v805_v33, %v11746_v60 }
 0x1fa   : > { %v5033_v35 = vcombine.low %v5025_v53, %v5032_v34  ;;  %v3574_v22 = vrot.slane %v1486_v26, %v11746_v60  ;;  %v3599_v37 = vrot.slane %v3591_v46, %v11746_v60  ;;  %v3606_v57 = vrot.slane %v10129_v25, %v11746_v60 }
 0x1fb   : > { %v3567_v23 = vrot.slane %v3553_v30, %v11746_v60  ;;  %v2531_v27 = vrot.slane %v2517_v38, %v11746_v60  ;;  %v702_v59 = vmul.f32 %v12194_v19, %v11738_v50  ;;  %v5523_v34 = vmax.f32 %v5521_v40, %v5522_v3 }
 0x1fc   : > { %v5764_v29 = vsel %vm5371_vm1, %v5033_v35, -inf  ;;  %v2532_v49 = vcombine.high %v2524_v7, %v2524_v7  ;;  %v3589_v53 = vrot.slane %v3574_v22, %v11746_v60  ;;  %v3614_v26 = vcombine.low %v3599_v37, %v3606_v57 }
 0x1fd   : > { %v5765_v32 = vrot.slane %v5764_v29, 4  ;;  %v3575_v39 = vcombine.low %v3560_v63, %v3567_v23  ;;  %v2533_v30 = vcombine.high %v2531_v27, %v2531_v27  ;;  %v2540_v46 = vrot.slane %v2524_v7, %v11746_v60 }
 0x1fe   : > { %v2547_v25 = vrot.slane %v2531_v27, %v11746_v60  ;;  %v2554_v38 = vrot.slane %v2532_v49, %v11746_v60  ;;  %v3621_v40 = vrot.slane %v3614_v26, %v11746_v60  ;;  %v746_v27 = vadd.f32 %v11740_v51, %v702_v59  ;;  %v11431_v26 = vld [vmem:[%s14614_s2 + $0x40] sm:$0xff]  }
 0x1ff   : > { %v5766_v33 = vmax.f32 %v5764_v29, %v5765_v32  ;;  %v3582_v35 = vrot.slane %v3575_v39, %v11746_v60  ;;  %v2561_v3 = vrot.slane %v2533_v30, %v11746_v60  ;;  %v2562_v63 = vcombine.high %v2540_v46, %v2540_v46  ;;  %10921 = vmatprep.subr.bf16.mxu1 %v11431_v26 }
 0x200   : > { %v2563_v37 = vcombine.high %v2547_v25, %v2547_v25  ;;  %v2564_v57 = vcombine.high %v2554_v38, %v2554_v38  ;;  %v3629_v7 = vcombine.low %v3621_v40, %v12546_v12  ;;  %v4918_v32 = vcombine.low %v2540_v46, %v2554_v38  ;;  %10922 = vmatpush3.bf16.msra.mxu1 %v11431_v26 }
 0x201   : > { %v5767_v23 = vrot.slane %v5766_v33, 2  ;;  %v3590_v22 = vcombine.low %v3582_v35, %v3589_v53  ;;  %v2565_v29 = vcombine.high %v2561_v3, %v2561_v3  ;;  %v5524_v39 = vrot.slane %v5523_v34, 1 }
 0x202   : > { %v4939_v19 = vrot.slane %v2562_v63, %v11746_v60  ;;  %v4956_v42 = vcombine.low %v2564_v57, %v2547_v25  ;;  %v5512_v53 = vsel %vm5371_vm1, %v3629_v7, -inf  ;;  %v4932_v35 = vrot.slane %v4918_v32, %v11746_v60 }
 0x203   : > { %v5505_v49 = vsel %vm5371_vm1, %v3590_v22, -inf  ;;  %v4957_v12 = vcombine.low %v2561_v3, %v2563_v37  ;;  %v5768_v40 = vmax.f32 %v5766_v33, %v5767_v23  ;;  %v5513_v46 = vrot.slane %v5512_v53, 4 }
 0x204   : > { %v5506_v30 = vrot.slane %v5505_v49, 4  ;;  %v4954_v59 = vrot.slane %v4939_v19, %v11746_v60  ;;  %v4964_v38 = vrot.slane %v4956_v42, %v11746_v60  ;;  %v4940_v25 = vcombine.low %v12543_v6, %v4932_v35  ;;  %v11432_v42 = vld [vmem:[%s14614_s2 + $0x48] sm:$0xff]  }
 0x205   : > { %v4971_v63 = vrot.slane %v4957_v12, %v11746_v60  ;;  %v4978_v57 = vrot.slane %v2565_v29, %v11746_v60  ;;  %v12625_v7 = vunpack.c.l.b16 %v5871_v14  ;;  %v5514_v33 = vmax.f32 %v5512_v53, %v5513_v46  ;;  %10923 = vmatprep.subr.bf16.mxu1 %v11432_v42  ;;  %v11433_v46 = vld [vmem:[%s14614_s2 + $0x50] sm:$0xff]  }
 0x206   : > { %v5507_v22 = vmax.f32 %v5505_v49, %v5506_v30  ;;  %v786_v3 = vmax.f32 %v746_v27, 0.0  ;;  %v724_v19 = vmul.f32 %v12236_v16, %v11738_v50  ;;  %v4947_v23 = vrot.slane %v4940_v25, %v11746_v60  ;;  %10924 = vmatpush3.bf16.msra.mxu1 %v11432_v42 }
 0x207   : > { %14644 = vst [vmem:[#allocation16_spill] sm:$0xff] %v12625_v7  ;;  %v4979_v37 = vcombine.low %v4964_v38, %v4971_v63  ;;  %v4993_v29 = vrot.slane %v4978_v57, %v11746_v60  ;;  %v5525_v32 = vmax.f32 %v5523_v34, %v5524_v39  ;;  %v5515_v49 = vrot.slane %v5514_v33, 2  ;;  %10925 = vmatprep.subr.bf16.mxu1 %v11433_v46 }
 0x208   : > { %v5508_v6 = vrot.slane %v5507_v22, 2  ;;  %v1586_v31 = vcombine.high %v786_v3, %v786_v3  ;;  %v1593_v14 = vrot.slane %v786_v3, %v11746_v60  ;;  %v5769_v27 = vrot.slane %v5768_v40, 1 }
 0x209   : > { %v4955_v30 = vcombine.low %v4947_v23, %v4954_v59  ;;  %v4986_v16 = vrot.slane %v4979_v37, %v11746_v60  ;;  %v14645_v53 = vcombine.high %v12557_v13, %v12557_v13  ;;  %v5516_v12 = vmax.f32 %v5514_v33, %v5515_v49 }
 0x20a   : > { %v5509_v26 = vmax.f32 %v5507_v22, %v5508_v6  ;;  %v1600_v34 = vrot.slane %v1586_v31, %v11746_v60  ;;  %v1601_v39 = vcombine.high %v1593_v14, %v1593_v14  ;;  %v768_v25 = vadd.f32 %v11740_v51, %v724_v19  ;;  %10926 = vmatpush3.bf16.msra.mxu1 %v11433_v46  ;;  %v11434_v19 = vld [vmem:[%s14614_s2 + $0x58] sm:$0xff]  }
 0x20b   : > { %v12640_v35 = vcombine.low %v12584_v17, %v14645_v53  ;;  %v4994_v22 = vcombine.low %v4986_v16, %v4993_v29  ;;  %v5750_v59 = vsel %vm5371_vm1, %v4955_v30, -inf  ;;  %v5841_v63 = vpack.c.bf16 %v5525_v32, %v5525_v32  ;;  %10927 = vmatprep.subr.bf16.mxu1 %v11434_v19 }
 0x20c   : > { %v5510_v38 = vrot.slane %v5509_v26, 1  ;;  %v5517_v57 = vrot.slane %v5516_v12, 1  ;;  %v5751_v13 = vrot.slane %v5750_v59, 4  ;;  %v12649_v3 = vrot.slane %v1600_v34, %v11746_v60 }
 0x20d   : > { %v5770_v33 = vmax.f32 %v5768_v40, %v5769_v27  ;;  %v1609_v6 = vrot.slane %v1593_v14, %v11746_v60  ;;  %v1623_v23 = vrot.slane %v1601_v39, %v11746_v60  ;;  %v5757_v49 = vsel %vm5371_vm1, %v4994_v22, -inf }
 0x20e   : > { %v5511_v42 = vmax.f32 %v5509_v26, %v5510_v38  ;;  %v5518_v37 = vmax.f32 %v5516_v12, %v5517_v57  ;;  %v5752_v29 = vmax.f32 %v5750_v59, %v5751_v13  ;;  %v1602_v31 = vcombine.high %v1600_v34, %v1600_v34  ;;  %10928 = vmatpush3.bf16.msra.mxu1 %v11434_v19 }
 0x20f   : > { %v3747_v30 = vcombine.low %v1609_v6, %v1623_v23  ;;  %v10131_v16 = vcombine.high %v1609_v6, %v1623_v23  ;;  %v808_v53 = vmax.f32 %v768_v25, 0.0  ;;  %v5969_v40 = vunpack.c.l.b16 %v5841_v63 }
 0x210   : > { %v5839_v32 = vpack.c.bf16 %v5511_v42, %v5511_v42  ;;  %v5840_v27 = vpack.c.bf16 %v5518_v37, %v5518_v37  ;;  %v5753_v26 = vrot.slane %v5752_v29, 2  ;;  %v3769_v14 = vrot.slane %v12649_v3, %v11746_v60 }
 0x211   : > { %v5876_v12 = vpack.c.bf16 %v5770_v33, %v5770_v33  ;;  %v3755_v46 = vrot.slane %v3747_v30, %v11746_v60  ;;  %v3762_v34 = vrot.slane %v10131_v16, %v11746_v60  ;;  %v5758_v59 = vrot.slane %v5757_v49, 4 }
 0x212   : > { %v5967_v39 = vunpack.c.l.b16 %v5839_v32  ;;  %v5968_v38 = vunpack.c.l.b16 %v5840_v27  ;;  %v5754_v22 = vmax.f32 %v5752_v29, %v5753_v26  ;;  %v12662_v57 = vrot.slane %v1602_v31, %v11746_v60 }
 0x213   : > { %v3770_v63 = vcombine.low %v3755_v46, %v3762_v34  ;;  %v2664_v13 = vcombine.high %v808_v53, %v808_v53  ;;  %v2671_v42 = vrot.slane %v808_v53, %v11746_v60  ;;  %v3784_v23 = vrot.slane %v3769_v14, %v11746_v60 }
 0x214   : > { %v6032_v25 = vsel %vm6016_vm4, %v5967_v39, %v12524_v41  ;;  %v5755_v6 = vrot.slane %v5754_v22, 1  ;;  %v701_v37 = vmul.f32 %v11738_v50, %v12255_v9  ;;  %v1632_v41 = vcombine.high %v12649_v3, %v12649_v3 }
 0x215   : > { %v6033_v33 = vsel %vm6018_vm5, %v5968_v38, %v6032_v25  ;;  %v3777_v29 = vrot.slane %v3770_v63, %v11746_v60  ;;  %v2678_v31 = vrot.slane %v2664_v13, %v11746_v60  ;;  %v2679_v19 = vcombine.high %v2671_v42, %v2671_v42 }
 0x216   : > { %v12674_v32 = vrot.slane %v2671_v42, %v11746_v60  ;;  %v745_v30 = vadd.f32 %v11740_v51, %v701_v37  ;;  %v12680_v16 = vsel %vm6020_vm6, %v5969_v40, %v6033_v33  ;;  %v723_v53 = vmul.f32 %v11738_v50, %v12288_v20 }
 0x217   : > { %v12684_v9 = vmax.f32 %v5754_v22, %v5755_v6  ;;  %v3785_v27 = vcombine.low %v3777_v29, %v3784_v23  ;;  %v2680_v26 = vcombine.high %v2678_v31, %v2678_v31  ;;  %v2701_v14 = vrot.slane %v2679_v19, %v11746_v60 }
 0x218   : > { %v14646_v39 = vpack.c.bf16 %v12572_v55, %v12572_v55  ;;  %v2709_v3 = vcombine.high %v12674_v32, %v12674_v32  ;;  %v785_v34 = vmax.f32 %v745_v30, 0.0  ;;  %v767_v40 = vadd.f32 %v11740_v51, %v723_v53 }
 0x219   : > { %v5540_v38 = vsel %vm5371_vm1, %v3785_v27, -inf  ;;  %v12697_v20 = vrot.slane %v2678_v31, %v11746_v60  ;;  %v12700_v22 = vrot.slane %v2680_v26, %v11746_v60  ;;  %v2711_v25 = vcombine.high %v2701_v14, %v2701_v14 }
 0x21a   : > { %v12690_v46 = vunpack.c.l.b16 %v14646_v39  ;;  %v12702_v63 = vunpack.c.l.b16 %v5876_v12  ;;  %v12704_v55 = vmax.f32 %v5757_v49, %v5758_v59  ;;  %v5541_v13 = vrot.slane %v5540_v38, 4 }
 0x21b   : > { %v1537_v42 = vcombine.high %v785_v34, %v785_v34  ;;  %v12709_v6 = vcombine.low %v12662_v57, %v1632_v41  ;;  %v12711_v23 = vcombine.low %v2701_v14, %v2709_v3  ;;  %v1544_v37 = vrot.slane %v785_v34, %v11746_v60 }
 0x21c   : > { %14647 = vst [vmem:[#allocation17_spill] sm:$0xff] %v12690_v46  ;;  %14648 = vst [vmem:[#allocation18_spill] sm:$0xff] %v12702_v63  ;;  %v5542_v29 = vmax.f32 %v5540_v38, %v5541_v13  ;;  %v807_v19 = vmax.f32 %v767_v40, 0.0  ;;  %v2614_v49 = vcombine.high %v12584_v17, %v12584_v17  ;;  %v12718_v12 = vrot.slane %v2711_v25, %v11746_v60  ;;  %v11435_v40 = vld [vmem:[%s14614_s2 + $0x60] sm:$0xff]  }
 0x21d   : > { %v1551_v31 = vrot.slane %v1537_v42, %v11746_v60  ;;  %v5151_v59 = vcombine.low %v12697_v20, %v12700_v22  ;;  %v1552_v30 = vcombine.high %v1544_v37, %v1544_v37  ;;  %v1560_v26 = vrot.slane %v1544_v37, %v11746_v60  ;;  %v11436_v37 = vld [vmem:[%s14614_s2 + $0x68] sm:$0xff]   ;;  %10929 = vmatprep.subr.bf16.mxu1 %v11435_v40 }
 0x21e   : > { %v5543_v53 = vrot.slane %v5542_v29, 2  ;;  %v2615_v3 = vcombine.high %v807_v19, %v807_v19  ;;  %v2622_v34 = vrot.slane %v807_v19, %v11746_v60  ;;  %10930 = vmatpush3.bf16.msra.mxu1 %v11435_v40 }
 0x21f   : > { %v1553_v27 = vcombine.high %v1551_v31, %v1551_v31  ;;  %v1567_v14 = vrot.slane %v1551_v31, %v11746_v60  ;;  %v1574_v17 = vrot.slane %v1552_v30, %v11746_v60  ;;  %v1582_v13 = vcombine.high %v1560_v26, %v1560_v26  ;;  %10931 = vmatprep.subr.bf16.mxu1 %v11436_v37 }
 0x220   : > { %v5544_v38 = vmax.f32 %v5542_v29, %v5543_v53  ;;  %v2629_v30 = vrot.slane %v2615_v3, %v11746_v60  ;;  %v2630_v41 = vcombine.high %v2622_v34, %v2622_v34  ;;  %v2638_v46 = vrot.slane %v2622_v34, %v11746_v60 }
 0x221   : > { %v1581_v25 = vrot.slane %v1553_v27, %v11746_v60  ;;  %v1583_v42 = vcombine.high %v1567_v14, %v1567_v14  ;;  %v1584_v31 = vcombine.high %v1574_v17, %v1574_v17  ;;  %v3670_v33 = vcombine.low %v1560_v26, %v1574_v17  ;;  %v11437_v26 = vld [vmem:[%s14614_s2 + $0x70] sm:$0xff]  }
 0x222   : > { %v5545_v19 = vrot.slane %v5544_v38, 1  ;;  %v3691_v63 = vrot.slane %v1582_v13, %v11746_v60  ;;  %v2631_v27 = vcombine.high %v2629_v30, %v2629_v30  ;;  %v12747_v3 = vrot.slane %v5151_v59, %v11746_v60  ;;  %10932 = vmatpush3.bf16.msra.mxu1 %v11436_v37 }
 0x223   : > { %v1585_v39 = vcombine.high %v1581_v25, %v1581_v25  ;;  %v3709_v61 = vcombine.low %v1581_v25, %v1583_v42  ;;  %v3684_v29 = vrot.slane %v3670_v33, %v11746_v60  ;;  %v3708_v53 = vcombine.low %v1584_v31, %v1567_v14  ;;  %10933 = vmatprep.subr.bf16.mxu1 %v11437_v26 }
 0x224   : > { %v2645_v34 = vrot.slane %v2629_v30, %v11746_v60  ;;  %v2652_v13 = vrot.slane %v2630_v41, %v11746_v60  ;;  %v12755_v42 = vmax.f32 %v5544_v38, %v5545_v19  ;;  %v3706_v31 = vrot.slane %v3691_v63, %v11746_v60  ;;  %v11438_v41 = vld [vmem:[%s14614_s2 + $0x78] sm:$0xff]  }
 0x225   : > { %v3723_v25 = vrot.slane %v3709_v61, %v11746_v60  ;;  %v3730_v40 = vrot.slane %v1585_v39, %v11746_v60  ;;  %v3692_v33 = vcombine.low %v12560_v8, %v3684_v29  ;;  %v3716_v14 = vrot.slane %v3708_v53, %v11746_v60 }
 0x226   : > { %v2659_v17 = vrot.slane %v2631_v27, %v11746_v60  ;;  %v5035_v59 = vcombine.low %v2614_v49, %v2638_v46  ;;  %v2661_v39 = vcombine.high %v2645_v34, %v2645_v34  ;;  %v5042_v8 = vrot.slane %v12640_v35, %v11746_v60  ;;  %10934 = vmatpush3.bf16.msra.mxu1 %v11437_v26 }
 0x227   : > { %v3699_v61 = vrot.slane %v3692_v33, %v11746_v60  ;;  %v3731_v7 = vcombine.low %v3716_v14, %v3723_v25  ;;  %v3745_v38 = vrot.slane %v3730_v40, %v11746_v60  ;;  %v5056_v49 = vrot.slane %v2652_v13, %v11746_v60  ;;  %10935 = vmatprep.subr.bf16.mxu1 %v11438_v41 }
 0x228   : > { %v2663_v30 = vcombine.high %v2659_v17, %v2659_v17  ;;  %v5049_v63 = vrot.slane %v5035_v59, %v11746_v60  ;;  %v10148_v29 = vcombine.high %v2638_v46, %v2652_v13  ;;  %v5074_v53 = vcombine.low %v2645_v34, %v2659_v17 }
 0x229   : > { %v3707_v37 = vcombine.low %v3699_v61, %v3706_v31  ;;  %v3738_v19 = vrot.slane %v3731_v7, %v11746_v60  ;;  %v5071_v35 = vrot.slane %v5056_v49, %v11746_v60  ;;  %v5095_v25 = vrot.slane %v2661_v39, %v11746_v60  ;;  %v11439_v7 = vld [vmem:[%s14614_s2] sm:$0xff]  }
 0x22a   : > { %v5057_v27 = vcombine.low %v5042_v8, %v5049_v63  ;;  %v5112_v33 = vcombine.low %v2663_v30, %v12674_v32  ;;  %v5081_v59 = vrot.slane %v10148_v29, %v11746_v60  ;;  %v5088_v54 = vrot.slane %v5074_v53, %v11746_v60  ;;  %10936 = vmatpush3.bf16.msra.mxu1 %v11438_v41 }
 0x22b   : > { %v3746_v14 = vcombine.low %v3738_v19, %v3745_v38  ;;  %v5526_v40 = vsel %vm5371_vm1, %v3707_v37, -inf  ;;  %v5110_v34 = vrot.slane %v5095_v25, %v11746_v60  ;;  %v704_v31 = vmul.f32 %v12321_v44, %v11738_v50  ;;  %10945 = vmatprep.subr.bf16.mxu1 %v11439_v7 }
 0x22c   : > { %v5527_v46 = vrot.slane %v5526_v40, 4  ;;  %v5064_v17 = vrot.slane %v5057_v27, %v11746_v60  ;;  %v5120_v32 = vrot.slane %v5112_v33, %v11746_v60  ;;  %v5096_v13 = vcombine.low %v5081_v59, %v5088_v54 }
 0x22d   : > { %v5533_v26 = vsel %vm5371_vm1, %v3746_v14, -inf  ;;  %v726_v61 = vmul.f32 %v12368_v43, %v11738_v50  ;;  %v14649_v30 = vrot.slane %v12711_v23, %v11746_v60  ;;  %v5844_v49 = vpack.c.bf16 %v12755_v42, %v12755_v42 }
 0x22e   : > { %v5528_v39 = vmax.f32 %v5526_v40, %v5527_v46  ;;  %v5534_v8 = vrot.slane %v5533_v26, 4  ;;  %v5072_v38 = vcombine.low %v5064_v17, %v5071_v35  ;;  %v14650_v54 = vcombine.high %v12697_v20, %v12700_v22 }
 0x22f   : > { %v5135_v63 = vcombine.low %v5120_v32, %v14649_v30  ;;  %v5103_v44 = vrot.slane %v5096_v13, %v11746_v60  ;;  %v748_v43 = vadd.f32 %v11740_v51, %v704_v31  ;;  %v770_v25 = vadd.f32 %v11740_v51, %v726_v61 }
 0x230   : > { %v12795_v37 = vrot.slane %v14650_v54, %v11746_v60  ;;  %v5529_v19 = vrot.slane %v5528_v39, 2  ;;  %v5535_v29 = vmax.f32 %v5533_v26, %v5534_v8  ;;  %v5771_v41 = vsel %vm5371_vm1, %v5072_v38, -inf }
 0x231   : > { %v5142_v23 = vrot.slane %v5135_v63, %v11746_v60  ;;  %v5111_v53 = vcombine.low %v5103_v44, %v5110_v34  ;;  %v5772_v27 = vrot.slane %v5771_v41, 4  ;;  %v788_v35 = vmax.f32 %v748_v43, 0.0 }
 0x232   : > { %v5530_v33 = vmax.f32 %v5528_v39, %v5529_v19  ;;  %v5536_v20 = vrot.slane %v5535_v29, 2  ;;  %v14651_v22 = vrot.slane %v12718_v12, %v11746_v60  ;;  %v703_v40 = vmul.f32 %v11738_v50, %v12388_v0 }
 0x233   : > { %v5773_v59 = vmax.f32 %v5771_v41, %v5772_v27  ;;  %v5778_v7 = vsel %vm5371_vm1, %v5111_v53, -inf  ;;  %v1684_v46 = vcombine.high %v788_v35, %v788_v35  ;;  %v1691_v17 = vrot.slane %v788_v35, %v11746_v60 }
 0x234   : > { %v5150_v14 = vcombine.low %v5142_v23, %v14651_v22  ;;  %v5531_v34 = vrot.slane %v5530_v33, 1  ;;  %v5537_v32 = vmax.f32 %v5535_v29, %v5536_v20  ;;  %v5779_v26 = vrot.slane %v5778_v7, 4 }
 0x235   : > { %v5774_v31 = vrot.slane %v5773_v59, 2  ;;  %v1698_v12 = vrot.slane %v1684_v46, %v11746_v60  ;;  %v1699_v39 = vcombine.high %v1691_v17, %v1691_v17  ;;  %v12812_v30 = vrot.slane %v1691_v17, %v11746_v60 }
 0x236   : > { %v5785_v13 = vsel %vm5371_vm1, %v5150_v14, -inf  ;;  %v5532_v8 = vmax.f32 %v5530_v33, %v5531_v34  ;;  %v5538_v38 = vrot.slane %v5537_v32, 1  ;;  %v5780_v0 = vmax.f32 %v5778_v7, %v5779_v26 }
 0x237   : > { %v5786_v61 = vrot.slane %v5785_v13, 4  ;;  %v5775_v63 = vmax.f32 %v5773_v59, %v5774_v31  ;;  %v1700_v54 = vcombine.high %v1698_v12, %v1698_v12  ;;  %v1714_v44 = vrot.slane %v1698_v12, %v11746_v60 }
 0x238   : > { %v810_v43 = vmax.f32 %v770_v25, 0.0  ;;  %v5539_v19 = vmax.f32 %v5537_v32, %v5538_v38  ;;  %v5842_v29 = vpack.c.bf16 %v5532_v8, %v5532_v8  ;;  %v5781_v23 = vrot.slane %v5780_v0, 2 }
 0x239   : > { %v1721_v41 = vrot.slane %v1699_v39, %v11746_v60  ;;  %v5776_v53 = vrot.slane %v5775_v63, 1  ;;  %v1728_v27 = vrot.slane %v1700_v54, %v11746_v60  ;;  %v1729_v35 = vcombine.high %v12812_v30, %v12812_v30 }
 0x23a   : > { %v747_v33 = vadd.f32 %v11740_v51, %v703_v40  ;;  %v5970_v20 = vunpack.c.l.b16 %v5842_v29  ;;  %v5782_v22 = vmax.f32 %v5780_v0, %v5781_v23  ;;  %v12820_v14 = vmax.f32 %v5785_v13, %v5786_v61 }
 0x23b   : > { %v1731_v59 = vcombine.high %v1721_v41, %v1721_v41  ;;  %v5843_v7 = vpack.c.bf16 %v5539_v19, %v5539_v19  ;;  %v5777_v25 = vmax.f32 %v5775_v63, %v5776_v53  ;;  %v3903_v46 = vcombine.low %v1714_v44, %v1728_v27 }
 0x23c   : > { %v10133_v17 = vcombine.high %v1714_v44, %v1728_v27  ;;  %v12825_v32 = vsel %vm6022_vm7, %v5970_v20, %v12680_v16  ;;  %v5783_v26 = vrot.slane %v5782_v22, 1  ;;  %v12827_v31 = vcombine.low %v1721_v41, %v1729_v35 }
 0x23d   : > { %v14652_v40 = vpack.c.bf16 %v12684_v9, %v12684_v9  ;;  %v5877_v61 = vpack.c.bf16 %v5777_v25, %v5777_v25  ;;  %v12837_v39 = vrot.slane %v1731_v59, %v11746_v60  ;;  %v12840_v8 = vrot.slane %v3903_v46, %v11746_v60 }
 0x23e   : > { %v12843_v16 = vrot.slane %v10133_v17, %v11746_v60  ;;  %v2762_v38 = vcombine.high %v810_v43, %v810_v43  ;;  %v2769_v0 = vrot.slane %v810_v43, %v11746_v60  ;;  %v12849_v9 = vunpack.c.l.b16 %v5844_v49 }
 0x23f   : > { %v12832_v12 = vunpack.c.l.b16 %v14652_v40  ;;  %v12851_v63 = vunpack.c.l.b16 %v5843_v7  ;;  %v787_v44 = vmax.f32 %v747_v33, 0.0  ;;  %v12854_v19 = vmax.f32 %v5782_v22, %v5783_v26 }
 0x240   : > { %v3879_v29 = vrot.slane %v12827_v31, %v11746_v60  ;;  %v2776_v23 = vrot.slane %v2762_v38, %v11746_v60  ;;  %v2777_v41 = vcombine.high %v2769_v0, %v2769_v0  ;;  %v12859_v53 = vunpack.c.l.b16 %v5877_v61 }
 0x241   : > { %v1635_v49 = vcombine.high %v787_v44, %v787_v44  ;;  %v1642_v43 = vrot.slane %v787_v44, %v11746_v60  ;;  %v1634_v22 = vcombine.high %v12662_v57, %v12662_v57  ;;  %v2785_v46 = vrot.slane %v2769_v0, %v11746_v60 }
 0x242   : > { %v2778_v35 = vcombine.high %v2776_v23, %v2776_v23  ;;  %v2792_v33 = vrot.slane %v2776_v23, %v11746_v60  ;;  %v2799_v20 = vrot.slane %v2777_v41, %v11746_v60  ;;  %v3794_v44 = vrot.slane %v12709_v6, %v11746_v60 }
 0x243   : > { %v1649_v59 = vrot.slane %v1635_v49, %v11746_v60  ;;  %v1650_v7 = vcombine.high %v1642_v43, %v1642_v43  ;;  %v1658_v25 = vrot.slane %v1642_v43, %v11746_v60  ;;  %v2807_v57 = vcombine.high %v2785_v46, %v2785_v46 }
 0x244   : > { %v2806_v17 = vrot.slane %v2778_v35, %v11746_v60  ;;  %v2808_v26 = vcombine.high %v2792_v33, %v2792_v33  ;;  %v2809_v31 = vcombine.high %v2799_v20, %v2799_v20  ;;  %v725_v35 = vmul.f32 %v11738_v50, %v12417_v48 }
 0x245   : > { %v1651_v40 = vcombine.high %v1649_v59, %v1649_v59  ;;  %v1665_v61 = vrot.slane %v1649_v59, %v11746_v60  ;;  %v1672_v38 = vrot.slane %v1650_v7, %v11746_v60  ;;  %v3787_v0 = vcombine.low %v1634_v22, %v1658_v25 }
 0x246   : > { %v2810_v23 = vcombine.high %v2806_v17, %v2806_v17  ;;  %v5268_v41 = vcombine.low %v2809_v31, %v2792_v33  ;;  %v5269_v49 = vcombine.low %v2806_v17, %v2808_v26  ;;  %v5230_v34 = vcombine.low %v2785_v46, %v2799_v20 }
 0x247   : > { %v1679_v43 = vrot.slane %v1651_v40, %v11746_v60  ;;  %v1681_v54 = vcombine.high %v1665_v61, %v1665_v61  ;;  %v3808_v7 = vrot.slane %v1672_v38, %v11746_v60  ;;  %v3801_v6 = vrot.slane %v3787_v0, %v11746_v60 }
 0x248   : > { %v5276_v27 = vrot.slane %v5268_v41, %v11746_v60  ;;  %v5283_v59 = vrot.slane %v5269_v49, %v11746_v60  ;;  %v10132_v13 = vcombine.high %v1658_v25, %v1672_v38  ;;  %v12886_v17 = vrot.slane %v2807_v57, %v11746_v60 }
 0x249   : > { %v1683_v42 = vcombine.high %v1679_v43, %v1679_v43  ;;  %v3826_v33 = vcombine.low %v1665_v61, %v1679_v43  ;;  %v12889_v22 = vrot.slane %v2810_v23, %v11746_v60  ;;  %v3823_v48 = vrot.slane %v3808_v7, %v11746_v60 }
 0x24a   : > { %v3847_v20 = vrot.slane %v1681_v54, %v11746_v60  ;;  %v3809_v46 = vcombine.low %v3794_v44, %v3801_v6  ;;  %v3833_v26 = vrot.slane %v10132_v13, %v11746_v60  ;;  %v5878_v25 = vpack.c.bf16 %v12854_v19, %v12854_v19 }
 0x24b   : > { %v3840_v31 = vrot.slane %v3826_v33, %v11746_v60  ;;  %v3864_v40 = vcombine.low %v1683_v42, %v12812_v30  ;;  %v12899_v61 = vrot.slane %v5230_v34, %v11746_v60  ;;  %v12901_v38 = vcombine.low %v5276_v27, %v5283_v59 }
 0x24c   : > { %v769_v57 = vadd.f32 %v11740_v51, %v725_v35  ;;  %v3816_v23 = vrot.slane %v3809_v46, %v11746_v60  ;;  %v706_v13 = vmul.f32 %v12470_v36, %v11738_v50  ;;  %v3862_v34 = vrot.slane %v3847_v20, %v11746_v60 }
 0x24d   : > { %v3848_v54 = vcombine.low %v3833_v26, %v3840_v31  ;;  %v3872_v44 = vrot.slane %v3864_v40, %v11746_v60  ;;  %v14653_v7 = vcombine.low %v12747_v3, %v12795_v37 }
 0x24e   : > { %v809_v27 = vmax.f32 %v769_v57, 0.0  ;;  %v3824_v41 = vcombine.low %v3816_v23, %v3823_v48  ;;  %v750_v0 = vadd.f32 %v11740_v51, %v706_v13  ;;  %v14654_v57 = vrot.slane %v12837_v39, %v11746_v60 }
 0x24f   : > { %v3855_v49 = vrot.slane %v3848_v54, %v11746_v60  ;;  %v3887_v43 = vcombine.low %v3872_v44, %v3879_v29  ;;  %v5181_v6 = vrot.slane %v14653_v7, %v11746_v60 }
 0x250   : > { %v2713_v59 = vcombine.high %v809_v27, %v809_v27  ;;  %v2720_v36 = vrot.slane %v809_v27, %v11746_v60  ;;  %v5547_v48 = vsel %vm5371_vm1, %v3824_v41, -inf  ;;  %v790_v46 = vmax.f32 %v750_v0, 0.0 }
 0x251   : > { %v3863_v33 = vcombine.low %v3855_v49, %v3862_v34  ;;  %v3894_v20 = vrot.slane %v3887_v43, %v11746_v60  ;;  %v5548_v29 = vrot.slane %v5547_v48, 4 }
 0x252   : > { %v2727_v26 = vrot.slane %v2713_v59, %v11746_v60  ;;  %v2728_v31 = vcombine.high %v2720_v36, %v2720_v36  ;;  %v2736_v40 = vrot.slane %v2720_v36, %v11746_v60  ;;  %v1782_v3 = vcombine.high %v790_v46, %v790_v46 }
 0x253   : > { %v3902_v23 = vcombine.low %v3894_v20, %v14654_v57  ;;  %v5554_v54 = vsel %vm5371_vm1, %v3863_v33, -inf  ;;  %v1789_v37 = vrot.slane %v790_v46, %v11746_v60  ;;  %v5549_v44 = vmax.f32 %v5547_v48, %v5548_v29 }
 0x254   : > { %v5555_v13 = vrot.slane %v5554_v54, 4  ;;  %v2729_v34 = vcombine.high %v2727_v26, %v2727_v26  ;;  %v2743_v27 = vrot.slane %v2727_v26, %v11746_v60  ;;  %v2750_v49 = vrot.slane %v2728_v31, %v11746_v60 }
 0x255   : > { %v5561_v41 = vsel %vm5371_vm1, %v3902_v23, -inf  ;;  %v2758_v43 = vcombine.high %v2736_v40, %v2736_v40  ;;  %v5173_v0 = vrot.slane %v2736_v40, %v11746_v60  ;;  %v5550_v59 = vrot.slane %v5549_v44, 2 }
 0x256   : > { %v5556_v39 = vmax.f32 %v5554_v54, %v5555_v13  ;;  %v5562_v36 = vrot.slane %v5561_v41, 4  ;;  %v2757_v7 = vrot.slane %v2729_v34, %v11746_v60  ;;  %v2760_v33 = vcombine.high %v2750_v49, %v2750_v49 }
 0x257   : > { %v5188_v20 = vrot.slane %v5173_v0, %v11746_v60  ;;  %v5190_v48 = vcombine.low %v2750_v49, %v2758_v43  ;;  %v1796_v46 = vrot.slane %v1782_v3, %v11746_v60  ;;  %v5551_v29 = vmax.f32 %v5549_v44, %v5550_v59 }
 0x258   : > { %v5557_v26 = vrot.slane %v5556_v39, 2  ;;  %v5563_v57 = vmax.f32 %v5561_v41, %v5562_v36  ;;  %v5212_v23 = vrot.slane %v2757_v7, %v11746_v60  ;;  %v5191_v35 = vcombine.low %v2760_v33, %v2743_v27 }
 0x259   : > { %v5189_v31 = vcombine.low %v5181_v6, %v5188_v20  ;;  %v5198_v40 = vrot.slane %v5190_v48, %v11746_v60  ;;  %v10150_v42 = vcombine.high %v2743_v27, %v2757_v7  ;;  %v5552_v54 = vrot.slane %v5551_v29, 1 }
 0x25a   : > { %v5558_v13 = vmax.f32 %v5556_v39, %v5557_v26  ;;  %v5564_v30 = vrot.slane %v5563_v57, 2  ;;  %v705_v34 = vmul.f32 %v11738_v50, %v12497_v11  ;;  %v5205_v49 = vrot.slane %v5191_v35, %v11746_v60 }
 0x25b   : > { %v5237_v3 = vrot.slane %v10150_v42, %v11746_v60  ;;  %v5792_v44 = vsel %vm5371_vm1, %v5189_v31, -inf  ;;  %v1797_v41 = vcombine.high %v1789_v37, %v1789_v37  ;;  %v5553_v43 = vmax.f32 %v5551_v29, %v5552_v54 }
 0x25c   : > { %v5559_v0 = vrot.slane %v5558_v13, 1  ;;  %v5565_v6 = vmax.f32 %v5563_v57, %v5564_v30  ;;  %v5793_v59 = vrot.slane %v5792_v44, 4  ;;  %v5213_v36 = vcombine.low %v5198_v40, %v5205_v49 }
 0x25d   : > { %v5227_v27 = vrot.slane %v5212_v23, %v11746_v60  ;;  %v5252_v39 = vcombine.low %v5237_v3, %v12899_v61  ;;  %v1798_v7 = vcombine.high %v1796_v46, %v1796_v46  ;;  %v5845_v11 = vpack.c.bf16 %v5553_v43, %v5553_v43 }
 0x25e   : > { %v5560_v33 = vmax.f32 %v5558_v13, %v5559_v0  ;;  %v5566_v20 = vrot.slane %v5565_v6, 1  ;;  %v5794_v48 = vmax.f32 %v5792_v44, %v5793_v59  ;;  %v5220_v35 = vrot.slane %v5213_v36, %v11746_v60 }
 0x25f   : > { %v5259_v42 = vrot.slane %v5252_v39, %v11746_v60  ;;  %v1812_v26 = vrot.slane %v1796_v46, %v11746_v60  ;;  %v1819_v29 = vrot.slane %v1797_v41, %v11746_v60  ;;  %v5973_v57 = vunpack.c.l.b16 %v5845_v11 }
 0x260   : > { %v5567_v30 = vmax.f32 %v5565_v6, %v5566_v20  ;;  %v5795_v31 = vrot.slane %v5794_v48, 2  ;;  %v1805_v23 = vrot.slane %v1789_v37, %v11746_v60  ;;  %v12955_v61 = vunpack.c.l.b16 %v5878_v25 }
 0x261   : > { %v5228_v40 = vcombine.low %v5220_v35, %v5227_v27  ;;  %v14655_v54 = vrot.slane %v12886_v17, %v11746_v60  ;;  %v749_v49 = vadd.f32 %v11740_v51, %v705_v34  ;;  %v5846_v46 = vpack.c.bf16 %v5560_v33, %v5560_v33 }
 0x262   : > { %v12963_v3 = vsel %vm6012_vm2, %v5973_v57, %v12849_v9  ;;  %v5796_v44 = vmax.f32 %v5794_v48, %v5795_v31  ;;  %v1826_v37 = vrot.slane %v1798_v7, %v11746_v60  ;;  %v5847_v41 = vpack.c.bf16 %v5567_v30, %v5567_v30 }
 0x263   : > { %v5267_v13 = vcombine.low %v5259_v42, %v14655_v54  ;;  %v5799_v19 = vsel %vm5371_vm1, %v5228_v40, -inf  ;;  %v1828_v25 = vcombine.high %v1812_v26, %v1812_v26  ;;  %v1829_v43 = vcombine.high %v1819_v29, %v1819_v29 }
 0x264   : > { %v14656_v0 = vrot.slane %v12889_v22, %v11746_v60  ;;  %v14657_v17 = vrot.slane %v12901_v38, %v11746_v60  ;;  %v1827_v9 = vcombine.high %v1805_v23, %v1805_v23  ;;  %v708_v59 = vmul.f32 %v12521_v10, %v11738_v50 }
 0x265   : > { %v12976_v6 = vsel %vm5371_vm1, %v5267_v13, -inf  ;;  %v5797_v36 = vrot.slane %v5796_v44, 1  ;;  %v5800_v27 = vrot.slane %v5799_v19, 4  ;;  %v1830_v39 = vcombine.high %v1826_v37, %v1826_v37 }
 0x266   : > { %v12973_v34 = vcombine.low %v14657_v17, %v14656_v0  ;;  %v4020_v7 = vcombine.low %v1829_v43, %v1812_v26  ;;  %v12980_v33 = vunpack.c.l.b16 %v5846_v46  ;;  %v4021_v20 = vcombine.low %v1826_v37, %v1828_v25 }
 0x267   : > { %v789_v22 = vmax.f32 %v749_v49, 0.0  ;;  %v14658_v38 = vcombine.low %v12840_v8, %v12843_v16  ;;  %v12986_v48 = vunpack.c.l.b16 %v5847_v41  ;;  %v3982_v42 = vcombine.low %v1805_v23, %v1819_v29 }
 0x268   : > { %v4028_v10 = vrot.slane %v4020_v7, %v11746_v60  ;;  %v12991_v30 = vrot.slane %v1827_v9, %v11746_v60  ;;  %v4035_v26 = vrot.slane %v4021_v20, %v11746_v60  ;;  %v4042_v57 = vrot.slane %v1830_v39, %v11746_v60 }
 0x269   : > { %v3933_v11 = vrot.slane %v14658_v38, %v11746_v60  ;;  %v1733_v31 = vcombine.high %v789_v22, %v789_v22  ;;  %v12995_v40 = vmax.f32 %v5796_v44, %v5797_v36  ;;  %v12997_v54 = vmax.f32 %v5799_v19, %v5800_v27 }
 0x26a   : > { %v1740_v8 = vrot.slane %v789_v22, %v11746_v60  ;;  %v752_v16 = vadd.f32 %v11740_v51, %v708_v59  ;;  %v4043_v13 = vcombine.low %v4028_v10, %v4035_v26  ;;  %v707_v23 = vmul.f32 %v11738_v50, %v12536_v56 }
 0x26b   : > { %v1747_v29 = vrot.slane %v1733_v31, %v11746_v60  ;;  %v13007_v49 = vsel %vm6014_vm3, %v11906_v5, %v11882_v15  ;;  %v3996_v46 = vrot.slane %v3982_v42, %v11746_v60  ;;  %v4057_v25 = vrot.slane %v4042_v57, %v11746_v60 }
 0x26c   : > { %v1748_v44 = vcombine.high %v1740_v8, %v1740_v8  ;;  %v1756_v37 = vrot.slane %v1740_v8, %v11746_v60  ;;  %v792_v41 = vmax.f32 %v752_v16, 0.0  ;;  %v4050_v19 = vrot.slane %v4043_v13, %v11746_v60 }
 0x26d   : > { %v1749_v43 = vcombine.high %v1747_v29, %v1747_v29  ;;  %v1763_v0 = vrot.slane %v1747_v29, %v11746_v60  ;;  %v751_v59 = vadd.f32 %v11740_v51, %v707_v23  ;;  %v14659_v36 = vrot.slane %v12040_v47, 2 }
 0x26e   : > { %v1770_v50 = vrot.slane %v1748_v44, %v11746_v60  ;;  %v1778_v56 = vcombine.high %v1756_v37, %v1756_v37  ;;  %v3925_v17 = vrot.slane %v1756_v37, %v11746_v60  ;;  %v1880_v15 = vcombine.high %v792_v41, %v792_v41 }
 0x26f   : > { %v1777_v5 = vrot.slane %v1749_v43, %v11746_v60  ;;  %v1887_v9 = vrot.slane %v792_v41, %v11746_v60  ;;  %v13022_v27 = vmax.f32 %v12040_v47, %v14659_v36  ;;  %v4018_v38 = vrot.slane %v12991_v30, %v11746_v60 }
 0x270   : > { %v1780_v39 = vcombine.high %v1770_v50, %v1770_v50  ;;  %v3940_v7 = vrot.slane %v3925_v17, %v11746_v60  ;;  %v3942_v20 = vcombine.low %v1770_v50, %v1778_v56  ;;  %v1894_v22 = vrot.slane %v1880_v15, %v11746_v60 }
 0x271   : > { %v4058_v42 = vcombine.low %v4050_v19, %v4057_v25  ;;  %v10134_v10 = vcombine.high %v1763_v0, %v1777_v5  ;;  %v1895_v26 = vcombine.high %v1887_v9, %v1887_v9  ;;  %v3964_v8 = vrot.slane %v1777_v5, %v11746_v60 }
 0x272   : > { %v3941_v57 = vcombine.low %v3933_v11, %v3940_v7  ;;  %v3943_v31 = vcombine.low %v1780_v39, %v1763_v0  ;;  %v3950_v51 = vrot.slane %v3942_v20, %v11746_v60  ;;  %v1896_v16 = vcombine.high %v1894_v22, %v1894_v22 }
 0x273   : > { %v3989_v47 = vrot.slane %v10134_v10, %v11746_v60  ;;  %v791_v13 = vmax.f32 %v751_v59, 0.0  ;;  %v5426_v29 = vrot.slane %v13022_v27, 1  ;;  %v13035_v30 = vrot.slane %v1887_v9, %v11746_v60 }
 0x274   : > { %v3957_v23 = vrot.slane %v3943_v31, %v11746_v60  ;;  %v5568_v44 = vsel %vm5371_vm1, %v3941_v57, -inf  ;;  %v1910_v11 = vrot.slane %v1894_v22, %v11746_v60  ;;  %v1917_v19 = vrot.slane %v1895_v26, %v11746_v60 }
 0x275   : > { %v4004_v37 = vcombine.low %v3989_v47, %v3996_v46  ;;  %v5569_v41 = vrot.slane %v5568_v44, 4  ;;  %v1924_v25 = vrot.slane %v1896_v16, %v11746_v60  ;;  %v5589_v43 = vsel %vm5371_vm1, %v4058_v42, -inf }
 0x276   : > { %v3965_v0 = vcombine.low %v3950_v51, %v3957_v23  ;;  %v3979_v50 = vrot.slane %v3964_v8, %v11746_v60  ;;  %v1926_v56 = vcombine.high %v1910_v11, %v1910_v11  ;;  %v1831_v9 = vcombine.high %v791_v13, %v791_v13 }
 0x277   : > { %v4011_v17 = vrot.slane %v4004_v37, %v11746_v60  ;;  %v5570_v15 = vmax.f32 %v5568_v44, %v5569_v41  ;;  %v1928_v5 = vcombine.high %v1924_v25, %v1924_v25  ;;  %v10136_v46 = vcombine.high %v13035_v30, %v1917_v19 }
 0x278   : > { %v3972_v59 = vrot.slane %v3965_v0, %v11746_v60  ;;  %v4138_v36 = vcombine.low %v1910_v11, %v1924_v25  ;;  %v4159_v39 = vrot.slane %v1926_v56, %v11746_v60  ;;  %v5590_v7 = vrot.slane %v5589_v43, 4 }
 0x279   : > { %v4019_v20 = vcombine.low %v4011_v17, %v4018_v38  ;;  %v5571_v22 = vrot.slane %v5570_v15, 2  ;;  %v4176_v42 = vcombine.low %v1928_v5, %v11944_v62  ;;  %v4145_v26 = vrot.slane %v10136_v46, %v11746_v60 }
 0x27a   : > { %v3980_v10 = vcombine.low %v3972_v59, %v3979_v50  ;;  %v4152_v57 = vrot.slane %v4138_v36, %v11746_v60  ;;  %v4174_v31 = vrot.slane %v4159_v39, %v11746_v60  ;;  %v1838_v16 = vrot.slane %v791_v13, %v11746_v60 }
 0x27b   : > { %v5572_v51 = vmax.f32 %v5570_v15, %v5571_v22  ;;  %v5582_v8 = vsel %vm5371_vm1, %v4019_v20, -inf  ;;  %v4184_v47 = vrot.slane %v4176_v42, %v11746_v60  ;;  %v1845_v62 = vrot.slane %v1831_v9, %v11746_v60 }
 0x27c   : > { %v5575_v23 = vsel %vm5371_vm1, %v3980_v10, -inf  ;;  %v5583_v38 = vrot.slane %v5582_v8, 4  ;;  %v4160_v44 = vcombine.low %v4145_v26, %v4152_v57  ;;  %v14660_v41 = vrot.slane %v11972_v4, %v11746_v60 }
 0x27d   : > { %v5573_v11 = vrot.slane %v5572_v51, 1  ;;  %v5576_v37 = vrot.slane %v5575_v23, 4  ;;  %v1846_v0 = vcombine.high %v1838_v16, %v1838_v16  ;;  %v4120_v50 = vrot.slane %v1917_v19, %v11746_v60 }
 0x27e   : > { %v4199_v25 = vcombine.low %v4184_v47, %v14660_v41  ;;  %v4167_v56 = vrot.slane %v4160_v44, %v11746_v60  ;;  %v1847_v17 = vcombine.high %v1845_v62, %v1845_v62  ;;  %v1854_v13 = vrot.slane %v1838_v16, %v11746_v60 }
 0x27f   : > { %v5577_v15 = vmax.f32 %v5575_v23, %v5576_v37  ;;  %v5584_v5 = vmax.f32 %v5582_v8, %v5583_v38  ;;  %v1861_v9 = vrot.slane %v1845_v62, %v11746_v60  ;;  %v5574_v46 = vmax.f32 %v5572_v51, %v5573_v11 }
 0x280   : > { %v4206_v59 = vrot.slane %v4199_v25, %v11746_v60  ;;  %v4175_v36 = vcombine.low %v4167_v56, %v4174_v31  ;;  %v1868_v39 = vrot.slane %v1846_v0, %v11746_v60  ;;  %v1875_v4 = vrot.slane %v1847_v17, %v11746_v60 }
 0x281   : > { %v13065_v20 = vmax.f32 %v5589_v43, %v5590_v7  ;;  %v5578_v19 = vrot.slane %v5577_v15, 2  ;;  %v14661_v22 = vrot.slane %v11976_v21, %v11746_v60  ;;  %v1877_v10 = vcombine.high %v1861_v9, %v1861_v9 }
 0x282   : > { %v4135_v26 = vrot.slane %v4120_v50, %v11746_v60  ;;  %v5610_v57 = vsel %vm5371_vm1, %v4175_v36, -inf  ;;  %v1879_v8 = vcombine.high %v1875_v4, %v1875_v4  ;;  %v4059_v47 = vcombine.low %v1854_v13, %v1868_v39 }
 0x283   : > { %v4214_v42 = vcombine.low %v4206_v59, %v14661_v22  ;;  %v5579_v51 = vmax.f32 %v5577_v15, %v5578_v19  ;;  %v5585_v31 = vrot.slane %v5584_v5, 2  ;;  %v5611_v16 = vrot.slane %v5610_v57, 4 }
 0x284   : > { %v5848_v38 = vpack.c.bf16 %v5574_v46, %v5574_v46  ;;  %v10135_v7 = vcombine.high %v1854_v13, %v1868_v39  ;;  %v4067_v44 = vrot.slane %v4059_v47, %v11746_v60  ;;  %v4081_v11 = vrot.slane %v1861_v9, %v11746_v60 }
 0x285   : > { %v5617_v23 = vsel %vm5371_vm1, %v4214_v42, -inf  ;;  %v5580_v62 = vrot.slane %v5579_v51, 1  ;;  %v5612_v21 = vmax.f32 %v5610_v57, %v5611_v16  ;;  %v4098_v37 = vcombine.low %v1875_v4, %v1877_v10 }
 0x286   : > { %v5618_v43 = vrot.slane %v5617_v23, 4  ;;  %v4074_v25 = vrot.slane %v10135_v7, %v11746_v60  ;;  %v4099_v0 = vcombine.low %v1879_v8, %v13035_v30  ;;  %v5427_v50 = vmax.f32 %v13022_v27, %v5426_v29 }
 0x287   : > { %v5581_v56 = vmax.f32 %v5579_v51, %v5580_v62  ;;  %v13080_v17 = vmax.f32 %v5584_v5, %v5585_v31  ;;  %v5613_v13 = vrot.slane %v5612_v21, 2  ;;  %v4106_v15 = vrot.slane %v4098_v37, %v11746_v60 }
 0x288   : > { %v5619_v41 = vmax.f32 %v5617_v23, %v5618_v43  ;;  %v4082_v46 = vcombine.low %v4067_v44, %v4074_v25  ;;  %v4113_v9 = vrot.slane %v4099_v0, %v11746_v60  ;;  %v5827_v36 = vpack.c.bf16 %v5427_v50, %v5427_v50 }
 0x289   : > { %v5614_v39 = vmax.f32 %v5612_v21, %v5613_v13  ;;  %v4096_v4 = vrot.slane %v4081_v11, %v11746_v60  ;;  %v6017_v30 = vsel %vm6016_vm4, %v11953_v18, %v13007_v49  ;;  %v5849_v22 = vpack.c.bf16 %v5581_v56, %v5581_v56  ;;  %v14662_v49 = vld [vmem:[#allocation5_spill] sm:$0xff] }
 0x28a   : > { %v5620_v59 = vrot.slane %v5619_v41, 2  ;;  %v4089_v29 = vrot.slane %v4082_v46, %v11746_v60  ;;  %v4121_v5 = vcombine.low %v4106_v15, %v4113_v9  ;;  %v5955_v19 = vunpack.c.l.b16 %v5827_v36 }
 0x28b   : > { %v5615_v42 = vrot.slane %v5614_v39, 1  ;;  %v6019_v10 = vsel %vm6018_vm5, %v11965_v1, %v6017_v30  ;;  %v5592_v1 = vrot.slane %v13065_v20, 2  ;;  %v13109_v44 = vunpack.c.l.b16 %v5848_v38 }
 0x28c   : > { %v5621_v27 = vmax.f32 %v5619_v41, %v5620_v59  ;;  %v4097_v8 = vcombine.low %v4089_v29, %v4096_v4  ;;  %v4128_v47 = vrot.slane %v4121_v5, %v11746_v60  ;;  %v6021_v51 = vsel %vm6020_vm6, %v11919_v24, %v6019_v10 }
 0x28d   : > { %v5616_v18 = vmax.f32 %v5614_v39, %v5615_v42  ;;  %v6023_v31 = vsel %vm6022_vm7, %v14662_v49, %v6021_v51  ;;  %v5587_v24 = vrot.slane %v13080_v17, 1  ;;  %v14623_v21 = vmov 0  }
 0x28e   : > { %v5622_v57 = vrot.slane %v5621_v27, 1  ;;  %v4136_v23 = vcombine.low %v4128_v47, %v4135_v26  ;;  %v5596_v43 = vsel %vm5371_vm1, %v4097_v8, -inf  ;;  %v6066_v7 = vpack.c.b16 %v5955_v19, %v6023_v31 }
 0x28f   : > { %v5597_v62 = vrot.slane %v5596_v43, 4  ;;  %v13113_v11 = vcombine.low %v14623_v21, %v14623_v21  ;;  %v13115_v37 = vunpack.c.l.b16 %v5849_v22  ;;  %v5854_v0 = vpack.c.bf16 %v5616_v18, %v5616_v18 }
 0x290   : > { %v5623_v26 = vmax.f32 %v5621_v27, %v5622_v57  ;;  %v5603_v41 = vsel %vm5371_vm1, %v4136_v23, -inf  ;;  %v6085_v25 = vsel %vm13097_vm10, 0, %v6066_v7  ;;  %v13126_v13 = vcombine.high %v14623_v21, %v14623_v21  ;;  %v11457_v23 = vld [vmem:[%s14614_s2 + $0xd0] sm:$0xff]  }
 0x291   : > { %v5598_v50 = vmax.f32 %v5596_v43, %v5597_v62  ;;  %v5604_v56 = vrot.slane %v5603_v41, 4  ;;  %v13122_v38 = vsel %vm13104_vm12, %v6085_v25, 0  ;;  %v6164_v36 = vshrl.u32 %v13113_v11, 16 }
 0x292   : > { %v13130_v15 = vcombine.low %v13122_v38, %v13122_v38  ;;  %v13134_v59 = vcombine.high %v13122_v38, %v13122_v38  ;;  %v6167_v39 = vshll.u32 %v13113_v11, 16  ;;  %v6173_v4 = vshll.u32 %v13126_v13, 16 }
 0x293   : > { %v5599_v46 = vrot.slane %v5598_v50, 2  ;;  %v5605_v9 = vmax.f32 %v5603_v41, %v5604_v56  ;;  %v6166_v19 = vrot.slane %v6164_v36, 4  ;;  %v5855_v42 = vpack.c.bf16 %v5623_v26, %v5623_v26 }
 0x294   : > { %v6178_v30 = vshrl.u32 %v13130_v15, 16  ;;  %v6181_v27 = vshll.u32 %v13130_v15, 16  ;;  %v6169_v22 = vrot.slane %v6167_v39, 5  ;;  %v6187_v8 = vshll.u32 %v13134_v59, 16 }
 0x295   : > { %v5600_v29 = vmax.f32 %v5598_v50, %v5599_v46  ;;  %v5606_v5 = vrot.slane %v5605_v9, 2  ;;  %v6175_v49 = vrot.slane %v6173_v4, 5  ;;  %v5982_v31 = vunpack.c.l.b16 %v5854_v0 }
 0x296   : > { %v6180_v10 = vrot.slane %v6178_v30, 4  ;;  %v6183_v57 = vrot.slane %v6181_v27, 5  ;;  %v6170_v18 = vor.u32 %v6169_v22, %v6166_v19  ;;  %v6029_v7 = vsel %vm6022_vm7, %v12538_v45, %v12426_v2 }
 0x297   : > { %v5601_v47 = vrot.slane %v5600_v29, 1  ;;  %v5607_v51 = vmax.f32 %v5605_v9, %v5606_v5  ;;  %v6068_v62 = vpack.c.b16 %v12851_v63, %v12825_v32  ;;  %v6067_v50 = vpack.c.b16 %v12414_v58, %v6029_v7 }
 0x298   : > { %v6184_v43 = vor.u32 %v6183_v57, %v6180_v10  ;;  %v6171_v25 = vrot.slane %v6170_v18, 4  ;;  %v5983_v0 = vunpack.c.l.b16 %v5855_v42  ;;  %v6189_v46 = vrot.slane %v6187_v8, 5  ;;  %v14670_v8 = vld [vmem:[#allocation4_spill] sm:$0xff] }
 0x299   : > { %v5602_v26 = vmax.f32 %v5600_v29, %v5601_v47  ;;  %v5608_v41 = vrot.slane %v5607_v51, 1  ;;  %v6087_v9 = vsel %vm13097_vm10, 0, %v6068_v62  ;;  %v6086_v2 = vsel %vm13097_vm10, 0, %v6067_v50 }
 0x29a   : > { %v6185_v56 = vrot.slane %v6184_v43, 4  ;;  %v13158_v4 = vsel %vm13144_vm15, %v6171_v25, %v6175_v49  ;;  %v13168_v58 = vsel %vm13104_vm12, %v6086_v2, 0  ;;  %v13172_v32 = vsel %vm13104_vm12, %v6087_v9, 0 }
 0x29b   : > { %v5609_v36 = vmax.f32 %v5607_v51, %v5608_v41  ;;  %v5852_v39 = vpack.c.bf16 %v5602_v26, %v5602_v26  ;;  %14669 = vst [vmem:[#allocation5_spill] sm:$0xff] %v13158_v4  ;;  %v5588_v63 = vmax.f32 %v13080_v17, %v5587_v24  ;;  %v13179_v5 = vcombine.low %v13168_v58, %v13168_v58 }
 0x29c   : > { %v13164_v45 = vsel %vm13144_vm15, %v6185_v56, %v6189_v46  ;;  %v13183_v19 = vcombine.high %v13168_v58, %v13168_v58  ;;  %v13187_v22 = vcombine.low %v13172_v32, %v13172_v32  ;;  %v13191_v17 = vcombine.high %v13172_v32, %v13172_v32 }
 0x29d   : > { %v5853_v30 = vpack.c.bf16 %v5609_v36, %v5609_v36  ;;  %v5980_v27 = vunpack.c.l.b16 %v5852_v39  ;;  %v10183_v29 = vcombine.low %v13158_v4, %v13164_v45  ;;  %v5593_v24 = vmax.f32 %v13065_v20, %v5592_v1 }
 0x29e   : > { %v6192_v10 = vshrl.u32 %v13179_v5, 16  ;;  %v6195_v57 = vshll.u32 %v13179_v5, 16  ;;  %v14671_v47 = vrot.slane %v14670_v8, 2  ;;  %v6201_v18 = vshll.u32 %v13183_v19, 16 }
 0x29f   : > { %v5981_v42 = vunpack.c.l.b16 %v5853_v30  ;;  %10937 = vmatprep.mubr.bf16.mxu1 %v10183_v29  ;;  %v6206_v49 = vshrl.u32 %v13187_v22, 16  ;;  %v6209_v43 = vshll.u32 %v13187_v22, 16  ;;  %v6215_v7 = vshll.u32 %v13191_v17, 16 }
 0x2a0   : > { %v5649_v51 = vmax.f32 %v14670_v8, %v14671_v47  ;;  %v6194_v1 = vrot.slane %v6192_v10, 4  ;;  %v6197_v62 = vrot.slane %v6195_v57, 5  ;;  %v5594_v26 = vrot.slane %v5593_v24, 1 }
 0x2a1   : > { %v6042_v20 = vsel %vm6012_vm2, %v5981_v42, %v5980_v27  ;;  %v6203_v41 = vrot.slane %v6201_v18, 5  ;;  %v6208_v25 = vrot.slane %v6206_v49, 4  ;;  %v6211_v50 = vrot.slane %v6209_v43, 5 }
 0x2a2   : > { %v6217_v56 = vrot.slane %v6215_v7, 5  ;;  %v6198_v46 = vor.u32 %v6197_v62, %v6194_v1  ;;  %v5595_v9 = vmax.f32 %v5593_v24, %v5594_v26  ;;  %v5650_v36 = vrot.slane %v5649_v51, 1  ;;  %v11440_v1 = vld [vmem:[%s14614_s2 + $0x8] sm:$0xff]  }
 0x2a3   : > { %v5850_v39 = vpack.c.bf16 %v5588_v63, %v5588_v63  ;;  %v6212_v2 = vor.u32 %v6211_v50, %v6208_v25  ;;  %v6037_v30 = vsel %vm6014_vm3, %v12980_v33, %v12963_v3  ;;  %v6043_v29 = vsel %vm6014_vm3, %v5982_v31, %v6042_v20  ;;  %v14675_v26 = vld [vmem:[#allocation3_spill] sm:$0xff] }
 0x2a4   : > { %v14672_v27 = vrot.slane %v12315_v52, 1  ;;  %v6199_v10 = vrot.slane %v6198_v46, 4  ;;  %v5651_v57 = vmax.f32 %v5649_v51, %v5650_v36  ;;  %v5851_v8 = vpack.c.bf16 %v5595_v9, %v5595_v9  ;;  %v14676_v25 = vld [vmem:[#allocation7_spill] sm:$0xff] }
 0x2a5   : > { %v5978_v47 = vunpack.c.l.b16 %v5850_v39  ;;  %v6213_v18 = vrot.slane %v6212_v2, 4  ;;  %v6038_v24 = vsel %vm6016_vm4, %v12986_v48, %v6037_v30  ;;  %v6044_v63 = vsel %vm6016_vm4, %v5983_v0, %v6043_v29  ;;  %v14674_v0 = vld [vmem:[#allocation6_spill] sm:$0xff]  ;;  %v14678_v2 = vld [vmem:[#allocation8_spill] sm:$0xff]  ;;  %v14679_v30 = vld [vmem:[#allocation9_spill] sm:$0xff] }
 0x2a6   : > { %v5700_v42 = vmax.f32 %v12315_v52, %v14672_v27  ;;  %v14673_v49 = vrot.slane %v12284_v28, 2  ;;  %v13221_v33 = vsel %vm13144_vm15, %v6199_v10, %v6203_v41  ;;  %v5859_v31 = vpack.c.bf16 %v5651_v57, %v5651_v57  ;;  %v14680_v27 = vld [vmem:[#allocation14_spill] sm:$0xff]  ;;  %v14681_v10 = vld [vmem:[#allocation13_spill] sm:$0xff] }
 0x2a7   : > { %v5979_v52 = vunpack.c.l.b16 %v5851_v8  ;;  %v6039_v51 = vsel %vm6018_vm5, %v13109_v44, %v6038_v24  ;;  %v13227_v43 = vsel %vm13144_vm15, %v6213_v18, %v6217_v56  ;;  %v6045_v7 = vsel %vm6018_vm5, %v14674_v0, %v6044_v63  ;;  %v11575_v8 = vld [vmem:[%s14614_s2] sm:$0xff]   ;;  %v11441_v63 = vld [vmem:[%s14614_s2 + $0x10] sm:$0xff]  }
 0x2a8   : > { %v5705_v3 = vmax.f32 %v12284_v28, %v14673_v49  ;;  %v6040_v48 = vsel %vm6020_vm6, %v13115_v37, %v6039_v51  ;;  %v13235_v20 = vcombine.low %v13221_v33, %v13227_v43  ;;  %v5987_v44 = vunpack.c.l.b16 %v5859_v31  ;;  %v14682_v24 = vld [vmem:[#allocation10_spill] sm:$0xff] }
 0x2a9   : > { %v6041_v62 = vsel %vm6022_vm7, %v5978_v47, %v6040_v48  ;;  %v6046_v41 = vsel %vm6020_vm6, %v14675_v26, %v6045_v7  ;;  %v14677_v46 = vrot.slane %v12704_v55, 2  ;;  %v5866_v39 = vpack.c.bf16 %v5700_v42, %v5700_v42 }
 0x2aa   : > { %v5706_v28 = vrot.slane %v5705_v3, 1  ;;  %v6047_v37 = vsel %vm6022_vm7, %v14676_v25, %v6046_v41  ;;  %v6069_v50 = vpack.c.b16 %v5979_v52, %v6041_v62  ;;  %10938 = vmatmul.mubr.bf16.vlgmr.msra.gmra.mrb[20].mxu1 %v13235_v20  ;;  %v6049_v29 = vsel %vm6014_vm3, %v14679_v30, %v14678_v2  ;;  %v14683_v52 = vld [vmem:[#allocation11_spill] sm:$0xff]  ;;  %v14684_v41 = vld [vmem:[#allocation12_spill] sm:$0xff] }
 0x2ab   : > { %v5761_v9 = vmax.f32 %v12704_v55, %v14677_v46  ;;  %v6070_v36 = vpack.c.b16 %v5987_v44, %v6047_v37  ;;  %v6055_v57 = vsel %vm6014_vm3, %v14681_v10, %v14680_v27  ;;  %10946 = vmatpush3.bf16.msra.mxu1 %v11575_v8  ;;  %v6050_v42 = vsel %vm6016_vm4, %v14682_v24, %v6049_v29 }
 0x2ac   : > { %v5707_v56 = vmax.f32 %v5705_v3, %v5706_v28  ;;  %v6088_v55 = vsel %vm13097_vm10, 0, %v6069_v50  ;;  %10947 = vmatprep.subr.bf16.mxu1 %v11440_v1  ;;  %v5994_v31 = vunpack.c.l.b16 %v5866_v39  ;;  %v6051_v51 = vsel %vm6018_vm5, %v14683_v52, %v6050_v42  ;;  %v14686_v52 = vld [vmem:[#allocation17_spill] sm:$0xff] }
 0x2ad   : > { %v5762_v47 = vrot.slane %v5761_v9, 1  ;;  %v6089_v49 = vsel %vm13097_vm10, 0, %v6070_v36  ;;  %v13269_v3 = vsel %vm13104_vm12, %v6088_v55, 0  ;;  %v6052_v25 = vsel %vm6020_vm6, %v14684_v41, %v6051_v51 }
 0x2ae   : > { %v5867_v18 = vpack.c.bf16 %v5707_v56, %v5707_v56  ;;  %v13275_v48 = vsel %vm13104_vm12, %v6089_v49, 0  ;;  %v13279_v0 = vcombine.low %v13269_v3, %v13269_v3  ;;  %v13283_v7 = vcombine.high %v13269_v3, %v13269_v3 }
 0x2af   : > { %v5763_v28 = vmax.f32 %v5761_v9, %v5762_v47  ;;  %v13287_v44 = vcombine.low %v13275_v48, %v13275_v48  ;;  %v13291_v62 = vcombine.high %v13275_v48, %v13275_v48  ;;  %10948 = vmatpush3.bf16.msra.mxu1 %v11440_v1  ;;  %v11442_v9 = vld [vmem:[%s14614_s2 + $0x18] sm:$0xff]   ;;  %v6053_v1 = vsel %vm6022_vm7, %v5994_v31, %v6052_v25  ;;  %v11443_v31 = vld [vmem:[%s14614_s2 + $0x20] sm:$0xff]   ;;  %v14687_v25 = vld [vmem:[#allocation15_spill] sm:$0xff] }
 0x2b0   : > { %v5995_v26 = vunpack.c.l.b16 %v5867_v18  ;;  %v6220_v37 = vshrl.u32 %v13279_v0, 16  ;;  %v6223_v50 = vshll.u32 %v13279_v0, 16  ;;  %v6229_v56 = vshll.u32 %v13283_v7, 16  ;;  %10949 = vmatprep.subr.bf16.mxu1 %v11441_v63  ;;  %v14685_v18 = vld [vmem:[#allocation16_spill] sm:$0xff] }
 0x2b1   : > { %v5875_v46 = vpack.c.bf16 %v5763_v28, %v5763_v28  ;;  %v6234_v36 = vshrl.u32 %v13287_v44, 16  ;;  %v6237_v39 = vshll.u32 %v13287_v44, 16  ;;  %v6243_v2 = vshll.u32 %v13291_v62, 16 }
 0x2b2   : > { %v6222_v29 = vrot.slane %v6220_v37, 4  ;;  %v6225_v27 = vrot.slane %v6223_v50, 5  ;;  %v6231_v10 = vrot.slane %v6229_v56, 5  ;;  %v6056_v24 = vsel %vm6016_vm4, %v14685_v18, %v6055_v57 }
 0x2b3   : > { %v6236_v8 = vrot.slane %v6234_v36, 4  ;;  %v6239_v55 = vrot.slane %v6237_v39, 5  ;;  %v6003_v47 = vunpack.c.l.b16 %v5875_v46  ;;  %10950 = vmatpush3.bf16.msra.mxu1 %v11441_v63  ;;  %v6245_v49 = vrot.slane %v6243_v2, 5 }
 0x2b4   : > { %v6226_v42 = vor.u32 %v6225_v27, %v6222_v29  ;;  %v6057_v51 = vsel %vm6018_vm5, %v14686_v52, %v6056_v24  ;;  %v6071_v28 = vpack.c.b16 %v5995_v26, %v6053_v1  ;;  %10951 = vmatprep.subr.bf16.mxu1 %v11442_v9  ;;  %v13317_v50 = vcombine.low %v13168_v58, %v13172_v32  ;;  %v11444_v27 = vld [vmem:[%s14614_s2 + $0x28] sm:$0xff]  }
 0x2b5   : > { %v6240_v41 = vor.u32 %v6239_v55, %v6236_v8  ;;  %v6058_v37 = vsel %vm6020_vm6, %v14687_v25, %v6057_v51  ;;  %v13321_v57 = vcombine.low %v13269_v3, %v13275_v48  ;;  %v10207_v29 = vrot.slane %v13113_v11, 9 }
 0x2b6   : > { %v6227_v63 = vrot.slane %v6226_v42, 4  ;;  %v6059_v26 = vsel %vm6022_vm7, %v12832_v12, %v6058_v37  ;;  %v6090_v56 = vsel %vm13097_vm10, 0, %v6071_v28  ;;  %v6547_v55 = vrot.slane %v13126_v13, 5 }
 0x2b7   : > { %v6241_v46 = vrot.slane %v6240_v41, 4  ;;  %v6072_v36 = vpack.c.b16 %v6003_v47, %v6059_v26  ;;  %v13329_v39 = vsel %vm13104_vm12, %v6090_v56, 0  ;;  %10952 = vmatpush3.bf16.msra.mxu1 %v11442_v9  ;;  %v10195_v25 = vcombine.low %v14623_v21, %v13122_v38 }
 0x2b8   : > { %v13333_v2 = vsel %vm13144_vm15, %v6227_v63, %v6231_v10  ;;  %v13337_v1 = vcombine.low %v13329_v39, %v13329_v39  ;;  %v13341_v12 = vcombine.high %v13329_v39, %v13329_v39  ;;  %10953 = vmatprep.subr.bf16.mxu1 %v11443_v31  ;;  %v10208_v37 = vrot.slane %v13130_v15, 9 }
 0x2b9   : > { %v13349_v9 = vsel %vm13144_vm15, %v6241_v46, %v6245_v49  ;;  %v6091_v8 = vsel %vm13097_vm10, 0, %v6072_v36  ;;  %v11445_v46 = vld [vmem:[%s14614_s2 + $0x30] sm:$0xff]   ;;  %v6555_v35 = vrot.slane %v13183_v19, 5 }
 0x2ba   : > { %v13358_v11 = vcombine.low %v13333_v2, %v13349_v9  ;;  %v13362_v47 = vsel %vm13104_vm12, %v6091_v8, 0  ;;  %v6248_v18 = vshrl.u32 %v13337_v1, 16  ;;  %v6251_v24 = vshll.u32 %v13337_v1, 16 }
 0x2bb   : > { %v10165_v13 = vcombine.low %v13362_v47, %v13362_v47  ;;  %v10166_v49 = vcombine.high %v13362_v47, %v13362_v47  ;;  %v6257_v52 = vshll.u32 %v13341_v12, 16  ;;  %v13379_v51 = vcombine.low %v13329_v39, %v13362_v47  ;;  %10954 = vmatpush3.bf16.msra.mxu1 %v11443_v31 }
 0x2bc   : > { %10941 = vmatprep.mubr.bf16.mxu1 %v13358_v11  ;;  %v6250_v28 = vrot.slane %v6248_v18, 4  ;;  %v6253_v41 = vrot.slane %v6251_v24, 5  ;;  %10955 = vmatprep.subr.bf16.mxu1 %v11444_v27  ;;  %v13390_v31 = vsel %vm13368_vm11, %v10207_v29, %v6547_v55  ;;  %v6551_v18 = vrot.slane %v13134_v59, 5  ;;  %v11446_v59 = vld [vmem:[%s14614_s2 + $0x38] sm:$0xff]  }
 0x2bd   : > { %v6262_v63 = vshrl.u32 %v10165_v13, 16  ;;  %v6265_v26 = vshll.u32 %v10165_v13, 16  ;;  %v6271_v56 = vshll.u32 %v10166_v49, 16  ;;  %v6259_v8 = vrot.slane %v6257_v52, 5 }
 0x2be   : > { %v6254_v36 = vor.u32 %v6253_v41, %v6250_v28  ;;  %v10209_v24 = vrot.slane %v13179_v5, 9  ;;  %v13397_v4 = vsel %vm13368_vm11, %v10208_v37, %v6551_v18  ;;  %v10210_v29 = vrot.slane %v13187_v22, 9 }
 0x2bf   : > { %v6264_v21 = vrot.slane %v6262_v63, 4  ;;  %v6267_v15 = vrot.slane %v6265_v26, 5  ;;  %v6273_v10 = vrot.slane %v6271_v56, 5  ;;  %10956 = vmatpush3.bf16.msra.mxu1 %v11444_v27  ;;  %v6559_v55 = vrot.slane %v13191_v17, 5 }
 0x2c0   : > { %v6255_v30 = vrot.slane %v6254_v36, 4  ;;  %10957 = vmatprep.subr.bf16.mxu1 %v11445_v46  ;;  %v10231_v5 = vcombine.low %v13390_v31, %v13397_v4  ;;  %v13408_v19 = vsel %vm13368_vm11, %v10209_v24, %v6555_v35  ;;  %v10211_v27 = vrot.slane %v13279_v0, 9 }
 0x2c1   : > { %v6268_v52 = vor.u32 %v6267_v15, %v6264_v21  ;;  %v13417_v21 = vsel %vm13368_vm11, %v10210_v29, %v6559_v55  ;;  %v6563_v17 = vrot.slane %v13283_v7, 5  ;;  %v10212_v28 = vrot.slane %v13287_v44, 9 }
 0x2c2   : > { %v13413_v22 = vsel %vm13144_vm15, %v6255_v30, %v6259_v8  ;;  %v13423_v37 = vcombine.low %v13408_v19, %v13417_v21  ;;  %v6567_v35 = vrot.slane %v13291_v62, 5  ;;  %v10213_v0 = vrot.slane %v13337_v1, 9 }
 0x2c3   : > { %v6269_v41 = vrot.slane %v6268_v52, 4  ;;  %10958 = vmatpush3.bf16.msra.mxu1 %v11445_v46  ;;  %v13429_v30 = vsel %vm13368_vm11, %v10211_v27, %v6563_v17  ;;  %v6571_v63 = vrot.slane %v13341_v12, 5  ;;  %v10214_v26 = vrot.slane %v10165_v13, 9 }
 0x2c4   : > { %v6575_v7 = vrot.slane %v10166_v49, 5  ;;  %10959 = vmatprep.subr.bf16.mxu1 %v11446_v59  ;;  %v13438_v56 = vsel %vm13368_vm11, %v10212_v28, %v6567_v35  ;;  %v10259_v1 = vcombine.low %v13122_v38, %v13168_v58  ;;  %v10260_v8 = vcombine.low %v13172_v32, %v13269_v3  ;;  %v14693_v35 = vld [vmem:[#allocation18_spill] sm:$0xff]  ;;  %v11462_v38 = vld [vmem:[%s14614_s2 + $0xf8] sm:$0xff]   ;;  %v11468_v3 = vld [vmem:[%s14614_s2 + $0x128] sm:$0xff]  }
 0x2c5   : > { %v13434_v44 = vsel %vm13144_vm15, %v6269_v41, %v6273_v10  ;;  %v11447_v10 = vld [vmem:[%s14614_s2 + $0x80] sm:$0xff]   ;;  %v13453_v13 = vcombine.low %v13429_v30, %v13438_v56  ;;  %v13457_v49 = vsel %vm13368_vm11, %v10213_v0, %v6571_v63  ;;  %v10261_v18 = vcombine.low %v13275_v48, %v13329_v39  ;;  %v11469_v48 = vld [vmem:[%s14614_s2 + $0x130] sm:$0xff]   ;;  %v11472_v39 = vld [vmem:[%s14614_s2 + $0x148] sm:$0xff]  }
 0x2c6   : > { %v13446_v12 = vcombine.low %v13413_v22, %v13434_v44  ;;  %v13461_v46 = vsel %vm13368_vm11, %v10214_v26, %v6575_v7  ;;  %v14690_v24 = vrot.slane %v12820_v14, 2  ;;  %v5880_v29 = vpack.c.bf16 %v12995_v40, %v12995_v40  ;;  %v11463_v58 = vld [vmem:[%s14614_s2 + $0x100] sm:$0xff]  }
 0x2c7   : > { %v13465_v36 = vcombine.low %v13457_v49, %v13461_v46  ;;  %v14691_v55 = vrot.slane %v12997_v54, 2  ;;  %v14692_v27 = vrot.slane %v12976_v6, 4  ;;  %v5813_v28 = vsel %vm5371_vm1, %v12973_v34, -inf  ;;  %10960 = vmatpush3.bf16.msra.mxu1 %v11446_v59  ;;  %v11467_v32 = vld [vmem:[%s14614_s2 + $0x120] sm:$0xff]  }
 0x2c8   : > { %v5789_v15 = vmax.f32 %v12820_v14, %v14690_v24  ;;  %10942 = vmatmul.mubr.bf16.gmra.mrb[24].mxu1 %v13446_v12  ;;  %v5814_v14 = vrot.slane %v5813_v28, 4  ;;  %v6060_v40 = vsel %vm6012_vm2, %v12859_v53, %v14693_v35  ;;  %v10289_v0 = vcombine.low %v13164_v45, %v13221_v33  ;;  %10969 = vmatprep.subr.bf16.mxu1 %v11447_v10  ;;  %v11448_v35 = vld [vmem:[%s14614_s2 + $0x88] sm:$0xff]   ;;  %v11470_v45 = vld [vmem:[%s14614_s2 + $0x138] sm:$0xff]   ;;  %v11471_v33 = vld [vmem:[%s14614_s2 + $0x140] sm:$0xff]  }
 0x2c9   : > { %v5803_v52 = vmax.f32 %v12997_v54, %v14691_v55  ;;  %v5808_v17 = vmax.f32 %v12976_v6, %v14692_v27  ;;  %10961 = vmatprep.mubr.bf16.mxu1 %v10195_v25  ;;  %v6061_v6 = vsel %vm6014_vm3, %v12955_v61, %v6060_v40  ;;  %v10318_v26 = vcombine.low %v13397_v4, %v13408_v19  ;;  %v11478_v4 = vld [vmem:[%s14614_s2 + $0x178] sm:$0xff]   ;;  %v11479_v19 = vld [vmem:[%s14614_s2 + $0x180] sm:$0xff]  }
 0x2ca   : > { %v5790_v41 = vrot.slane %v5789_v15, 1  ;;  %v5815_v59 = vmax.f32 %v5813_v28, %v5814_v14  ;;  %v10320_v53 = vcombine.low %v13438_v56, %v13457_v49  ;;  %v6008_v62 = vunpack.c.l.b16 %v5880_v29  ;;  %v11449_v14 = vld [vmem:[%s14614_s2 + $0x90] sm:$0xff]   ;;  %v11487_v49 = vld [vmem:[%s14614_s2 + $0x1c0] sm:$0xff]  }
 0x2cb   : > { %v5804_v54 = vrot.slane %v5803_v52, 1  ;;  %v5809_v63 = vrot.slane %v5808_v17, 2  ;;  %v11485_v56 = vld [vmem:[%s14614_s2 + $0x1b0] sm:$0xff]   ;;  %vm8288_vm1 = vsmask.f32 1280 }
 0x2cc   : > { %v5791_v25 = vmax.f32 %v5789_v15, %v5790_v41  ;;  %v5816_v55 = vrot.slane %v5815_v59, 2 }
 0x2cd   : > { %v5805_v7 = vmax.f32 %v5803_v52, %v5804_v54  ;;  %v5810_v24 = vmax.f32 %v5808_v17, %v5809_v63 }
 0x2ce   : > { %v5879_v27 = vpack.c.bf16 %v5791_v25, %v5791_v25  ;;  %v5817_v34 = vmax.f32 %v5815_v59, %v5816_v55 }
 0x2cf   : > { %v5811_v61 = vrot.slane %v5810_v24, 1  ;;  %v5881_v40 = vpack.c.bf16 %v5805_v7, %v5805_v7 }
 0x2d0   : > { %v6007_v15 = vunpack.c.l.b16 %v5879_v27  ;;  %10962 = vmatmul.mubr.bf16.vlgmr.msra.gmra.mrb[20].mxu1 %v13317_v50  ;;  %v5818_v52 = vrot.slane %v5817_v34, 1 }
 0x2d1   : > { %v5812_v28 = vmax.f32 %v5810_v24, %v5811_v61  ;;  %v6009_v41 = vunpack.c.l.b16 %v5881_v40  ;;  %10965 = vmatprep.mubr.bf16.mxu1 %v13321_v57  ;;  %10970 = vmatpush3.bf16.msra.mxu1 %v11447_v10  ;;  %v11450_v10 = vld [vmem:[%s14614_s2 + $0x98] sm:$0xff]   ;;  %v11452_v40 = vld [vmem:[%s14614_s2 + $0xa8] sm:$0xff]  }
 0x2d2   : > { %v6062_v17 = vsel %vm6016_vm4, %v6007_v15, %v6061_v6  ;;  %10971 = vmatprep.subr.bf16.mxu1 %v11448_v35  ;;  %v5819_v63 = vmax.f32 %v5817_v34, %v5818_v52  ;;  %v11451_v34 = vld [vmem:[%s14614_s2 + $0xa0] sm:$0xff]  }
 0x2d3   : > { %v5882_v54 = vpack.c.bf16 %v5812_v28, %v5812_v28  ;;  %v6063_v29 = vsel %vm6018_vm5, %v6008_v62, %v6062_v17 }
 0x2d4   : > { %v6064_v25 = vsel %vm6020_vm6, %v6009_v41, %v6063_v29  ;;  %v5883_v7 = vpack.c.bf16 %v5819_v63, %v5819_v63 }
 0x2d5   : > { %v6010_v59 = vunpack.c.l.b16 %v5882_v54  ;;  %10972 = vmatpush3.bf16.msra.mxu1 %v11448_v35  ;;  %v11453_v54 = vld [vmem:[%s14614_s2 + $0xb0] sm:$0xff]  }
 0x2d6   : > { %10973 = vmatprep.subr.bf16.mxu1 %v11449_v14  ;;  %v6011_v24 = vunpack.c.l.b16 %v5883_v7 }
 0x2d7   : > { %v6065_v6 = vsel %vm6022_vm7, %v6010_v59, %v6064_v25 }
 0x2d8   : > { %10966 = vmatmul.mubr.bf16.gmra.mrb[24].mxu1 %v13379_v51  ;;  %v6073_v62 = vpack.c.b16 %v6011_v24, %v6065_v6  ;;  %v11454_v6 = vld [vmem:[%s14614_s2 + $0xb8] sm:$0xff]  }
 0x2d9   : > { %10974 = vmatpush3.bf16.msra.mxu1 %v11449_v14  ;;  %10985 = vmatprep.mubr.bf16.mxu1 %v10231_v5 }
 0x2da   : > { %10975 = vmatprep.subr.bf16.mxu1 %v11450_v10  ;;  %v6092_v55 = vsel %vm13097_vm10, 0, %v6073_v62  ;;  %v11455_v62 = vld [vmem:[%s14614_s2 + $0xc0] sm:$0xff]  }
 0x2db   : > { %v13524_v27 = vsel %vm13104_vm12, %v6092_v55, 0  ;;  %v11458_v55 = vld [vmem:[%s14614_s2 + $0xd8] sm:$0xff]   ;;  %vm8289_vm12 = vsmask.f32 3336 }
 0x2dc   : > { %v10262_v35 = vcombine.low %v13362_v47, %v13524_v27  ;;  %v10271_v5 = vcombine.low %v13524_v27, %v13524_v27  ;;  %v10272_v61 = vcombine.high %v13524_v27, %v13524_v27  ;;  %v14694_v47 = vcombine.low %v13227_v43, %v13333_v2  ;;  %v11475_v43 = vld [vmem:[%s14614_s2 + $0x160] sm:$0xff]   ;;  %v11476_v2 = vld [vmem:[%s14614_s2 + $0x168] sm:$0xff]   ;;  %vm8290_vm13 = vmor %vm8288_vm1, %vm8289_vm12 }
 0x2dd   : > { %10976 = vmatpush3.bf16.msra.mxu1 %v11450_v10  ;;  %vm8292_vm9 = vmor %vm8290_vm13, %vm8291_vm14  ;;  %vm7822_vm13 = vcmask 1041408   ;;  %vm8191_vm14 = vsmask.f32 2304 }
 0x2de   : > { %10977 = vmatprep.subr.bf16.mxu1 %v11451_v34  ;;  %v6883_v15 = vshrl.u32 %v10271_v5, 16  ;;  %v6886_v28 = vshll.u32 %v10271_v5, 16  ;;  %v6892_v60 = vshll.u32 %v10272_v61, 16  ;;  %v10301_v41 = vrot.slane %v10271_v5, 9  ;;  %v11459_v5 = vld [vmem:[%s14614_s2 + $0xe0] sm:$0xff]  }
 0x2df   : > { %v7045_v52 = vrot.slane %v10272_v61, 5  ;;  %v11460_v61 = vld [vmem:[%s14614_s2 + $0xe8] sm:$0xff]  }
 0x2e0   : > { %v6885_v17 = vrot.slane %v6883_v15, 4  ;;  %v6888_v14 = vrot.slane %v6886_v28, 5  ;;  %v6894_v25 = vrot.slane %v6892_v60, 5  ;;  %v11465_v15 = vld [vmem:[%s14614_s2 + $0x110] sm:$0xff]   ;;  %v11466_v28 = vld [vmem:[%s14614_s2 + $0x118] sm:$0xff]   ;;  %v14697_v60 = vmov 0  }
 0x2e1   : > { %10978 = vmatpush3.bf16.msra.mxu1 %v11451_v34  ;;  %v13540_v29 = vsel %vm13368_vm11, %v10301_v41, %v7045_v52  ;;  %v11456_v34 = vld [vmem:[%s14614_s2 + $0xc8] sm:$0xff]   ;;  %v10346_v41 = vcombine.low %v13524_v27, %v14697_v60  ;;  %v11490_v52 = vld [vmem:[%s14614_s2 + $0x1d8] sm:$0xff]   ;;  %v11493_v27 = vld [vmem:[%s14614_s2 + $0x1f0] sm:$0xff]   ;;  %vm8293_vm11 = vsmask.f32 7448 }
 0x2e2   : > { %10979 = vmatprep.subr.bf16.mxu1 %v11452_v40  ;;  %v6889_v63 = vor.u32 %v6888_v14, %v6885_v17  ;;  %v10321_v59 = vcombine.low %v13461_v46, %v13540_v29  ;;  %v10396_v7 = vcombine.low %v13540_v29, %v13390_v31  ;;  %v11488_v46 = vld [vmem:[%s14614_s2 + $0x1c8] sm:$0xff]   ;;  %v11495_v17 = vld [vmem:[%s14614_s2 + $0x200] sm:$0xff]  }
 0x2e3   : > { %v11496_v14 = vld [vmem:[%s14614_s2 + $0x208] sm:$0xff]   ;;  %v14699_v29 = vld [vmem:[#allocation2_spill] sm:$0xff] }
 0x2e4   : > { %v6890_v10 = vrot.slane %v6889_v63, 4  ;;  %v14698_v63 = vld [vmem:[#allocation5_spill] sm:$0xff] }
 0x2e5   : > { %10980 = vmatpush3.bf16.msra.mxu1 %v11452_v40  ;;  %v11461_v40 = vld [vmem:[%s14614_s2 + $0xf0] sm:$0xff]  }
 0x2e6   : > { %10981 = vmatprep.subr.bf16.mxu1 %v11453_v54  ;;  %v13551_v42 = vsel %vm13144_vm15, %v6890_v10, %v6894_v25  ;;  %v11501_v10 = vld [vmem:[%s14614_s2 + $0x230] sm:$0xff]   ;;  %vm8691_vm15 = vmor %vm6082_vm8, %vm6012_vm2 }
 0x2e7   : > { %v10292_v24 = vcombine.low %v13434_v44, %v13551_v42  ;;  %v14696_v44 = vcombine.low %v13417_v21, %v13429_v30  ;;  %v11483_v21 = vld [vmem:[%s14614_s2 + $0x1a0] sm:$0xff]   ;;  %v11484_v30 = vld [vmem:[%s14614_s2 + $0x1a8] sm:$0xff]   ;;  %v10371_v25 = vcombine.low %v13551_v42, %v14698_v63  ;;  %vm13808_vm1 = vmor %vm8691_vm15, %vm6016_vm4 }
 0x2e8   : > { %v11504_v42 = vld [vmem:[%s14615_s3 + $0x48] sm:$0xff]   ;;  %vm13816_vm8 = vmor %vm8292_vm9, %vm8293_vm11 }
 0x2e9   : > { %10982 = vmatpush3.bf16.msra.mxu1 %v11453_v54  ;;  %v11497_v54 = vld [vmem:[%s14614_s2 + $0x210] sm:$0xff]   ;;  %vm13825_vm12 = vmor %vm13808_vm1, %vm6020_vm6 }
 0x2ea   : > { %10983 = vmatprep.subr.bf16.mxu1 %v11454_v6  ;;  %vm13877_vm15 = vmand %vm6542_vm0, %vm8191_vm14 }
 0x2ed   : > { %10984 = vmatpush3.bf16.msra.mxu1 %v11454_v6  ;;  %v11503_v6 = vld [vmem:[%s14615_s3 + $0x40] sm:$0xff]  }
 0x2ee   : > { %10993 = vmatprep.subr.bf16.mxu1 %v11455_v62  ;;  %11137 = vmatprep.subr.bf16.mxu0 %v11503_v6 }
 0x2ef   : > { %11138 = vmatpush3.bf16.msra.mxu0 %v11503_v6 }
 0x2f0   : > { %10986 = vmatmul.mubr.bf16.vlgmr.msra.gmra.mrb[20].mxu1 %v13423_v37  ;;  %11139 = vmatprep.subr.bf16.mxu0 %v11504_v42 }
 0x2f1   : > { %10989 = vmatprep.mubr.bf16.mxu1 %v13453_v13  ;;  %10994 = vmatpush3.bf16.msra.mxu1 %v11455_v62 }
 0x2f2   : > { %10995 = vmatprep.subr.bf16.mxu1 %v11456_v34 }
 0x2f3   : > { %11140 = vmatpush3.bf16.msra.mxu0 %v11504_v42 }
 0x2f5   : > { %10996 = vmatpush3.bf16.msra.mxu1 %v11456_v34 }
 0x2f6   : > { %10997 = vmatprep.subr.bf16.mxu1 %v11457_v23 }
 0x2f8   : > { %10990 = vmatmul.mubr.bf16.gmra.mrb[24].mxu1 %v13465_v36 }
 0x2f9   : > { %10998 = vmatpush3.bf16.msra.mxu1 %v11457_v23  ;;  %11009 = vmatprep.mubr.bf16.mxu1 %v10259_v1  ;;  %v11464_v1 = vld [vmem:[%s14614_s2 + $0x108] sm:$0xff]   ;;  %v11507_v23 = vld [vmem:[%s14615_s3 + $0x60] sm:$0xff]  }
 0x2fa   : > { %10999 = vmatprep.subr.bf16.mxu1 %v11458_v55 }
 0x2fd   : > { %11000 = vmatpush3.bf16.msra.mxu1 %v11458_v55  ;;  %v11508_v55 = vld [vmem:[%s14615_s3 + $0x68] sm:$0xff]  }
 0x2fe   : > { %11001 = vmatprep.subr.bf16.mxu1 %v11459_v5 }
 0x301   : > { %11002 = vmatpush3.bf16.msra.mxu1 %v11459_v5 }
 0x302   : > { %11003 = vmatprep.subr.bf16.mxu1 %v11460_v61 }
 0x305   : > { %11004 = vmatpush3.bf16.msra.mxu1 %v11460_v61 }
 0x306   : > { %11005 = vmatprep.subr.bf16.mxu1 %v11461_v40 }
 0x309   : > { %11006 = vmatpush3.bf16.msra.mxu1 %v11461_v40  ;;  %v11509_v40 = vld [vmem:[%s14615_s3 + $0x70] sm:$0xff]  }
 0x30a   : > { %11007 = vmatprep.subr.bf16.mxu1 %v11462_v38 }
 0x30d   : > { %11008 = vmatpush3.bf16.msra.mxu1 %v11462_v38  ;;  %v7616_v38 = vsub.s32 1, %v14699_v29 }
 0x30e   : > { %11017 = vmatprep.subr.bf16.mxu1 %v11463_v58 }
 0x310   : > { %11010 = vmatmul.mubr.bf16.vlgmr.msra.gmra.mrb[20].mxu1 %v10260_v8  ;;  %v14695_v8 = vcombine.low %v13349_v9, %v13413_v22  ;;  %v11477_v9 = vld [vmem:[%s14614_s2 + $0x170] sm:$0xff]   ;;  %v11480_v22 = vld [vmem:[%s14614_s2 + $0x188] sm:$0xff]  }
 0x311   : > { %11013 = vmatprep.mubr.bf16.mxu1 %v10261_v18  ;;  %11018 = vmatpush3.bf16.msra.mxu1 %v11463_v58  ;;  %v11473_v18 = vld [vmem:[%s14614_s2 + $0x150] sm:$0xff]  }
 0x312   : > { %11019 = vmatprep.subr.bf16.mxu1 %v11464_v1 }
 0x315   : > { %11020 = vmatpush3.bf16.msra.mxu1 %v11464_v1 }
 0x316   : > { %11021 = vmatprep.subr.bf16.mxu1 %v11465_v15 }
 0x318   : > { %11014 = vmatmul.mubr.bf16.gmra.mrb[24].mxu1 %v10262_v35  ;;  %v11482_v35 = vld [vmem:[%s14614_s2 + $0x198] sm:$0xff]  }
 0x319   : > { %11022 = vmatpush3.bf16.msra.mxu1 %v11465_v15  ;;  %11033 = vmatprep.mubr.bf16.mxu1 %v10289_v0  ;;  %v11474_v0 = vld [vmem:[%s14614_s2 + $0x158] sm:$0xff]  }
 0x31a   : > { %11023 = vmatprep.subr.bf16.mxu1 %v11466_v28  ;;  %v11510_v15 = vld [vmem:[%s14615_s3 + $0x78] sm:$0xff]  }
 0x31d   : > { %11024 = vmatpush3.bf16.msra.mxu1 %v11466_v28  ;;  %v11576_v28 = vld [vmem:[%s14616_s4] sm:$0x7] }
 0x31e   : > { %11025 = vmatprep.subr.bf16.mxu1 %v11467_v32 }
 0x321   : > { %11026 = vmatpush3.bf16.msra.mxu1 %v11467_v32  ;;  %v13791_v32 = vrot.slane %v11576_v28, %v7616_v38 }
 0x322   : > { %11027 = vmatprep.subr.bf16.mxu1 %v11468_v3 }
 0x325   : > { %11028 = vmatpush3.bf16.msra.mxu1 %v11468_v3 }
 0x326   : > { %11029 = vmatprep.subr.bf16.mxu1 %v11469_v48 }
 0x329   : > { %11030 = vmatpush3.bf16.msra.mxu1 %v11469_v48  ;;  %v11577_v48 = vld [vmem:[%s14617_s5] sm:$0x7] }
 0x32a   : > { %11031 = vmatprep.subr.bf16.mxu1 %v11470_v45 }
 0x32d   : > { %11032 = vmatpush3.bf16.msra.mxu1 %v11470_v45  ;;  %v13798_v45 = vrot.slane %v11577_v48, %v7616_v38 }
 0x32e   : > { %11041 = vmatprep.subr.bf16.mxu1 %v11471_v33 }
 0x330   : > { %11034 = vmatmul.mubr.bf16.vlgmr.msra.gmra.mrb[20].mxu1 %v14694_v47 }
 0x331   : > { %11037 = vmatprep.mubr.bf16.mxu1 %v14695_v8  ;;  %11042 = vmatpush3.bf16.msra.mxu1 %v11471_v33  ;;  %v11511_v8 = vld [vmem:[%s14615_s3] sm:$0xff]  }
 0x332   : > { %11043 = vmatprep.subr.bf16.mxu1 %v11472_v39 }
 0x335   : > { %11044 = vmatpush3.bf16.msra.mxu1 %v11472_v39 }
 0x336   : > { %11045 = vmatprep.subr.bf16.mxu1 %v11473_v18 }
 0x338   : > { %11038 = vmatmul.mubr.bf16.gmra.mrb[24].mxu1 %v10292_v24  ;;  %v11591_v24 = vmov 1983009808  }
 0x339   : > { %11046 = vmatpush3.bf16.msra.mxu1 %v11473_v18  ;;  %11057 = vmatprep.mubr.bf16.mxu1 %v10318_v26  ;;  %v11481_v26 = vld [vmem:[%s14614_s2 + $0x190] sm:$0xff]   ;;  %v7656_v62 = vunpack.c.l.s4 %v11591_v24 }
 0x33a   : > { %11047 = vmatprep.subr.bf16.mxu1 %v11474_v0 }
 0x33b   : > { %v7657_v31 = vunpack.c.0.s8 %v7656_v62 }
 0x33d   : > { %11048 = vmatpush3.bf16.msra.mxu1 %v11474_v0 }
 0x33e   : > { %11049 = vmatprep.subr.bf16.mxu1 %v11475_v43 }
 0x341   : > { %11050 = vmatpush3.bf16.msra.mxu1 %v11475_v43 }
 0x342   : > { %11051 = vmatprep.subr.bf16.mxu1 %v11476_v2 }
 0x345   : > { %11052 = vmatpush3.bf16.msra.mxu1 %v11476_v2 }
 0x346   : > { %11053 = vmatprep.subr.bf16.mxu1 %v11477_v9 }
 0x349   : > { %11054 = vmatpush3.bf16.msra.mxu1 %v11477_v9 }
 0x34a   : > { %11055 = vmatprep.subr.bf16.mxu1 %v11478_v4 }
 0x34d   : > { %11056 = vmatpush3.bf16.msra.mxu1 %v11478_v4 }
 0x34e   : > { %11065 = vmatprep.subr.bf16.mxu1 %v11479_v19 }
 0x350   : > { %11058 = vmatmul.mubr.bf16.vlgmr.msra.gmra.mrb[20].mxu1 %v14696_v44 }
 0x351   : > { %11061 = vmatprep.mubr.bf16.mxu1 %v10320_v53  ;;  %11066 = vmatpush3.bf16.msra.mxu1 %v11479_v19  ;;  %v11489_v53 = vld [vmem:[%s14614_s2 + $0x1d0] sm:$0xff]  }
 0x352   : > { %11067 = vmatprep.subr.bf16.mxu1 %v11480_v22 }
 0x355   : > { %11068 = vmatpush3.bf16.msra.mxu1 %v11480_v22 }
 0x356   : > { %11069 = vmatprep.subr.bf16.mxu1 %v11481_v26 }
 0x358   : > { %11062 = vmatmul.mubr.bf16.gmra.mrb[24].mxu1 %v10321_v59  ;;  %v11498_v59 = vld [vmem:[%s14614_s2 + $0x218] sm:$0xff]  }
 0x359   : > { %11070 = vmatpush3.bf16.msra.mxu1 %v11481_v26  ;;  %11081 = vmatprep.mubr.bf16.mxu1 %v13317_v50  ;;  %v11486_v50 = vld [vmem:[%s14614_s2 + $0x1b8] sm:$0xff]  }
 0x35a   : > { %11071 = vmatprep.subr.bf16.mxu1 %v11482_v35 }
 0x35d   : > { %11072 = vmatpush3.bf16.msra.mxu1 %v11482_v35 }
 0x35e   : > { %11073 = vmatprep.subr.bf16.mxu1 %v11483_v21 }
 0x361   : > { %11074 = vmatpush3.bf16.msra.mxu1 %v11483_v21 }
 0x362   : > { %11075 = vmatprep.subr.bf16.mxu1 %v11484_v30 }
 0x365   : > { %11076 = vmatpush3.bf16.msra.mxu1 %v11484_v30 }
 0x366   : > { %11077 = vmatprep.subr.bf16.mxu1 %v11485_v56 }
 0x369   : > { %11078 = vmatpush3.bf16.msra.mxu1 %v11485_v56 }
 0x36a   : > { %11079 = vmatprep.subr.bf16.mxu1 %v11486_v50 }
 0x36d   : > { %11080 = vmatpush3.bf16.msra.mxu1 %v11486_v50 }
 0x36e   : > { %11089 = vmatprep.subr.bf16.mxu1 %v11487_v49 }
 0x370   : > { %11082 = vmatmul.mubr.bf16.vlgmr.msra.gmra.mrb[20].mxu1 %v13321_v57  ;;  %v11491_v57 = vld [vmem:[%s14614_s2 + $0x1e0] sm:$0xff]  }
 0x371   : > { %11085 = vmatprep.mubr.bf16.mxu1 %v13379_v51  ;;  %11090 = vmatpush3.bf16.msra.mxu1 %v11487_v49  ;;  %v11492_v51 = vld [vmem:[%s14614_s2 + $0x1e8] sm:$0xff]  }
 0x372   : > { %11091 = vmatprep.subr.bf16.mxu1 %v11488_v46 }
 0x375   : > { %11092 = vmatpush3.bf16.msra.mxu1 %v11488_v46 }
 0x376   : > { %11093 = vmatprep.subr.bf16.mxu1 %v11489_v53 }
 0x378   : > { %11086 = vmatmul.mubr.bf16.gmra.mrb[24].mxu1 %v10346_v41 }
 0x379   : > { %11094 = vmatpush3.bf16.msra.mxu1 %v11489_v53  ;;  %11105 = vmatprep.mubr.bf16.mxu1 %v13235_v20  ;;  %v11494_v20 = vld [vmem:[%s14614_s2 + $0x1f8] sm:$0xff]  }
 0x37a   : > { %11095 = vmatprep.subr.bf16.mxu1 %v11490_v52 }
 0x37d   : > { %11096 = vmatpush3.bf16.msra.mxu1 %v11490_v52 }
 0x37e   : > { %11097 = vmatprep.subr.bf16.mxu1 %v11491_v57 }
 0x381   : > { %11098 = vmatpush3.bf16.msra.mxu1 %v11491_v57 }
 0x382   : > { %11099 = vmatprep.subr.bf16.mxu1 %v11492_v51 }
 0x385   : > { %11100 = vmatpush3.bf16.msra.mxu1 %v11492_v51 }
 0x386   : > { %11101 = vmatprep.subr.bf16.mxu1 %v11493_v27 }
 0x389   : > { %11102 = vmatpush3.bf16.msra.mxu1 %v11493_v27 }
 0x38a   : > { %11103 = vmatprep.subr.bf16.mxu1 %v11494_v20 }
 0x38d   : > { %11104 = vmatpush3.bf16.msra.mxu1 %v11494_v20 }
 0x38e   : > { %11113 = vmatprep.subr.bf16.mxu1 %v11495_v17 }
 0x390   : > { %11106 = vmatmul.mubr.bf16.vlgmr.msra.gmra.mrb[20].mxu1 %v13358_v11  ;;  %v11499_v11 = vld [vmem:[%s14614_s2 + $0x220] sm:$0xff]  }
 0x391   : > { %11109 = vmatprep.mubr.bf16.mxu1 %v13446_v12  ;;  %11114 = vmatpush3.bf16.msra.mxu1 %v11495_v17  ;;  %v11500_v12 = vld [vmem:[%s14614_s2 + $0x228] sm:$0xff]  }
 0x392   : > { %11115 = vmatprep.subr.bf16.mxu1 %v11496_v14 }
 0x395   : > { %11116 = vmatpush3.bf16.msra.mxu1 %v11496_v14 }
 0x396   : > { %11117 = vmatprep.subr.bf16.mxu1 %v11497_v54 }
 0x398   : > { %11110 = vmatmul.mubr.bf16.gmra.mrb[24].mxu1 %v10371_v25 }
 0x399   : > { %11118 = vmatpush3.bf16.msra.mxu1 %v11497_v54  ;;  %11129 = vmatprep.mubr.bf16.mxu1 %v13423_v37  ;;  %v11502_v37 = vld [vmem:[%s14614_s2 + $0x238] sm:$0xff]  }
 0x39a   : > { %11119 = vmatprep.subr.bf16.mxu1 %v11498_v59 }
 0x39d   : > { %11120 = vmatpush3.bf16.msra.mxu1 %v11498_v59 }
 0x39e   : > { %11121 = vmatprep.subr.bf16.mxu1 %v11499_v11 }
 0x3a1   : > { %11122 = vmatpush3.bf16.msra.mxu1 %v11499_v11 }
 0x3a2   : > { %11123 = vmatprep.subr.bf16.mxu1 %v11500_v12 }
 0x3a5   : > { %11124 = vmatpush3.bf16.msra.mxu1 %v11500_v12 }
 0x3a6   : > { %11125 = vmatprep.subr.bf16.mxu1 %v11501_v10 }
 0x3a9   : > { %11126 = vmatpush3.bf16.msra.mxu1 %v11501_v10 }
 0x3aa   : > { %11127 = vmatprep.subr.bf16.mxu1 %v11502_v37 }
 0x3ad   : > { %11128 = vmatpush3.bf16.msra.mxu1 %v11502_v37 }
 0x3b0   : > { %11130 = vmatmul.mubr.bf16.vlgmr.msra.gmra.mrb[20].mxu1 %v13453_v13  ;;  %v11505_v13 = vld [vmem:[%s14615_s3 + $0x50] sm:$0xff]  }
 0x3b1   : > { %11133 = vmatprep.mubr.bf16.mxu1 %v13465_v36  ;;  %11141 = vmatprep.subr.bf16.mxu0 %v11505_v13  ;;  %v11506_v36 = vld [vmem:[%s14615_s3 + $0x58] sm:$0xff]  }
 0x3b2   : > { %11142 = vmatpush3.bf16.msra.mxu0 %v11505_v13 }
 0x3b3   : > { %11143 = vmatprep.subr.bf16.mxu0 %v11506_v36 }
 0x3b6   : > { %11144 = vmatpush3.bf16.msra.mxu0 %v11506_v36 }
 0x3b7   : > { %11145 = vmatprep.subr.bf16.mxu0 %v11507_v23 }
 0x3b8   : > { %11134 = vmatmul.mubr.bf16.gmra.mrb[24].mxu1 %v10396_v7  ;;  %v13767_v7 = vsub.s32 %v7657_v31, %v14699_v29 }
 0x3ba   : > { %v13771_v34 = vrot.slane %v14697_v60, %v13767_v7  ;;  %11146 = vmatpush3.bf16.msra.mxu0 %v11507_v23 }
 0x3bb   : > { %11147 = vmatprep.subr.bf16.mxu0 %v11508_v55 }
 0x3bc   : > { %v8296_v5 = vshrl.u32 %v13771_v34, 16  ;;  %v8299_v61 = vshll.u32 %v13771_v34, 16  ;;  %v8231_v3 = vcombine.high %v13771_v34, %v13771_v34  ;;  %v10437_v56 = vrot.slane %v13771_v34, 9 }
 0x3be   : > { %11148 = vmatpush3.bf16.msra.mxu0 %v11508_v55  ;;  %v8298_v58 = vrot.slane %v8296_v5, 6  ;;  %v8301_v1 = vrot.slane %v8299_v61, 7  ;;  %v8305_v39 = vshll.u32 %v8231_v3, 16  ;;  %v8698_v50 = vrot.slane %v8231_v3, 7 }
 0x3bf   : > { %11149 = vmatprep.subr.bf16.mxu0 %v11509_v40 }
 0x3c0   : > { %v8302_v33 = vor.u32 %v8301_v1, %v8298_v58  ;;  %v8307_v26 = vrot.slane %v8305_v39, 7  ;;  %v13844_v25 = vsel %vm13825_vm12, %v10437_v56, %v8698_v50 }
 0x3c2   : > { %11150 = vmatpush3.bf16.msra.mxu0 %v11509_v40  ;;  %v8303_v44 = vrot.slane %v8302_v33, 2 }
 0x3c3   : > { %11151 = vmatprep.subr.bf16.mxu0 %v11510_v15 }
 0x3c4   : > { %v13835_v20 = vsel %vm13816_vm8, %v8303_v44, %v8307_v26 }
 0x3c6   : > { %11152 = vmatpush3.bf16.msra.mxu0 %v11510_v15 }
 0x3c7   : > { %11157 = vmatprep.subr.bf16.mxu0 %v11511_v8 }
 0x483   : > { %v11131_v47 = vpop.f32.mrb[20].mxu1 }
 0x484   : > { %v7620_v18 = vmul.f32 %v11131_v47, %v13791_v32  ;;  %v7575_v0 = vpop.f32.mrb[21].mxu1 }
 0x485   : > { %v7618_v43 = vmul.f32 %v13791_v32, %v7575_v0  ;;  %v11132_v2 = vpop.f32.mrb[22].mxu1 }
 0x486   : > { %v7632_v4 = vadd.f32 %v13798_v45, %v7620_v18  ;;  %v7621_v19 = vmul.f32 %v11132_v2, %v13791_v32  ;;  %v7578_v22 = vpop.f32.mrb[23].mxu1 }
 0x487   : > { %v7630_v35 = vadd.f32 %v13798_v45, %v7618_v43  ;;  %v7619_v21 = vmul.f32 %v13791_v32, %v7578_v22 }
 0x488   : > { %v7640_v49 = vmax.f32 %v7632_v4, 0.0  ;;  %v7633_v46 = vadd.f32 %v13798_v45, %v7621_v19 }
 0x489   : > { %v7638_v41 = vmax.f32 %v7630_v35, 0.0  ;;  %v7631_v52 = vadd.f32 %v13798_v45, %v7619_v21 }
 0x48a   : > { %v7688_v57 = vcombine.high %v7640_v49, %v7640_v49  ;;  %v7695_v51 = vrot.slane %v7640_v49, %v13767_v7  ;;  %v13831_v27 = vmax.f32 %v7633_v46, 0.0 }
 0x48b   : > { %v7654_v17 = vcombine.high %v7638_v41, %v7638_v41  ;;  %v7661_v14 = vrot.slane %v7638_v41, %v13767_v7  ;;  %v13838_v54 = vmax.f32 %v7631_v52, 0.0  ;;  %v13840_v63 = vpop.f32.mrb[24].mxu1 }
 0x48c   : > { %v7702_v59 = vrot.slane %v7688_v57, %v13767_v7  ;;  %v7703_v11 = vcombine.high %v7695_v51, %v7695_v51  ;;  %v7879_v12 = vsel %vm7822_vm13, %v7695_v51, -inf  ;;  %v7705_v10 = vcombine.high %v13831_v27, %v13831_v27  ;;  %v13850_v37 = vpop.f32.mrb[25].mxu1 }
 0x48d   : > { %v7880_v6 = vrot.slane %v7879_v12, 4  ;;  %v7668_v42 = vrot.slane %v7654_v17, %v13767_v7  ;;  %v7669_v24 = vcombine.high %v7661_v14, %v7661_v14  ;;  %v7823_v62 = vsel %vm7822_vm13, %v7661_v14, -inf  ;;  %v13854_v13 = vpop.f32.mrb[26].mxu1 }
 0x48e   : > { %v7704_v31 = vcombine.high %v7702_v59, %v7702_v59  ;;  %v7886_v36 = vsel %vm7822_vm13, %v7703_v11, -inf  ;;  %v7893_v34 = vsel %vm7822_vm13, %v7702_v59, -inf  ;;  %v7824_v23 = vrot.slane %v7823_v62, 4  ;;  %v13858_v55 = vpop.f32.mrb[27].mxu1 }
 0x48f   : > { %v7881_v5 = vmax.f32 %v7879_v12, %v7880_v6  ;;  %v7887_v61 = vrot.slane %v7886_v36, 4  ;;  %v7894_v40 = vrot.slane %v7893_v34, 4  ;;  %v7670_v38 = vcombine.high %v7668_v42, %v7668_v42 }
 0x490   : > { %v7900_v58 = vsel %vm7822_vm13, %v7704_v31, -inf  ;;  %v7825_v1 = vmax.f32 %v7823_v62, %v7824_v23  ;;  %v7830_v15 = vsel %vm7822_vm13, %v7669_v24, -inf  ;;  %v7837_v28 = vsel %vm7822_vm13, %v7668_v42, -inf }
 0x491   : > { %v7882_v3 = vrot.slane %v7881_v5, 2  ;;  %v7888_v48 = vmax.f32 %v7886_v36, %v7887_v61  ;;  %v7895_v33 = vmax.f32 %v7893_v34, %v7894_v40  ;;  %v7901_v39 = vrot.slane %v7900_v58, 4 }
 0x492   : > { %v7826_v47 = vrot.slane %v7825_v1, 2  ;;  %v7831_v8 = vrot.slane %v7830_v15, 4  ;;  %v7838_v18 = vrot.slane %v7837_v28, 4  ;;  %v7844_v0 = vsel %vm7822_vm13, %v7670_v38, -inf }
 0x493   : > { %v7883_v43 = vmax.f32 %v7881_v5, %v7882_v3  ;;  %v7889_v2 = vrot.slane %v7888_v48, 2  ;;  %v7896_v9 = vrot.slane %v7895_v33, 2  ;;  %v7902_v4 = vmax.f32 %v7900_v58, %v7901_v39 }
 0x494   : > { %v7827_v19 = vmax.f32 %v7825_v1, %v7826_v47  ;;  %v7832_v22 = vmax.f32 %v7830_v15, %v7831_v8  ;;  %v7839_v44 = vmax.f32 %v7837_v28, %v7838_v18  ;;  %v7845_v26 = vrot.slane %v7844_v0, 4 }
 0x495   : > { %v7884_v35 = vrot.slane %v7883_v43, 1  ;;  %v7890_v21 = vmax.f32 %v7888_v48, %v7889_v2  ;;  %v7897_v56 = vmax.f32 %v7895_v33, %v7896_v9  ;;  %v7903_v50 = vrot.slane %v7902_v4, 2 }
 0x496   : > { %v7828_v49 = vrot.slane %v7827_v19, 1  ;;  %v7833_v46 = vrot.slane %v7832_v22, 2  ;;  %v7840_v41 = vrot.slane %v7839_v44, 2  ;;  %v7846_v52 = vmax.f32 %v7844_v0, %v7845_v26 }
 0x497   : > { %v7885_v57 = vmax.f32 %v7883_v43, %v7884_v35  ;;  %v7891_v51 = vrot.slane %v7890_v21, 1  ;;  %v7898_v17 = vrot.slane %v7897_v56, 1  ;;  %v7904_v14 = vmax.f32 %v7902_v4, %v7903_v50 }
 0x498   : > { %v7829_v59 = vmax.f32 %v7827_v19, %v7828_v49  ;;  %v7834_v11 = vmax.f32 %v7832_v22, %v7833_v46  ;;  %v7841_v12 = vmax.f32 %v7839_v44, %v7840_v41  ;;  %v7847_v6 = vrot.slane %v7846_v52, 2 }
 0x499   : > { %v7892_v42 = vmax.f32 %v7890_v21, %v7891_v51  ;;  %v7899_v24 = vmax.f32 %v7897_v56, %v7898_v17  ;;  %v7905_v62 = vrot.slane %v7904_v14, 1  ;;  %v8055_v31 = vpack.c.bf16 %v7885_v57, %v7885_v57 }
 0x49a   : > { %v7835_v36 = vrot.slane %v7834_v11, 1  ;;  %v7842_v34 = vrot.slane %v7841_v12, 1  ;;  %v7848_v23 = vmax.f32 %v7846_v52, %v7847_v6  ;;  %v8047_v5 = vpack.c.bf16 %v7829_v59, %v7829_v59 }
 0x49b   : > { %v7906_v61 = vmax.f32 %v7904_v14, %v7905_v62  ;;  %v8056_v40 = vpack.c.bf16 %v7892_v42, %v7892_v42  ;;  %v8057_v38 = vpack.c.bf16 %v7899_v24, %v7899_v24  ;;  %v8119_v58 = vunpack.c.l.b16 %v8055_v31 }
 0x49c   : > { %v7836_v1 = vmax.f32 %v7834_v11, %v7835_v36  ;;  %v7843_v15 = vmax.f32 %v7841_v12, %v7842_v34  ;;  %v7849_v28 = vrot.slane %v7848_v23, 1  ;;  %v8111_v3 = vunpack.c.l.b16 %v8047_v5 }
 0x49d   : > { %v8058_v48 = vpack.c.bf16 %v7906_v61, %v7906_v61  ;;  %v8120_v33 = vunpack.c.l.b16 %v8056_v40  ;;  %v8121_v39 = vunpack.c.l.b16 %v8057_v38  ;;  %v7712_v47 = vrot.slane %v13831_v27, %v13767_v7 }
 0x49e   : > { %v7850_v8 = vmax.f32 %v7848_v23, %v7849_v28  ;;  %v8048_v18 = vpack.c.bf16 %v7836_v1, %v7836_v1  ;;  %v8049_v0 = vpack.c.bf16 %v7843_v15, %v7843_v15  ;;  %v7719_v43 = vrot.slane %v7705_v10, %v13767_v7 }
 0x49f   : > { %v8122_v2 = vunpack.c.l.b16 %v8058_v48  ;;  %v8149_v9 = vsel %vm6012_vm2, %v8120_v33, %v8119_v58  ;;  %v7720_v4 = vcombine.high %v7712_v47, %v7712_v47  ;;  %v7907_v19 = vsel %vm7822_vm13, %v7712_v47, -inf }
 0x4a0   : > { %v8150_v22 = vsel %vm6014_vm3, %v8121_v39, %v8149_v9  ;;  %v8050_v44 = vpack.c.bf16 %v7850_v8, %v7850_v8  ;;  %v8112_v26 = vunpack.c.l.b16 %v8048_v18  ;;  %v8113_v35 = vunpack.c.l.b16 %v8049_v0 }
 0x4a1   : > { %v8151_v21 = vsel %vm6016_vm4, %v8122_v2, %v8150_v22  ;;  %v7721_v56 = vcombine.high %v7719_v43, %v7719_v43  ;;  %v7908_v50 = vrot.slane %v7907_v19, 4  ;;  %v7914_v49 = vsel %vm7822_vm13, %v7720_v4, -inf }
 0x4a2   : > { %v8169_v10 = vpack.c.b16 %v8151_v21, %v8151_v21  ;;  %v8114_v46 = vunpack.c.l.b16 %v8050_v44  ;;  %v8143_v41 = vsel %vm6012_vm2, %v8112_v26, %v8111_v3  ;;  %v7915_v52 = vrot.slane %v7914_v49, 4 }
 0x4a3   : > { %v8144_v57 = vsel %vm6014_vm3, %v8113_v35, %v8143_v41  ;;  %v7909_v51 = vmax.f32 %v7907_v19, %v7908_v50  ;;  %v7921_v17 = vsel %vm7822_vm13, %v7719_v43, -inf  ;;  %v7928_v14 = vsel %vm7822_vm13, %v7721_v56, -inf }
 0x4a4   : > { %v8185_v59 = vsel %vm13097_vm10, 0, %v8169_v10  ;;  %v8145_v11 = vsel %vm6016_vm4, %v8114_v46, %v8144_v57  ;;  %v7916_v12 = vmax.f32 %v7914_v49, %v7915_v52  ;;  %v7922_v6 = vrot.slane %v7921_v17, 4 }
 0x4a5   : > { %v13890_v42 = vsel %vm13877_vm15, %v8185_v59, 0  ;;  %v8167_v24 = vpack.c.b16 %v8145_v11, %v8145_v11  ;;  %v7910_v62 = vrot.slane %v7909_v51, 2  ;;  %v7929_v31 = vrot.slane %v7928_v14, 4 }
 0x4a6   : > { %v7917_v36 = vrot.slane %v7916_v12, 2  ;;  %v7923_v34 = vmax.f32 %v7921_v17, %v7922_v6  ;;  %v7671_v23 = vcombine.high %v13838_v54, %v13838_v54  ;;  %v7678_v5 = vrot.slane %v13838_v54, %v13767_v7 }
 0x4a7   : > { %v8183_v61 = vsel %vm13097_vm10, 0, %v8167_v24  ;;  %v7911_v40 = vmax.f32 %v7909_v51, %v7910_v62  ;;  %v7930_v38 = vmax.f32 %v7928_v14, %v7929_v31  ;;  %v7624_v58 = vmul.f32 %v13840_v63, %v13791_v32 }
 0x4a8   : > { %v13902_v1 = vsel %vm13877_vm15, %v8183_v61, 0  ;;  %v7918_v15 = vmax.f32 %v7916_v12, %v7917_v36  ;;  %v7924_v28 = vrot.slane %v7923_v34, 2  ;;  %v7685_v3 = vrot.slane %v7671_v23, %v13767_v7 }
 0x4a9   : > { %v7912_v48 = vrot.slane %v7911_v40, 1  ;;  %v7931_v33 = vrot.slane %v7930_v38, 2  ;;  %v7686_v39 = vcombine.high %v7678_v5, %v7678_v5  ;;  %v7851_v54 = vsel %vm7822_vm13, %v7678_v5, -inf }
 0x4aa   : > { %v7919_v47 = vrot.slane %v7918_v15, 1  ;;  %v7925_v8 = vmax.f32 %v7923_v34, %v7924_v28  ;;  %v7687_v18 = vcombine.high %v7685_v3, %v7685_v3  ;;  %v7852_v0 = vrot.slane %v7851_v54, 4 }
 0x4ab   : > { %v7913_v43 = vmax.f32 %v7911_v40, %v7912_v48  ;;  %v7932_v2 = vmax.f32 %v7930_v38, %v7931_v33  ;;  %v7858_v63 = vsel %vm7822_vm13, %v7686_v39, -inf  ;;  %v7865_v9 = vsel %vm7822_vm13, %v7685_v3, -inf }
 0x4ac   : > { %v7920_v4 = vmax.f32 %v7918_v15, %v7919_v47  ;;  %v7926_v19 = vrot.slane %v7925_v8, 1  ;;  %v7853_v22 = vmax.f32 %v7851_v54, %v7852_v0  ;;  %v7859_v44 = vrot.slane %v7858_v63, 4 }
 0x4ad   : > { %v7933_v26 = vrot.slane %v7932_v2, 1  ;;  %v8059_v35 = vpack.c.bf16 %v7913_v43, %v7913_v43  ;;  %v7866_v21 = vrot.slane %v7865_v9, 4  ;;  %v7872_v56 = vsel %vm7822_vm13, %v7687_v18, -inf }
 0x4ae   : > { %v7927_v50 = vmax.f32 %v7925_v8, %v7926_v19  ;;  %v8060_v49 = vpack.c.bf16 %v7920_v4, %v7920_v4  ;;  %v7854_v10 = vrot.slane %v7853_v22, 2  ;;  %v7860_v46 = vmax.f32 %v7858_v63, %v7859_v44 }
 0x4af   : > { %v7934_v41 = vmax.f32 %v7932_v2, %v7933_v26  ;;  %v8123_v52 = vunpack.c.l.b16 %v8059_v35  ;;  %v7867_v57 = vmax.f32 %v7865_v9, %v7866_v21  ;;  %v7873_v51 = vrot.slane %v7872_v56, 4 }
 0x4b0   : > { %v8061_v17 = vpack.c.bf16 %v7927_v50, %v7927_v50  ;;  %v8124_v14 = vunpack.c.l.b16 %v8060_v49  ;;  %v7855_v59 = vmax.f32 %v7853_v22, %v7854_v10  ;;  %v7861_v11 = vrot.slane %v7860_v46, 2 }
 0x4b1   : > { %v8062_v12 = vpack.c.bf16 %v7934_v41, %v7934_v41  ;;  %v7868_v6 = vrot.slane %v7867_v57, 2  ;;  %v7874_v24 = vmax.f32 %v7872_v56, %v7873_v51  ;;  %v7636_v62 = vadd.f32 %v13798_v45, %v7624_v58 }
 0x4b2   : > { %v8125_v31 = vunpack.c.l.b16 %v8061_v17  ;;  %v8152_v36 = vsel %vm6012_vm2, %v8124_v14, %v8123_v52  ;;  %v7856_v34 = vrot.slane %v7855_v59, 1  ;;  %v7862_v23 = vmax.f32 %v7860_v46, %v7861_v11 }
 0x4b3   : > { %v8126_v5 = vunpack.c.l.b16 %v8062_v12  ;;  %v7869_v61 = vmax.f32 %v7867_v57, %v7868_v6  ;;  %v7875_v40 = vrot.slane %v7874_v24, 2  ;;  %v7644_v38 = vmax.f32 %v7636_v62, 0.0 }
 0x4b4   : > { %v8153_v15 = vsel %vm6014_vm3, %v8125_v31, %v8152_v36  ;;  %v7857_v28 = vmax.f32 %v7855_v59, %v7856_v34  ;;  %v7863_v3 = vrot.slane %v7862_v23, 1  ;;  %v7622_v48 = vmul.f32 %v13791_v32, %v13850_v37 }
 0x4b5   : > { %v8154_v33 = vsel %vm6016_vm4, %v8126_v5, %v8153_v15  ;;  %v7870_v39 = vrot.slane %v7869_v61, 1  ;;  %v7876_v58 = vmax.f32 %v7874_v24, %v7875_v40  ;;  %v7756_v54 = vcombine.high %v7644_v38, %v7644_v38 }
 0x4b6   : > { %v8170_v47 = vpack.c.b16 %v8154_v33, %v8154_v33  ;;  %v7864_v8 = vmax.f32 %v7862_v23, %v7863_v3  ;;  %v8051_v18 = vpack.c.bf16 %v7857_v28, %v7857_v28  ;;  %v7763_v0 = vrot.slane %v7644_v38, %v13767_v7 }
 0x4b7   : > { %v7871_v43 = vmax.f32 %v7869_v61, %v7870_v39  ;;  %v7877_v2 = vrot.slane %v7876_v58, 1  ;;  %v7770_v63 = vrot.slane %v7756_v54, %v13767_v7  ;;  %v7634_v9 = vadd.f32 %v13798_v45, %v7622_v48 }
 0x4b8   : > { %v8186_v4 = vsel %vm13097_vm10, 0, %v8170_v47  ;;  %v8052_v37 = vpack.c.bf16 %v7864_v8, %v7864_v8  ;;  %v8115_v19 = vunpack.c.l.b16 %v8051_v18  ;;  %v7771_v22 = vcombine.high %v7763_v0, %v7763_v0 }
 0x4b9   : > { %v13922_v44 = vsel %vm13877_vm15, %v8186_v4, 0  ;;  %v7878_v26 = vmax.f32 %v7876_v58, %v7877_v2  ;;  %v8053_v35 = vpack.c.bf16 %v7871_v43, %v7871_v43  ;;  %v7772_v21 = vcombine.high %v7770_v63, %v7770_v63 }
 0x4ba   : > { %v13926_v56 = vrot.slane %v13922_v44, %v13767_v7  ;;  %v8116_v50 = vunpack.c.l.b16 %v8052_v37  ;;  %v7991_v49 = vsel %vm7822_vm13, %v7763_v0, -inf  ;;  %v7998_v10 = vsel %vm7822_vm13, %v7771_v22, -inf }
 0x4bb   : > { %v8054_v46 = vpack.c.bf16 %v7878_v26, %v7878_v26  ;;  %v8117_v41 = vunpack.c.l.b16 %v8053_v35  ;;  %v7992_v52 = vrot.slane %v7991_v49, 4  ;;  %v7999_v57 = vrot.slane %v7998_v10, 4 }
 0x4bc   : > { %v8146_v51 = vsel %vm6012_vm2, %v8116_v50, %v8115_v19  ;;  %v8005_v17 = vsel %vm7822_vm13, %v7770_v63, -inf  ;;  %v8012_v14 = vsel %vm7822_vm13, %v7772_v21, -inf  ;;  %v7642_v59 = vmax.f32 %v7634_v9, 0.0 }
 0x4bd   : > { %v8118_v11 = vunpack.c.l.b16 %v8054_v46  ;;  %v8147_v12 = vsel %vm6014_vm3, %v8117_v41, %v8146_v51  ;;  %v7993_v6 = vmax.f32 %v7991_v49, %v7992_v52  ;;  %v8000_v24 = vmax.f32 %v7998_v10, %v7999_v57 }
 0x4be   : > { %v8006_v62 = vrot.slane %v8005_v17, 4  ;;  %v8013_v31 = vrot.slane %v8012_v14, 4  ;;  %v7722_v36 = vcombine.high %v7642_v59, %v7642_v59  ;;  %v7729_v34 = vrot.slane %v7642_v59, %v13767_v7 }
 0x4bf   : > { %v8148_v23 = vsel %vm6016_vm4, %v8118_v11, %v8147_v12  ;;  %v7994_v5 = vrot.slane %v7993_v6, 2  ;;  %v8001_v61 = vrot.slane %v8000_v24, 2  ;;  %v7625_v40 = vmul.f32 %v13854_v13, %v13791_v32 }
 0x4c0   : > { %v8168_v38 = vpack.c.b16 %v8148_v23, %v8148_v23  ;;  %v8007_v15 = vmax.f32 %v8005_v17, %v8006_v62  ;;  %v8014_v28 = vmax.f32 %v8012_v14, %v8013_v31  ;;  %v7736_v3 = vrot.slane %v7722_v36, %v13767_v7 }
 0x4c1   : > { %v7995_v48 = vmax.f32 %v7993_v6, %v7994_v5  ;;  %v8002_v33 = vmax.f32 %v8000_v24, %v8001_v61  ;;  %v7737_v39 = vcombine.high %v7729_v34, %v7729_v34  ;;  %v7935_v58 = vsel %vm7822_vm13, %v7729_v34, -inf }
 0x4c2   : > { %v8184_v54 = vsel %vm13097_vm10, 0, %v8168_v38  ;;  %v8008_v47 = vrot.slane %v8007_v15, 2  ;;  %v8015_v8 = vrot.slane %v8014_v28, 2  ;;  %v7738_v18 = vcombine.high %v7736_v3, %v7736_v3 }
 0x4c3   : > { %v13944_v0 = vsel %vm13877_vm15, %v8184_v54, 0  ;;  %v7996_v13 = vrot.slane %v7995_v48, 1  ;;  %v8003_v43 = vrot.slane %v8002_v33, 1  ;;  %v7936_v2 = vrot.slane %v7935_v58, 4 }
 0x4c4   : > { %v8009_v63 = vmax.f32 %v8007_v15, %v8008_v47  ;;  %v8016_v9 = vmax.f32 %v8014_v28, %v8015_v8  ;;  %v7942_v4 = vsel %vm7822_vm13, %v7737_v39, -inf  ;;  %v7949_v37 = vsel %vm7822_vm13, %v7736_v3, -inf }
 0x4c5   : > { %v7997_v19 = vmax.f32 %v7995_v48, %v7996_v13  ;;  %v8004_v22 = vmax.f32 %v8002_v33, %v8003_v43  ;;  %v7937_v26 = vmax.f32 %v7935_v58, %v7936_v2  ;;  %v7943_v35 = vrot.slane %v7942_v4, 4 }
 0x4c6   : > { %v8010_v21 = vrot.slane %v8009_v63, 1  ;;  %v8017_v50 = vrot.slane %v8016_v9, 1  ;;  %v7950_v49 = vrot.slane %v7949_v37, 4  ;;  %v7956_v10 = vsel %vm7822_vm13, %v7738_v18, -inf }
 0x4c7   : > { %v8071_v46 = vpack.c.bf16 %v7997_v19, %v7997_v19  ;;  %v8072_v41 = vpack.c.bf16 %v8004_v22, %v8004_v22  ;;  %v7938_v52 = vrot.slane %v7937_v26, 2  ;;  %v7944_v57 = vmax.f32 %v7942_v4, %v7943_v35 }
 0x4c8   : > { %v8011_v51 = vmax.f32 %v8009_v63, %v8010_v21  ;;  %v8018_v17 = vmax.f32 %v8016_v9, %v8017_v50  ;;  %v7951_v14 = vmax.f32 %v7949_v37, %v7950_v49  ;;  %v7957_v59 = vrot.slane %v7956_v10, 4 }
 0x4c9   : > { %v8135_v11 = vunpack.c.l.b16 %v8071_v46  ;;  %v8136_v12 = vunpack.c.l.b16 %v8072_v41  ;;  %v7939_v6 = vmax.f32 %v7937_v26, %v7938_v52  ;;  %v7945_v24 = vrot.slane %v7944_v57, 2 }
 0x4ca   : > { %v8073_v62 = vpack.c.bf16 %v8011_v51, %v8011_v51  ;;  %v8074_v31 = vpack.c.bf16 %v8018_v17, %v8018_v17  ;;  %v7952_v36 = vrot.slane %v7951_v14, 2  ;;  %v7958_v34 = vmax.f32 %v7956_v10, %v7957_v59 }
 0x4cb   : > { %v8161_v23 = vsel %vm6012_vm2, %v8136_v12, %v8135_v11  ;;  %v7940_v5 = vrot.slane %v7939_v6, 1  ;;  %v7946_v61 = vmax.f32 %v7944_v57, %v7945_v24  ;;  %v7637_v38 = vadd.f32 %v13798_v45, %v7625_v40 }
 0x4cc   : > { %v8137_v15 = vunpack.c.l.b16 %v8073_v62  ;;  %v8138_v28 = vunpack.c.l.b16 %v8074_v31  ;;  %v7953_v3 = vmax.f32 %v7951_v14, %v7952_v36  ;;  %v7959_v48 = vrot.slane %v7958_v34, 2 }
 0x4cd   : > { %v7941_v33 = vmax.f32 %v7939_v6, %v7940_v5  ;;  %v7947_v39 = vrot.slane %v7946_v61, 1  ;;  %v7645_v58 = vmax.f32 %v7637_v38, 0.0  ;;  %v7623_v54 = vmul.f32 %v13791_v32, %v13858_v55 }
 0x4ce   : > { %v8162_v47 = vsel %vm6014_vm3, %v8137_v15, %v8161_v23  ;;  %v7954_v8 = vrot.slane %v7953_v3, 1  ;;  %v7960_v18 = vmax.f32 %v7958_v34, %v7959_v48  ;;  %v13956_v13 = vrot.slane %v13902_v1, %v13767_v7 }
 0x4cf   : > { %v8163_v40 = vsel %vm6016_vm4, %v8138_v28, %v8162_v47  ;;  %v7948_v43 = vmax.f32 %v7946_v61, %v7947_v39  ;;  %v8063_v2 = vpack.c.bf16 %v7941_v33, %v7941_v33  ;;  %v7773_v63 = vcombine.high %v7645_v58, %v7645_v58 }
 0x4d0   : > { %v8173_v9 = vpack.c.b16 %v8163_v40, %v8163_v40  ;;  %v7955_v4 = vmax.f32 %v7953_v3, %v7954_v8  ;;  %v7961_v37 = vrot.slane %v7960_v18, 1  ;;  %v7780_v19 = vrot.slane %v7645_v58, %v13767_v7 }
 0x4d1   : > { %v8064_v22 = vpack.c.bf16 %v7948_v43, %v7948_v43  ;;  %v8127_v32 = vunpack.c.l.b16 %v8063_v2  ;;  %v7787_v55 = vrot.slane %v7773_v63, %v13767_v7  ;;  %v7635_v26 = vadd.f32 %v13798_v45, %v7623_v54 }
 0x4d2   : > { %v8189_v35 = vsel %vm13097_vm10, 0, %v8173_v9  ;;  %v7962_v21 = vmax.f32 %v7960_v18, %v7961_v37  ;;  %v8065_v50 = vpack.c.bf16 %v7955_v4, %v7955_v4  ;;  %v7788_v49 = vcombine.high %v7780_v19, %v7780_v19 }
 0x4d3   : > { %v13966_v10 = vsel %vm13877_vm15, %v8189_v35, 0  ;;  %v8128_v46 = vunpack.c.l.b16 %v8064_v22  ;;  %v7789_v41 = vcombine.high %v7787_v55, %v7787_v55  ;;  %v8019_v52 = vsel %vm7822_vm13, %v7780_v19, -inf }
 0x4d4   : > { %v13971_v57 = vrot.slane %v13966_v10, %v13767_v7  ;;  %v8066_v51 = vpack.c.bf16 %v7962_v21, %v7962_v21  ;;  %v8129_v45 = vunpack.c.l.b16 %v8065_v50  ;;  %v8020_v17 = vrot.slane %v8019_v52, 4 }
 0x4d5   : > { %v8155_v14 = vsel %vm6012_vm2, %v8128_v46, %v8127_v32  ;;  %v8026_v59 = vsel %vm7822_vm13, %v7788_v49, -inf  ;;  %v8033_v11 = vsel %vm7822_vm13, %v7787_v55, -inf  ;;  %v8040_v12 = vsel %vm7822_vm13, %v7789_v41, -inf }
 0x4d6   : > { %v8130_v6 = vunpack.c.l.b16 %v8066_v51  ;;  %v8156_v24 = vsel %vm6014_vm3, %v8129_v45, %v8155_v14  ;;  %v8021_v62 = vmax.f32 %v8019_v52, %v8020_v17  ;;  %v8027_v31 = vrot.slane %v8026_v59, 4 }
 0x4d7   : > { %v8034_v36 = vrot.slane %v8033_v11, 4  ;;  %v8041_v34 = vrot.slane %v8040_v12, 4  ;;  %v7643_v23 = vmax.f32 %v7635_v26, 0.0  ;;  %v13980_v5 = vcombine.high %v13956_v13, %v13956_v13 }
 0x4d8   : > { %v8157_v61 = vsel %vm6016_vm4, %v8130_v6, %v8156_v24  ;;  %v8022_v38 = vrot.slane %v8021_v62, 2  ;;  %v8028_v15 = vmax.f32 %v8026_v59, %v8027_v31  ;;  %v13985_v28 = vrot.slane %v13944_v0, %v13767_v7 }
 0x4d9   : > { %v8171_v3 = vpack.c.b16 %v8157_v61, %v8157_v61  ;;  %v8035_v48 = vmax.f32 %v8033_v11, %v8034_v36  ;;  %v8042_v33 = vmax.f32 %v8040_v12, %v8041_v34  ;;  %v7739_v39 = vcombine.high %v7643_v23, %v7643_v23 }
 0x4da   : > { %v8023_v58 = vmax.f32 %v8021_v62, %v8022_v38  ;;  %v8029_v54 = vrot.slane %v8028_v15, 2  ;;  %v7746_v47 = vrot.slane %v7643_v23, %v13767_v7  ;;  %v13990_v8 = vcombine.high %v13985_v28, %v13985_v28 }
 0x4db   : > { %v8187_v18 = vsel %vm13097_vm10, 0, %v8171_v3  ;;  %v8036_v40 = vrot.slane %v8035_v48, 2  ;;  %v8043_v43 = vrot.slane %v8042_v33, 2  ;;  %v7753_v2 = vrot.slane %v7739_v39, %v13767_v7 }
 0x4dc   : > { %v13997_v63 = vsel %vm13877_vm15, %v8187_v18, 0  ;;  %v8024_v9 = vrot.slane %v8023_v58, 1  ;;  %v8030_v4 = vmax.f32 %v8028_v15, %v8029_v54  ;;  %v7754_v37 = vcombine.high %v7746_v47, %v7746_v47 }
 0x4dd   : > { %v14001_v19 = vrot.slane %v13997_v63, %v13767_v7  ;;  %v8037_v22 = vmax.f32 %v8035_v48, %v8036_v40  ;;  %v8044_v32 = vmax.f32 %v8042_v33, %v8043_v43  ;;  %v7755_v55 = vcombine.high %v7753_v2, %v7753_v2 }
 0x4de   : > { %v8025_v26 = vmax.f32 %v8023_v58, %v8024_v9  ;;  %v8031_v35 = vrot.slane %v8030_v4, 1  ;;  %v7963_v21 = vsel %vm7822_vm13, %v7746_v47, -inf  ;;  %v7970_v50 = vsel %vm7822_vm13, %v7754_v37, -inf }
 0x4df   : > { %v8038_v49 = vrot.slane %v8037_v22, 1  ;;  %v8045_v46 = vrot.slane %v8044_v32, 1  ;;  %v7964_v41 = vrot.slane %v7963_v21, 4  ;;  %v7971_v52 = vrot.slane %v7970_v50, 4 }
 0x4e0   : > { %v8032_v51 = vmax.f32 %v8030_v4, %v8031_v35  ;;  %v8075_v45 = vpack.c.bf16 %v8025_v26, %v8025_v26  ;;  %v7977_v17 = vsel %vm7822_vm13, %v7753_v2, -inf  ;;  %v7984_v14 = vsel %vm7822_vm13, %v7755_v55, -inf }
 0x4e1   : > { %v8039_v59 = vmax.f32 %v8037_v22, %v8038_v49  ;;  %v8046_v11 = vmax.f32 %v8044_v32, %v8045_v46  ;;  %v7965_v12 = vmax.f32 %v7963_v21, %v7964_v41  ;;  %v7972_v6 = vmax.f32 %v7970_v50, %v7971_v52 }
 0x4e2   : > { %v8076_v24 = vpack.c.bf16 %v8032_v51, %v8032_v51  ;;  %v8139_v62 = vunpack.c.l.b16 %v8075_v45  ;;  %v7978_v31 = vrot.slane %v7977_v17, 4  ;;  %v7985_v36 = vrot.slane %v7984_v14, 4 }
 0x4e3   : > { %v8077_v34 = vpack.c.bf16 %v8039_v59, %v8039_v59  ;;  %v8078_v23 = vpack.c.bf16 %v8046_v11, %v8046_v11  ;;  %v7966_v61 = vrot.slane %v7965_v12, 2  ;;  %v7973_v38 = vrot.slane %v7972_v6, 2 }
 0x4e4   : > { %v8140_v15 = vunpack.c.l.b16 %v8076_v24  ;;  %v7979_v3 = vmax.f32 %v7977_v17, %v7978_v31  ;;  %v7986_v48 = vmax.f32 %v7984_v14, %v7985_v36  ;;  %v14009_v33 = vrot.slane %v13890_v42, %v13767_v7 }
 0x4e5   : > { %v8141_v39 = vunpack.c.l.b16 %v8077_v34  ;;  %v8142_v58 = vunpack.c.l.b16 %v8078_v23  ;;  %v7967_v54 = vmax.f32 %v7965_v12, %v7966_v61  ;;  %v7974_v47 = vmax.f32 %v7972_v6, %v7973_v38 }
 0x4e6   : > { %v8164_v18 = vsel %vm6012_vm2, %v8140_v15, %v8139_v62  ;;  %v7980_v40 = vrot.slane %v7979_v3, 2  ;;  %v7987_v43 = vrot.slane %v7986_v48, 2  ;;  %v14014_v2 = vcombine.high %v14009_v33, %v14009_v33 }
 0x4e7   : > { %v8165_v9 = vsel %vm6014_vm3, %v8141_v39, %v8164_v18  ;;  %v7968_v4 = vrot.slane %v7967_v54, 1  ;;  %v7975_v37 = vrot.slane %v7974_v47, 1  ;;  %v8310_v22 = vshrl.u32 %v13956_v13, 16 }
 0x4e8   : > { %v8166_v32 = vsel %vm6016_vm4, %v8142_v58, %v8165_v9  ;;  %v7981_v55 = vmax.f32 %v7979_v3, %v7980_v40  ;;  %v7988_v26 = vmax.f32 %v7986_v48, %v7987_v43  ;;  %v8313_v35 = vshll.u32 %v13956_v13, 16 }
 0x4e9   : > { %v8174_v21 = vpack.c.b16 %v8166_v32, %v8166_v32  ;;  %v7969_v50 = vmax.f32 %v7967_v54, %v7968_v4  ;;  %v7976_v49 = vmax.f32 %v7974_v47, %v7975_v37  ;;  %v8312_v46 = vrot.slane %v8310_v22, 6 }
 0x4ea   : > { %v7982_v41 = vrot.slane %v7981_v55, 1  ;;  %v7989_v52 = vrot.slane %v7988_v26, 1  ;;  %v8315_v51 = vrot.slane %v8313_v35, 7  ;;  %v8319_v45 = vshll.u32 %v13980_v5, 16 }
 0x4eb   : > { %v8190_v17 = vsel %vm13097_vm10, 0, %v8174_v21  ;;  %v8067_v14 = vpack.c.bf16 %v7969_v50, %v7969_v50  ;;  %v8068_v59 = vpack.c.bf16 %v7976_v49, %v7976_v49  ;;  %v8324_v11 = vshrl.u32 %v13985_v28, 16 }
 0x4ec   : > { %v14026_v12 = vsel %vm13877_vm15, %v8190_v17, 0  ;;  %v7983_v6 = vmax.f32 %v7981_v55, %v7982_v41  ;;  %v7990_v24 = vmax.f32 %v7988_v26, %v7989_v52  ;;  %v8316_v62 = vor.u32 %v8315_v51, %v8312_v46 }
 0x4ed   : > { %v8131_v31 = vunpack.c.l.b16 %v8067_v14  ;;  %v8132_v36 = vunpack.c.l.b16 %v8068_v59  ;;  %v8321_v34 = vrot.slane %v8319_v45, 7  ;;  %v8326_v23 = vrot.slane %v8324_v11, 6 }
 0x4ee   : > { %v8069_v61 = vpack.c.bf16 %v7983_v6, %v7983_v6  ;;  %v8070_v38 = vpack.c.bf16 %v7990_v24, %v7990_v24  ;;  %v8317_v15 = vrot.slane %v8316_v62, 2  ;;  %v8327_v3 = vshll.u32 %v13985_v28, 16 }
 0x4ef   : > { %v8158_v48 = vsel %vm6012_vm2, %v8132_v36, %v8131_v31  ;;  %v8333_v39 = vshll.u32 %v13990_v8, 16  ;;  %v8338_v58 = vshrl.u32 %v14009_v33, 16  ;;  %v8341_v54 = vshll.u32 %v14009_v33, 16 }
 0x4f0   : > { %v8133_v47 = vunpack.c.l.b16 %v8069_v61  ;;  %v8134_v18 = vunpack.c.l.b16 %v8070_v38  ;;  %v14035_v40 = vsel %vm13816_vm8, %v8317_v15, %v8321_v34  ;;  %v8329_v43 = vrot.slane %v8327_v3, 7 }
 0x4f1   : > { %v8335_v9 = vrot.slane %v8333_v39, 7  ;;  %v8340_v4 = vrot.slane %v8338_v58, 6  ;;  %v8343_v37 = vrot.slane %v8341_v54, 7  ;;  %v8347_v22 = vshll.u32 %v14014_v2, 16 }
 0x4f2   : > { %v8159_v32 = vsel %vm6014_vm3, %v8133_v47, %v8158_v48  ;;  %v8330_v55 = vor.u32 %v8329_v43, %v8326_v23  ;;  %v8424_v26 = vcombine.low %v13835_v20, %v14035_v40  ;;  %v14043_v35 = vrot.slane %v14026_v12, %v13767_v7 }
 0x4f3   : > { %v8160_v21 = vsel %vm6016_vm4, %v8134_v18, %v8159_v32  ;;  %v8344_v50 = vor.u32 %v8343_v37, %v8340_v4  ;;  %v8349_v49 = vrot.slane %v8347_v22, 7  ;;  %v14048_v46 = vcombine.high %v13926_v56, %v13926_v56 }
 0x4f4   : > { %v8172_v41 = vpack.c.b16 %v8160_v21, %v8160_v21  ;;  %v8331_v52 = vrot.slane %v8330_v55, 2  ;;  %v8432_v51 = vrot.slane %v8424_v26, %v13767_v7  ;;  %v14053_v45 = vcombine.high %v14043_v35, %v14043_v35 }
 0x4f5   : > { %v8345_v17 = vrot.slane %v8344_v50, 2  ;;  %v9046_v14 = vshrl.u32 %v14043_v35, 16  ;;  %v9049_v59 = vshll.u32 %v14043_v35, 16  ;;  %v14059_v11 = vcombine.high %v14001_v19, %v14001_v19 }
 0x4f6   : > { %v8188_v6 = vsel %vm13097_vm10, 0, %v8172_v41  ;;  %v14065_v24 = vsel %vm13816_vm8, %v8331_v52, %v8335_v9  ;;  %v9055_v62 = vshll.u32 %v14053_v45, 16  ;;  %v14070_v31 = vcombine.high %v13971_v57, %v13971_v57 }
 0x4f7   : > { %v14074_v36 = vsel %vm13877_vm15, %v8188_v6, 0  ;;  %v14078_v34 = vsel %vm13816_vm8, %v8345_v17, %v8349_v49  ;;  %v9048_v16 = vrot.slane %v9046_v14, 6  ;;  %v9051_v23 = vrot.slane %v9049_v59, 7 }
 0x4f8   : > { %v14082_v61 = vrot.slane %v14074_v36, %v13767_v7  ;;  %v8425_v38 = vcombine.low %v14065_v24, %v14078_v34  ;;  %v9057_v15 = vrot.slane %v9055_v62, 7  ;;  %v8352_v3 = vshrl.u32 %v13926_v56, 16 }
 0x4f9   : > { %v9052_v48 = vor.u32 %v9051_v23, %v9048_v16  ;;  %v8355_v27 = vshll.u32 %v13926_v56, 16  ;;  %v8361_v39 = vshll.u32 %v14048_v46, 16  ;;  %v8366_v58 = vshrl.u32 %v14001_v19, 16 }
 0x4fa   : > { %v14091_v54 = vrot.slane %v8425_v38, %v13767_v7  ;;  %v14095_v47 = vcombine.high %v14082_v61, %v14082_v61  ;;  %v8354_v18 = vrot.slane %v8352_v3, 6  ;;  %v8369_v43 = vshll.u32 %v14001_v19, 16 }
 0x4fb   : > { %v9053_v9 = vrot.slane %v9052_v48, 2  ;;  %v8357_v4 = vrot.slane %v8355_v27, 7  ;;  %v8363_v37 = vrot.slane %v8361_v39, 7  ;;  %v8368_v22 = vrot.slane %v8366_v58, 6 }
 0x4fc   : > { %v8440_v32 = vcombine.low %v8432_v51, %v14091_v54  ;;  %v8371_v55 = vrot.slane %v8369_v43, 7  ;;  %v8375_v26 = vshll.u32 %v14059_v11, 16  ;;  %v8380_v21 = vshrl.u32 %v14082_v61, 16 }
 0x4fd   : > { %v14103_v50 = vsel %vm13816_vm8, %v9053_v9, %v9057_v15  ;;  %v8358_v49 = vor.u32 %v8357_v4, %v8354_v18  ;;  %v8383_v41 = vshll.u32 %v14082_v61, 16  ;;  %v8389_v52 = vshll.u32 %v14095_v47, 16 }
 0x4fe   : > { %11153 = vmatprep.mubr.bf16.mxu0 %v8440_v32  ;;  %v9519_v17 = vcombine.low %v14103_v50, %v13835_v20  ;;  %v8372_v14 = vor.u32 %v8371_v55, %v8368_v22  ;;  %v8377_v51 = vrot.slane %v8375_v26, 7  ;;  %v8382_v59 = vrot.slane %v8380_v21, 6 }
 0x4ff   : > { %v8359_v6 = vrot.slane %v8358_v49, 2  ;;  %v8385_v62 = vrot.slane %v8383_v41, 7  ;;  %v8391_v16 = vrot.slane %v8389_v52, 7  ;;  %v8394_v23 = vshrl.u32 %v13971_v57, 16 }
 0x500   : > { %v8373_v38 = vrot.slane %v8372_v14, 2  ;;  %v8397_v15 = vshll.u32 %v13971_v57, 16  ;;  %v8403_v3 = vshll.u32 %v14070_v31, 16  ;;  %v8557_v48 = vcombine.low %v14697_v60, %v13902_v1 }
 0x501   : > { %v14116_v27 = vsel %vm13816_vm8, %v8359_v6, %v8363_v37  ;;  %v8386_v39 = vor.u32 %v8385_v62, %v8382_v59  ;;  %v8396_v58 = vrot.slane %v8394_v23, 6  ;;  %v8558_v18 = vcombine.low %v13944_v0, %v13890_v42 }
 0x502   : > { %v14122_v43 = vsel %vm13816_vm8, %v8373_v38, %v8377_v51  ;;  %v8399_v9 = vrot.slane %v8397_v15, 7  ;;  %v8405_v4 = vrot.slane %v8403_v3, 7  ;;  %v8565_v22 = vrot.slane %v8557_v48, %v13767_v7 }
 0x503   : > { %v8387_v32 = vrot.slane %v8386_v39, 2  ;;  %v8441_v55 = vcombine.low %v14116_v27, %v14122_v43  ;;  %v14128_v37 = vrot.slane %v8558_v18, %v13767_v7  ;;  %v8574_v26 = vcombine.low %v13922_v44, %v13997_v63 }
 0x504   : > { %v8400_v21 = vor.u32 %v8399_v9, %v8396_v58  ;;  %v8575_v49 = vcombine.low %v14074_v36, %v13966_v10  ;;  %v10438_v41 = vrot.slane %v13956_v13, 9  ;;  %v8702_v52 = vrot.slane %v13980_v5, 7 }
 0x505   : > { %v14138_v14 = vsel %vm13816_vm8, %v8387_v32, %v8391_v16  ;;  %v14141_v51 = vrot.slane %v8441_v55, %v13767_v7  ;;  %v8573_v59 = vcombine.low %v8565_v22, %v14128_v37  ;;  %v14145_v6 = vrot.slane %v8574_v26, %v13767_v7 }
 0x506   : > { %v8401_v62 = vrot.slane %v8400_v21, 2  ;;  %v14148_v23 = vrot.slane %v8575_v49, %v13767_v7  ;;  %v14152_v13 = vsel %vm13825_vm12, %v10438_v41, %v8702_v52  ;;  %v10439_v5 = vrot.slane %v13985_v28, 9  ;;  %v11512_v41 = vld [vmem:[%s14615_s3 + $0x8] sm:$0xff]  }
 0x507   : > { %v8706_v16 = vrot.slane %v13990_v8, 7  ;;  %v10440_v38 = vrot.slane %v14009_v33, 9  ;;  %v8710_v15 = vrot.slane %v14014_v2, 7  ;;  %v8745_v3 = vcombine.low %v13844_v25, %v14152_v13 }
 0x508   : > { %v8406_v48 = vsel %vm13816_vm8, %v8401_v62, %v8405_v4  ;;  %v8590_v39 = vcombine.low %v14145_v6, %v14148_v23  ;;  %v10517_v58 = vrot.slane %v14043_v35, 9  ;;  %v9215_v18 = vrot.slane %v14053_v45, 7 }
 0x509   : > { %v8442_v28 = vcombine.low %v14138_v14, %v8406_v48  ;;  %v8707_v8 = vsel %vm13825_vm12, %v10439_v5, %v8706_v16  ;;  %v14171_v33 = vsel %vm13825_vm12, %v10440_v38, %v8710_v15  ;;  %v14174_v2 = vrot.slane %v8745_v3, %v13767_v7  ;;  %v11578_v15 = vld [vmem:[%s14615_s3] sm:$0xff]  }
 0x50a   : > { %v8746_v30 = vcombine.low %v8707_v8, %v14171_v33  ;;  %v14179_v9 = vsel %vm13825_vm12, %v10517_v58, %v9215_v18  ;;  %v10441_v35 = vrot.slane %v13926_v56, 9  ;;  %v8714_v45 = vrot.slane %v14048_v46, 7 }
 0x50b   : > { %v14184_v4 = vrot.slane %v8442_v28, %v13767_v7  ;;  %v9649_v22 = vcombine.low %v14179_v9, %v13844_v25  ;;  %v10442_v32 = vrot.slane %v14001_v19, 9  ;;  %v8718_v55 = vrot.slane %v14059_v11, 7 }
 0x50c   : > { %v14191_v26 = vrot.slane %v8746_v30, %v13767_v7  ;;  %v8715_v21 = vsel %vm13825_vm12, %v10441_v35, %v8714_v45  ;;  %v10443_v56 = vrot.slane %v14082_v61, 9  ;;  %v8722_v46 = vrot.slane %v14095_v47, 7 }
 0x50d   : > { %v8457_v49 = vcombine.low %v14141_v51, %v14184_v4  ;;  %v8719_v19 = vsel %vm13825_vm12, %v10442_v32, %v8718_v55  ;;  %v10444_v11 = vrot.slane %v13971_v57, 9  ;;  %v8726_v52 = vrot.slane %v14070_v31, 7 }
 0x50e   : > { %v8761_v62 = vcombine.low %v14174_v2, %v14191_v26  ;;  %v8723_v61 = vsel %vm13825_vm12, %v10443_v56, %v8722_v46  ;;  %v8762_v47 = vcombine.low %v8715_v21, %v8719_v19  ;;  %v8900_v5 = vcombine.low %v13902_v1, %v13944_v0  ;;  %v11525_v2 = vld [vmem:[%s14615_s3 + $0xb0] sm:$0xff]  }
 0x50f   : > { %11154 = vmatmul.mubr.bf16.vlgmr.msra.gmra.mrb[24].mxu0 %v8457_v49  ;;  %v8727_v16 = vsel %vm13825_vm12, %v10444_v11, %v8726_v52  ;;  %v8901_v38 = vcombine.low %v13890_v42, %v13922_v44  ;;  %v8917_v57 = vcombine.low %v13997_v63, %v14074_v36  ;;  %v8918_v31 = vcombine.low %v13966_v10, %v14026_v12  ;;  %v11513_v42 = vld [vmem:[%s14615_s3 + $0x10] sm:$0xff]   ;;  %v11515_v52 = vld [vmem:[%s14615_s3 + $0x20] sm:$0xff]  }
 0x510   : > { %11158 = vmatpush3.bf16.msra.mxu0 %v11578_v15  ;;  %11173 = vmatprep.mubr.bf16.mxu0 %v8573_v59  ;;  %v8763_v1 = vcombine.low %v8723_v61, %v8727_v16  ;;  %v14224_v0 = vrot.slane %v8762_v47, %v13767_v7  ;;  %v14227_v53 = vrot.slane %v8900_v5, %v13767_v7  ;;  %v11518_v47 = vld [vmem:[%s14615_s3 + $0x38] sm:$0xff]   ;;  %v11519_v5 = vld [vmem:[%s14615_s3 + $0x80] sm:$0xff]   ;;  %v11528_v15 = vld [vmem:[%s14615_s3 + $0xc8] sm:$0xff]   ;;  %vm9989_vm10 = vcmask 1041409  }
 0x511   : > { %11159 = vmatprep.subr.bf16.mxu0 %v11512_v41  ;;  %v14233_v44 = vrot.slane %v8901_v38, %v13767_v7  ;;  %v14236_v10 = vrot.slane %v8917_v57, %v13767_v7  ;;  %v14239_v63 = vrot.slane %v8918_v31, %v13767_v7  ;;  %v9076_v36 = vcombine.low %v14035_v40, %v14065_v24  ;;  %v11521_v38 = vld [vmem:[%s14615_s3 + $0x90] sm:$0xff]   ;;  %v11522_v57 = vld [vmem:[%s14615_s3 + $0x98] sm:$0xff]   ;;  %v11527_v31 = vld [vmem:[%s14615_s3 + $0xc0] sm:$0xff]  }
 0x512   : > { %v14244_v59 = vrot.slane %v8763_v1, %v13767_v7  ;;  %v9077_v3 = vcombine.low %v14078_v34, %v14116_v27  ;;  %v9093_v58 = vcombine.low %v14122_v43, %v14138_v14  ;;  %v9094_v18 = vcombine.low %v8406_v48, %v14103_v50  ;;  %v11514_v14 = vld [vmem:[%s14615_s3 + $0x18] sm:$0xff]   ;;  %v11529_v1 = vld [vmem:[%s14615_s3 + $0xd0] sm:$0xff]  }
 0x513   : > { %v8916_v28 = vcombine.low %v14227_v53, %v14233_v44  ;;  %v8933_v30 = vcombine.low %v14236_v10, %v14239_v63  ;;  %v14256_v35 = vrot.slane %v9076_v36, %v13767_v7  ;;  %v9234_v40 = vcombine.low %v14152_v13, %v8707_v8  ;;  %v11531_v36 = vld [vmem:[%s14615_s3 + $0xe0] sm:$0xff]   ;;  %v11532_v53 = vld [vmem:[%s14615_s3 + $0xe8] sm:$0xff]   ;;  %v11533_v44 = vld [vmem:[%s14615_s3 + $0xf0] sm:$0xff]  }
 0x514   : > { %11160 = vmatpush3.bf16.msra.mxu0 %v11512_v41  ;;  %v8778_v24 = vcombine.low %v14224_v0, %v14244_v59  ;;  %v14262_v34 = vrot.slane %v9077_v3, %v13767_v7  ;;  %v14265_v27 = vrot.slane %v9093_v58, %v13767_v7  ;;  %v14268_v43 = vrot.slane %v9094_v18, %v13767_v7  ;;  %v11534_v3 = vld [vmem:[%s14615_s3 + $0xf8] sm:$0xff]   ;;  %v11535_v58 = vld [vmem:[%s14615_s3 + $0x100] sm:$0xff]   ;;  %v11536_v18 = vld [vmem:[%s14615_s3 + $0x108] sm:$0xff]  }
 0x515   : > { %11161 = vmatprep.subr.bf16.mxu0 %v11513_v42  ;;  %v9235_v13 = vcombine.low %v14171_v33, %v8715_v21  ;;  %v14275_v48 = vrot.slane %v9234_v40, %v13767_v7  ;;  %v9251_v8 = vcombine.low %v8719_v19, %v8723_v61  ;;  %v9252_v45 = vcombine.low %v8727_v16, %v14179_v9  ;;  %v11516_v9 = vld [vmem:[%s14615_s3 + $0x28] sm:$0xff]   ;;  %v11538_v40 = vld [vmem:[%s14615_s3 + $0x118] sm:$0xff]   ;;  %v11539_v10 = vld [vmem:[%s14615_s3 + $0x120] sm:$0xff]  }
 0x516   : > { %v9092_v32 = vcombine.low %v14256_v35, %v14262_v34  ;;  %v9109_v55 = vcombine.low %v14265_v27, %v14268_v43  ;;  %v9388_v56 = vcombine.low %v14128_v37, %v14145_v6  ;;  %v9389_v46 = vcombine.low %v14026_v12, %v14697_v60  ;;  %v11520_v16 = vld [vmem:[%s14615_s3 + $0x88] sm:$0xff]   ;;  %v11542_v35 = vld [vmem:[%s14615_s3 + $0x138] sm:$0xff]   ;;  %v11547_v27 = vld [vmem:[%s14615_s3 + $0x160] sm:$0xff]  }
 0x517   : > { %v14287_v33 = vrot.slane %v9235_v13, %v13767_v7  ;;  %v14290_v21 = vrot.slane %v9251_v8, %v13767_v7  ;;  %v14293_v49 = vrot.slane %v9252_v45, %v13767_v7  ;;  %v9518_v41 = vcombine.low %v14091_v54, %v14141_v51  ;;  %v11540_v63 = vld [vmem:[%s14615_s3 + $0x128] sm:$0xff]   ;;  %v11546_v13 = vld [vmem:[%s14615_s3 + $0x158] sm:$0xff]   ;;  %v11551_v45 = vld [vmem:[%s14615_s3 + $0x180] sm:$0xff]  }
 0x518   : > { %11162 = vmatpush3.bf16.msra.mxu0 %v11513_v42  ;;  %v9396_v19 = vrot.slane %v9389_v46, %v13767_v7  ;;  %v14302_v60 = vrot.slane %v9519_v17, %v13767_v7  ;;  %v9648_v12 = vcombine.low %v14191_v26, %v14224_v0  ;;  %v14310_v11 = vrot.slane %v9649_v22, %v13767_v7  ;;  %v11517_v22 = vld [vmem:[%s14615_s3 + $0x30] sm:$0xff]   ;;  %v11530_v42 = vld [vmem:[%s14615_s3 + $0xd8] sm:$0xff]   ;;  %v11544_v34 = vld [vmem:[%s14615_s3 + $0x148] sm:$0xff]  }
 0x519   : > { %11163 = vmatprep.subr.bf16.mxu0 %v11514_v14  ;;  %v9250_v61 = vcombine.low %v14275_v48, %v14287_v33  ;;  %v9267_v20 = vcombine.low %v14290_v21, %v14293_v49  ;;  %v11548_v43 = vld [vmem:[%s14615_s3 + $0x168] sm:$0xff]   ;;  %v11549_v48 = vld [vmem:[%s14615_s3 + $0x170] sm:$0xff]   ;;  %v11550_v8 = vld [vmem:[%s14615_s3 + $0x178] sm:$0xff]  }
 0x51a   : > { %v14320_v50 = vcombine.low %v14148_v23, %v9396_v19  ;;  %v9527_v17 = vcombine.low %v14184_v4, %v14302_v60  ;;  %v9657_v25 = vcombine.low %v14244_v59, %v14310_v11  ;;  %v11523_v23 = vld [vmem:[%s14615_s3 + $0xa0] sm:$0xff]   ;;  %v11554_v46 = vld [vmem:[%s14615_s3 + $0x198] sm:$0xff]   ;;  %v11556_v37 = vld [vmem:[%s14615_s3 + $0x1a8] sm:$0xff]  }
 0x51b   : > { %v11555_v33 = vld [vmem:[%s14615_s3 + $0x1a0] sm:$0xff]   ;;  %v11557_v6 = vld [vmem:[%s14615_s3 + $0x1b0] sm:$0xff]   ;;  %v11560_v49 = vld [vmem:[%s14615_s3 + $0x1c8] sm:$0xff]  }
 0x51c   : > { %11164 = vmatpush3.bf16.msra.mxu0 %v11514_v14  ;;  %v11545_v14 = vld [vmem:[%s14615_s3 + $0x150] sm:$0xff]   ;;  %v11559_v21 = vld [vmem:[%s14615_s3 + $0x1c0] sm:$0xff]   ;;  %v11564_v54 = vld [vmem:[%s14615_s3 + $0x1e8] sm:$0xff]  }
 0x51d   : > { %11165 = vmatprep.subr.bf16.mxu0 %v11515_v52  ;;  %v11561_v19 = vld [vmem:[%s14615_s3 + $0x1d0] sm:$0xff]   ;;  %v11571_v4 = vld [vmem:[%s14615_s3 + $0x220] sm:$0xff]   ;;  %v11572_v26 = vld [vmem:[%s14615_s3 + $0x228] sm:$0xff]  }
 0x51e   : > { %v11565_v51 = vld [vmem:[%s14615_s3 + $0x1f0] sm:$0xff]   ;;  %v11574_v60 = vld [vmem:[%s14615_s3 + $0x238] sm:$0xff]  }
 0x51f   : > { %v11573_v0 = vld [vmem:[%s14615_s3 + $0x230] sm:$0xff]  }
 0x520   : > { %11166 = vmatpush3.bf16.msra.mxu0 %v11515_v52  ;;  %v11562_v52 = vld [vmem:[%s14615_s3 + $0x1d8] sm:$0xff]  }
 0x521   : > { %11167 = vmatprep.subr.bf16.mxu0 %v11516_v9 }
 0x524   : > { %11168 = vmatpush3.bf16.msra.mxu0 %v11516_v9  ;;  %v11569_v9 = vld [vmem:[%s14615_s3 + $0x210] sm:$0xff]  }
 0x525   : > { %11169 = vmatprep.subr.bf16.mxu0 %v11517_v22 }
 0x528   : > { %11170 = vmatpush3.bf16.msra.mxu0 %v11517_v22  ;;  %v11570_v22 = vld [vmem:[%s14615_s3 + $0x218] sm:$0xff]  }
 0x529   : > { %11171 = vmatprep.subr.bf16.mxu0 %v11518_v47 }
 0x52c   : > { %11172 = vmatpush3.bf16.msra.mxu0 %v11518_v47 }
 0x52d   : > { %11177 = vmatprep.subr.bf16.mxu0 %v11519_v5 }
 0x52f   : > { %11174 = vmatmul.mubr.bf16.vlgmr.msra.gmra.mrb[24].mxu0 %v8590_v39  ;;  %v11524_v39 = vld [vmem:[%s14615_s3 + $0xa8] sm:$0xff]  }
 0x530   : > { %11178 = vmatpush3.bf16.msra.mxu0 %v11519_v5  ;;  %11193 = vmatprep.mubr.bf16.mxu0 %v8761_v62  ;;  %v11526_v62 = vld [vmem:[%s14615_s3 + $0xb8] sm:$0xff]   ;;  %v11580_v5 = vld [vmem:[%s14617_s5] sm:$0x7] }
 0x531   : > { %11179 = vmatprep.subr.bf16.mxu0 %v11520_v16 }
 0x534   : > { %11180 = vmatpush3.bf16.msra.mxu0 %v11520_v16 }
 0x535   : > { %11181 = vmatprep.subr.bf16.mxu0 %v11521_v38 }
 0x538   : > { %11182 = vmatpush3.bf16.msra.mxu0 %v11521_v38 }
 0x539   : > { %11183 = vmatprep.subr.bf16.mxu0 %v11522_v57 }
 0x53c   : > { %11184 = vmatpush3.bf16.msra.mxu0 %v11522_v57 }
 0x53d   : > { %11185 = vmatprep.subr.bf16.mxu0 %v11523_v23 }
 0x540   : > { %11186 = vmatpush3.bf16.msra.mxu0 %v11523_v23 }
 0x541   : > { %11187 = vmatprep.subr.bf16.mxu0 %v11524_v39 }
 0x544   : > { %11188 = vmatpush3.bf16.msra.mxu0 %v11524_v39 }
 0x545   : > { %11189 = vmatprep.subr.bf16.mxu0 %v11525_v2 }
 0x548   : > { %11190 = vmatpush3.bf16.msra.mxu0 %v11525_v2 }
 0x549   : > { %11191 = vmatprep.subr.bf16.mxu0 %v11526_v62 }
 0x54c   : > { %11192 = vmatpush3.bf16.msra.mxu0 %v11526_v62 }
 0x54d   : > { %11197 = vmatprep.subr.bf16.mxu0 %v11527_v31 }
 0x54f   : > { %11194 = vmatmul.mubr.bf16.vlgmr.msra.gmra.mrb[24].mxu0 %v8778_v24  ;;  %v11543_v24 = vld [vmem:[%s14615_s3 + $0x140] sm:$0xff]  }
 0x550   : > { %11198 = vmatpush3.bf16.msra.mxu0 %v11527_v31  ;;  %11213 = vmatprep.mubr.bf16.mxu0 %v8916_v28  ;;  %v11537_v28 = vld [vmem:[%s14615_s3 + $0x110] sm:$0xff]  }
 0x551   : > { %11199 = vmatprep.subr.bf16.mxu0 %v11528_v15 }
 0x554   : > { %11200 = vmatpush3.bf16.msra.mxu0 %v11528_v15 }
 0x555   : > { %11201 = vmatprep.subr.bf16.mxu0 %v11529_v1 }
 0x558   : > { %11202 = vmatpush3.bf16.msra.mxu0 %v11529_v1 }
 0x559   : > { %11203 = vmatprep.subr.bf16.mxu0 %v11530_v42 }
 0x55c   : > { %11204 = vmatpush3.bf16.msra.mxu0 %v11530_v42 }
 0x55d   : > { %11205 = vmatprep.subr.bf16.mxu0 %v11531_v36 }
 0x560   : > { %11206 = vmatpush3.bf16.msra.mxu0 %v11531_v36 }
 0x561   : > { %11207 = vmatprep.subr.bf16.mxu0 %v11532_v53 }
 0x564   : > { %11208 = vmatpush3.bf16.msra.mxu0 %v11532_v53 }
 0x565   : > { %11209 = vmatprep.subr.bf16.mxu0 %v11533_v44 }
 0x568   : > { %11210 = vmatpush3.bf16.msra.mxu0 %v11533_v44 }
 0x569   : > { %11211 = vmatprep.subr.bf16.mxu0 %v11534_v3 }
 0x56c   : > { %11212 = vmatpush3.bf16.msra.mxu0 %v11534_v3 }
 0x56d   : > { %11217 = vmatprep.subr.bf16.mxu0 %v11535_v58 }
 0x56f   : > { %11214 = vmatmul.mubr.bf16.vlgmr.msra.gmra.mrb[24].mxu0 %v8933_v30  ;;  %v11541_v30 = vld [vmem:[%s14615_s3 + $0x130] sm:$0xff]  }
 0x570   : > { %11218 = vmatpush3.bf16.msra.mxu0 %v11535_v58  ;;  %11233 = vmatprep.mubr.bf16.mxu0 %v9092_v32  ;;  %v11552_v32 = vld [vmem:[%s14615_s3 + $0x188] sm:$0xff]  }
 0x571   : > { %11219 = vmatprep.subr.bf16.mxu0 %v11536_v18 }
 0x574   : > { %11220 = vmatpush3.bf16.msra.mxu0 %v11536_v18 }
 0x575   : > { %11221 = vmatprep.subr.bf16.mxu0 %v11537_v28 }
 0x578   : > { %11222 = vmatpush3.bf16.msra.mxu0 %v11537_v28 }
 0x579   : > { %11223 = vmatprep.subr.bf16.mxu0 %v11538_v40 }
 0x57c   : > { %11224 = vmatpush3.bf16.msra.mxu0 %v11538_v40 }
 0x57d   : > { %11225 = vmatprep.subr.bf16.mxu0 %v11539_v10 }
 0x580   : > { %11226 = vmatpush3.bf16.msra.mxu0 %v11539_v10 }
 0x581   : > { %11227 = vmatprep.subr.bf16.mxu0 %v11540_v63 }
 0x584   : > { %11228 = vmatpush3.bf16.msra.mxu0 %v11540_v63 }
 0x585   : > { %11229 = vmatprep.subr.bf16.mxu0 %v11541_v30 }
 0x588   : > { %11230 = vmatpush3.bf16.msra.mxu0 %v11541_v30 }
 0x589   : > { %11231 = vmatprep.subr.bf16.mxu0 %v11542_v35 }
 0x58c   : > { %11232 = vmatpush3.bf16.msra.mxu0 %v11542_v35 }
 0x58d   : > { %11237 = vmatprep.subr.bf16.mxu0 %v11543_v24 }
 0x58f   : > { %11234 = vmatmul.mubr.bf16.vlgmr.msra.gmra.mrb[24].mxu0 %v9109_v55  ;;  %v11553_v55 = vld [vmem:[%s14615_s3 + $0x190] sm:$0xff]  }
 0x590   : > { %11238 = vmatpush3.bf16.msra.mxu0 %v11543_v24  ;;  %11253 = vmatprep.mubr.bf16.mxu0 %v9250_v61  ;;  %v11563_v61 = vld [vmem:[%s14615_s3 + $0x1e0] sm:$0xff]  }
 0x591   : > { %11239 = vmatprep.subr.bf16.mxu0 %v11544_v34 }
 0x594   : > { %11240 = vmatpush3.bf16.msra.mxu0 %v11544_v34 }
 0x595   : > { %11241 = vmatprep.subr.bf16.mxu0 %v11545_v14 }
 0x598   : > { %11242 = vmatpush3.bf16.msra.mxu0 %v11545_v14 }
 0x599   : > { %11243 = vmatprep.subr.bf16.mxu0 %v11546_v13 }
 0x59c   : > { %11244 = vmatpush3.bf16.msra.mxu0 %v11546_v13 }
 0x59d   : > { %11245 = vmatprep.subr.bf16.mxu0 %v11547_v27 }
 0x5a0   : > { %11246 = vmatpush3.bf16.msra.mxu0 %v11547_v27 }
 0x5a1   : > { %11247 = vmatprep.subr.bf16.mxu0 %v11548_v43 }
 0x5a4   : > { %11248 = vmatpush3.bf16.msra.mxu0 %v11548_v43 }
 0x5a5   : > { %11249 = vmatprep.subr.bf16.mxu0 %v11549_v48 }
 0x5a8   : > { %11250 = vmatpush3.bf16.msra.mxu0 %v11549_v48 }
 0x5a9   : > { %11251 = vmatprep.subr.bf16.mxu0 %v11550_v8 }
 0x5ac   : > { %11252 = vmatpush3.bf16.msra.mxu0 %v11550_v8 }
 0x5ad   : > { %11257 = vmatprep.subr.bf16.mxu0 %v11551_v45 }
 0x5af   : > { %11254 = vmatmul.mubr.bf16.vlgmr.msra.gmra.mrb[24].mxu0 %v9267_v20  ;;  %v11567_v20 = vld [vmem:[%s14615_s3 + $0x200] sm:$0xff]  }
 0x5b0   : > { %11258 = vmatpush3.bf16.msra.mxu0 %v11551_v45  ;;  %11273 = vmatprep.mubr.bf16.mxu0 %v9388_v56  ;;  %v11558_v56 = vld [vmem:[%s14615_s3 + $0x1b8] sm:$0xff]  }
 0x5b1   : > { %11259 = vmatprep.subr.bf16.mxu0 %v11552_v32 }
 0x5b4   : > { %11260 = vmatpush3.bf16.msra.mxu0 %v11552_v32 }
 0x5b5   : > { %11261 = vmatprep.subr.bf16.mxu0 %v11553_v55 }
 0x5b8   : > { %11262 = vmatpush3.bf16.msra.mxu0 %v11553_v55 }
 0x5b9   : > { %11263 = vmatprep.subr.bf16.mxu0 %v11554_v46 }
 0x5bc   : > { %11264 = vmatpush3.bf16.msra.mxu0 %v11554_v46 }
 0x5bd   : > { %11265 = vmatprep.subr.bf16.mxu0 %v11555_v33 }
 0x5c0   : > { %11266 = vmatpush3.bf16.msra.mxu0 %v11555_v33 }
 0x5c1   : > { %11267 = vmatprep.subr.bf16.mxu0 %v11556_v37 }
 0x5c4   : > { %11268 = vmatpush3.bf16.msra.mxu0 %v11556_v37 }
 0x5c5   : > { %11269 = vmatprep.subr.bf16.mxu0 %v11557_v6 }
 0x5c8   : > { %11270 = vmatpush3.bf16.msra.mxu0 %v11557_v6 }
 0x5c9   : > { %11271 = vmatprep.subr.bf16.mxu0 %v11558_v56 }
 0x5cc   : > { %11272 = vmatpush3.bf16.msra.mxu0 %v11558_v56 }
 0x5cd   : > { %11277 = vmatprep.subr.bf16.mxu0 %v11559_v21 }
 0x5cf   : > { %11274 = vmatmul.mubr.bf16.vlgmr.msra.gmra.mrb[24].mxu0 %v14320_v50  ;;  %v11568_v50 = vld [vmem:[%s14615_s3 + $0x208] sm:$0xff]  }
 0x5d0   : > { %11278 = vmatpush3.bf16.msra.mxu0 %v11559_v21  ;;  %11293 = vmatprep.mubr.bf16.mxu0 %v9518_v41  ;;  %v11566_v41 = vld [vmem:[%s14615_s3 + $0x1f8] sm:$0xff]  }
 0x5d1   : > { %11279 = vmatprep.subr.bf16.mxu0 %v11560_v49 }
 0x5d4   : > { %11280 = vmatpush3.bf16.msra.mxu0 %v11560_v49 }
 0x5d5   : > { %11281 = vmatprep.subr.bf16.mxu0 %v11561_v19 }
 0x5d8   : > { %11282 = vmatpush3.bf16.msra.mxu0 %v11561_v19 }
 0x5d9   : > { %11283 = vmatprep.subr.bf16.mxu0 %v11562_v52 }
 0x5dc   : > { %11284 = vmatpush3.bf16.msra.mxu0 %v11562_v52 }
 0x5dd   : > { %11285 = vmatprep.subr.bf16.mxu0 %v11563_v61 }
 0x5e0   : > { %11286 = vmatpush3.bf16.msra.mxu0 %v11563_v61 }
 0x5e1   : > { %11287 = vmatprep.subr.bf16.mxu0 %v11564_v54 }
 0x5e4   : > { %11288 = vmatpush3.bf16.msra.mxu0 %v11564_v54 }
 0x5e5   : > { %11289 = vmatprep.subr.bf16.mxu0 %v11565_v51 }
 0x5e8   : > { %11290 = vmatpush3.bf16.msra.mxu0 %v11565_v51 }
 0x5e9   : > { %11291 = vmatprep.subr.bf16.mxu0 %v11566_v41 }
 0x5ec   : > { %11292 = vmatpush3.bf16.msra.mxu0 %v11566_v41 }
 0x5ed   : > { %11297 = vmatprep.subr.bf16.mxu0 %v11567_v20 }
 0x5ef   : > { %11294 = vmatmul.mubr.bf16.vlgmr.msra.gmra.mrb[24].mxu0 %v9527_v17  ;;  %v11579_v17 = vld [vmem:[%s14616_s4] sm:$0x7] }
 0x5f0   : > { %11298 = vmatpush3.bf16.msra.mxu0 %v11567_v20  ;;  %11313 = vmatprep.mubr.bf16.mxu0 %v9648_v12  ;;  %v9763_v12 = vsub.s32 2, %v14699_v29 }
 0x5f1   : > { %11299 = vmatprep.subr.bf16.mxu0 %v11568_v50 }
 0x5f2   : > { %v9764_v47 = vrot.slane %v11579_v17, %v9763_v12  ;;  %v9772_v16 = vrot.slane %v11580_v5, %v9763_v12 }
 0x5f4   : > { %11300 = vmatpush3.bf16.msra.mxu0 %v11568_v50 }
 0x5f5   : > { %11301 = vmatprep.subr.bf16.mxu0 %v11569_v9 }
 0x5f8   : > { %11302 = vmatpush3.bf16.msra.mxu0 %v11569_v9 }
 0x5f9   : > { %11303 = vmatprep.subr.bf16.mxu0 %v11570_v22 }
 0x5fc   : > { %11304 = vmatpush3.bf16.msra.mxu0 %v11570_v22 }
 0x5fd   : > { %11305 = vmatprep.subr.bf16.mxu0 %v11571_v4 }
 0x600   : > { %11306 = vmatpush3.bf16.msra.mxu0 %v11571_v4 }
 0x601   : > { %11307 = vmatprep.subr.bf16.mxu0 %v11572_v26 }
 0x604   : > { %11308 = vmatpush3.bf16.msra.mxu0 %v11572_v26 }
 0x605   : > { %11309 = vmatprep.subr.bf16.mxu0 %v11573_v0 }
 0x608   : > { %11310 = vmatpush3.bf16.msra.mxu0 %v11573_v0 }
 0x609   : > { %11311 = vmatprep.subr.bf16.mxu0 %v11574_v60 }
 0x60c   : > { %11312 = vmatpush3.bf16.msra.mxu0 %v11574_v60 }
 0x60f   : > { %11314 = vmatmul.mubr.bf16.vlgmr.msra.gmra.mrb[24].mxu0 %v9657_v25 }
 0x6e2   : > { %v11315_v38 = vpop.f32.mrb[24].mxu0 }
 0x6e3   : > { %v9767_v57 = vmul.f32 %v11315_v38, %v9764_v47  ;;  %v9742_v23 = vpop.f32.mrb[25].mxu0 }
 0x6e4   : > { %v9765_v39 = vmul.f32 %v9764_v47, %v9742_v23  ;;  %v11316_v2 = vpop.f32.mrb[26].mxu0 }
 0x6e5   : > { %v9775_v62 = vadd.f32 %v9772_v16, %v9767_v57  ;;  %v9745_v59 = vpop.f32.mrb[27].mxu0  ;;  %v9768_v29 = vmul.f32 %v11316_v2, %v9764_v47 }
 0x6e6   : > { %v9773_v11 = vadd.f32 %v9772_v16, %v9765_v39  ;;  %v9766_v35 = vmul.f32 %v9764_v47, %v9745_v59 }
 0x6e7   : > { %v9779_v25 = vmax.f32 %v9775_v62, 0.0  ;;  %v9776_v58 = vadd.f32 %v9772_v16, %v9768_v29 }
 0x6e8   : > { %v9777_v31 = vmax.f32 %v9773_v11, 0.0  ;;  %v9774_v6 = vadd.f32 %v9772_v16, %v9766_v35 }
 0x6e9   : > { %v9819_v15 = vcombine.high %v9779_v25, %v9779_v25  ;;  %v9826_v1 = vrot.slane %v9779_v25, %v13767_v7  ;;  %v9780_v8 = vmax.f32 %v9776_v58, 0.0 }
 0x6ea   : > { %v9785_v42 = vcombine.high %v9777_v31, %v9777_v31  ;;  %v9792_v36 = vrot.slane %v9777_v31, %v13767_v7  ;;  %v9778_v20 = vmax.f32 %v9774_v6, 0.0 }
 0x6eb   : > { %v9833_v53 = vrot.slane %v9819_v15, %v13767_v7  ;;  %v9834_v44 = vcombine.high %v9826_v1, %v9826_v1  ;;  %v9925_v3 = vsel %vm7822_vm13, %v9826_v1, -inf  ;;  %v9836_v51 = vcombine.high %v9780_v8, %v9780_v8 }
 0x6ec   : > { %v9926_v18 = vrot.slane %v9925_v3, 4  ;;  %v9799_v28 = vrot.slane %v9785_v42, %v13767_v7  ;;  %v9800_v40 = vcombine.high %v9792_v36, %v9792_v36  ;;  %v9869_v10 = vsel %vm7822_vm13, %v9792_v36, -inf }
 0x6ed   : > { %v9932_v63 = vsel %vm7822_vm13, %v9834_v44, -inf  ;;  %v9870_v30 = vrot.slane %v9869_v10, 4  ;;  %v9835_v24 = vcombine.high %v9833_v53, %v9833_v53  ;;  %v9939_v14 = vsel %vm7822_vm13, %v9833_v53, -inf }
 0x6ee   : > { %v9927_v34 = vmax.f32 %v9925_v3, %v9926_v18  ;;  %v9801_v13 = vcombine.high %v9799_v28, %v9799_v28  ;;  %v9933_v27 = vrot.slane %v9932_v63, 4  ;;  %v9883_v43 = vsel %vm7822_vm13, %v9799_v28, -inf }
 0x6ef   : > { %v9876_v48 = vsel %vm7822_vm13, %v9800_v40, -inf  ;;  %v9940_v45 = vrot.slane %v9939_v14, 4  ;;  %v9871_v32 = vmax.f32 %v9869_v10, %v9870_v30  ;;  %v9884_v55 = vrot.slane %v9883_v43, 4 }
 0x6f0   : > { %v9890_v46 = vsel %vm7822_vm13, %v9801_v13, -inf  ;;  %v9928_v33 = vrot.slane %v9927_v34, 2  ;;  %v9946_v37 = vsel %vm7822_vm13, %v9835_v24, -inf  ;;  %v9934_v56 = vmax.f32 %v9932_v63, %v9933_v27 }
 0x6f1   : > { %v9877_v21 = vrot.slane %v9876_v48, 4  ;;  %v9891_v49 = vrot.slane %v9890_v46, 4  ;;  %v9885_v19 = vmax.f32 %v9883_v43, %v9884_v55  ;;  %v9941_v52 = vmax.f32 %v9939_v14, %v9940_v45 }
 0x6f2   : > { %v9947_v61 = vrot.slane %v9946_v37, 4  ;;  %v9872_v54 = vrot.slane %v9871_v32, 2  ;;  %v14565_v41 = vmax.f32 %v9927_v34, %v9928_v33  ;;  %v9935_v50 = vrot.slane %v9934_v56, 2 }
 0x6f3   : > { %v9878_v9 = vmax.f32 %v9876_v48, %v9877_v21  ;;  %v9892_v22 = vmax.f32 %v9890_v46, %v9891_v49  ;;  %v9886_v4 = vrot.slane %v9885_v19, 2  ;;  %v9843_v26 = vrot.slane %v9780_v8, %v13767_v7 }
 0x6f4   : > { %v9942_v0 = vrot.slane %v9941_v52, 2  ;;  %v9948_v60 = vmax.f32 %v9946_v37, %v9947_v61  ;;  %v9873_v12 = vmax.f32 %v9871_v32, %v9872_v54  ;;  %v9850_v17 = vrot.slane %v9836_v51, %v13767_v7 }
 0x6f5   : > { %v9930_v47 = vrot.slane %v14565_v41, 1  ;;  %v9851_v5 = vcombine.high %v9843_v26, %v9843_v26  ;;  %v9953_v16 = vsel %vm7822_vm13, %v9843_v26, -inf  ;;  %v9802_v38 = vcombine.high %v9778_v20, %v9778_v20 }
 0x6f6   : > { %v14571_v57 = vmax.f32 %v9934_v56, %v9935_v50  ;;  %v9879_v23 = vrot.slane %v9878_v9, 2  ;;  %v9893_v39 = vrot.slane %v9892_v22, 2  ;;  %v9852_v2 = vcombine.high %v9850_v17, %v9850_v17 }
 0x6f7   : > { %v9887_v62 = vmax.f32 %v9885_v19, %v9886_v4  ;;  %v9960_v59 = vsel %vm7822_vm13, %v9851_v5, -inf  ;;  %v9967_v11 = vsel %vm7822_vm13, %v9850_v17, -inf  ;;  %v9809_v25 = vrot.slane %v9778_v20, %v13767_v7 }
 0x6f8   : > { %v14576_v29 = vmax.f32 %v9941_v52, %v9942_v0  ;;  %v9954_v31 = vrot.slane %v9953_v16, 4  ;;  %v9961_v15 = vrot.slane %v9960_v59, 4  ;;  %v9968_v1 = vrot.slane %v9967_v11, 4 }
 0x6f9   : > { %v9949_v42 = vrot.slane %v9948_v60, 2  ;;  %v9974_v36 = vsel %vm7822_vm13, %v9852_v2, -inf  ;;  %v9816_v53 = vrot.slane %v9802_v38, %v13767_v7  ;;  %v9817_v44 = vcombine.high %v9809_v25, %v9809_v25 }
 0x6fa   : > { %v9874_v3 = vrot.slane %v9873_v12, 1  ;;  %v9880_v58 = vmax.f32 %v9878_v9, %v9879_v23  ;;  %v9894_v18 = vmax.f32 %v9892_v22, %v9893_v39  ;;  %v9975_v28 = vrot.slane %v9974_v36, 4 }
 0x6fb   : > { %v9888_v40 = vrot.slane %v9887_v62, 1  ;;  %v9818_v10 = vcombine.high %v9816_v53, %v9816_v53  ;;  %v9897_v63 = vsel %vm7822_vm13, %v9809_v25, -inf  ;;  %v9904_v30 = vsel %vm7822_vm13, %v9817_v44, -inf }
 0x6fc   : > { %v9955_v35 = vmax.f32 %v9953_v16, %v9954_v31  ;;  %v9962_v24 = vmax.f32 %v9960_v59, %v9961_v15  ;;  %v9969_v34 = vmax.f32 %v9967_v11, %v9968_v1  ;;  %v9898_v14 = vrot.slane %v9897_v63, 4 }
 0x6fd   : > { %v9976_v13 = vmax.f32 %v9974_v36, %v9975_v28  ;;  %v9905_v27 = vrot.slane %v9904_v30, 4  ;;  %v9911_v43 = vsel %vm7822_vm13, %v9816_v53, -inf  ;;  %v9918_v7 = vsel %vm7822_vm13, %v9818_v10, -inf }
 0x6fe   : > { %v9875_v48 = vmax.f32 %v9873_v12, %v9874_v3  ;;  %v9881_v8 = vrot.slane %v9880_v58, 1  ;;  %v9895_v45 = vrot.slane %v9894_v18, 1  ;;  %v9899_v32 = vmax.f32 %v9897_v63, %v9898_v14 }
 0x6ff   : > { %v9889_v55 = vmax.f32 %v9887_v62, %v9888_v40  ;;  %v9906_v46 = vmax.f32 %v9904_v30, %v9905_v27  ;;  %v9912_v33 = vrot.slane %v9911_v43, 4  ;;  %v9919_v37 = vrot.slane %v9918_v7, 4 }
 0x700   : > { %v9956_v6 = vrot.slane %v9955_v35, 2  ;;  %v9963_v56 = vrot.slane %v9962_v24, 2  ;;  %v9970_v21 = vrot.slane %v9969_v34, 2  ;;  %v9900_v49 = vrot.slane %v9899_v32, 2 }
 0x701   : > { %v9977_v19 = vrot.slane %v9976_v13, 2  ;;  %v9907_v52 = vrot.slane %v9906_v46, 2  ;;  %v9913_v61 = vmax.f32 %v9911_v43, %v9912_v33  ;;  %v9920_v54 = vmax.f32 %v9918_v7, %v9919_v37 }
 0x702   : > { %v9950_v51 = vmax.f32 %v9948_v60, %v9949_v42  ;;  %v9882_v20 = vmax.f32 %v9880_v58, %v9881_v8  ;;  %v9896_v50 = vmax.f32 %v9894_v18, %v9895_v45  ;;  %v9901_v9 = vmax.f32 %v9899_v32, %v9900_v49 }
 0x703   : > { %v9990_v22 = vsel %vm9989_vm10, %v9889_v55, %v9875_v48  ;;  %v9908_v4 = vmax.f32 %v9906_v46, %v9907_v52  ;;  %v9914_v26 = vrot.slane %v9913_v61, 2  ;;  %v9921_v0 = vrot.slane %v9920_v54, 2 }
 0x704   : > { %v9957_v12 = vmax.f32 %v9955_v35, %v9956_v6  ;;  %v9964_v17 = vmax.f32 %v9962_v24, %v9963_v56  ;;  %v9971_v5 = vmax.f32 %v9969_v34, %v9970_v21  ;;  %v9902_v16 = vrot.slane %v9901_v9, 1 }
 0x705   : > { %v9978_v38 = vmax.f32 %v9976_v13, %v9977_v19  ;;  %v9909_v23 = vrot.slane %v9908_v4, 1  ;;  %v9915_v39 = vmax.f32 %v9913_v61, %v9914_v26  ;;  %v9922_v2 = vmax.f32 %v9920_v54, %v9921_v0 }
 0x706   : > { %v9937_v62 = vrot.slane %v14571_v57, 1  ;;  %v9944_v60 = vrot.slane %v14576_v29, 1  ;;  %v10006_v59 = vsel %vm9989_vm10, %v9896_v50, %v9882_v20  ;;  %v9903_v11 = vmax.f32 %v9901_v9, %v9902_v16 }
 0x707   : > { %v9951_v25 = vrot.slane %v9950_v51, 1  ;;  %v9910_v31 = vmax.f32 %v9908_v4, %v9909_v23  ;;  %v9916_v15 = vrot.slane %v9915_v39, 1  ;;  %v9923_v1 = vrot.slane %v9922_v2, 1 }
 0x708   : > { %v9958_v42 = vrot.slane %v9957_v12, 1  ;;  %v9965_v36 = vrot.slane %v9964_v17, 1  ;;  %v9972_v53 = vrot.slane %v9971_v5, 1  ;;  %v9991_v44 = vsel %vm6012_vm2, %v9903_v11, %v9990_v22 }
 0x709   : > { %v9979_v3 = vrot.slane %v9978_v38, 1  ;;  %v9917_v58 = vmax.f32 %v9915_v39, %v9916_v15  ;;  %v9924_v18 = vmax.f32 %v9922_v2, %v9923_v1  ;;  %v10007_v28 = vsel %vm6012_vm2, %v9910_v31, %v10006_v59 }
 0x70a   : > { %v9931_v40 = vmax.f32 %v14565_v41, %v9930_v47  ;;  %v9938_v10 = vmax.f32 %v14571_v57, %v9937_v62  ;;  %v9945_v63 = vmax.f32 %v14576_v29, %v9944_v60  ;;  %v9952_v30 = vmax.f32 %v9950_v51, %v9951_v25 }
 0x70b   : > { %v9992_v35 = vsel %vm6014_vm3, %v9917_v58, %v9991_v44  ;;  %v10008_v24 = vsel %vm6014_vm3, %v9924_v18, %v10007_v28  ;;  %v9959_v34 = vmax.f32 %v9957_v12, %v9958_v42  ;;  %v9966_v14 = vmax.f32 %v9964_v17, %v9965_v36 }
 0x70c   : > { %v9993_v13 = vsel %vm6016_vm4, %v9931_v40, %v9992_v35  ;;  %v10009_v27 = vsel %vm6016_vm4, %v9938_v10, %v10008_v24  ;;  %v9973_v43 = vmax.f32 %v9971_v5, %v9972_v53  ;;  %v9980_v7 = vmax.f32 %v9978_v38, %v9979_v3 }
 0x70d   : > { %v9994_v41 = vsel %vm6018_vm5, %v9945_v63, %v9993_v13  ;;  %v10010_v47 = vsel %vm6018_vm5, %v9952_v30, %v10009_v27 }
 0x70e   : > { %v9995_v57 = vsel %vm6020_vm6, %v9959_v34, %v9994_v41  ;;  %v10011_v29 = vsel %vm6020_vm6, %v9966_v14, %v10010_v47 }
 0x70f   : > { %v9996_v48 = vsel %vm6022_vm7, %v9973_v43, %v9995_v57  ;;  %v10012_v8 = vsel %vm6022_vm7, %v9980_v7, %v10011_v29 }
 0x710   : > { %10014 = vst [vmem:[%s251_s30] sm:$0xff] %v9996_v48  ;;  %10015 = vst [vmem:[%s251_s30 + $0x8] sm:$0xff] %v10012_v8 }
 0x711 PF: > { %s16_s21 = sadd.s32 1, %s11587_s21  }
 0x712   : > { %p13_p4 = scmp.ge.s32.totalorder %s16_s21, 4  }
 0x714   :  { %15 = sbr.rel (!%p13_p4) target bundleno = 1 (0x1), region = 90 }

</bundles_post_ra>
